<compile_context>
chip_gen: v5e
topology: v5e:2x2
jax: 0.10.0
libtpu: 0.0.40
codegen_flags: <defaults>
</compile_context>

<pallas_src>
import functools

import jax
import jax.numpy as jnp
from jax.experimental import pallas as pl
from jax.experimental.pallas import tpu as pltpu


def _round_up(x, m):
    return ((x + m - 1) // m) * m


@functools.lru_cache(maxsize=1)
def _vmem_capacity_bytes():
    # Per-TensorCore VMEM; fall back to the smallest current part (v7x: 64 MiB) so the tile
    # picker stays safe when the query is unavailable.
    try:
        return int(pltpu.get_tpu_info().vmem_capacity_bytes)
    except Exception:
        return 64 * 1024 * 1024


# --------------------------------------------------------------- LSTM recurrent kernel
def _pick_time_tile(B, L, H4, H, cap):
    # Timesteps per grid step: amortize per-grid-step overhead over Lt recurrent steps.
    budget = cap // 2
    for lt in (16, 8):
        if L < lt:
            continue
        blocks = 2 * B * lt * (H4 + H) * 4          # double-buffered gx + out blocks (f32)
        whh = 2 * 2 * H * H4                        # double-buffered resident bf16 W_hh
        if blocks + whh <= budget:
            return lt
    return min(L, 8)


def lstm_block_kernel(gx_ref, whh_ref, o_ref, h_scr, c_scr):
    """Lt timesteps of the recurrence for one batch tile.

    gx_ref : (tb, Lt, 4H) f32   precomputed x_t @ W_ih^T + b (input GEMM hoisted outside)
    whh_ref: (H, 4H)      bf16  recurrent weights (grid-invariant, resident)
    o_ref  : (tb, Lt, H)  f32   hidden states for these timesteps
    h_scr, c_scr: (tb, H) f32   carried state (reset at the first time block per batch tile)
    """
    @pl.when(pl.program_id(1) == 0)
    def _():
        h_scr[...] = jnp.zeros_like(h_scr)
        c_scr[...] = jnp.zeros_like(c_scr)

    H = h_scr.shape[1]
    Lt = gx_ref.shape[1]
    whh = whh_ref[...]
    h = h_scr[...]
    c = c_scr[...]
    for lt in range(Lt):                             # static unroll over the time block
        gates = gx_ref[:, lt, :] + jnp.dot(h.astype(whh.dtype), whh,
                                           preferred_element_type=jnp.float32)   # (tb, 4H)
        i = jax.nn.sigmoid(gates[:, 0 * H:1 * H])
        f = jax.nn.sigmoid(gates[:, 1 * H:2 * H])
        g = jnp.tanh(gates[:, 2 * H:3 * H])
        o = jax.nn.sigmoid(gates[:, 3 * H:4 * H])
        c = f * c + i * g
        h = o * jnp.tanh(c)
        o_ref[:, lt, :] = h.astype(o_ref.dtype)
    h_scr[...] = h
    c_scr[...] = c


def lstm_pallas(x_blf, wih_t, whh_t, bias):
    """x_blf: (B, L, Fin) f32; wih_t: (Fin, 4H) bf16; whh_t: (H, 4H) bf16; bias: (1, 4H) f32."""
    B, L, Fin = x_blf.shape
    H4 = whh_t.shape[1]
    H = H4 // 4
    cap = _vmem_capacity_bytes()

    # Hoisted, time-batched input projection: one (B*L, Fin) x (Fin, 4H) MXU GEMM (bf16 in,
    # f32 accumulate).  Kept batch-major -> no HBM transposes anywhere in the pipeline.
    gx = jnp.dot(x_blf.reshape(B * L, Fin).astype(jnp.bfloat16), wih_t,
                 preferred_element_type=jnp.float32) + bias               # (B*L, 4H) f32
    gx = gx.reshape(B, L, H4)

    Lt = _pick_time_tile(B, L, H4, H, cap)
    L_pad = _round_up(L, Lt)
    if L_pad != L:
        # Extra zero timesteps at the end only produce extra hidden states that are sliced
        # off; the forward recurrence of the valid steps is unaffected.
        gx = jnp.pad(gx, ((0, 0), (0, L_pad - L), (0, 0)))

    # Single batch tile: on single-TensorCore chips (v5e/v6e) splitting the batch only
    # shrinks the MXU M-dim and doubles the number of grid steps.
    tb = B

    out = pl.pallas_call(
        lstm_block_kernel,
        out_shape=jax.ShapeDtypeStruct((B, L_pad, H), jnp.float32),
        grid_spec=pltpu.PrefetchScalarGridSpec(
            num_scalar_prefetch=0,
            grid=(B // tb, L_pad // Lt),                                  # batch, time(serial)
            in_specs=[
                pl.BlockSpec((tb, Lt, H4), lambda b, t: (b, t, 0)),       # gx for Lt steps
                pl.BlockSpec((H, H4), lambda b, t: (0, 0)),               # resident W_hh
            ],
            out_specs=pl.BlockSpec((tb, Lt, H), lambda b, t: (b, t, 0)),
            scratch_shapes=[pltpu.VMEM((tb, H), jnp.float32),
                            pltpu.VMEM((tb, H), jnp.float32)],
        ),
        compiler_params=pltpu.CompilerParams(
            dimension_semantics=("parallel", "arbitrary"),
            vmem_limit_bytes=int(min(cap * 3 // 4, 100 * 1024 * 1024))),
    )(gx, whh_t)
    if L_pad != L:
        out = out[:, :L, :]
    return out


# --------------------------------------------------------- SoftDotAttention kernel
def attn_kernel(h_ref, ctx_ref, win_ref, woc_ref, woh_ref, o_ref):
    """SoftDotAttention (h_tilde branch) for one tile of rows.

    h_ref  : (tm, H)     f32  query rows (ctx from the first LSTM)
    ctx_ref: (tm, K, F)  f32  per-row feature views (f32 straight from HBM, no standalone cast)
    win_ref: (H, F) bf16; woc_ref: (F, H) bf16; woh_ref: (H, H) bf16
    o_ref  : (tm, H)     f32
    """
    h = h_ref[...].astype(jnp.bfloat16)
    ctx = ctx_ref[...]                                                    # (tm, K, F) f32

    # target = linear_in(h): dense (tm, H) x (H, F) MXU matmul, f32 accumulate.
    target = jnp.dot(h, win_ref[...], preferred_element_type=jnp.float32)        # (tm, F)

    # Attention logits: per-row dot products over F done on the VPU (f32 mul + f32 reduce)
    # instead of tm independent M=1 MXU matmuls; hidden under the feature DMA.
    logits = jnp.sum(ctx * target[:, None, :], axis=-1)                          # (tm, K)

    # softmax over the K views (f32)
    m = jnp.max(logits, axis=-1, keepdims=True)
    e = jnp.exp(logits - m)
    attn = e * pl.reciprocal(jnp.sum(e, axis=-1, keepdims=True), approx=True)    # (tm, K)

    # Weighted context: broadcast-multiply + reduce over K (VPU/XLU, also hidden under DMA).
    weighted = jnp.sum(ctx * attn[:, :, None], axis=1)                           # (tm, F)

    # h_tilde = tanh(linear_out(cat(weighted, h))) — concat weight split into two MXU matmuls.
    h_tilde = jnp.tanh(
        jnp.dot(weighted.astype(jnp.bfloat16), woc_ref[...],
                preferred_element_type=jnp.float32)
        + jnp.dot(h, woh_ref[...], preferred_element_type=jnp.float32))          # (tm, H)
    o_ref[...] = h_tilde.astype(o_ref.dtype)


def _pick_attn_row_tile(R, K, F, H, cap):
    # VMEM-padding-aware: the (tm, K, F) f32 block pads K -> mult of 8 sublanes and
    # F -> mult of 128 lanes.  Budget covers the double-buffered feature block, the two
    # broadcast-multiply temporaries, and the double-buffered bf16 weights.
    F_pad = _round_up(F, 128)
    H_pad = _round_up(H, 128)
    K_pad = _round_up(K, 8)
    budget = int(cap * 0.6)
    fixed = 2 * 2 * (H * F_pad + _round_up(F, 8) * H_pad + H * H_pad)    # bf16 weights, 2 bufs
    tm = 8
    for cand in (128, 64, 32, 16, 8):
        ctx_tile = cand * K_pad * F_pad * 4
        small = 4 * cand * H_pad * 4 + 2 * cand * F_pad * 4              # h/out blocks, target/weighted
        if fixed + 4 * ctx_tile + small <= budget:                       # 2x double-buffer + 2x temps
            tm = cand
            break
    tm = min(tm, max(8, _round_up(R, 8)))
    # Prefer a tile that divides R so the (large) feature tensor never needs an HBM pad copy.
    while R % tm != 0 and tm > 8:
        tm //= 2
    return tm


def soft_dot_attention_pallas(h, ctx_feat, win_t, woc_t, woh_t):
    """h: (R, H) f32; ctx_feat: (R, K, F) f32; weights pre-transposed bf16."""
    R, H = h.shape
    _, K, F = ctx_feat.shape
    cap = _vmem_capacity_bytes()

    tm = _pick_attn_row_tile(R, K, F, H, cap)
    R_pad = _round_up(R, tm)
    if R_pad != R:
        # Zero rows give a uniform softmax and h_tilde = 0; they are sliced off below.
        h = jnp.pad(h, ((0, R_pad - R), (0, 0)))
        ctx_feat = jnp.pad(ctx_feat, ((0, R_pad - R), (0, 0), (0, 0)))

    out = pl.pallas_call(
        attn_kernel,
        out_shape=jax.ShapeDtypeStruct((R_pad, H), jnp.float32),
        grid_spec=pltpu.PrefetchScalarGridSpec(
            num_scalar_prefetch=0,
            grid=(R_pad // tm,),
            in_specs=[
                pl.BlockSpec((tm, H), lambda i: (i, 0)),
                pl.BlockSpec((tm, K, F), lambda i: (i, 0, 0)),
                pl.BlockSpec((H, F), lambda i: (0, 0)),                  # grid-invariant weights
                pl.BlockSpec((F, H), lambda i: (0, 0)),
                pl.BlockSpec((H, H), lambda i: (0, 0)),
            ],
            out_specs=pl.BlockSpec((tm, H), lambda i: (i, 0)),
        ),
        compiler_params=pltpu.CompilerParams(
            dimension_semantics=("parallel",),
            vmem_limit_bytes=int(min(cap * 3 // 4, 100 * 1024 * 1024))),
    )(h, ctx_feat, win_t, woc_t, woh_t)
    return out[:R]


# ------------------------------------------------------- parameter preprocessing (one-time)
def prepare_speaker_encoder_params(params, compute_dtype=jnp.bfloat16):
    """Transpose / cast / fuse the PyTorch-layout weights once at load time."""
    def lstm_prep(w_ih, w_hh, b_ih, b_hh):
        return dict(
            wih_t=jnp.asarray(w_ih, compute_dtype).T,                     # (Fin, 4H) bf16
            whh_t=jnp.asarray(w_hh, compute_dtype).T,                     # (H, 4H)   bf16
            bias=(jnp.asarray(b_ih, jnp.float32)
                  + jnp.asarray(b_hh, jnp.float32)).reshape(1, -1),       # (1, 4H)   f32
        )

    F = params["w_in"].shape[0]
    w_out = jnp.asarray(params["w_out"], compute_dtype)                   # (H, F + H)
    return {
        "lstm1": lstm_prep(params["w_ih1"], params["w_hh1"], params["b_ih1"], params["b_hh1"]),
        "lstm2": lstm_prep(params["w_ih2"], params["w_hh2"], params["b_ih2"], params["b_hh2"]),
        "attn": dict(
            win_t=jnp.asarray(params["w_in"], compute_dtype).T,           # (H, F)
            woc_t=w_out[:, :F].T,                                         # (F, H) weighted-ctx half
            woh_t=w_out[:, F:].T,                                         # (H, H) h half
        ),
    }


# ------------------------------------------------------------ SpeakerEncoder forward
def speaker_encoder_forward(prep, action_embeds, feature, lengths=None):
    """action_embeds: (B, L, F); feature: (B, L, K, F) -> (B, L, H)."""
    # TODO(synk): drop / drop3 (nn.Dropout) are identity at inference; training-mode dropout
    # would need pltpu.prng_* inside the kernels.  `lengths` is unused, matching the given
    # PyTorch forward (it never packs the sequence).
    B, L, F = action_embeds.shape
    K = feature.shape[2]

    ctx = lstm_pallas(action_embeds, **prep["lstm1"])                     # (B, L, H) f32
    H = ctx.shape[-1]
    x = soft_dot_attention_pallas(
        ctx.reshape(B * L, H),                                            # free reshape, no transpose
        feature.reshape(B * L, K, F),                                     # f32 fed straight in
        **prep["attn"])                                                   # (B*L, H) f32
    out = lstm_pallas(x.reshape(B, L, H), **prep["lstm2"])                # (B, L, H)
    return out


# --------------------------------------------------------------- pure-JAX reference
def _lstm_ref(x, w_ih, w_hh, b_ih, b_hh):
    B, L, _ = x.shape
    H = w_hh.shape[1]

    def step(carry, x_t):
        h, c = carry
        gates = x_t @ w_ih.T + h @ w_hh.T + b_ih + b_hh
        i, f, g, o = jnp.split(gates, 4, axis=-1)
        i, f, o = jax.nn.sigmoid(i), jax.nn.sigmoid(f), jax.nn.sigmoid(o)
        g = jnp.tanh(g)
        c = f * c + i * g
        h = o * jnp.tanh(c)
        return (h, c), h

    init = (jnp.zeros((B, H)), jnp.zeros((B, H)))
    _, ys = jax.lax.scan(step, init, jnp.transpose(x, (1, 0, 2)))
    return jnp.transpose(ys, (1, 0, 2))


def _forward_ref(params, action_embeds, feature):
    B, L, F = action_embeds.shape
    K = feature.shape[2]
    H = params["w_hh1"].shape[1]
    ctx = _lstm_ref(action_embeds, params["w_ih1"], params["w_hh1"],
                    params["b_ih1"], params["b_hh1"])
    h = ctx.reshape(B * L, H)
    c = feature.reshape(B * L, K, F)
    target = h @ params["w_in"].T
    logits = jnp.einsum("rkf,rf->rk", c, target)
    attn = jax.nn.softmax(logits, axis=-1)
    weighted = jnp.einsum("rk,rkf->rf", attn, c)
    h_tilde = jnp.tanh(jnp.concatenate([weighted, h], -1) @ params["w_out"].T)
    x = h_tilde.reshape(B, L, H)
    return _lstm_ref(x, params["w_ih2"], params["w_hh2"],
                     params["b_ih2"], params["b_hh2"])


# ----------------------------------------------------------------------------- main
if __name__ == "__main__":
    # Small shapes consistent with the module (real: F=2052, K=36, H=512, L~80).
    B, L, K, F, H = 2, 8, 36, 32, 32

    key = jax.random.PRNGKey(0)
    ks = jax.random.split(key, 12)
    s = 0.1
    params = {
        # first LSTM: input F -> hidden H (unidirectional)
        "w_ih1": s * jax.random.normal(ks[0], (4 * H, F), jnp.float32),
        "w_hh1": s * jax.random.normal(ks[1], (4 * H, H), jnp.float32),
        "b_ih1": s * jax.random.normal(ks[2], (4 * H,), jnp.float32),
        "b_hh1": s * jax.random.normal(ks[3], (4 * H,), jnp.float32),
        # SoftDotAttention: linear_in (F, H), linear_out (H, F + H) on cat(weighted, h)
        "w_in": s * jax.random.normal(ks[4], (F, H), jnp.float32),
        "w_out": s * jax.random.normal(ks[5], (H, F + H), jnp.float32),
        # post LSTM: input H -> hidden H
        "w_ih2": s * jax.random.normal(ks[6], (4 * H, H), jnp.float32),
        "w_hh2": s * jax.random.normal(ks[7], (4 * H, H), jnp.float32),
        "b_ih2": s * jax.random.normal(ks[8], (4 * H,), jnp.float32),
        "b_hh2": s * jax.random.normal(ks[9], (4 * H,), jnp.float32),
    }

    action_embeds = jax.random.normal(ks[10], (B, L, F), jnp.float32)
    feature = jax.random.normal(ks[11], (B, L, K, F), jnp.float32)
    lengths = jnp.full((B,), L, jnp.int32)   # unused, as in the PyTorch module

    prep = prepare_speaker_encoder_params(params)      # one-time transpose/cast/bias-fuse
    out = jax.jit(speaker_encoder_forward)(prep, action_embeds, feature, lengths)
    out = jax.block_until_ready(out)
    assert out.shape == (B, L, H)

    ref = _forward_ref(params, action_embeds, feature)
    err = jnp.max(jnp.abs(out - ref))
    assert jnp.allclose(out, ref, atol=2e-2, rtol=2e-2), f"max abs err {err}"

    print("KERNEL_OK")
</pallas_src>

<mosaic_0001>
module attributes {stable_mosaic.version = 11 : i64} {
  func.func @attn_kernel(%arg0: i32, %arg1: memref<16x32xf32, #tpu.memory_space<vmem>>, %arg2: memref<16x36x32xf32, #tpu.memory_space<vmem>>, %arg3: memref<32x32xbf16, #tpu.memory_space<vmem>>, %arg4: memref<32x32xbf16, #tpu.memory_space<vmem>>, %arg5: memref<32x32xbf16, #tpu.memory_space<vmem>>, %arg6: memref<16x32xf32, #tpu.memory_space<vmem>>) attributes {dimension_semantics = [#tpu.dimension_semantics<parallel>], iteration_bounds = array<i64: 1>, scalar_prefetch = 0 : i64, scratch_operands = 0 : i64, tpu.core_type = #tpu.core_type<tc>, window_params = [{transform_indices = @transform_0, window_bounds = array<i64: 16, 32>}, {transform_indices = @transform_1, window_bounds = array<i64: 16, 36, 32>}, {pipeline_mode = #tpu.pipeline_mode<synchronous>, transform_indices = @transform_2, window_bounds = array<i64: 32, 32>}, {pipeline_mode = #tpu.pipeline_mode<synchronous>, transform_indices = @transform_3, window_bounds = array<i64: 32, 32>}, {pipeline_mode = #tpu.pipeline_mode<synchronous>, transform_indices = @transform_4, window_bounds = array<i64: 32, 32>}, {transform_indices = @transform_5, window_bounds = array<i64: 16, 32>}]} {
    %c0 = arith.constant 0 : index
    %c0_0 = arith.constant 0 : index
    %0 = vector.load %arg1[%c0, %c0_0] : memref<16x32xf32, #tpu.memory_space<vmem>>, vector<16x32xf32>
    %1 = arith.truncf %0 : vector<16x32xf32> to vector<16x32xbf16>
    %c0_1 = arith.constant 0 : index
    %c0_2 = arith.constant 0 : index
    %c0_3 = arith.constant 0 : index
    %2 = vector.load %arg2[%c0_1, %c0_2, %c0_3] : memref<16x36x32xf32, #tpu.memory_space<vmem>>, vector<16x36x32xf32>
    %c0_4 = arith.constant 0 : index
    %c0_5 = arith.constant 0 : index
    %3 = vector.load %arg3[%c0_4, %c0_5] : memref<32x32xbf16, #tpu.memory_space<vmem>>, vector<32x32xbf16>
    %cst = arith.constant dense<0.000000e+00> : vector<16x32xf32>
    %4 = tpu.matmul %1, %3, %cst {dimension_numbers = #tpu.dot_dimension_numbers<[1], [0], [0], [1], [0, 0, 1, 1], [], []>} : vector<16x32xbf16>, vector<32x32xbf16>, vector<16x32xf32> -> vector<16x32xf32>
    %5 = vector.shape_cast %4 : vector<16x32xf32> to vector<16x1x32xf32>
    %6 = vector.broadcast %5 : vector<16x1x32xf32> to vector<16x36x32xf32>
    %7 = arith.mulf %2, %6 : vector<16x36x32xf32>
    %cst_6 = arith.constant dense<0.000000e+00> : vector<16x36xf32>
    %8 = vector.multi_reduction <add>, %7, %cst_6 [2] : vector<16x36x32xf32> to vector<16x36xf32>
    %cst_7 = arith.constant dense<0xFF800000> : vector<16xf32>
    %9 = vector.multi_reduction <maximumf>, %8, %cst_7 [1] : vector<16x36xf32> to vector<16xf32>
    %10 = vector.shape_cast %9 : vector<16xf32> to vector<16x1xf32>
    %11 = vector.broadcast %10 : vector<16x1xf32> to vector<16x36xf32>
    %12 = arith.subf %8, %11 : vector<16x36xf32>
    %13 = math.exp %12 : vector<16x36xf32>
    %cst_8 = arith.constant dense<0.000000e+00> : vector<16xf32>
    %14 = vector.multi_reduction <add>, %13, %cst_8 [1] : vector<16x36xf32> to vector<16xf32>
    %15 = vector.shape_cast %14 : vector<16xf32> to vector<16x1xf32>
    %16 = tpu.reciprocal %15 {approx = true} : vector<16x1xf32> -> vector<16x1xf32>
    %17 = vector.broadcast %16 : vector<16x1xf32> to vector<16x36xf32>
    %18 = arith.mulf %13, %17 : vector<16x36xf32>
    %19 = vector.shape_cast %18 : vector<16x36xf32> to vector<16x36x1xf32>
    %20 = vector.broadcast %19 : vector<16x36x1xf32> to vector<16x36x32xf32>
    %21 = arith.mulf %2, %20 : vector<16x36x32xf32>
    %cst_9 = arith.constant dense<0.000000e+00> : vector<16x32xf32>
    %22 = vector.multi_reduction <add>, %21, %cst_9 [1] : vector<16x36x32xf32> to vector<16x32xf32>
    %23 = arith.truncf %22 : vector<16x32xf32> to vector<16x32xbf16>
    %c0_10 = arith.constant 0 : index
    %c0_11 = arith.constant 0 : index
    %24 = vector.load %arg4[%c0_10, %c0_11] : memref<32x32xbf16, #tpu.memory_space<vmem>>, vector<32x32xbf16>
    %cst_12 = arith.constant dense<0.000000e+00> : vector<16x32xf32>
    %25 = tpu.matmul %23, %24, %cst_12 {dimension_numbers = #tpu.dot_dimension_numbers<[1], [0], [0], [1], [0, 0, 1, 1], [], []>} : vector<16x32xbf16>, vector<32x32xbf16>, vector<16x32xf32> -> vector<16x32xf32>
    %c0_13 = arith.constant 0 : index
    %c0_14 = arith.constant 0 : index
    %26 = vector.load %arg5[%c0_13, %c0_14] : memref<32x32xbf16, #tpu.memory_space<vmem>>, vector<32x32xbf16>
    %cst_15 = arith.constant dense<0.000000e+00> : vector<16x32xf32>
    %27 = tpu.matmul %1, %26, %cst_15 {dimension_numbers = #tpu.dot_dimension_numbers<[1], [0], [0], [1], [0, 0, 1, 1], [], []>} : vector<16x32xbf16>, vector<32x32xbf16>, vector<16x32xf32> -> vector<16x32xf32>
    %28 = arith.addf %25, %27 : vector<16x32xf32>
    %29 = math.tanh %28 : vector<16x32xf32>
    %c0_16 = arith.constant 0 : index
    %c0_17 = arith.constant 0 : index
    %30 = vector.load %arg6[%c0_16, %c0_17] : memref<16x32xf32, #tpu.memory_space<vmem>>, vector<16x32xf32>
    tpu.vector_store %arg6[%c0_16, %c0_17], %29 {strides = array<i32>} : memref<16x32xf32, #tpu.memory_space<vmem>>, vector<16x32xf32>,
    return
  }
  func.func @transform_0(%arg0: i32) -> (i32, i32) {
    %c0_i32 = arith.constant 0 : i32
    %c0_i32_0 = arith.constant 0 : i32
    return %arg0, %c0_i32 : i32, i32
  }
  func.func @transform_1(%arg0: i32) -> (i32, i32, i32) {
    %c0_i32 = arith.constant 0 : i32
    %c0_i32_0 = arith.constant 0 : i32
    %c0_i32_1 = arith.constant 0 : i32
    return %arg0, %c0_i32, %c0_i32_0 : i32, i32, i32
  }
  func.func @transform_2(%arg0: i32) -> (i32, i32) {
    %c0_i32 = arith.constant 0 : i32
    %c0_i32_0 = arith.constant 0 : i32
    %c0_i32_1 = arith.constant 0 : i32
    return %c0_i32, %c0_i32_0 : i32, i32
  }
  func.func @transform_3(%arg0: i32) -> (i32, i32) {
    %c0_i32 = arith.constant 0 : i32
    %c0_i32_0 = arith.constant 0 : i32
    %c0_i32_1 = arith.constant 0 : i32
    return %c0_i32, %c0_i32_0 : i32, i32
  }
  func.func @transform_4(%arg0: i32) -> (i32, i32) {
    %c0_i32 = arith.constant 0 : i32
    %c0_i32_0 = arith.constant 0 : i32
    %c0_i32_1 = arith.constant 0 : i32
    return %c0_i32, %c0_i32_0 : i32, i32
  }
  func.func @transform_5(%arg0: i32) -> (i32, i32) {
    %c0_i32 = arith.constant 0 : i32
    %c0_i32_0 = arith.constant 0 : i32
    return %arg0, %c0_i32 : i32, i32
  }
}

module attributes {stable_mosaic.version = 11 : i64} {
  func.func @lstm_block_kernel(%arg0: i32, %arg1: i32, %arg2: memref<2x8x128xf32, #tpu.memory_space<vmem>>, %arg3: memref<32x128xbf16, #tpu.memory_space<vmem>>, %arg4: memref<2x8x32xf32, #tpu.memory_space<vmem>>, %arg5: memref<2x32xf32, #tpu.memory_space<vmem>>, %arg6: memref<2x32xf32, #tpu.memory_space<vmem>>) attributes {dimension_semantics = [#tpu.dimension_semantics<parallel>, #tpu.dimension_semantics<arbitrary>], iteration_bounds = array<i64: 1, 1>, scalar_prefetch = 0 : i64, scratch_operands = 2 : i64, tpu.core_type = #tpu.core_type<tc>, window_params = [{transform_indices = @transform_0, window_bounds = array<i64: 2, 8, 128>}, {pipeline_mode = #tpu.pipeline_mode<synchronous>, transform_indices = @transform_1, window_bounds = array<i64: 32, 128>}, {transform_indices = @transform_2, window_bounds = array<i64: 2, 8, 32>}]} {
    %c0_i32 = arith.constant 0 : i32
    %0 = arith.cmpi eq, %arg1, %c0_i32 : i32
    %1 = arith.extui %0 : i1 to i32
    %c0_i32_0 = arith.constant 0 : i32
    %2 = arith.cmpi ne, %1, %c0_i32_0 : i32
    scf.if %2 {
      %cst_82 = arith.constant 0.000000e+00 : f32
      %272 = vector.broadcast %cst_82 : f32 to vector<2x32xf32>
      %c0_83 = arith.constant 0 : index
      %c0_84 = arith.constant 0 : index
      %273 = vector.load %arg5[%c0_83, %c0_84] : memref<2x32xf32, #tpu.memory_space<vmem>>, vector<2x32xf32>
      tpu.vector_store %arg5[%c0_83, %c0_84], %272 {strides = array<i32>} : memref<2x32xf32, #tpu.memory_space<vmem>>, vector<2x32xf32>,
      %cst_85 = arith.constant 0.000000e+00 : f32
      %274 = vector.broadcast %cst_85 : f32 to vector<2x32xf32>
      %c0_86 = arith.constant 0 : index
      %c0_87 = arith.constant 0 : index
      %275 = vector.load %arg6[%c0_86, %c0_87] : memref<2x32xf32, #tpu.memory_space<vmem>>, vector<2x32xf32>
      tpu.vector_store %arg6[%c0_86, %c0_87], %274 {strides = array<i32>} : memref<2x32xf32, #tpu.memory_space<vmem>>, vector<2x32xf32>,
    } else {
    }
    %c0 = arith.constant 0 : index
    %c0_1 = arith.constant 0 : index
    %3 = vector.load %arg3[%c0, %c0_1] : memref<32x128xbf16, #tpu.memory_space<vmem>>, vector<32x128xbf16>
    %c0_2 = arith.constant 0 : index
    %c0_3 = arith.constant 0 : index
    %4 = vector.load %arg5[%c0_2, %c0_3] : memref<2x32xf32, #tpu.memory_space<vmem>>, vector<2x32xf32>
    %c0_4 = arith.constant 0 : index
    %c0_5 = arith.constant 0 : index
    %5 = vector.load %arg6[%c0_4, %c0_5] : memref<2x32xf32, #tpu.memory_space<vmem>>, vector<2x32xf32>
    %c0_6 = arith.constant 0 : index
    %c0_7 = arith.constant 0 : index
    %c0_8 = arith.constant 0 : index
    %6 = vector.load %arg2[%c0_6, %c0_7, %c0_8] : memref<2x8x128xf32, #tpu.memory_space<vmem>>, vector<2x1x128xf32>
    %7 = vector.shape_cast %6 : vector<2x1x128xf32> to vector<2x128xf32>
    %8 = arith.truncf %4 : vector<2x32xf32> to vector<2x32xbf16>
    %cst = arith.constant dense<0.000000e+00> : vector<2x128xf32>
    %9 = tpu.matmul %8, %3, %cst {dimension_numbers = #tpu.dot_dimension_numbers<[1], [0], [0], [1], [0, 0, 1, 1], [], []>} : vector<2x32xbf16>, vector<32x128xbf16>, vector<2x128xf32> -> vector<2x128xf32>
    %10 = arith.addf %7, %9 : vector<2x128xf32>
    %11 = vector.extract_strided_slice %10 {offsets = [0, 0], sizes = [2, 32], strides = [1, 1]} : vector<2x128xf32> to vector<2x32xf32>
    %12 = arith.negf %11 : vector<2x32xf32>
    %13 = math.exp %12 : vector<2x32xf32>
    %cst_9 = arith.constant 1.000000e+00 : f32
    %14 = vector.broadcast %cst_9 : f32 to vector<2x32xf32>
    %15 = arith.addf %14, %13 : vector<2x32xf32>
    %16 = arith.divf %14, %15 : vector<2x32xf32>
    %17 = vector.extract_strided_slice %10 {offsets = [0, 32], sizes = [2, 32], strides = [1, 1]} : vector<2x128xf32> to vector<2x32xf32>
    %18 = arith.negf %17 : vector<2x32xf32>
    %19 = math.exp %18 : vector<2x32xf32>
    %cst_10 = arith.constant 1.000000e+00 : f32
    %20 = vector.broadcast %cst_10 : f32 to vector<2x32xf32>
    %21 = arith.addf %20, %19 : vector<2x32xf32>
    %22 = arith.divf %20, %21 : vector<2x32xf32>
    %23 = vector.extract_strided_slice %10 {offsets = [0, 64], sizes = [2, 32], strides = [1, 1]} : vector<2x128xf32> to vector<2x32xf32>
    %24 = math.tanh %23 : vector<2x32xf32>
    %25 = vector.extract_strided_slice %10 {offsets = [0, 96], sizes = [2, 32], strides = [1, 1]} : vector<2x128xf32> to vector<2x32xf32>
    %26 = arith.negf %25 : vector<2x32xf32>
    %27 = math.exp %26 : vector<2x32xf32>
    %cst_11 = arith.constant 1.000000e+00 : f32
    %28 = vector.broadcast %cst_11 : f32 to vector<2x32xf32>
    %29 = arith.addf %28, %27 : vector<2x32xf32>
    %30 = arith.divf %28, %29 : vector<2x32xf32>
    %31 = arith.mulf %22, %5 : vector<2x32xf32>
    %32 = arith.mulf %16, %24 : vector<2x32xf32>
    %33 = arith.addf %31, %32 : vector<2x32xf32>
    %34 = math.tanh %33 : vector<2x32xf32>
    %35 = arith.mulf %30, %34 : vector<2x32xf32>
    %c0_12 = arith.constant 0 : index
    %c0_13 = arith.constant 0 : index
    %c0_14 = arith.constant 0 : index
    %36 = vector.load %arg4[%c0_12, %c0_13, %c0_14] : memref<2x8x32xf32, #tpu.memory_space<vmem>>, vector<2x1x32xf32>
    %37 = vector.shape_cast %36 : vector<2x1x32xf32> to vector<2x32xf32>
    %38 = vector.shape_cast %35 : vector<2x32xf32> to vector<2x1x32xf32>
    tpu.vector_store %arg4[%c0_12, %c0_13, %c0_14], %38 {strides = array<i32>} : memref<2x8x32xf32, #tpu.memory_space<vmem>>, vector<2x1x32xf32>,
    %c0_15 = arith.constant 0 : index
    %c1 = arith.constant 1 : index
    %c0_16 = arith.constant 0 : index
    %39 = vector.load %arg2[%c0_15, %c1, %c0_16] : memref<2x8x128xf32, #tpu.memory_space<vmem>>, vector<2x1x128xf32>
    %40 = vector.shape_cast %39 : vector<2x1x128xf32> to vector<2x128xf32>
    %41 = arith.truncf %35 : vector<2x32xf32> to vector<2x32xbf16>
    %cst_17 = arith.constant dense<0.000000e+00> : vector<2x128xf32>
    %42 = tpu.matmul %41, %3, %cst_17 {dimension_numbers = #tpu.dot_dimension_numbers<[1], [0], [0], [1], [0, 0, 1, 1], [], []>} : vector<2x32xbf16>, vector<32x128xbf16>, vector<2x128xf32> -> vector<2x128xf32>
    %43 = arith.addf %40, %42 : vector<2x128xf32>
    %44 = vector.extract_strided_slice %43 {offsets = [0, 0], sizes = [2, 32], strides = [1, 1]} : vector<2x128xf32> to vector<2x32xf32>
    %45 = arith.negf %44 : vector<2x32xf32>
    %46 = math.exp %45 : vector<2x32xf32>
    %cst_18 = arith.constant 1.000000e+00 : f32
    %47 = vector.broadcast %cst_18 : f32 to vector<2x32xf32>
    %48 = arith.addf %47, %46 : vector<2x32xf32>
    %49 = arith.divf %47, %48 : vector<2x32xf32>
    %50 = vector.extract_strided_slice %43 {offsets = [0, 32], sizes = [2, 32], strides = [1, 1]} : vector<2x128xf32> to vector<2x32xf32>
    %51 = arith.negf %50 : vector<2x32xf32>
    %52 = math.exp %51 : vector<2x32xf32>
    %cst_19 = arith.constant 1.000000e+00 : f32
    %53 = vector.broadcast %cst_19 : f32 to vector<2x32xf32>
    %54 = arith.addf %53, %52 : vector<2x32xf32>
    %55 = arith.divf %53, %54 : vector<2x32xf32>
    %56 = vector.extract_strided_slice %43 {offsets = [0, 64], sizes = [2, 32], strides = [1, 1]} : vector<2x128xf32> to vector<2x32xf32>
    %57 = math.tanh %56 : vector<2x32xf32>
    %58 = vector.extract_strided_slice %43 {offsets = [0, 96], sizes = [2, 32], strides = [1, 1]} : vector<2x128xf32> to vector<2x32xf32>
    %59 = arith.negf %58 : vector<2x32xf32>
    %60 = math.exp %59 : vector<2x32xf32>
    %cst_20 = arith.constant 1.000000e+00 : f32
    %61 = vector.broadcast %cst_20 : f32 to vector<2x32xf32>
    %62 = arith.addf %61, %60 : vector<2x32xf32>
    %63 = arith.divf %61, %62 : vector<2x32xf32>
    %64 = arith.mulf %55, %33 : vector<2x32xf32>
    %65 = arith.mulf %49, %57 : vector<2x32xf32>
    %66 = arith.addf %64, %65 : vector<2x32xf32>
    %67 = math.tanh %66 : vector<2x32xf32>
    %68 = arith.mulf %63, %67 : vector<2x32xf32>
    %c0_21 = arith.constant 0 : index
    %c1_22 = arith.constant 1 : index
    %c0_23 = arith.constant 0 : index
    %69 = vector.load %arg4[%c0_21, %c1_22, %c0_23] : memref<2x8x32xf32, #tpu.memory_space<vmem>>, vector<2x1x32xf32>
    %70 = vector.shape_cast %69 : vector<2x1x32xf32> to vector<2x32xf32>
    %71 = vector.shape_cast %68 : vector<2x32xf32> to vector<2x1x32xf32>
    tpu.vector_store %arg4[%c0_21, %c1_22, %c0_23], %71 {strides = array<i32>} : memref<2x8x32xf32, #tpu.memory_space<vmem>>, vector<2x1x32xf32>,
    %c0_24 = arith.constant 0 : index
    %c2 = arith.constant 2 : index
    %c0_25 = arith.constant 0 : index
    %72 = vector.load %arg2[%c0_24, %c2, %c0_25] : memref<2x8x128xf32, #tpu.memory_space<vmem>>, vector<2x1x128xf32>
    %73 = vector.shape_cast %72 : vector<2x1x128xf32> to vector<2x128xf32>
    %74 = arith.truncf %68 : vector<2x32xf32> to vector<2x32xbf16>
    %cst_26 = arith.constant dense<0.000000e+00> : vector<2x128xf32>
    %75 = tpu.matmul %74, %3, %cst_26 {dimension_numbers = #tpu.dot_dimension_numbers<[1], [0], [0], [1], [0, 0, 1, 1], [], []>} : vector<2x32xbf16>, vector<32x128xbf16>, vector<2x128xf32> -> vector<2x128xf32>
    %76 = arith.addf %73, %75 : vector<2x128xf32>
    %77 = vector.extract_strided_slice %76 {offsets = [0, 0], sizes = [2, 32], strides = [1, 1]} : vector<2x128xf32> to vector<2x32xf32>
    %78 = arith.negf %77 : vector<2x32xf32>
    %79 = math.exp %78 : vector<2x32xf32>
    %cst_27 = arith.constant 1.000000e+00 : f32
    %80 = vector.broadcast %cst_27 : f32 to vector<2x32xf32>
    %81 = arith.addf %80, %79 : vector<2x32xf32>
    %82 = arith.divf %80, %81 : vector<2x32xf32>
    %83 = vector.extract_strided_slice %76 {offsets = [0, 32], sizes = [2, 32], strides = [1, 1]} : vector<2x128xf32> to vector<2x32xf32>
    %84 = arith.negf %83 : vector<2x32xf32>
    %85 = math.exp %84 : vector<2x32xf32>
    %cst_28 = arith.constant 1.000000e+00 : f32
    %86 = vector.broadcast %cst_28 : f32 to vector<2x32xf32>
    %87 = arith.addf %86, %85 : vector<2x32xf32>
    %88 = arith.divf %86, %87 : vector<2x32xf32>
    %89 = vector.extract_strided_slice %76 {offsets = [0, 64], sizes = [2, 32], strides = [1, 1]} : vector<2x128xf32> to vector<2x32xf32>
    %90 = math.tanh %89 : vector<2x32xf32>
    %91 = vector.extract_strided_slice %76 {offsets = [0, 96], sizes = [2, 32], strides = [1, 1]} : vector<2x128xf32> to vector<2x32xf32>
    %92 = arith.negf %91 : vector<2x32xf32>
    %93 = math.exp %92 : vector<2x32xf32>
    %cst_29 = arith.constant 1.000000e+00 : f32
    %94 = vector.broadcast %cst_29 : f32 to vector<2x32xf32>
    %95 = arith.addf %94, %93 : vector<2x32xf32>
    %96 = arith.divf %94, %95 : vector<2x32xf32>
    %97 = arith.mulf %88, %66 : vector<2x32xf32>
    %98 = arith.mulf %82, %90 : vector<2x32xf32>
    %99 = arith.addf %97, %98 : vector<2x32xf32>
    %100 = math.tanh %99 : vector<2x32xf32>
    %101 = arith.mulf %96, %100 : vector<2x32xf32>
    %c0_30 = arith.constant 0 : index
    %c2_31 = arith.constant 2 : index
    %c0_32 = arith.constant 0 : index
    %102 = vector.load %arg4[%c0_30, %c2_31, %c0_32] : memref<2x8x32xf32, #tpu.memory_space<vmem>>, vector<2x1x32xf32>
    %103 = vector.shape_cast %102 : vector<2x1x32xf32> to vector<2x32xf32>
    %104 = vector.shape_cast %101 : vector<2x32xf32> to vector<2x1x32xf32>
    tpu.vector_store %arg4[%c0_30, %c2_31, %c0_32], %104 {strides = array<i32>} : memref<2x8x32xf32, #tpu.memory_space<vmem>>, vector<2x1x32xf32>,
    %c0_33 = arith.constant 0 : index
    %c3 = arith.constant 3 : index
    %c0_34 = arith.constant 0 : index
    %105 = vector.load %arg2[%c0_33, %c3, %c0_34] : memref<2x8x128xf32, #tpu.memory_space<vmem>>, vector<2x1x128xf32>
    %106 = vector.shape_cast %105 : vector<2x1x128xf32> to vector<2x128xf32>
    %107 = arith.truncf %101 : vector<2x32xf32> to vector<2x32xbf16>
    %cst_35 = arith.constant dense<0.000000e+00> : vector<2x128xf32>
    %108 = tpu.matmul %107, %3, %cst_35 {dimension_numbers = #tpu.dot_dimension_numbers<[1], [0], [0], [1], [0, 0, 1, 1], [], []>} : vector<2x32xbf16>, vector<32x128xbf16>, vector<2x128xf32> -> vector<2x128xf32>
    %109 = arith.addf %106, %108 : vector<2x128xf32>
    %110 = vector.extract_strided_slice %109 {offsets = [0, 0], sizes = [2, 32], strides = [1, 1]} : vector<2x128xf32> to vector<2x32xf32>
    %111 = arith.negf %110 : vector<2x32xf32>
    %112 = math.exp %111 : vector<2x32xf32>
    %cst_36 = arith.constant 1.000000e+00 : f32
    %113 = vector.broadcast %cst_36 : f32 to vector<2x32xf32>
    %114 = arith.addf %113, %112 : vector<2x32xf32>
    %115 = arith.divf %113, %114 : vector<2x32xf32>
    %116 = vector.extract_strided_slice %109 {offsets = [0, 32], sizes = [2, 32], strides = [1, 1]} : vector<2x128xf32> to vector<2x32xf32>
    %117 = arith.negf %116 : vector<2x32xf32>
    %118 = math.exp %117 : vector<2x32xf32>
    %cst_37 = arith.constant 1.000000e+00 : f32
    %119 = vector.broadcast %cst_37 : f32 to vector<2x32xf32>
    %120 = arith.addf %119, %118 : vector<2x32xf32>
    %121 = arith.divf %119, %120 : vector<2x32xf32>
    %122 = vector.extract_strided_slice %109 {offsets = [0, 64], sizes = [2, 32], strides = [1, 1]} : vector<2x128xf32> to vector<2x32xf32>
    %123 = math.tanh %122 : vector<2x32xf32>
    %124 = vector.extract_strided_slice %109 {offsets = [0, 96], sizes = [2, 32], strides = [1, 1]} : vector<2x128xf32> to vector<2x32xf32>
    %125 = arith.negf %124 : vector<2x32xf32>
    %126 = math.exp %125 : vector<2x32xf32>
    %cst_38 = arith.constant 1.000000e+00 : f32
    %127 = vector.broadcast %cst_38 : f32 to vector<2x32xf32>
    %128 = arith.addf %127, %126 : vector<2x32xf32>
    %129 = arith.divf %127, %128 : vector<2x32xf32>
    %130 = arith.mulf %121, %99 : vector<2x32xf32>
    %131 = arith.mulf %115, %123 : vector<2x32xf32>
    %132 = arith.addf %130, %131 : vector<2x32xf32>
    %133 = math.tanh %132 : vector<2x32xf32>
    %134 = arith.mulf %129, %133 : vector<2x32xf32>
    %c0_39 = arith.constant 0 : index
    %c3_40 = arith.constant 3 : index
    %c0_41 = arith.constant 0 : index
    %135 = vector.load %arg4[%c0_39, %c3_40, %c0_41] : memref<2x8x32xf32, #tpu.memory_space<vmem>>, vector<2x1x32xf32>
    %136 = vector.shape_cast %135 : vector<2x1x32xf32> to vector<2x32xf32>
    %137 = vector.shape_cast %134 : vector<2x32xf32> to vector<2x1x32xf32>
    tpu.vector_store %arg4[%c0_39, %c3_40, %c0_41], %137 {strides = array<i32>} : memref<2x8x32xf32, #tpu.memory_space<vmem>>, vector<2x1x32xf32>,
    %c0_42 = arith.constant 0 : index
    %c4 = arith.constant 4 : index
    %c0_43 = arith.constant 0 : index
    %138 = vector.load %arg2[%c0_42, %c4, %c0_43] : memref<2x8x128xf32, #tpu.memory_space<vmem>>, vector<2x1x128xf32>
    %139 = vector.shape_cast %138 : vector<2x1x128xf32> to vector<2x128xf32>
    %140 = arith.truncf %134 : vector<2x32xf32> to vector<2x32xbf16>
    %cst_44 = arith.constant dense<0.000000e+00> : vector<2x128xf32>
    %141 = tpu.matmul %140, %3, %cst_44 {dimension_numbers = #tpu.dot_dimension_numbers<[1], [0], [0], [1], [0, 0, 1, 1], [], []>} : vector<2x32xbf16>, vector<32x128xbf16>, vector<2x128xf32> -> vector<2x128xf32>
    %142 = arith.addf %139, %141 : vector<2x128xf32>
    %143 = vector.extract_strided_slice %142 {offsets = [0, 0], sizes = [2, 32], strides = [1, 1]} : vector<2x128xf32> to vector<2x32xf32>
    %144 = arith.negf %143 : vector<2x32xf32>
    %145 = math.exp %144 : vector<2x32xf32>
    %cst_45 = arith.constant 1.000000e+00 : f32
    %146 = vector.broadcast %cst_45 : f32 to vector<2x32xf32>
    %147 = arith.addf %146, %145 : vector<2x32xf32>
    %148 = arith.divf %146, %147 : vector<2x32xf32>
    %149 = vector.extract_strided_slice %142 {offsets = [0, 32], sizes = [2, 32], strides = [1, 1]} : vector<2x128xf32> to vector<2x32xf32>
    %150 = arith.negf %149 : vector<2x32xf32>
    %151 = math.exp %150 : vector<2x32xf32>
    %cst_46 = arith.constant 1.000000e+00 : f32
    %152 = vector.broadcast %cst_46 : f32 to vector<2x32xf32>
    %153 = arith.addf %152, %151 : vector<2x32xf32>
    %154 = arith.divf %152, %153 : vector<2x32xf32>
    %155 = vector.extract_strided_slice %142 {offsets = [0, 64], sizes = [2, 32], strides = [1, 1]} : vector<2x128xf32> to vector<2x32xf32>
    %156 = math.tanh %155 : vector<2x32xf32>
    %157 = vector.extract_strided_slice %142 {offsets = [0, 96], sizes = [2, 32], strides = [1, 1]} : vector<2x128xf32> to vector<2x32xf32>
    %158 = arith.negf %157 : vector<2x32xf32>
    %159 = math.exp %158 : vector<2x32xf32>
    %cst_47 = arith.constant 1.000000e+00 : f32
    %160 = vector.broadcast %cst_47 : f32 to vector<2x32xf32>
    %161 = arith.addf %160, %159 : vector<2x32xf32>
    %162 = arith.divf %160, %161 : vector<2x32xf32>
    %163 = arith.mulf %154, %132 : vector<2x32xf32>
    %164 = arith.mulf %148, %156 : vector<2x32xf32>
    %165 = arith.addf %163, %164 : vector<2x32xf32>
    %166 = math.tanh %165 : vector<2x32xf32>
    %167 = arith.mulf %162, %166 : vector<2x32xf32>
    %c0_48 = arith.constant 0 : index
    %c4_49 = arith.constant 4 : index
    %c0_50 = arith.constant 0 : index
    %168 = vector.load %arg4[%c0_48, %c4_49, %c0_50] : memref<2x8x32xf32, #tpu.memory_space<vmem>>, vector<2x1x32xf32>
    %169 = vector.shape_cast %168 : vector<2x1x32xf32> to vector<2x32xf32>
    %170 = vector.shape_cast %167 : vector<2x32xf32> to vector<2x1x32xf32>
    tpu.vector_store %arg4[%c0_48, %c4_49, %c0_50], %170 {strides = array<i32>} : memref<2x8x32xf32, #tpu.memory_space<vmem>>, vector<2x1x32xf32>,
    %c0_51 = arith.constant 0 : index
    %c5 = arith.constant 5 : index
    %c0_52 = arith.constant 0 : index
    %171 = vector.load %arg2[%c0_51, %c5, %c0_52] : memref<2x8x128xf32, #tpu.memory_space<vmem>>, vector<2x1x128xf32>
    %172 = vector.shape_cast %171 : vector<2x1x128xf32> to vector<2x128xf32>
    %173 = arith.truncf %167 : vector<2x32xf32> to vector<2x32xbf16>
    %cst_53 = arith.constant dense<0.000000e+00> : vector<2x128xf32>
    %174 = tpu.matmul %173, %3, %cst_53 {dimension_numbers = #tpu.dot_dimension_numbers<[1], [0], [0], [1], [0, 0, 1, 1], [], []>} : vector<2x32xbf16>, vector<32x128xbf16>, vector<2x128xf32> -> vector<2x128xf32>
    %175 = arith.addf %172, %174 : vector<2x128xf32>
    %176 = vector.extract_strided_slice %175 {offsets = [0, 0], sizes = [2, 32], strides = [1, 1]} : vector<2x128xf32> to vector<2x32xf32>
    %177 = arith.negf %176 : vector<2x32xf32>
    %178 = math.exp %177 : vector<2x32xf32>
    %cst_54 = arith.constant 1.000000e+00 : f32
    %179 = vector.broadcast %cst_54 : f32 to vector<2x32xf32>
    %180 = arith.addf %179, %178 : vector<2x32xf32>
    %181 = arith.divf %179, %180 : vector<2x32xf32>
    %182 = vector.extract_strided_slice %175 {offsets = [0, 32], sizes = [2, 32], strides = [1, 1]} : vector<2x128xf32> to vector<2x32xf32>
    %183 = arith.negf %182 : vector<2x32xf32>
    %184 = math.exp %183 : vector<2x32xf32>
    %cst_55 = arith.constant 1.000000e+00 : f32
    %185 = vector.broadcast %cst_55 : f32 to vector<2x32xf32>
    %186 = arith.addf %185, %184 : vector<2x32xf32>
    %187 = arith.divf %185, %186 : vector<2x32xf32>
    %188 = vector.extract_strided_slice %175 {offsets = [0, 64], sizes = [2, 32], strides = [1, 1]} : vector<2x128xf32> to vector<2x32xf32>
    %189 = math.tanh %188 : vector<2x32xf32>
    %190 = vector.extract_strided_slice %175 {offsets = [0, 96], sizes = [2, 32], strides = [1, 1]} : vector<2x128xf32> to vector<2x32xf32>
    %191 = arith.negf %190 : vector<2x32xf32>
    %192 = math.exp %191 : vector<2x32xf32>
    %cst_56 = arith.constant 1.000000e+00 : f32
    %193 = vector.broadcast %cst_56 : f32 to vector<2x32xf32>
    %194 = arith.addf %193, %192 : vector<2x32xf32>
    %195 = arith.divf %193, %194 : vector<2x32xf32>
    %196 = arith.mulf %187, %165 : vector<2x32xf32>
    %197 = arith.mulf %181, %189 : vector<2x32xf32>
    %198 = arith.addf %196, %197 : vector<2x32xf32>
    %199 = math.tanh %198 : vector<2x32xf32>
    %200 = arith.mulf %195, %199 : vector<2x32xf32>
    %c0_57 = arith.constant 0 : index
    %c5_58 = arith.constant 5 : index
    %c0_59 = arith.constant 0 : index
    %201 = vector.load %arg4[%c0_57, %c5_58, %c0_59] : memref<2x8x32xf32, #tpu.memory_space<vmem>>, vector<2x1x32xf32>
    %202 = vector.shape_cast %201 : vector<2x1x32xf32> to vector<2x32xf32>
    %203 = vector.shape_cast %200 : vector<2x32xf32> to vector<2x1x32xf32>
    tpu.vector_store %arg4[%c0_57, %c5_58, %c0_59], %203 {strides = array<i32>} : memref<2x8x32xf32, #tpu.memory_space<vmem>>, vector<2x1x32xf32>,
    %c0_60 = arith.constant 0 : index
    %c6 = arith.constant 6 : index
    %c0_61 = arith.constant 0 : index
    %204 = vector.load %arg2[%c0_60, %c6, %c0_61] : memref<2x8x128xf32, #tpu.memory_space<vmem>>, vector<2x1x128xf32>
    %205 = vector.shape_cast %204 : vector<2x1x128xf32> to vector<2x128xf32>
    %206 = arith.truncf %200 : vector<2x32xf32> to vector<2x32xbf16>
    %cst_62 = arith.constant dense<0.000000e+00> : vector<2x128xf32>
    %207 = tpu.matmul %206, %3, %cst_62 {dimension_numbers = #tpu.dot_dimension_numbers<[1], [0], [0], [1], [0, 0, 1, 1], [], []>} : vector<2x32xbf16>, vector<32x128xbf16>, vector<2x128xf32> -> vector<2x128xf32>
    %208 = arith.addf %205, %207 : vector<2x128xf32>
    %209 = vector.extract_strided_slice %208 {offsets = [0, 0], sizes = [2, 32], strides = [1, 1]} : vector<2x128xf32> to vector<2x32xf32>
    %210 = arith.negf %209 : vector<2x32xf32>
    %211 = math.exp %210 : vector<2x32xf32>
    %cst_63 = arith.constant 1.000000e+00 : f32
    %212 = vector.broadcast %cst_63 : f32 to vector<2x32xf32>
    %213 = arith.addf %212, %211 : vector<2x32xf32>
    %214 = arith.divf %212, %213 : vector<2x32xf32>
    %215 = vector.extract_strided_slice %208 {offsets = [0, 32], sizes = [2, 32], strides = [1, 1]} : vector<2x128xf32> to vector<2x32xf32>
    %216 = arith.negf %215 : vector<2x32xf32>
    %217 = math.exp %216 : vector<2x32xf32>
    %cst_64 = arith.constant 1.000000e+00 : f32
    %218 = vector.broadcast %cst_64 : f32 to vector<2x32xf32>
    %219 = arith.addf %218, %217 : vector<2x32xf32>
    %220 = arith.divf %218, %219 : vector<2x32xf32>
    %221 = vector.extract_strided_slice %208 {offsets = [0, 64], sizes = [2, 32], strides = [1, 1]} : vector<2x128xf32> to vector<2x32xf32>
    %222 = math.tanh %221 : vector<2x32xf32>
    %223 = vector.extract_strided_slice %208 {offsets = [0, 96], sizes = [2, 32], strides = [1, 1]} : vector<2x128xf32> to vector<2x32xf32>
    %224 = arith.negf %223 : vector<2x32xf32>
    %225 = math.exp %224 : vector<2x32xf32>
    %cst_65 = arith.constant 1.000000e+00 : f32
    %226 = vector.broadcast %cst_65 : f32 to vector<2x32xf32>
    %227 = arith.addf %226, %225 : vector<2x32xf32>
    %228 = arith.divf %226, %227 : vector<2x32xf32>
    %229 = arith.mulf %220, %198 : vector<2x32xf32>
    %230 = arith.mulf %214, %222 : vector<2x32xf32>
    %231 = arith.addf %229, %230 : vector<2x32xf32>
    %232 = math.tanh %231 : vector<2x32xf32>
    %233 = arith.mulf %228, %232 : vector<2x32xf32>
    %c0_66 = arith.constant 0 : index
    %c6_67 = arith.constant 6 : index
    %c0_68 = arith.constant 0 : index
    %234 = vector.load %arg4[%c0_66, %c6_67, %c0_68] : memref<2x8x32xf32, #tpu.memory_space<vmem>>, vector<2x1x32xf32>
    %235 = vector.shape_cast %234 : vector<2x1x32xf32> to vector<2x32xf32>
    %236 = vector.shape_cast %233 : vector<2x32xf32> to vector<2x1x32xf32>
    tpu.vector_store %arg4[%c0_66, %c6_67, %c0_68], %236 {strides = array<i32>} : memref<2x8x32xf32, #tpu.memory_space<vmem>>, vector<2x1x32xf32>,
    %c0_69 = arith.constant 0 : index
    %c7 = arith.constant 7 : index
    %c0_70 = arith.constant 0 : index
    %237 = vector.load %arg2[%c0_69, %c7, %c0_70] : memref<2x8x128xf32, #tpu.memory_space<vmem>>, vector<2x1x128xf32>
    %238 = vector.shape_cast %237 : vector<2x1x128xf32> to vector<2x128xf32>
    %239 = arith.truncf %233 : vector<2x32xf32> to vector<2x32xbf16>
    %cst_71 = arith.constant dense<0.000000e+00> : vector<2x128xf32>
    %240 = tpu.matmul %239, %3, %cst_71 {dimension_numbers = #tpu.dot_dimension_numbers<[1], [0], [0], [1], [0, 0, 1, 1], [], []>} : vector<2x32xbf16>, vector<32x128xbf16>, vector<2x128xf32> -> vector<2x128xf32>
    %241 = arith.addf %238, %240 : vector<2x128xf32>
    %242 = vector.extract_strided_slice %241 {offsets = [0, 0], sizes = [2, 32], strides = [1, 1]} : vector<2x128xf32> to vector<2x32xf32>
    %243 = arith.negf %242 : vector<2x32xf32>
    %244 = math.exp %243 : vector<2x32xf32>
    %cst_72 = arith.constant 1.000000e+00 : f32
    %245 = vector.broadcast %cst_72 : f32 to vector<2x32xf32>
    %246 = arith.addf %245, %244 : vector<2x32xf32>
    %247 = arith.divf %245, %246 : vector<2x32xf32>
    %248 = vector.extract_strided_slice %241 {offsets = [0, 32], sizes = [2, 32], strides = [1, 1]} : vector<2x128xf32> to vector<2x32xf32>
    %249 = arith.negf %248 : vector<2x32xf32>
    %250 = math.exp %249 : vector<2x32xf32>
    %cst_73 = arith.constant 1.000000e+00 : f32
    %251 = vector.broadcast %cst_73 : f32 to vector<2x32xf32>
    %252 = arith.addf %251, %250 : vector<2x32xf32>
    %253 = arith.divf %251, %252 : vector<2x32xf32>
    %254 = vector.extract_strided_slice %241 {offsets = [0, 64], sizes = [2, 32], strides = [1, 1]} : vector<2x128xf32> to vector<2x32xf32>
    %255 = math.tanh %254 : vector<2x32xf32>
    %256 = vector.extract_strided_slice %241 {offsets = [0, 96], sizes = [2, 32], strides = [1, 1]} : vector<2x128xf32> to vector<2x32xf32>
    %257 = arith.negf %256 : vector<2x32xf32>
    %258 = math.exp %257 : vector<2x32xf32>
    %cst_74 = arith.constant 1.000000e+00 : f32
    %259 = vector.broadcast %cst_74 : f32 to vector<2x32xf32>
    %260 = arith.addf %259, %258 : vector<2x32xf32>
    %261 = arith.divf %259, %260 : vector<2x32xf32>
    %262 = arith.mulf %253, %231 : vector<2x32xf32>
    %263 = arith.mulf %247, %255 : vector<2x32xf32>
    %264 = arith.addf %262, %263 : vector<2x32xf32>
    %265 = math.tanh %264 : vector<2x32xf32>
    %266 = arith.mulf %261, %265 : vector<2x32xf32>
    %c0_75 = arith.constant 0 : index
    %c7_76 = arith.constant 7 : index
    %c0_77 = arith.constant 0 : index
    %267 = vector.load %arg4[%c0_75, %c7_76, %c0_77] : memref<2x8x32xf32, #tpu.memory_space<vmem>>, vector<2x1x32xf32>
    %268 = vector.shape_cast %267 : vector<2x1x32xf32> to vector<2x32xf32>
    %269 = vector.shape_cast %266 : vector<2x32xf32> to vector<2x1x32xf32>
    tpu.vector_store %arg4[%c0_75, %c7_76, %c0_77], %269 {strides = array<i32>} : memref<2x8x32xf32, #tpu.memory_space<vmem>>, vector<2x1x32xf32>,
    %c0_78 = arith.constant 0 : index
    %c0_79 = arith.constant 0 : index
    %270 = vector.load %arg5[%c0_78, %c0_79] : memref<2x32xf32, #tpu.memory_space<vmem>>, vector<2x32xf32>
    tpu.vector_store %arg5[%c0_78, %c0_79], %266 {strides = array<i32>} : memref<2x32xf32, #tpu.memory_space<vmem>>, vector<2x32xf32>,
    %c0_80 = arith.constant 0 : index
    %c0_81 = arith.constant 0 : index
    %271 = vector.load %arg6[%c0_80, %c0_81] : memref<2x32xf32, #tpu.memory_space<vmem>>, vector<2x32xf32>
    tpu.vector_store %arg6[%c0_80, %c0_81], %264 {strides = array<i32>} : memref<2x32xf32, #tpu.memory_space<vmem>>, vector<2x32xf32>,
    return
  }
  func.func @transform_0(%arg0: i32, %arg1: i32) -> (i32, i32, i32) {
    %c0_i32 = arith.constant 0 : i32
    %c0_i32_0 = arith.constant 0 : i32
    return %arg0, %arg1, %c0_i32 : i32, i32, i32
  }
  func.func @transform_1(%arg0: i32, %arg1: i32) -> (i32, i32) {
    %c0_i32 = arith.constant 0 : i32
    %c0_i32_0 = arith.constant 0 : i32
    %c0_i32_1 = arith.constant 0 : i32
    return %c0_i32, %c0_i32_0 : i32, i32
  }
  func.func @transform_2(%arg0: i32, %arg1: i32) -> (i32, i32, i32) {
    %c0_i32 = arith.constant 0 : i32
    %c0_i32_0 = arith.constant 0 : i32
    return %arg0, %arg1, %c0_i32 : i32, i32, i32
  }
}

module attributes {stable_mosaic.version = 11 : i64} {
  func.func @lstm_block_kernel(%arg0: i32, %arg1: i32, %arg2: memref<2x8x128xf32, #tpu.memory_space<vmem>>, %arg3: memref<32x128xbf16, #tpu.memory_space<vmem>>, %arg4: memref<2x8x32xf32, #tpu.memory_space<vmem>>, %arg5: memref<2x32xf32, #tpu.memory_space<vmem>>, %arg6: memref<2x32xf32, #tpu.memory_space<vmem>>) attributes {dimension_semantics = [#tpu.dimension_semantics<parallel>, #tpu.dimension_semantics<arbitrary>], iteration_bounds = array<i64: 1, 1>, scalar_prefetch = 0 : i64, scratch_operands = 2 : i64, tpu.core_type = #tpu.core_type<tc>, window_params = [{transform_indices = @transform_0, window_bounds = array<i64: 2, 8, 128>}, {pipeline_mode = #tpu.pipeline_mode<synchronous>, transform_indices = @transform_1, window_bounds = array<i64: 32, 128>}, {transform_indices = @transform_2, window_bounds = array<i64: 2, 8, 32>}]} {
    %c0_i32 = arith.constant 0 : i32
    %0 = arith.cmpi eq, %arg1, %c0_i32 : i32
    %1 = arith.extui %0 : i1 to i32
    %c0_i32_0 = arith.constant 0 : i32
    %2 = arith.cmpi ne, %1, %c0_i32_0 : i32
    scf.if %2 {
      %cst_82 = arith.constant 0.000000e+00 : f32
      %272 = vector.broadcast %cst_82 : f32 to vector<2x32xf32>
      %c0_83 = arith.constant 0 : index
      %c0_84 = arith.constant 0 : index
      %273 = vector.load %arg5[%c0_83, %c0_84] : memref<2x32xf32, #tpu.memory_space<vmem>>, vector<2x32xf32>
      tpu.vector_store %arg5[%c0_83, %c0_84], %272 {strides = array<i32>} : memref<2x32xf32, #tpu.memory_space<vmem>>, vector<2x32xf32>,
      %cst_85 = arith.constant 0.000000e+00 : f32
      %274 = vector.broadcast %cst_85 : f32 to vector<2x32xf32>
      %c0_86 = arith.constant 0 : index
      %c0_87 = arith.constant 0 : index
      %275 = vector.load %arg6[%c0_86, %c0_87] : memref<2x32xf32, #tpu.memory_space<vmem>>, vector<2x32xf32>
      tpu.vector_store %arg6[%c0_86, %c0_87], %274 {strides = array<i32>} : memref<2x32xf32, #tpu.memory_space<vmem>>, vector<2x32xf32>,
    } else {
    }
    %c0 = arith.constant 0 : index
    %c0_1 = arith.constant 0 : index
    %3 = vector.load %arg3[%c0, %c0_1] : memref<32x128xbf16, #tpu.memory_space<vmem>>, vector<32x128xbf16>
    %c0_2 = arith.constant 0 : index
    %c0_3 = arith.constant 0 : index
    %4 = vector.load %arg5[%c0_2, %c0_3] : memref<2x32xf32, #tpu.memory_space<vmem>>, vector<2x32xf32>
    %c0_4 = arith.constant 0 : index
    %c0_5 = arith.constant 0 : index
    %5 = vector.load %arg6[%c0_4, %c0_5] : memref<2x32xf32, #tpu.memory_space<vmem>>, vector<2x32xf32>
    %c0_6 = arith.constant 0 : index
    %c0_7 = arith.constant 0 : index
    %c0_8 = arith.constant 0 : index
    %6 = vector.load %arg2[%c0_6, %c0_7, %c0_8] : memref<2x8x128xf32, #tpu.memory_space<vmem>>, vector<2x1x128xf32>
    %7 = vector.shape_cast %6 : vector<2x1x128xf32> to vector<2x128xf32>
    %8 = arith.truncf %4 : vector<2x32xf32> to vector<2x32xbf16>
    %cst = arith.constant dense<0.000000e+00> : vector<2x128xf32>
    %9 = tpu.matmul %8, %3, %cst {dimension_numbers = #tpu.dot_dimension_numbers<[1], [0], [0], [1], [0, 0, 1, 1], [], []>} : vector<2x32xbf16>, vector<32x128xbf16>, vector<2x128xf32> -> vector<2x128xf32>
    %10 = arith.addf %7, %9 : vector<2x128xf32>
    %11 = vector.extract_strided_slice %10 {offsets = [0, 0], sizes = [2, 32], strides = [1, 1]} : vector<2x128xf32> to vector<2x32xf32>
    %12 = arith.negf %11 : vector<2x32xf32>
    %13 = math.exp %12 : vector<2x32xf32>
    %cst_9 = arith.constant 1.000000e+00 : f32
    %14 = vector.broadcast %cst_9 : f32 to vector<2x32xf32>
    %15 = arith.addf %14, %13 : vector<2x32xf32>
    %16 = arith.divf %14, %15 : vector<2x32xf32>
    %17 = vector.extract_strided_slice %10 {offsets = [0, 32], sizes = [2, 32], strides = [1, 1]} : vector<2x128xf32> to vector<2x32xf32>
    %18 = arith.negf %17 : vector<2x32xf32>
    %19 = math.exp %18 : vector<2x32xf32>
    %cst_10 = arith.constant 1.000000e+00 : f32
    %20 = vector.broadcast %cst_10 : f32 to vector<2x32xf32>
    %21 = arith.addf %20, %19 : vector<2x32xf32>
    %22 = arith.divf %20, %21 : vector<2x32xf32>
    %23 = vector.extract_strided_slice %10 {offsets = [0, 64], sizes = [2, 32], strides = [1, 1]} : vector<2x128xf32> to vector<2x32xf32>
    %24 = math.tanh %23 : vector<2x32xf32>
    %25 = vector.extract_strided_slice %10 {offsets = [0, 96], sizes = [2, 32], strides = [1, 1]} : vector<2x128xf32> to vector<2x32xf32>
    %26 = arith.negf %25 : vector<2x32xf32>
    %27 = math.exp %26 : vector<2x32xf32>
    %cst_11 = arith.constant 1.000000e+00 : f32
    %28 = vector.broadcast %cst_11 : f32 to vector<2x32xf32>
    %29 = arith.addf %28, %27 : vector<2x32xf32>
    %30 = arith.divf %28, %29 : vector<2x32xf32>
    %31 = arith.mulf %22, %5 : vector<2x32xf32>
    %32 = arith.mulf %16, %24 : vector<2x32xf32>
    %33 = arith.addf %31, %32 : vector<2x32xf32>
    %34 = math.tanh %33 : vector<2x32xf32>
    %35 = arith.mulf %30, %34 : vector<2x32xf32>
    %c0_12 = arith.constant 0 : index
    %c0_13 = arith.constant 0 : index
    %c0_14 = arith.constant 0 : index
    %36 = vector.load %arg4[%c0_12, %c0_13, %c0_14] : memref<2x8x32xf32, #tpu.memory_space<vmem>>, vector<2x1x32xf32>
    %37 = vector.shape_cast %36 : vector<2x1x32xf32> to vector<2x32xf32>
    %38 = vector.shape_cast %35 : vector<2x32xf32> to vector<2x1x32xf32>
    tpu.vector_store %arg4[%c0_12, %c0_13, %c0_14], %38 {strides = array<i32>} : memref<2x8x32xf32, #tpu.memory_space<vmem>>, vector<2x1x32xf32>,
    %c0_15 = arith.constant 0 : index
    %c1 = arith.constant 1 : index
    %c0_16 = arith.constant 0 : index
    %39 = vector.load %arg2[%c0_15, %c1, %c0_16] : memref<2x8x128xf32, #tpu.memory_space<vmem>>, vector<2x1x128xf32>
    %40 = vector.shape_cast %39 : vector<2x1x128xf32> to vector<2x128xf32>
    %41 = arith.truncf %35 : vector<2x32xf32> to vector<2x32xbf16>
    %cst_17 = arith.constant dense<0.000000e+00> : vector<2x128xf32>
    %42 = tpu.matmul %41, %3, %cst_17 {dimension_numbers = #tpu.dot_dimension_numbers<[1], [0], [0], [1], [0, 0, 1, 1], [], []>} : vector<2x32xbf16>, vector<32x128xbf16>, vector<2x128xf32> -> vector<2x128xf32>
    %43 = arith.addf %40, %42 : vector<2x128xf32>
    %44 = vector.extract_strided_slice %43 {offsets = [0, 0], sizes = [2, 32], strides = [1, 1]} : vector<2x128xf32> to vector<2x32xf32>
    %45 = arith.negf %44 : vector<2x32xf32>
    %46 = math.exp %45 : vector<2x32xf32>
    %cst_18 = arith.constant 1.000000e+00 : f32
    %47 = vector.broadcast %cst_18 : f32 to vector<2x32xf32>
    %48 = arith.addf %47, %46 : vector<2x32xf32>
    %49 = arith.divf %47, %48 : vector<2x32xf32>
    %50 = vector.extract_strided_slice %43 {offsets = [0, 32], sizes = [2, 32], strides = [1, 1]} : vector<2x128xf32> to vector<2x32xf32>
    %51 = arith.negf %50 : vector<2x32xf32>
    %52 = math.exp %51 : vector<2x32xf32>
    %cst_19 = arith.constant 1.000000e+00 : f32
    %53 = vector.broadcast %cst_19 : f32 to vector<2x32xf32>
    %54 = arith.addf %53, %52 : vector<2x32xf32>
    %55 = arith.divf %53, %54 : vector<2x32xf32>
    %56 = vector.extract_strided_slice %43 {offsets = [0, 64], sizes = [2, 32], strides = [1, 1]} : vector<2x128xf32> to vector<2x32xf32>
    %57 = math.tanh %56 : vector<2x32xf32>
    %58 = vector.extract_strided_slice %43 {offsets = [0, 96], sizes = [2, 32], strides = [1, 1]} : vector<2x128xf32> to vector<2x32xf32>
    %59 = arith.negf %58 : vector<2x32xf32>
    %60 = math.exp %59 : vector<2x32xf32>
    %cst_20 = arith.constant 1.000000e+00 : f32
    %61 = vector.broadcast %cst_20 : f32 to vector<2x32xf32>
    %62 = arith.addf %61, %60 : vector<2x32xf32>
    %63 = arith.divf %61, %62 : vector<2x32xf32>
    %64 = arith.mulf %55, %33 : vector<2x32xf32>
    %65 = arith.mulf %49, %57 : vector<2x32xf32>
    %66 = arith.addf %64, %65 : vector<2x32xf32>
    %67 = math.tanh %66 : vector<2x32xf32>
    %68 = arith.mulf %63, %67 : vector<2x32xf32>
    %c0_21 = arith.constant 0 : index
    %c1_22 = arith.constant 1 : index
    %c0_23 = arith.constant 0 : index
    %69 = vector.load %arg4[%c0_21, %c1_22, %c0_23] : memref<2x8x32xf32, #tpu.memory_space<vmem>>, vector<2x1x32xf32>
    %70 = vector.shape_cast %69 : vector<2x1x32xf32> to vector<2x32xf32>
    %71 = vector.shape_cast %68 : vector<2x32xf32> to vector<2x1x32xf32>
    tpu.vector_store %arg4[%c0_21, %c1_22, %c0_23], %71 {strides = array<i32>} : memref<2x8x32xf32, #tpu.memory_space<vmem>>, vector<2x1x32xf32>,
    %c0_24 = arith.constant 0 : index
    %c2 = arith.constant 2 : index
    %c0_25 = arith.constant 0 : index
    %72 = vector.load %arg2[%c0_24, %c2, %c0_25] : memref<2x8x128xf32, #tpu.memory_space<vmem>>, vector<2x1x128xf32>
    %73 = vector.shape_cast %72 : vector<2x1x128xf32> to vector<2x128xf32>
    %74 = arith.truncf %68 : vector<2x32xf32> to vector<2x32xbf16>
    %cst_26 = arith.constant dense<0.000000e+00> : vector<2x128xf32>
    %75 = tpu.matmul %74, %3, %cst_26 {dimension_numbers = #tpu.dot_dimension_numbers<[1], [0], [0], [1], [0, 0, 1, 1], [], []>} : vector<2x32xbf16>, vector<32x128xbf16>, vector<2x128xf32> -> vector<2x128xf32>
    %76 = arith.addf %73, %75 : vector<2x128xf32>
    %77 = vector.extract_strided_slice %76 {offsets = [0, 0], sizes = [2, 32], strides = [1, 1]} : vector<2x128xf32> to vector<2x32xf32>
    %78 = arith.negf %77 : vector<2x32xf32>
    %79 = math.exp %78 : vector<2x32xf32>
    %cst_27 = arith.constant 1.000000e+00 : f32
    %80 = vector.broadcast %cst_27 : f32 to vector<2x32xf32>
    %81 = arith.addf %80, %79 : vector<2x32xf32>
    %82 = arith.divf %80, %81 : vector<2x32xf32>
    %83 = vector.extract_strided_slice %76 {offsets = [0, 32], sizes = [2, 32], strides = [1, 1]} : vector<2x128xf32> to vector<2x32xf32>
    %84 = arith.negf %83 : vector<2x32xf32>
    %85 = math.exp %84 : vector<2x32xf32>
    %cst_28 = arith.constant 1.000000e+00 : f32
    %86 = vector.broadcast %cst_28 : f32 to vector<2x32xf32>
    %87 = arith.addf %86, %85 : vector<2x32xf32>
    %88 = arith.divf %86, %87 : vector<2x32xf32>
    %89 = vector.extract_strided_slice %76 {offsets = [0, 64], sizes = [2, 32], strides = [1, 1]} : vector<2x128xf32> to vector<2x32xf32>
    %90 = math.tanh %89 : vector<2x32xf32>
    %91 = vector.extract_strided_slice %76 {offsets = [0, 96], sizes = [2, 32], strides = [1, 1]} : vector<2x128xf32> to vector<2x32xf32>
    %92 = arith.negf %91 : vector<2x32xf32>
    %93 = math.exp %92 : vector<2x32xf32>
    %cst_29 = arith.constant 1.000000e+00 : f32
    %94 = vector.broadcast %cst_29 : f32 to vector<2x32xf32>
    %95 = arith.addf %94, %93 : vector<2x32xf32>
    %96 = arith.divf %94, %95 : vector<2x32xf32>
    %97 = arith.mulf %88, %66 : vector<2x32xf32>
    %98 = arith.mulf %82, %90 : vector<2x32xf32>
    %99 = arith.addf %97, %98 : vector<2x32xf32>
    %100 = math.tanh %99 : vector<2x32xf32>
    %101 = arith.mulf %96, %100 : vector<2x32xf32>
    %c0_30 = arith.constant 0 : index
    %c2_31 = arith.constant 2 : index
    %c0_32 = arith.constant 0 : index
    %102 = vector.load %arg4[%c0_30, %c2_31, %c0_32] : memref<2x8x32xf32, #tpu.memory_space<vmem>>, vector<2x1x32xf32>
    %103 = vector.shape_cast %102 : vector<2x1x32xf32> to vector<2x32xf32>
    %104 = vector.shape_cast %101 : vector<2x32xf32> to vector<2x1x32xf32>
    tpu.vector_store %arg4[%c0_30, %c2_31, %c0_32], %104 {strides = array<i32>} : memref<2x8x32xf32, #tpu.memory_space<vmem>>, vector<2x1x32xf32>,
    %c0_33 = arith.constant 0 : index
    %c3 = arith.constant 3 : index
    %c0_34 = arith.constant 0 : index
    %105 = vector.load %arg2[%c0_33, %c3, %c0_34] : memref<2x8x128xf32, #tpu.memory_space<vmem>>, vector<2x1x128xf32>
    %106 = vector.shape_cast %105 : vector<2x1x128xf32> to vector<2x128xf32>
    %107 = arith.truncf %101 : vector<2x32xf32> to vector<2x32xbf16>
    %cst_35 = arith.constant dense<0.000000e+00> : vector<2x128xf32>
    %108 = tpu.matmul %107, %3, %cst_35 {dimension_numbers = #tpu.dot_dimension_numbers<[1], [0], [0], [1], [0, 0, 1, 1], [], []>} : vector<2x32xbf16>, vector<32x128xbf16>, vector<2x128xf32> -> vector<2x128xf32>
    %109 = arith.addf %106, %108 : vector<2x128xf32>
    %110 = vector.extract_strided_slice %109 {offsets = [0, 0], sizes = [2, 32], strides = [1, 1]} : vector<2x128xf32> to vector<2x32xf32>
    %111 = arith.negf %110 : vector<2x32xf32>
    %112 = math.exp %111 : vector<2x32xf32>
    %cst_36 = arith.constant 1.000000e+00 : f32
    %113 = vector.broadcast %cst_36 : f32 to vector<2x32xf32>
    %114 = arith.addf %113, %112 : vector<2x32xf32>
    %115 = arith.divf %113, %114 : vector<2x32xf32>
    %116 = vector.extract_strided_slice %109 {offsets = [0, 32], sizes = [2, 32], strides = [1, 1]} : vector<2x128xf32> to vector<2x32xf32>
    %117 = arith.negf %116 : vector<2x32xf32>
    %118 = math.exp %117 : vector<2x32xf32>
    %cst_37 = arith.constant 1.000000e+00 : f32
    %119 = vector.broadcast %cst_37 : f32 to vector<2x32xf32>
    %120 = arith.addf %119, %118 : vector<2x32xf32>
    %121 = arith.divf %119, %120 : vector<2x32xf32>
    %122 = vector.extract_strided_slice %109 {offsets = [0, 64], sizes = [2, 32], strides = [1, 1]} : vector<2x128xf32> to vector<2x32xf32>
    %123 = math.tanh %122 : vector<2x32xf32>
    %124 = vector.extract_strided_slice %109 {offsets = [0, 96], sizes = [2, 32], strides = [1, 1]} : vector<2x128xf32> to vector<2x32xf32>
    %125 = arith.negf %124 : vector<2x32xf32>
    %126 = math.exp %125 : vector<2x32xf32>
    %cst_38 = arith.constant 1.000000e+00 : f32
    %127 = vector.broadcast %cst_38 : f32 to vector<2x32xf32>
    %128 = arith.addf %127, %126 : vector<2x32xf32>
    %129 = arith.divf %127, %128 : vector<2x32xf32>
    %130 = arith.mulf %121, %99 : vector<2x32xf32>
    %131 = arith.mulf %115, %123 : vector<2x32xf32>
    %132 = arith.addf %130, %131 : vector<2x32xf32>
    %133 = math.tanh %132 : vector<2x32xf32>
    %134 = arith.mulf %129, %133 : vector<2x32xf32>
    %c0_39 = arith.constant 0 : index
    %c3_40 = arith.constant 3 : index
    %c0_41 = arith.constant 0 : index
    %135 = vector.load %arg4[%c0_39, %c3_40, %c0_41] : memref<2x8x32xf32, #tpu.memory_space<vmem>>, vector<2x1x32xf32>
    %136 = vector.shape_cast %135 : vector<2x1x32xf32> to vector<2x32xf32>
    %137 = vector.shape_cast %134 : vector<2x32xf32> to vector<2x1x32xf32>
    tpu.vector_store %arg4[%c0_39, %c3_40, %c0_41], %137 {strides = array<i32>} : memref<2x8x32xf32, #tpu.memory_space<vmem>>, vector<2x1x32xf32>,
    %c0_42 = arith.constant 0 : index
    %c4 = arith.constant 4 : index
    %c0_43 = arith.constant 0 : index
    %138 = vector.load %arg2[%c0_42, %c4, %c0_43] : memref<2x8x128xf32, #tpu.memory_space<vmem>>, vector<2x1x128xf32>
    %139 = vector.shape_cast %138 : vector<2x1x128xf32> to vector<2x128xf32>
    %140 = arith.truncf %134 : vector<2x32xf32> to vector<2x32xbf16>
    %cst_44 = arith.constant dense<0.000000e+00> : vector<2x128xf32>
    %141 = tpu.matmul %140, %3, %cst_44 {dimension_numbers = #tpu.dot_dimension_numbers<[1], [0], [0], [1], [0, 0, 1, 1], [], []>} : vector<2x32xbf16>, vector<32x128xbf16>, vector<2x128xf32> -> vector<2x128xf32>
    %142 = arith.addf %139, %141 : vector<2x128xf32>
    %143 = vector.extract_strided_slice %142 {offsets = [0, 0], sizes = [2, 32], strides = [1, 1]} : vector<2x128xf32> to vector<2x32xf32>
    %144 = arith.negf %143 : vector<2x32xf32>
    %145 = math.exp %144 : vector<2x32xf32>
    %cst_45 = arith.constant 1.000000e+00 : f32
    %146 = vector.broadcast %cst_45 : f32 to vector<2x32xf32>
    %147 = arith.addf %146, %145 : vector<2x32xf32>
    %148 = arith.divf %146, %147 : vector<2x32xf32>
    %149 = vector.extract_strided_slice %142 {offsets = [0, 32], sizes = [2, 32], strides = [1, 1]} : vector<2x128xf32> to vector<2x32xf32>
    %150 = arith.negf %149 : vector<2x32xf32>
    %151 = math.exp %150 : vector<2x32xf32>
    %cst_46 = arith.constant 1.000000e+00 : f32
    %152 = vector.broadcast %cst_46 : f32 to vector<2x32xf32>
    %153 = arith.addf %152, %151 : vector<2x32xf32>
    %154 = arith.divf %152, %153 : vector<2x32xf32>
    %155 = vector.extract_strided_slice %142 {offsets = [0, 64], sizes = [2, 32], strides = [1, 1]} : vector<2x128xf32> to vector<2x32xf32>
    %156 = math.tanh %155 : vector<2x32xf32>
    %157 = vector.extract_strided_slice %142 {offsets = [0, 96], sizes = [2, 32], strides = [1, 1]} : vector<2x128xf32> to vector<2x32xf32>
    %158 = arith.negf %157 : vector<2x32xf32>
    %159 = math.exp %158 : vector<2x32xf32>
    %cst_47 = arith.constant 1.000000e+00 : f32
    %160 = vector.broadcast %cst_47 : f32 to vector<2x32xf32>
    %161 = arith.addf %160, %159 : vector<2x32xf32>
    %162 = arith.divf %160, %161 : vector<2x32xf32>
    %163 = arith.mulf %154, %132 : vector<2x32xf32>
    %164 = arith.mulf %148, %156 : vector<2x32xf32>
    %165 = arith.addf %163, %164 : vector<2x32xf32>
    %166 = math.tanh %165 : vector<2x32xf32>
    %167 = arith.mulf %162, %166 : vector<2x32xf32>
    %c0_48 = arith.constant 0 : index
    %c4_49 = arith.constant 4 : index
    %c0_50 = arith.constant 0 : index
    %168 = vector.load %arg4[%c0_48, %c4_49, %c0_50] : memref<2x8x32xf32, #tpu.memory_space<vmem>>, vector<2x1x32xf32>
    %169 = vector.shape_cast %168 : vector<2x1x32xf32> to vector<2x32xf32>
    %170 = vector.shape_cast %167 : vector<2x32xf32> to vector<2x1x32xf32>
    tpu.vector_store %arg4[%c0_48, %c4_49, %c0_50], %170 {strides = array<i32>} : memref<2x8x32xf32, #tpu.memory_space<vmem>>, vector<2x1x32xf32>,
    %c0_51 = arith.constant 0 : index
    %c5 = arith.constant 5 : index
    %c0_52 = arith.constant 0 : index
    %171 = vector.load %arg2[%c0_51, %c5, %c0_52] : memref<2x8x128xf32, #tpu.memory_space<vmem>>, vector<2x1x128xf32>
    %172 = vector.shape_cast %171 : vector<2x1x128xf32> to vector<2x128xf32>
    %173 = arith.truncf %167 : vector<2x32xf32> to vector<2x32xbf16>
    %cst_53 = arith.constant dense<0.000000e+00> : vector<2x128xf32>
    %174 = tpu.matmul %173, %3, %cst_53 {dimension_numbers = #tpu.dot_dimension_numbers<[1], [0], [0], [1], [0, 0, 1, 1], [], []>} : vector<2x32xbf16>, vector<32x128xbf16>, vector<2x128xf32> -> vector<2x128xf32>
    %175 = arith.addf %172, %174 : vector<2x128xf32>
    %176 = vector.extract_strided_slice %175 {offsets = [0, 0], sizes = [2, 32], strides = [1, 1]} : vector<2x128xf32> to vector<2x32xf32>
    %177 = arith.negf %176 : vector<2x32xf32>
    %178 = math.exp %177 : vector<2x32xf32>
    %cst_54 = arith.constant 1.000000e+00 : f32
    %179 = vector.broadcast %cst_54 : f32 to vector<2x32xf32>
    %180 = arith.addf %179, %178 : vector<2x32xf32>
    %181 = arith.divf %179, %180 : vector<2x32xf32>
    %182 = vector.extract_strided_slice %175 {offsets = [0, 32], sizes = [2, 32], strides = [1, 1]} : vector<2x128xf32> to vector<2x32xf32>
    %183 = arith.negf %182 : vector<2x32xf32>
    %184 = math.exp %183 : vector<2x32xf32>
    %cst_55 = arith.constant 1.000000e+00 : f32
    %185 = vector.broadcast %cst_55 : f32 to vector<2x32xf32>
    %186 = arith.addf %185, %184 : vector<2x32xf32>
    %187 = arith.divf %185, %186 : vector<2x32xf32>
    %188 = vector.extract_strided_slice %175 {offsets = [0, 64], sizes = [2, 32], strides = [1, 1]} : vector<2x128xf32> to vector<2x32xf32>
    %189 = math.tanh %188 : vector<2x32xf32>
    %190 = vector.extract_strided_slice %175 {offsets = [0, 96], sizes = [2, 32], strides = [1, 1]} : vector<2x128xf32> to vector<2x32xf32>
    %191 = arith.negf %190 : vector<2x32xf32>
    %192 = math.exp %191 : vector<2x32xf32>
    %cst_56 = arith.constant 1.000000e+00 : f32
    %193 = vector.broadcast %cst_56 : f32 to vector<2x32xf32>
    %194 = arith.addf %193, %192 : vector<2x32xf32>
    %195 = arith.divf %193, %194 : vector<2x32xf32>
    %196 = arith.mulf %187, %165 : vector<2x32xf32>
    %197 = arith.mulf %181, %189 : vector<2x32xf32>
    %198 = arith.addf %196, %197 : vector<2x32xf32>
    %199 = math.tanh %198 : vector<2x32xf32>
    %200 = arith.mulf %195, %199 : vector<2x32xf32>
    %c0_57 = arith.constant 0 : index
    %c5_58 = arith.constant 5 : index
    %c0_59 = arith.constant 0 : index
    %201 = vector.load %arg4[%c0_57, %c5_58, %c0_59] : memref<2x8x32xf32, #tpu.memory_space<vmem>>, vector<2x1x32xf32>
    %202 = vector.shape_cast %201 : vector<2x1x32xf32> to vector<2x32xf32>
    %203 = vector.shape_cast %200 : vector<2x32xf32> to vector<2x1x32xf32>
    tpu.vector_store %arg4[%c0_57, %c5_58, %c0_59], %203 {strides = array<i32>} : memref<2x8x32xf32, #tpu.memory_space<vmem>>, vector<2x1x32xf32>,
    %c0_60 = arith.constant 0 : index
    %c6 = arith.constant 6 : index
    %c0_61 = arith.constant 0 : index
    %204 = vector.load %arg2[%c0_60, %c6, %c0_61] : memref<2x8x128xf32, #tpu.memory_space<vmem>>, vector<2x1x128xf32>
    %205 = vector.shape_cast %204 : vector<2x1x128xf32> to vector<2x128xf32>
    %206 = arith.truncf %200 : vector<2x32xf32> to vector<2x32xbf16>
    %cst_62 = arith.constant dense<0.000000e+00> : vector<2x128xf32>
    %207 = tpu.matmul %206, %3, %cst_62 {dimension_numbers = #tpu.dot_dimension_numbers<[1], [0], [0], [1], [0, 0, 1, 1], [], []>} : vector<2x32xbf16>, vector<32x128xbf16>, vector<2x128xf32> -> vector<2x128xf32>
    %208 = arith.addf %205, %207 : vector<2x128xf32>
    %209 = vector.extract_strided_slice %208 {offsets = [0, 0], sizes = [2, 32], strides = [1, 1]} : vector<2x128xf32> to vector<2x32xf32>
    %210 = arith.negf %209 : vector<2x32xf32>
    %211 = math.exp %210 : vector<2x32xf32>
    %cst_63 = arith.constant 1.000000e+00 : f32
    %212 = vector.broadcast %cst_63 : f32 to vector<2x32xf32>
    %213 = arith.addf %212, %211 : vector<2x32xf32>
    %214 = arith.divf %212, %213 : vector<2x32xf32>
    %215 = vector.extract_strided_slice %208 {offsets = [0, 32], sizes = [2, 32], strides = [1, 1]} : vector<2x128xf32> to vector<2x32xf32>
    %216 = arith.negf %215 : vector<2x32xf32>
    %217 = math.exp %216 : vector<2x32xf32>
    %cst_64 = arith.constant 1.000000e+00 : f32
    %218 = vector.broadcast %cst_64 : f32 to vector<2x32xf32>
    %219 = arith.addf %218, %217 : vector<2x32xf32>
    %220 = arith.divf %218, %219 : vector<2x32xf32>
    %221 = vector.extract_strided_slice %208 {offsets = [0, 64], sizes = [2, 32], strides = [1, 1]} : vector<2x128xf32> to vector<2x32xf32>
    %222 = math.tanh %221 : vector<2x32xf32>
    %223 = vector.extract_strided_slice %208 {offsets = [0, 96], sizes = [2, 32], strides = [1, 1]} : vector<2x128xf32> to vector<2x32xf32>
    %224 = arith.negf %223 : vector<2x32xf32>
    %225 = math.exp %224 : vector<2x32xf32>
    %cst_65 = arith.constant 1.000000e+00 : f32
    %226 = vector.broadcast %cst_65 : f32 to vector<2x32xf32>
    %227 = arith.addf %226, %225 : vector<2x32xf32>
    %228 = arith.divf %226, %227 : vector<2x32xf32>
    %229 = arith.mulf %220, %198 : vector<2x32xf32>
    %230 = arith.mulf %214, %222 : vector<2x32xf32>
    %231 = arith.addf %229, %230 : vector<2x32xf32>
    %232 = math.tanh %231 : vector<2x32xf32>
    %233 = arith.mulf %228, %232 : vector<2x32xf32>
    %c0_66 = arith.constant 0 : index
    %c6_67 = arith.constant 6 : index
    %c0_68 = arith.constant 0 : index
    %234 = vector.load %arg4[%c0_66, %c6_67, %c0_68] : memref<2x8x32xf32, #tpu.memory_space<vmem>>, vector<2x1x32xf32>
    %235 = vector.shape_cast %234 : vector<2x1x32xf32> to vector<2x32xf32>
    %236 = vector.shape_cast %233 : vector<2x32xf32> to vector<2x1x32xf32>
    tpu.vector_store %arg4[%c0_66, %c6_67, %c0_68], %236 {strides = array<i32>} : memref<2x8x32xf32, #tpu.memory_space<vmem>>, vector<2x1x32xf32>,
    %c0_69 = arith.constant 0 : index
    %c7 = arith.constant 7 : index
    %c0_70 = arith.constant 0 : index
    %237 = vector.load %arg2[%c0_69, %c7, %c0_70] : memref<2x8x128xf32, #tpu.memory_space<vmem>>, vector<2x1x128xf32>
    %238 = vector.shape_cast %237 : vector<2x1x128xf32> to vector<2x128xf32>
    %239 = arith.truncf %233 : vector<2x32xf32> to vector<2x32xbf16>
    %cst_71 = arith.constant dense<0.000000e+00> : vector<2x128xf32>
    %240 = tpu.matmul %239, %3, %cst_71 {dimension_numbers = #tpu.dot_dimension_numbers<[1], [0], [0], [1], [0, 0, 1, 1], [], []>} : vector<2x32xbf16>, vector<32x128xbf16>, vector<2x128xf32> -> vector<2x128xf32>
    %241 = arith.addf %238, %240 : vector<2x128xf32>
    %242 = vector.extract_strided_slice %241 {offsets = [0, 0], sizes = [2, 32], strides = [1, 1]} : vector<2x128xf32> to vector<2x32xf32>
    %243 = arith.negf %242 : vector<2x32xf32>
    %244 = math.exp %243 : vector<2x32xf32>
    %cst_72 = arith.constant 1.000000e+00 : f32
    %245 = vector.broadcast %cst_72 : f32 to vector<2x32xf32>
    %246 = arith.addf %245, %244 : vector<2x32xf32>
    %247 = arith.divf %245, %246 : vector<2x32xf32>
    %248 = vector.extract_strided_slice %241 {offsets = [0, 32], sizes = [2, 32], strides = [1, 1]} : vector<2x128xf32> to vector<2x32xf32>
    %249 = arith.negf %248 : vector<2x32xf32>
    %250 = math.exp %249 : vector<2x32xf32>
    %cst_73 = arith.constant 1.000000e+00 : f32
    %251 = vector.broadcast %cst_73 : f32 to vector<2x32xf32>
    %252 = arith.addf %251, %250 : vector<2x32xf32>
    %253 = arith.divf %251, %252 : vector<2x32xf32>
    %254 = vector.extract_strided_slice %241 {offsets = [0, 64], sizes = [2, 32], strides = [1, 1]} : vector<2x128xf32> to vector<2x32xf32>
    %255 = math.tanh %254 : vector<2x32xf32>
    %256 = vector.extract_strided_slice %241 {offsets = [0, 96], sizes = [2, 32], strides = [1, 1]} : vector<2x128xf32> to vector<2x32xf32>
    %257 = arith.negf %256 : vector<2x32xf32>
    %258 = math.exp %257 : vector<2x32xf32>
    %cst_74 = arith.constant 1.000000e+00 : f32
    %259 = vector.broadcast %cst_74 : f32 to vector<2x32xf32>
    %260 = arith.addf %259, %258 : vector<2x32xf32>
    %261 = arith.divf %259, %260 : vector<2x32xf32>
    %262 = arith.mulf %253, %231 : vector<2x32xf32>
    %263 = arith.mulf %247, %255 : vector<2x32xf32>
    %264 = arith.addf %262, %263 : vector<2x32xf32>
    %265 = math.tanh %264 : vector<2x32xf32>
    %266 = arith.mulf %261, %265 : vector<2x32xf32>
    %c0_75 = arith.constant 0 : index
    %c7_76 = arith.constant 7 : index
    %c0_77 = arith.constant 0 : index
    %267 = vector.load %arg4[%c0_75, %c7_76, %c0_77] : memref<2x8x32xf32, #tpu.memory_space<vmem>>, vector<2x1x32xf32>
    %268 = vector.shape_cast %267 : vector<2x1x32xf32> to vector<2x32xf32>
    %269 = vector.shape_cast %266 : vector<2x32xf32> to vector<2x1x32xf32>
    tpu.vector_store %arg4[%c0_75, %c7_76, %c0_77], %269 {strides = array<i32>} : memref<2x8x32xf32, #tpu.memory_space<vmem>>, vector<2x1x32xf32>,
    %c0_78 = arith.constant 0 : index
    %c0_79 = arith.constant 0 : index
    %270 = vector.load %arg5[%c0_78, %c0_79] : memref<2x32xf32, #tpu.memory_space<vmem>>, vector<2x32xf32>
    tpu.vector_store %arg5[%c0_78, %c0_79], %266 {strides = array<i32>} : memref<2x32xf32, #tpu.memory_space<vmem>>, vector<2x32xf32>,
    %c0_80 = arith.constant 0 : index
    %c0_81 = arith.constant 0 : index
    %271 = vector.load %arg6[%c0_80, %c0_81] : memref<2x32xf32, #tpu.memory_space<vmem>>, vector<2x32xf32>
    tpu.vector_store %arg6[%c0_80, %c0_81], %264 {strides = array<i32>} : memref<2x32xf32, #tpu.memory_space<vmem>>, vector<2x32xf32>,
    return
  }
  func.func @transform_0(%arg0: i32, %arg1: i32) -> (i32, i32, i32) {
    %c0_i32 = arith.constant 0 : i32
    %c0_i32_0 = arith.constant 0 : i32
    return %arg0, %arg1, %c0_i32 : i32, i32, i32
  }
  func.func @transform_1(%arg0: i32, %arg1: i32) -> (i32, i32) {
    %c0_i32 = arith.constant 0 : i32
    %c0_i32_0 = arith.constant 0 : i32
    %c0_i32_1 = arith.constant 0 : i32
    return %c0_i32, %c0_i32_0 : i32, i32
  }
  func.func @transform_2(%arg0: i32, %arg1: i32) -> (i32, i32, i32) {
    %c0_i32 = arith.constant 0 : i32
    %c0_i32_0 = arith.constant 0 : i32
    return %arg0, %arg1, %c0_i32 : i32, i32, i32
  }
}

</mosaic_0001>

<bundles_post_ra>
// kernel: speaker_encoder_forward.3
= control target key start
LH: loop header
LB: loop body
LE: loop exit
PB: predicated region body
PF: predicated region fallthrough
CT: control target
= control target key end

     0   :  { %vm16_vm0 = vcmask 254976   ;;  %v1175_v1 = vmov 0.0   ;;  %vm40_vm1 = vcmask 261120   ;;  %s1176_s13 = smov 32   ;;  %s1177_s17 = smov 64   ;;  %vm165_vm10 = vcmask 1041409   ;;  %s1533_s1 = inlined_call_operand.vmem [shape: bf16[32,128], index: 1, kind: input, shape index: {}]   ;;  %s1534_s0 = inlined_call_operand.vmem [shape: f32[2,8,128], index: 0, kind: input, shape index: {}]   ;;  %s1535_s2 = inlined_call_operand.vmem [shape: f32[2,8,32], index: 2, kind: output, shape index: {}]  }
   0x1   :  { %v1042_v0 = vld [vmem:[%s1533_s1 + $0x8] sm:$0xff]  ;;  %17 = vst.msk [vmem:[#allocation2] sm:$0x3] %vm16_vm0, %v1175_v1  ;;  %v1041_v2 = vld [vmem:[%s1533_s1] sm:$0xff]  ;;  %s1178_s29 = smov 96  }
   0x2   :  { %18 = vst.msk [vmem:[#allocation3] sm:$0x3] %vm16_vm0, %v1175_v1  ;;  %50 = vmatpush.bf16.msra.mxu0 %v1042_v0  ;;  %179 = vmatpush.bf16.msra.mxu1 %v1042_v0  ;;  %v26_v7 = vld [vmem:[%s1534_s0 + $0x8] sm:$0x1]  ;;  %v25_v11 = vld [vmem:[%s1534_s0] sm:$0x1] }
   0x3   :  { %298 = vmatpush.bf16.msra.mxu2 %v1042_v0  ;;  %417 = vmatpush.bf16.msra.mxu3 %v1042_v0 }
   0x6   :  { %51 = vmatpush.bf16.msra.mxu0 %v1041_v2  ;;  %180 = vmatpush.bf16.msra.mxu1 %v1041_v2 }
   0x7   :  { %299 = vmatpush.bf16.msra.mxu2 %v1041_v2  ;;  %418 = vmatpush.bf16.msra.mxu3 %v1041_v2 }
   0x8   :  { %v23_v3 = vld [vmem:[#allocation2] sm:$0x3] }
   0x9   :  { %v27_v4 = vpack.c.bf16 %v23_v3, %v23_v3  ;;  %v24_v5 = vld [vmem:[#allocation3] sm:$0x3] }
   0xa   :  { %536 = vmatpush.bf16.msrb.mxu0 %v1042_v0  ;;  %655 = vmatpush.bf16.msrb.mxu1 %v1042_v0  ;;  %v104_v6 = vrot.slane %v24_v5, 1 }
   0xb   :  { %774 = vmatpush.bf16.msrb.mxu2 %v1042_v0  ;;  %893 = vmatpush.bf16.msrb.mxu3 %v1042_v0 }
   0xc   :  { %1017 = vmatmul.msk.bf16.vlgmr.msra.gmra.mxu0 %vm40_vm1, %v27_v4  ;;  %107 = vrot.lane.b32.xlu1 %v104_v6, %s1176_s13  ;;  %v156_v4 = vld [vmem:[%s1534_s0 + $0x1] sm:$0x1] }
   0xe   :  { %537 = vmatpush.bf16.msrb.mxu0 %v1041_v2  ;;  %656 = vmatpush.bf16.msrb.mxu1 %v1041_v2 }
   0xf   :  { %775 = vmatpush.bf16.msrb.mxu2 %v1041_v2  ;;  %894 = vmatpush.bf16.msrb.mxu3 %v1041_v2 }
  0x14   :  { %105 = vrot.lane.b32.xlu1 %v24_v5, %s1176_s13  ;;  %v157_v5 = vld [vmem:[%s1534_s0 + $0x9] sm:$0x1] }
  0x7e   :  { %v108_v46 = vpop.permute.xlu1 %107 }
  0x86   :  { %v106_v50 = vpop.permute.xlu1 %105 }
  0x89   :  { %v53_v8 = vpop.f32.mrf.mxu0 }
  0x8a   :  { %v58_v9 = vrot.slane %v53_v8, 1  ;;  %v61_v13 = vadd.f32 %v53_v8, %v25_v11 }
  0x8c   :  { %v62_v10 = vadd.f32 %v58_v9, %v26_v7  ;;  %v1018_v17 = vmul.f32 -1.442695, %v61_v13 }
  0x8e   :  { %1047 = vtanh.f32 %v62_v10  ;;  %v1019_v16 = vmul.f32 -1.442695, %v62_v10 }
  0x8f   :  { %1049 = vtanh.f32 %v61_v13 }
  0x90   :  { %1051 = vpow2.f32 %v1019_v16 }
  0x91   :  { %v55_v12 = vpop.f32.mrf.mxu0  ;;  %1053 = vpow2.f32 %v1018_v17 }
  0x94   :  { %v1048_v14 = vpop.eup %1047 }
  0x95   :  { %117 = vrot.lane.b32.xlu0 %v1048_v14, %s1177_s17  ;;  %v1050_v15 = vpop.eup %1049 }
  0x96   :  { %v1052_v18 = vpop.eup %1051 }
  0x97   :  { %v70_v19 = vadd.f32 1.0, %v1052_v18  ;;  %v1054_v20 = vpop.eup %1053 }
  0x98   :  { %v69_v21 = vadd.f32 1.0, %v1054_v20 }
  0x99   :  { %1055 = vrcp.f32 %v70_v19  ;;  %v97_v30 = vand.u32 2147483648, %v70_v19  ;;  %vm91_vm3 = vweird.f32 %v70_v19  ;;  %v95_v31 = vand.u32 2147483647, %v70_v19 }
  0x9a   :  { %1057 = vrcp.f32 %v69_v21  ;;  %v82_v39 = vand.u32 2147483648, %v69_v21  ;;  %vm76_vm7 = vweird.f32 %v69_v21  ;;  %v80_v40 = vand.u32 2147483647, %v69_v21 }
  0x9b   :  { %v98_v34 = vor.u32 1.1754944e-38, %v97_v30  ;;  %vm96_vm5 = vcmp.eq.f32.partialorder %v95_v31, 8.507059e+37 }
  0x9c   :  { %v83_v42 = vor.u32 1.1754944e-38, %v82_v39  ;;  %vm81_vm9 = vcmp.eq.f32.partialorder %v80_v40, 8.507059e+37 }
  0x9d   :  { %115 = vrot.lane.b32.xlu0 %v1050_v15, %s1177_s17 }
  0x9f   :  { %v1056_v22 = vpop.eup %1055 }
  0xa0   :  { %v87_v23 = vmul.f32 %v1056_v22, %v70_v19  ;;  %v1058_v25 = vpop.eup %1057  ;;  %vm92_vm2 = vweird.f32 %v1056_v22 }
  0xa1   :  { %v72_v27 = vmul.f32 %v1058_v25, %v69_v21  ;;  %vm93_vm4 = vmor %vm91_vm3, %vm92_vm2  ;;  %vm77_vm6 = vweird.f32 %v1058_v25 }
  0xa2   :  { %v88_v24 = vsub.f32 1.0, %v87_v23  ;;  %vm78_vm8 = vmor %vm76_vm7, %vm77_vm6 }
  0xa3   :  { %v73_v29 = vsub.f32 1.0, %v72_v27 }
  0xa4   :  { %v89_v26 = vmul.f32 %v1056_v22, %v88_v24 }
  0xa5   :  { %v74_v33 = vmul.f32 %v1058_v25, %v73_v29 }
  0xa6   :  { %v90_v28 = vadd.f32 %v1056_v22, %v89_v26 }
  0xa7   :  { %v75_v37 = vadd.f32 %v1058_v25, %v74_v33 }
  0xa8   :  { %v94_v32 = vsel %vm93_vm4, %v1056_v22, %v90_v28 }
  0xa9   :  { %v99_v35 = vsel %vm96_vm5, %v98_v34, %v94_v32  ;;  %v79_v41 = vsel %vm78_vm8, %v1058_v25, %v75_v37 }
  0xaa   :  { %v84_v43 = vsel %vm81_vm9, %v83_v42, %v79_v41  ;;  %v112_v47 = vmul.f32 %v108_v46, %v99_v35 }
  0xab   :  { %v111_v51 = vmul.f32 %v106_v50, %v84_v43 }
 0x107   :  { %v118_v36 = vpop.permute.xlu0 %117 }
 0x108   :  { %v122_v38 = vmul.f32 %v118_v36, %v99_v35 }
 0x10a   :  { %127 = vrot.lane.b32.xlu2 %v122_v38, %s1176_s13 }
 0x10f   :  { %v116_v44 = vpop.permute.xlu0 %115 }
 0x110   :  { %v121_v45 = vmul.f32 %v116_v44, %v84_v43 }
 0x112   :  { %125 = vrot.lane.b32.xlu2 %v121_v45, %s1176_s13 }
 0x164   :  { %v128_v48 = vpop.permute.xlu2 %127 }
 0x165   :  { %v1215_v49 = vadd.f32 %v128_v48, %v112_v47 }
 0x167   :  { %1059 = vtanh.f32 %v1215_v49 }
 0x16c   :  { %v126_v52 = vpop.permute.xlu2 %125 }
 0x16d   :  { %v1060_v53 = vpop.eup %1059  ;;  %v1218_v54 = vadd.f32 %v126_v52, %v111_v51 }
 0x16e   :  { %139 = vrot.lane.b32.xlu0 %v1060_v53, %s1177_s17 }
 0x16f   :  { %1061 = vtanh.f32 %v1218_v54 }
 0x175   :  { %v1062_v55 = vpop.eup %1061 }
 0x176   :  { %137 = vrot.lane.b32.xlu1 %v1062_v55, %s1177_s17 }
 0x1e0   :  { %v140_v56 = vpop.permute.xlu0 %139 }
 0x1e1   :  { %v1223_v57 = vmul.f32 %v140_v56, %v99_v35 }
 0x1e3   :  { %v159_v58 = vpack.c.bf16 %v1223_v57, %v1223_v57 }
 0x1e5   :  { %v163_v60 = vunpack.c.l.b16 %v159_v58 }
 0x1e7   :  { %v164_v63 = vrot.slane %v163_v60, 7 }
 0x1e8   :  { %v138_v59 = vpop.permute.xlu1 %137 }
 0x1e9   :  { %v1227_v61 = vmul.f32 %v138_v59, %v84_v43 }
 0x1eb   :  { %v158_v62 = vpack.c.bf16 %v1227_v61, %v1227_v61 }
 0x1ed   :  { %v162_v0 = vunpack.c.l.b16 %v158_v62 }
 0x1ef   :  { %v166_v1 = vsel %vm165_vm10, %v164_v63, %v162_v0 }
 0x1f0   :  { %v167_v2 = vpack.c.b16 %v166_v1, %v166_v1  ;;  %v276_v1 = vld [vmem:[%s1534_s0 + $0x2] sm:$0x1] }
 0x1f2   :  { %168 = vrot.lane.b32.xlu2 %v167_v2, %s1176_s13  ;;  %v277_v2 = vld [vmem:[%s1534_s0 + $0xa] sm:$0x1] }
 0x24c   :  { %v169_v3 = vpop.permute.xlu2 %168 }
 0x24d   :  { %1020 = vmatmul.msk.bf16.vlgmr.msra.gmra.mxu1 %vm40_vm1, %v169_v3 }
 0x2ca   :  { %v182_v6 = vpop.f32.mrf.mxu1 }
 0x2cb   :  { %v187_v7 = vrot.slane %v182_v6, 1  ;;  %v190_v8 = vadd.f32 %v182_v6, %v156_v4 }
 0x2cd   :  { %v191_v9 = vadd.f32 %v187_v7, %v157_v5  ;;  %1063 = vtanh.f32 %v190_v8  ;;  %v1021_v13 = vmul.f32 -1.442695, %v190_v8 }
 0x2cf   :  { %1065 = vtanh.f32 %v191_v9  ;;  %v1022_v14 = vmul.f32 -1.442695, %v191_v9 }
 0x2d0   :  { %1067 = vpow2.f32 %v1021_v13 }
 0x2d1   :  { %1069 = vpow2.f32 %v1022_v14 }
 0x2d2   :  { %v184_v10 = vpop.f32.mrf.mxu1 }
 0x2d3   :  { %v1064_v11 = vpop.eup %1063 }
 0x2d4   :  { %236 = vrot.lane.b32.xlu1 %v1064_v11, %s1177_s17 }
 0x2d5   :  { %v1066_v12 = vpop.eup %1065 }
 0x2d6   :  { %238 = vrot.lane.b32.xlu0 %v1066_v12, %s1177_s17  ;;  %v1068_v15 = vpop.eup %1067 }
 0x2d7   :  { %v1070_v16 = vpop.eup %1069  ;;  %v198_v17 = vadd.f32 1.0, %v1068_v15 }
 0x2d8   :  { %v199_v18 = vadd.f32 1.0, %v1070_v16 }
 0x2d9   :  { %1071 = vrcp.f32 %v198_v17  ;;  %v211_v28 = vand.u32 2147483648, %v198_v17  ;;  %vm205_vm12 = vweird.f32 %v198_v17  ;;  %v209_v29 = vand.u32 2147483647, %v198_v17 }
 0x2da   :  { %1073 = vrcp.f32 %v199_v18  ;;  %v226_v32 = vand.u32 2147483648, %v199_v18  ;;  %vm220_vm15 = vweird.f32 %v199_v18  ;;  %v224_v34 = vand.u32 2147483647, %v199_v18 }
 0x2db   :  { %v212_v33 = vor.u32 1.1754944e-38, %v211_v28  ;;  %vm210_vm2 = vcmp.eq.f32.partialorder %v209_v29, 8.507059e+37 }
 0x2dc   :  { %v227_v39 = vor.u32 1.1754944e-38, %v226_v32  ;;  %vm225_vm4 = vcmp.eq.f32.partialorder %v224_v34, 8.507059e+37 }
 0x2df   :  { %v1072_v19 = vpop.eup %1071 }
 0x2e0   :  { %v1074_v20 = vpop.eup %1073  ;;  %v201_v21 = vmul.f32 %v1072_v19, %v198_v17  ;;  %vm206_vm11 = vweird.f32 %v1072_v19 }
 0x2e1   :  { %v216_v22 = vmul.f32 %v1074_v20, %v199_v18  ;;  %vm207_vm13 = vmor %vm205_vm12, %vm206_vm11  ;;  %vm221_vm14 = vweird.f32 %v1074_v20 }
 0x2e2   :  { %v202_v23 = vsub.f32 1.0, %v201_v21  ;;  %vm222_vm3 = vmor %vm220_vm15, %vm221_vm14 }
 0x2e3   :  { %v217_v24 = vsub.f32 1.0, %v216_v22 }
 0x2e4   :  { %v203_v25 = vmul.f32 %v1072_v19, %v202_v23 }
 0x2e5   :  { %v218_v26 = vmul.f32 %v1074_v20, %v217_v24 }
 0x2e6   :  { %v204_v27 = vadd.f32 %v1072_v19, %v203_v25 }
 0x2e7   :  { %v219_v30 = vadd.f32 %v1074_v20, %v218_v26 }
 0x2e8   :  { %v208_v31 = vsel %vm207_vm13, %v1072_v19, %v204_v27 }
 0x2e9   :  { %v213_v36 = vsel %vm210_vm2, %v212_v33, %v208_v31  ;;  %v223_v37 = vsel %vm222_vm3, %v1074_v20, %v219_v30 }
 0x2ea   :  { %v228_v41 = vsel %vm225_vm4, %v227_v39, %v223_v37  ;;  %v232_v47 = vmul.f32 %v213_v36, %v1218_v54 }
 0x2eb   :  { %v233_v43 = vmul.f32 %v228_v41, %v1215_v49 }
 0x346   :  { %v237_v35 = vpop.permute.xlu1 %236 }
 0x347   :  { %v242_v38 = vmul.f32 %v237_v35, %v213_v36 }
 0x348   :  { %v239_v40 = vpop.permute.xlu0 %238 }
 0x349   :  { %246 = vrot.lane.b32.xlu0 %v242_v38, %s1176_s13  ;;  %v243_v42 = vmul.f32 %v239_v40, %v228_v41 }
 0x34b   :  { %248 = vrot.lane.b32.xlu2 %v243_v42, %s1176_s13 }
 0x3a5   :  { %v249_v44 = vpop.permute.xlu2 %248 }
 0x3a6   :  { %v1245_v45 = vadd.f32 %v249_v44, %v233_v43 }
 0x3a8   :  { %1075 = vtanh.f32 %v1245_v45 }
 0x3ae   :  { %v1076_v46 = vpop.eup %1075 }
 0x3af   :  { %260 = vrot.lane.b32.xlu1 %v1076_v46, %s1177_s17 }
 0x3bb   :  { %v247_v48 = vpop.permute.xlu0 %246 }
 0x3bc   :  { %v1250_v50 = vadd.f32 %v247_v48, %v232_v47 }
 0x3be   :  { %1077 = vtanh.f32 %v1250_v50 }
 0x3c4   :  { %v1078_v51 = vpop.eup %1077 }
 0x3c5   :  { %258 = vrot.lane.b32.xlu2 %v1078_v51, %s1177_s17 }
 0x41f   :  { %v259_v52 = vpop.permute.xlu2 %258 }
 0x420   :  { %v1254_v49 = vmul.f32 %v259_v52, %v213_v36 }
 0x421   :  { %v261_v53 = vpop.permute.xlu1 %260 }
 0x422   :  { %v1256_v55 = vmul.f32 %v261_v53, %v228_v41  ;;  %v278_v56 = vpack.c.bf16 %v1254_v49, %v1254_v49 }
 0x424   :  { %v279_v54 = vpack.c.bf16 %v1256_v55, %v1256_v55  ;;  %v282_v59 = vunpack.c.l.b16 %v278_v56 }
 0x426   :  { %v283_v58 = vunpack.c.l.b16 %v279_v54 }
 0x428   :  { %v284_v60 = vrot.slane %v283_v58, 7 }
 0x42a   :  { %v285_v62 = vsel %vm165_vm10, %v284_v60, %v282_v59 }
 0x42b   :  { %v286_v63 = vpack.c.b16 %v285_v62, %v285_v62 }
 0x42d   :  { %287 = vrot.lane.b32.xlu0 %v286_v63, %s1176_s13 }
 0x49f   :  { %v288_v0 = vpop.permute.xlu0 %287 }
 0x4a0   :  { %1023 = vmatmul.msk.bf16.vlgmr.msra.gmra.mxu2 %vm40_vm1, %v288_v0  ;;  %v395_v0 = vld [vmem:[%s1534_s0 + $0x3] sm:$0x1] }
 0x523   :  { %v301_v3 = vpop.f32.mrf.mxu2 }
 0x524   :  { %v306_v4 = vrot.slane %v301_v3, 1  ;;  %v309_v5 = vadd.f32 %v301_v3, %v276_v1  ;;  %v396_v1 = vld [vmem:[%s1534_s0 + $0xb] sm:$0x1] }
 0x526   :  { %v310_v6 = vadd.f32 %v306_v4, %v277_v2  ;;  %1079 = vtanh.f32 %v309_v5  ;;  %v1024_v10 = vmul.f32 -1.442695, %v309_v5 }
 0x528   :  { %1081 = vtanh.f32 %v310_v6  ;;  %v1025_v15 = vmul.f32 -1.442695, %v310_v6 }
 0x529   :  { %1083 = vpow2.f32 %v1024_v10 }
 0x52b   :  { %v303_v7 = vpop.f32.mrf.mxu2 }
 0x52c   :  { %v1080_v8 = vpop.eup %1079 }
 0x52d   :  { %355 = vrot.lane.b32.xlu2 %v1080_v8, %s1177_s17 }
 0x52e   :  { %v1082_v9 = vpop.eup %1081 }
 0x52f   :  { %357 = vrot.lane.b32.xlu1 %v1082_v9, %s1177_s17  ;;  %v1084_v11 = vpop.eup %1083 }
 0x530   :  { %v317_v12 = vadd.f32 1.0, %v1084_v11 }
 0x532   :  { %1085 = vrcp.f32 %v317_v12  ;;  %v330_v20 = vand.u32 2147483648, %v317_v12  ;;  %vm324_vm6 = vweird.f32 %v317_v12  ;;  %v328_v22 = vand.u32 2147483647, %v317_v12 }
 0x533   :  { %1087 = vpow2.f32 %v1025_v15 }
 0x534   :  { %v331_v24 = vor.u32 1.1754944e-38, %v330_v20  ;;  %vm329_vm8 = vcmp.eq.f32.partialorder %v328_v22, 8.507059e+37 }
 0x538   :  { %v1086_v13 = vpop.eup %1085 }
 0x539   :  { %v320_v14 = vmul.f32 %v1086_v13, %v317_v12  ;;  %v1088_v18 = vpop.eup %1087  ;;  %vm325_vm5 = vweird.f32 %v1086_v13 }
 0x53a   :  { %v318_v21 = vadd.f32 1.0, %v1088_v18  ;;  %vm326_vm7 = vmor %vm324_vm6, %vm325_vm5 }
 0x53b   :  { %v321_v16 = vsub.f32 1.0, %v320_v14 }
 0x53c   :  { %1089 = vrcp.f32 %v318_v21  ;;  %v345_v33 = vand.u32 2147483648, %v318_v21  ;;  %vm339_vm11 = vweird.f32 %v318_v21  ;;  %v343_v34 = vand.u32 2147483647, %v318_v21 }
 0x53d   :  { %v322_v17 = vmul.f32 %v1086_v13, %v321_v16 }
 0x53e   :  { %v346_v36 = vor.u32 1.1754944e-38, %v345_v33  ;;  %vm344_vm13 = vcmp.eq.f32.partialorder %v343_v34, 8.507059e+37 }
 0x53f   :  { %v323_v19 = vadd.f32 %v1086_v13, %v322_v17 }
 0x541   :  { %v327_v23 = vsel %vm326_vm7, %v1086_v13, %v323_v19 }
 0x542   :  { %v332_v26 = vsel %vm329_vm8, %v331_v24, %v327_v23  ;;  %v1090_v28 = vpop.eup %1089 }
 0x543   :  { %v335_v29 = vmul.f32 %v1090_v28, %v318_v21  ;;  %vm340_vm9 = vweird.f32 %v1090_v28  ;;  %v351_v40 = vmul.f32 %v332_v26, %v1250_v50 }
 0x544   :  { %vm341_vm12 = vmor %vm339_vm11, %vm340_vm9 }
 0x545   :  { %v336_v30 = vsub.f32 1.0, %v335_v29 }
 0x547   :  { %v337_v31 = vmul.f32 %v1090_v28, %v336_v30 }
 0x549   :  { %v338_v32 = vadd.f32 %v1090_v28, %v337_v31 }
 0x54b   :  { %v342_v35 = vsel %vm341_vm12, %v1090_v28, %v338_v32 }
 0x54c   :  { %v347_v38 = vsel %vm344_vm13, %v346_v36, %v342_v35 }
 0x54d   :  { %v352_v44 = vmul.f32 %v347_v38, %v1245_v45 }
 0x587   :  { %v356_v25 = vpop.permute.xlu2 %355 }
 0x588   :  { %v361_v27 = vmul.f32 %v356_v25, %v332_v26 }
 0x58a   :  { %365 = vrot.lane.b32.xlu1 %v361_v27, %s1176_s13 }
 0x5a1   :  { %v358_v37 = vpop.permute.xlu1 %357 }
 0x5a2   :  { %v362_v39 = vmul.f32 %v358_v37, %v347_v38 }
 0x5a4   :  { %367 = vrot.lane.b32.xlu0 %v362_v39, %s1176_s13 }
 0x5fc   :  { %v366_v41 = vpop.permute.xlu1 %365 }
 0x5fd   :  { %v1276_v42 = vadd.f32 %v366_v41, %v351_v40 }
 0x5ff   :  { %1091 = vtanh.f32 %v1276_v42 }
 0x605   :  { %v1092_v43 = vpop.eup %1091 }
 0x606   :  { %377 = vrot.lane.b32.xlu0 %v1092_v43, %s1177_s17 }
 0x616   :  { %v368_v46 = vpop.permute.xlu0 %367 }
 0x617   :  { %v1281_v47 = vadd.f32 %v368_v46, %v352_v44 }
 0x619   :  { %1093 = vtanh.f32 %v1281_v47 }
 0x61f   :  { %v1094_v48 = vpop.eup %1093 }
 0x620   :  { %379 = vrot.lane.b32.xlu2 %v1094_v48, %s1177_s17 }
 0x678   :  { %v378_v51 = vpop.permute.xlu0 %377 }
 0x679   :  { %v1285_v50 = vmul.f32 %v378_v51, %v332_v26 }
 0x67a   :  { %v380_v52 = vpop.permute.xlu2 %379 }
 0x67b   :  { %v1287_v53 = vmul.f32 %v380_v52, %v347_v38  ;;  %v397_v56 = vpack.c.bf16 %v1285_v50, %v1285_v50 }
 0x67d   :  { %v398_v45 = vpack.c.bf16 %v1287_v53, %v1287_v53  ;;  %v401_v58 = vunpack.c.l.b16 %v397_v56 }
 0x67f   :  { %v402_v54 = vunpack.c.l.b16 %v398_v45 }
 0x681   :  { %v403_v59 = vrot.slane %v402_v54, 7 }
 0x683   :  { %v404_v60 = vsel %vm165_vm10, %v403_v59, %v401_v58 }
 0x684   :  { %v405_v62 = vpack.c.b16 %v404_v60, %v404_v60 }
 0x686   :  { %406 = vrot.lane.b32.xlu1 %v405_v62, %s1176_s13 }
 0x6f8   :  { %v407_v63 = vpop.permute.xlu1 %406 }
 0x6f9   :  { %1026 = vmatmul.msk.bf16.vlgmr.msra.gmra.mxu3 %vm40_vm1, %v407_v63 }
 0x77c   :  { %v420_v2 = vpop.f32.mrf.mxu3 }
 0x77d   :  { %v425_v3 = vrot.slane %v420_v2, 1  ;;  %v428_v4 = vadd.f32 %v420_v2, %v395_v0  ;;  %v515_v2 = vld [vmem:[%s1534_s0 + $0xc] sm:$0x1] }
 0x77f   :  { %v429_v5 = vadd.f32 %v425_v3, %v396_v1  ;;  %1095 = vtanh.f32 %v428_v4  ;;  %v1027_v12 = vmul.f32 -1.442695, %v428_v4  ;;  %v514_v1 = vld [vmem:[%s1534_s0 + $0x4] sm:$0x1] }
 0x781   :  { %1097 = vtanh.f32 %v429_v5  ;;  %v1028_v9 = vmul.f32 -1.442695, %v429_v5 }
 0x783   :  { %1099 = vpow2.f32 %v1028_v9 }
 0x784   :  { %v422_v6 = vpop.f32.mrf.mxu3 }
 0x785   :  { %v1096_v7 = vpop.eup %1095 }
 0x786   :  { %474 = vrot.lane.b32.xlu0 %v1096_v7, %s1177_s17 }
 0x787   :  { %v1098_v8 = vpop.eup %1097 }
 0x788   :  { %476 = vrot.lane.b32.xlu2 %v1098_v8, %s1177_s17 }
 0x789   :  { %v1100_v10 = vpop.eup %1099 }
 0x78a   :  { %v437_v11 = vadd.f32 1.0, %v1100_v10 }
 0x78c   :  { %1101 = vrcp.f32 %v437_v11  ;;  %v464_v20 = vand.u32 2147483648, %v437_v11  ;;  %vm458_vm15 = vweird.f32 %v437_v11  ;;  %v462_v21 = vand.u32 2147483647, %v437_v11 }
 0x78d   :  { %1103 = vpow2.f32 %v1027_v12 }
 0x78e   :  { %v465_v23 = vor.u32 1.1754944e-38, %v464_v20  ;;  %vm463_vm3 = vcmp.eq.f32.partialorder %v462_v21, 8.507059e+37 }
 0x792   :  { %v1102_v13 = vpop.eup %1101 }
 0x793   :  { %v454_v14 = vmul.f32 %v1102_v13, %v437_v11  ;;  %v1104_v16 = vpop.eup %1103  ;;  %vm459_vm14 = vweird.f32 %v1102_v13 }
 0x794   :  { %v436_v17 = vadd.f32 1.0, %v1104_v16  ;;  %vm460_vm2 = vmor %vm458_vm15, %vm459_vm14 }
 0x795   :  { %v455_v15 = vsub.f32 1.0, %v454_v14 }
 0x796   :  { %1105 = vrcp.f32 %v436_v17  ;;  %v449_v32 = vand.u32 2147483648, %v436_v17  ;;  %vm443_vm5 = vweird.f32 %v436_v17  ;;  %v447_v33 = vand.u32 2147483647, %v436_v17 }
 0x797   :  { %v456_v18 = vmul.f32 %v1102_v13, %v455_v15 }
 0x798   :  { %v450_v35 = vor.u32 1.1754944e-38, %v449_v32  ;;  %vm448_vm7 = vcmp.eq.f32.partialorder %v447_v33, 8.507059e+37 }
 0x799   :  { %v457_v19 = vadd.f32 %v1102_v13, %v456_v18 }
 0x79b   :  { %v461_v22 = vsel %vm460_vm2, %v1102_v13, %v457_v19 }
 0x79c   :  { %v1106_v24 = vpop.eup %1105  ;;  %v466_v26 = vsel %vm463_vm3, %v465_v23, %v461_v22 }
 0x79d   :  { %v439_v28 = vmul.f32 %v1106_v24, %v436_v17  ;;  %vm444_vm4 = vweird.f32 %v1106_v24  ;;  %v471_v43 = vmul.f32 %v466_v26, %v1281_v47 }
 0x79e   :  { %vm445_vm6 = vmor %vm443_vm5, %vm444_vm4 }
 0x79f   :  { %v440_v29 = vsub.f32 1.0, %v439_v28 }
 0x7a1   :  { %v441_v30 = vmul.f32 %v1106_v24, %v440_v29 }
 0x7a3   :  { %v442_v31 = vadd.f32 %v1106_v24, %v441_v30 }
 0x7a5   :  { %v446_v34 = vsel %vm445_vm6, %v1106_v24, %v442_v31 }
 0x7a6   :  { %v451_v37 = vsel %vm448_vm7, %v450_v35, %v446_v34 }
 0x7a7   :  { %v470_v39 = vmul.f32 %v451_v37, %v1276_v42 }
 0x7e2   :  { %v477_v25 = vpop.permute.xlu2 %476 }
 0x7e3   :  { %v481_v27 = vmul.f32 %v477_v25, %v466_v26 }
 0x7e5   :  { %486 = vrot.lane.b32.xlu1 %v481_v27, %s1176_s13 }
 0x7f8   :  { %v475_v36 = vpop.permute.xlu0 %474 }
 0x7f9   :  { %v480_v38 = vmul.f32 %v475_v36, %v451_v37 }
 0x7fb   :  { %484 = vrot.lane.b32.xlu2 %v480_v38, %s1176_s13 }
 0x855   :  { %v485_v40 = vpop.permute.xlu2 %484 }
 0x856   :  { %v1307_v41 = vadd.f32 %v485_v40, %v470_v39 }
 0x857   :  { %v487_v44 = vpop.permute.xlu1 %486 }
 0x858   :  { %1107 = vtanh.f32 %v1307_v41  ;;  %v1311_v46 = vadd.f32 %v487_v44, %v471_v43 }
 0x85a   :  { %1109 = vtanh.f32 %v1311_v46 }
 0x85e   :  { %v1108_v48 = vpop.eup %1107 }
 0x85f   :  { %496 = vrot.lane.b32.xlu1 %v1108_v48, %s1177_s17 }
 0x860   :  { %v1110_v51 = vpop.eup %1109 }
 0x861   :  { %498 = vrot.lane.b32.xlu0 %v1110_v51, %s1177_s17 }
 0x8d1   :  { %v497_v52 = vpop.permute.xlu1 %496 }
 0x8d2   :  { %v1316_v42 = vmul.f32 %v497_v52, %v451_v37 }
 0x8d3   :  { %v499_v56 = vpop.permute.xlu0 %498 }
 0x8d4   :  { %v1318_v45 = vmul.f32 %v499_v56, %v466_v26  ;;  %v516_v47 = vpack.c.bf16 %v1316_v42, %v1316_v42 }
 0x8d6   :  { %v517_v54 = vpack.c.bf16 %v1318_v45, %v1318_v45  ;;  %v520_v59 = vunpack.c.l.b16 %v516_v47 }
 0x8d8   :  { %v521_v58 = vunpack.c.l.b16 %v517_v54 }
 0x8da   :  { %v522_v60 = vrot.slane %v521_v58, 7 }
 0x8dc   :  { %v523_v62 = vsel %vm165_vm10, %v522_v60, %v520_v59 }
 0x8dd   :  { %v524_v63 = vpack.c.b16 %v523_v62, %v523_v62 }
 0x8df   :  { %525 = vrot.lane.b32.xlu2 %v524_v63, %s1176_s13 }
 0x939   :  { %v526_v0 = vpop.permute.xlu2 %525 }
 0x93a   :  { %1029 = vmatmul.msk.bf16.vlgmr.msrb.gmra.mxu0 %vm40_vm1, %v526_v0 }
 0x9b7   :  { %v539_v3 = vpop.f32.mrf.mxu0 }
 0x9b8   :  { %v544_v4 = vrot.slane %v539_v3, 1  ;;  %v547_v5 = vadd.f32 %v539_v3, %v514_v1 }
 0x9ba   :  { %v548_v6 = vadd.f32 %v544_v4, %v515_v2  ;;  %1111 = vtanh.f32 %v547_v5  ;;  %v1030_v10 = vmul.f32 -1.442695, %v547_v5  ;;  %v633_v4 = vld [vmem:[%s1534_s0 + $0x5] sm:$0x1]  ;;  %v634_v5 = vld [vmem:[%s1534_s0 + $0xd] sm:$0x1] }
 0x9bc   :  { %1113 = vtanh.f32 %v548_v6  ;;  %v1031_v11 = vmul.f32 -1.442695, %v548_v6 }
 0x9bd   :  { %1115 = vpow2.f32 %v1030_v10 }
 0x9be   :  { %1117 = vpow2.f32 %v1031_v11 }
 0x9bf   :  { %v541_v7 = vpop.f32.mrf.mxu0 }
 0x9c0   :  { %v1112_v8 = vpop.eup %1111 }
 0x9c1   :  { %593 = vrot.lane.b32.xlu1 %v1112_v8, %s1177_s17 }
 0x9c2   :  { %v1114_v9 = vpop.eup %1113 }
 0x9c3   :  { %595 = vrot.lane.b32.xlu0 %v1114_v9, %s1177_s17  ;;  %v1116_v12 = vpop.eup %1115 }
 0x9c4   :  { %v1118_v13 = vpop.eup %1117  ;;  %v555_v14 = vadd.f32 1.0, %v1116_v12 }
 0x9c5   :  { %v556_v15 = vadd.f32 1.0, %v1118_v13 }
 0x9c6   :  { %1119 = vrcp.f32 %v555_v14  ;;  %v568_v25 = vand.u32 2147483648, %v555_v14  ;;  %vm562_vm9 = vweird.f32 %v555_v14  ;;  %v566_v26 = vand.u32 2147483647, %v555_v14 }
 0x9c7   :  { %1121 = vrcp.f32 %v556_v15  ;;  %v583_v29 = vand.u32 2147483648, %v556_v15  ;;  %vm577_vm13 = vweird.f32 %v556_v15  ;;  %v581_v31 = vand.u32 2147483647, %v556_v15 }
 0x9c8   :  { %v569_v30 = vor.u32 1.1754944e-38, %v568_v25  ;;  %vm567_vm14 = vcmp.eq.f32.partialorder %v566_v26, 8.507059e+37 }
 0x9c9   :  { %v584_v36 = vor.u32 1.1754944e-38, %v583_v29  ;;  %vm582_vm2 = vcmp.eq.f32.partialorder %v581_v31, 8.507059e+37 }
 0x9cc   :  { %v1120_v16 = vpop.eup %1119 }
 0x9cd   :  { %v1122_v17 = vpop.eup %1121  ;;  %v558_v18 = vmul.f32 %v1120_v16, %v555_v14  ;;  %vm563_vm8 = vweird.f32 %v1120_v16 }
 0x9ce   :  { %v573_v19 = vmul.f32 %v1122_v17, %v556_v15  ;;  %vm564_vm11 = vmor %vm562_vm9, %vm563_vm8  ;;  %vm578_vm12 = vweird.f32 %v1122_v17 }
 0x9cf   :  { %v559_v20 = vsub.f32 1.0, %v558_v18  ;;  %vm579_vm15 = vmor %vm577_vm13, %vm578_vm12 }
 0x9d0   :  { %v574_v21 = vsub.f32 1.0, %v573_v19 }
 0x9d1   :  { %v560_v22 = vmul.f32 %v1120_v16, %v559_v20 }
 0x9d2   :  { %v575_v23 = vmul.f32 %v1122_v17, %v574_v21 }
 0x9d3   :  { %v561_v24 = vadd.f32 %v1120_v16, %v560_v22 }
 0x9d4   :  { %v576_v27 = vadd.f32 %v1122_v17, %v575_v23 }
 0x9d5   :  { %v565_v28 = vsel %vm564_vm11, %v1120_v16, %v561_v24 }
 0x9d6   :  { %v570_v33 = vsel %vm567_vm14, %v569_v30, %v565_v28  ;;  %v580_v34 = vsel %vm579_vm15, %v1122_v17, %v576_v27 }
 0x9d7   :  { %v585_v38 = vsel %vm582_vm2, %v584_v36, %v580_v34  ;;  %v589_v51 = vmul.f32 %v570_v33, %v1307_v41 }
 0x9d8   :  { %v590_v40 = vmul.f32 %v585_v38, %v1311_v46 }
 0xa33   :  { %v594_v32 = vpop.permute.xlu1 %593 }
 0xa34   :  { %v599_v35 = vmul.f32 %v594_v32, %v570_v33 }
 0xa35   :  { %v596_v37 = vpop.permute.xlu0 %595 }
 0xa36   :  { %603 = vrot.lane.b32.xlu0 %v599_v35, %s1176_s13  ;;  %v600_v39 = vmul.f32 %v596_v37, %v585_v38 }
 0xa38   :  { %605 = vrot.lane.b32.xlu2 %v600_v39, %s1176_s13 }
 0xa92   :  { %v606_v43 = vpop.permute.xlu2 %605 }
 0xa93   :  { %v1338_v44 = vadd.f32 %v606_v43, %v590_v40 }
 0xa95   :  { %1123 = vtanh.f32 %v1338_v44 }
 0xa9b   :  { %v1124_v48 = vpop.eup %1123 }
 0xa9c   :  { %617 = vrot.lane.b32.xlu1 %v1124_v48, %s1177_s17 }
 0xaa8   :  { %v604_v52 = vpop.permute.xlu0 %603 }
 0xaa9   :  { %v1343_v56 = vadd.f32 %v604_v52, %v589_v51 }
 0xaab   :  { %1125 = vtanh.f32 %v1343_v56 }
 0xab1   :  { %v1126_v47 = vpop.eup %1125 }
 0xab2   :  { %615 = vrot.lane.b32.xlu2 %v1126_v47, %s1177_s17 }
 0xb0c   :  { %v616_v54 = vpop.permute.xlu2 %615 }
 0xb0d   :  { %v1347_v46 = vmul.f32 %v616_v54, %v570_v33 }
 0xb0e   :  { %v618_v58 = vpop.permute.xlu1 %617 }
 0xb0f   :  { %v1349_v59 = vmul.f32 %v618_v58, %v585_v38  ;;  %v635_v60 = vpack.c.bf16 %v1347_v46, %v1347_v46 }
 0xb11   :  { %v636_v41 = vpack.c.bf16 %v1349_v59, %v1349_v59  ;;  %v639_v63 = vunpack.c.l.b16 %v635_v60 }
 0xb13   :  { %v640_v62 = vunpack.c.l.b16 %v636_v41 }
 0xb15   :  { %v641_v0 = vrot.slane %v640_v62, 7 }
 0xb17   :  { %v642_v1 = vsel %vm165_vm10, %v641_v0, %v639_v63 }
 0xb18   :  { %v643_v2 = vpack.c.b16 %v642_v1, %v642_v1 }
 0xb1a   :  { %644 = vrot.lane.b32.xlu0 %v643_v2, %s1176_s13 }
 0xb8c   :  { %v645_v3 = vpop.permute.xlu0 %644 }
 0xb8d   :  { %1032 = vmatmul.msk.bf16.vlgmr.msrb.gmra.mxu1 %vm40_vm1, %v645_v3 }
 0xc0a   :  { %v658_v6 = vpop.f32.mrf.mxu1 }
 0xc0b   :  { %v663_v7 = vrot.slane %v658_v6, 1  ;;  %v666_v8 = vadd.f32 %v658_v6, %v633_v4 }
 0xc0d   :  { %v667_v9 = vadd.f32 %v663_v7, %v634_v5  ;;  %1127 = vtanh.f32 %v666_v8  ;;  %v1033_v13 = vmul.f32 -1.442695, %v666_v8 }
 0xc0f   :  { %1129 = vtanh.f32 %v667_v9  ;;  %v1034_v18 = vmul.f32 -1.442695, %v667_v9  ;;  %v752_v9 = vld [vmem:[%s1534_s0 + $0x6] sm:$0x1] }
 0xc10   :  { %1131 = vpow2.f32 %v1033_v13 }
 0xc12   :  { %v660_v10 = vpop.f32.mrf.mxu1 }
 0xc13   :  { %v1128_v11 = vpop.eup %1127  ;;  %v753_v10 = vld [vmem:[%s1534_s0 + $0xe] sm:$0x1] }
 0xc14   :  { %712 = vrot.lane.b32.xlu2 %v1128_v11, %s1177_s17 }
 0xc15   :  { %v1130_v12 = vpop.eup %1129 }
 0xc16   :  { %714 = vrot.lane.b32.xlu1 %v1130_v12, %s1177_s17  ;;  %v1132_v14 = vpop.eup %1131 }
 0xc17   :  { %v674_v15 = vadd.f32 1.0, %v1132_v14 }
 0xc19   :  { %1133 = vrcp.f32 %v674_v15  ;;  %v687_v23 = vand.u32 2147483648, %v674_v15  ;;  %vm681_vm4 = vweird.f32 %v674_v15  ;;  %v685_v25 = vand.u32 2147483647, %v674_v15 }
 0xc1a   :  { %1135 = vpow2.f32 %v1034_v18 }
 0xc1b   :  { %v688_v27 = vor.u32 1.1754944e-38, %v687_v23  ;;  %vm686_vm6 = vcmp.eq.f32.partialorder %v685_v25, 8.507059e+37 }
 0xc1f   :  { %v1134_v16 = vpop.eup %1133 }
 0xc20   :  { %v677_v17 = vmul.f32 %v1134_v16, %v674_v15  ;;  %v1136_v21 = vpop.eup %1135  ;;  %vm682_vm3 = vweird.f32 %v1134_v16 }
 0xc21   :  { %v675_v24 = vadd.f32 1.0, %v1136_v21  ;;  %vm683_vm5 = vmor %vm681_vm4, %vm682_vm3 }
 0xc22   :  { %v678_v19 = vsub.f32 1.0, %v677_v17 }
 0xc23   :  { %1137 = vrcp.f32 %v675_v24  ;;  %v702_v36 = vand.u32 2147483648, %v675_v24  ;;  %vm696_vm8 = vweird.f32 %v675_v24  ;;  %v700_v37 = vand.u32 2147483647, %v675_v24 }
 0xc24   :  { %v679_v20 = vmul.f32 %v1134_v16, %v678_v19 }
 0xc25   :  { %v703_v39 = vor.u32 1.1754944e-38, %v702_v36  ;;  %vm701_vm11 = vcmp.eq.f32.partialorder %v700_v37, 8.507059e+37 }
 0xc26   :  { %v680_v22 = vadd.f32 %v1134_v16, %v679_v20 }
 0xc28   :  { %v684_v26 = vsel %vm683_vm5, %v1134_v16, %v680_v22 }
 0xc29   :  { %v689_v29 = vsel %vm686_vm6, %v688_v27, %v684_v26  ;;  %v1138_v31 = vpop.eup %1137 }
 0xc2a   :  { %v692_v32 = vmul.f32 %v1138_v31, %v675_v24  ;;  %vm697_vm7 = vweird.f32 %v1138_v31  ;;  %v708_v51 = vmul.f32 %v689_v29, %v1343_v56 }
 0xc2b   :  { %vm698_vm9 = vmor %vm696_vm8, %vm697_vm7 }
 0xc2c   :  { %v693_v33 = vsub.f32 1.0, %v692_v32 }
 0xc2e   :  { %v694_v34 = vmul.f32 %v1138_v31, %v693_v33 }
 0xc30   :  { %v695_v35 = vadd.f32 %v1138_v31, %v694_v34 }
 0xc32   :  { %v699_v38 = vsel %vm698_vm9, %v1138_v31, %v695_v35 }
 0xc33   :  { %v704_v43 = vsel %vm701_vm11, %v703_v39, %v699_v38 }
 0xc34   :  { %v709_v58 = vmul.f32 %v704_v43, %v1338_v44 }
 0xc6e   :  { %v713_v28 = vpop.permute.xlu2 %712 }
 0xc6f   :  { %v718_v30 = vmul.f32 %v713_v28, %v689_v29 }
 0xc71   :  { %722 = vrot.lane.b32.xlu1 %v718_v30, %s1176_s13 }
 0xc88   :  { %v715_v40 = vpop.permute.xlu1 %714 }
 0xc89   :  { %v719_v48 = vmul.f32 %v715_v40, %v704_v43 }
 0xc8b   :  { %724 = vrot.lane.b32.xlu0 %v719_v48, %s1176_s13 }
 0xce3   :  { %v723_v52 = vpop.permute.xlu1 %722 }
 0xce4   :  { %v1369_v47 = vadd.f32 %v723_v52, %v708_v51 }
 0xce6   :  { %1139 = vtanh.f32 %v1369_v47 }
 0xcec   :  { %v1140_v54 = vpop.eup %1139 }
 0xced   :  { %734 = vrot.lane.b32.xlu0 %v1140_v54, %s1177_s17 }
 0xcfd   :  { %v725_v60 = vpop.permute.xlu0 %724 }
 0xcfe   :  { %v1374_v41 = vadd.f32 %v725_v60, %v709_v58 }
 0xd00   :  { %1141 = vtanh.f32 %v1374_v41 }
 0xd06   :  { %v1142_v62 = vpop.eup %1141 }
 0xd07   :  { %736 = vrot.lane.b32.xlu2 %v1142_v62, %s1177_s17 }
 0xd5f   :  { %v735_v63 = vpop.permute.xlu0 %734 }
 0xd60   :  { %v1378_v56 = vmul.f32 %v735_v63, %v689_v29 }
 0xd61   :  { %v737_v0 = vpop.permute.xlu2 %736 }
 0xd62   :  { %v1380_v1 = vmul.f32 %v737_v0, %v704_v43  ;;  %v754_v2 = vpack.c.bf16 %v1378_v56, %v1378_v56 }
 0xd64   :  { %v755_v44 = vpack.c.bf16 %v1380_v1, %v1380_v1  ;;  %v758_v4 = vunpack.c.l.b16 %v754_v2 }
 0xd66   :  { %v759_v3 = vunpack.c.l.b16 %v755_v44 }
 0xd68   :  { %v760_v5 = vrot.slane %v759_v3, 7 }
 0xd6a   :  { %v761_v6 = vsel %vm165_vm10, %v760_v5, %v758_v4 }
 0xd6b   :  { %v762_v7 = vpack.c.b16 %v761_v6, %v761_v6 }
 0xd6d   :  { %763 = vrot.lane.b32.xlu1 %v762_v7, %s1176_s13 }
 0xddf   :  { %v764_v8 = vpop.permute.xlu1 %763 }
 0xde0   :  { %1035 = vmatmul.msk.bf16.vlgmr.msrb.gmra.mxu2 %vm40_vm1, %v764_v8 }
 0xe63   :  { %v777_v11 = vpop.f32.mrf.mxu2 }
 0xe64   :  { %v782_v12 = vrot.slane %v777_v11, 1  ;;  %v785_v13 = vadd.f32 %v777_v11, %v752_v9 }
 0xe66   :  { %v786_v14 = vadd.f32 %v782_v12, %v753_v10  ;;  %1143 = vtanh.f32 %v785_v13  ;;  %v1036_v21 = vmul.f32 -1.442695, %v785_v13 }
 0xe68   :  { %1145 = vtanh.f32 %v786_v14  ;;  %v1037_v18 = vmul.f32 -1.442695, %v786_v14 }
 0xe6a   :  { %1147 = vpow2.f32 %v1037_v18 }
 0xe6b   :  { %v779_v15 = vpop.f32.mrf.mxu2 }
 0xe6c   :  { %v1144_v16 = vpop.eup %1143 }
 0xe6d   :  { %831 = vrot.lane.b32.xlu0 %v1144_v16, %s1177_s17  ;;  %v871_v16 = vld [vmem:[%s1534_s0 + $0x7] sm:$0x1] }
 0xe6e   :  { %v1146_v17 = vpop.eup %1145 }
 0xe6f   :  { %833 = vrot.lane.b32.xlu2 %v1146_v17, %s1177_s17  ;;  %v872_v17 = vld [vmem:[%s1534_s0 + $0xf] sm:$0x1] }
 0xe70   :  { %v1148_v19 = vpop.eup %1147 }
 0xe71   :  { %v794_v20 = vadd.f32 1.0, %v1148_v19 }
 0xe73   :  { %1149 = vrcp.f32 %v794_v20  ;;  %v821_v29 = vand.u32 2147483648, %v794_v20  ;;  %vm815_vm13 = vweird.f32 %v794_v20  ;;  %v819_v30 = vand.u32 2147483647, %v794_v20 }
 0xe74   :  { %1151 = vpow2.f32 %v1036_v21 }
 0xe75   :  { %v822_v32 = vor.u32 1.1754944e-38, %v821_v29  ;;  %vm820_vm15 = vcmp.eq.f32.partialorder %v819_v30, 8.507059e+37 }
 0xe79   :  { %v1150_v22 = vpop.eup %1149 }
 0xe7a   :  { %v811_v23 = vmul.f32 %v1150_v22, %v794_v20  ;;  %v1152_v25 = vpop.eup %1151  ;;  %vm816_vm12 = vweird.f32 %v1150_v22 }
 0xe7b   :  { %v793_v26 = vadd.f32 1.0, %v1152_v25  ;;  %vm817_vm14 = vmor %vm815_vm13, %vm816_vm12 }
 0xe7c   :  { %v812_v24 = vsub.f32 1.0, %v811_v23 }
 0xe7d   :  { %1153 = vrcp.f32 %v793_v26  ;;  %v806_v43 = vand.u32 2147483648, %v793_v26  ;;  %vm800_vm3 = vweird.f32 %v793_v26  ;;  %v804_v48 = vand.u32 2147483647, %v793_v26 }
 0xe7e   :  { %v813_v27 = vmul.f32 %v1150_v22, %v812_v24 }
 0xe7f   :  { %v807_v52 = vor.u32 1.1754944e-38, %v806_v43  ;;  %vm805_vm5 = vcmp.eq.f32.partialorder %v804_v48, 8.507059e+37 }
 0xe80   :  { %v814_v28 = vadd.f32 %v1150_v22, %v813_v27 }
 0xe82   :  { %v818_v31 = vsel %vm817_vm14, %v1150_v22, %v814_v28  ;;  %vm153_vm14 = vcmask 253952  }
 0xe83   :  { %v1154_v33 = vpop.eup %1153  ;;  %v823_v35 = vsel %vm820_vm15, %v822_v32, %v818_v31 }
 0xe84   :  { %v796_v37 = vmul.f32 %v1154_v33, %v793_v26  ;;  %vm801_vm2 = vweird.f32 %v1154_v33  ;;  %v828_v2 = vmul.f32 %v823_v35, %v1374_v41 }
 0xe85   :  { %vm802_vm4 = vmor %vm800_vm3, %vm801_vm2 }
 0xe86   :  { %v797_v38 = vsub.f32 1.0, %v796_v37 }
 0xe88   :  { %v798_v39 = vmul.f32 %v1154_v33, %v797_v38 }
 0xe8a   :  { %v799_v40 = vadd.f32 %v1154_v33, %v798_v39 }
 0xe8c   :  { %v803_v51 = vsel %vm802_vm4, %v1154_v33, %v799_v40 }
 0xe8d   :  { %v808_v58 = vsel %vm805_vm5, %v807_v52, %v803_v51 }
 0xe8e   :  { %v827_v62 = vmul.f32 %v808_v58, %v1369_v47 }
 0xec9   :  { %v834_v34 = vpop.permute.xlu2 %833 }
 0xeca   :  { %v838_v36 = vmul.f32 %v834_v34, %v823_v35 }
 0xecc   :  { %843 = vrot.lane.b32.xlu1 %v838_v36, %s1176_s13 }
 0xedf   :  { %v832_v54 = vpop.permute.xlu0 %831 }
 0xee0   :  { %v837_v60 = vmul.f32 %v832_v54, %v808_v58 }
 0xee2   :  { %841 = vrot.lane.b32.xlu2 %v837_v60, %s1176_s13 }
 0xf3c   :  { %v842_v63 = vpop.permute.xlu2 %841 }
 0xf3d   :  { %v1400_v0 = vadd.f32 %v842_v63, %v827_v62 }
 0xf3e   :  { %v844_v44 = vpop.permute.xlu1 %843 }
 0xf3f   :  { %1155 = vtanh.f32 %v1400_v0  ;;  %v1404_v3 = vadd.f32 %v844_v44, %v828_v2 }
 0xf41   :  { %1157 = vtanh.f32 %v1404_v3 }
 0xf45   :  { %v1156_v4 = vpop.eup %1155 }
 0xf46   :  { %853 = vrot.lane.b32.xlu1 %v1156_v4, %s1177_s17 }
 0xf47   :  { %v1158_v5 = vpop.eup %1157 }
 0xf48   :  { %855 = vrot.lane.b32.xlu0 %v1158_v5, %s1177_s17 }
 0xfb8   :  { %v854_v6 = vpop.permute.xlu1 %853 }
 0xfb9   :  { %v1409_v47 = vmul.f32 %v854_v6, %v808_v58 }
 0xfba   :  { %v856_v7 = vpop.permute.xlu0 %855 }
 0xfbb   :  { %v1411_v8 = vmul.f32 %v856_v7, %v823_v35  ;;  %v873_v41 = vpack.c.bf16 %v1409_v47, %v1409_v47 }
 0xfbd   :  { %v874_v9 = vpack.c.bf16 %v1411_v8, %v1411_v8  ;;  %v877_v11 = vunpack.c.l.b16 %v873_v41 }
 0xfbf   :  { %v878_v10 = vunpack.c.l.b16 %v874_v9 }
 0xfc1   :  { %v879_v12 = vrot.slane %v878_v10, 7 }
 0xfc3   :  { %v880_v13 = vsel %vm165_vm10, %v879_v12, %v877_v11 }
 0xfc4   :  { %v881_v14 = vpack.c.b16 %v880_v13, %v880_v13 }
 0xfc6   :  { %882 = vrot.lane.b32.xlu2 %v881_v14, %s1176_s13 }
0x1020   :  { %v883_v15 = vpop.permute.xlu2 %882 }
0x1021   :  { %1038 = vmatmul.msk.bf16.vlgmr.msrb.gmra.mxu3 %vm40_vm1, %v883_v15 }
0x10a4   :  { %v896_v18 = vpop.f32.mrf.mxu3 }
0x10a5   :  { %v901_v19 = vrot.slane %v896_v18, 1  ;;  %v904_v20 = vadd.f32 %v896_v18, %v871_v16 }
0x10a7   :  { %v905_v21 = vadd.f32 %v901_v19, %v872_v17  ;;  %1159 = vtanh.f32 %v904_v20  ;;  %v1039_v25 = vmul.f32 -1.442695, %v904_v20 }
0x10a9   :  { %1161 = vtanh.f32 %v905_v21  ;;  %v1040_v26 = vmul.f32 -1.442695, %v905_v21 }
0x10aa   :  { %1163 = vpow2.f32 %v1039_v25 }
0x10ab   :  { %1165 = vpow2.f32 %v1040_v26 }
0x10ac   :  { %v898_v22 = vpop.f32.mrf.mxu3 }
0x10ad   :  { %v1160_v23 = vpop.eup %1159 }
0x10ae   :  { %950 = vrot.lane.b32.xlu1 %v1160_v23, %s1177_s17 }
0x10af   :  { %v1162_v24 = vpop.eup %1161 }
0x10b0   :  { %952 = vrot.lane.b32.xlu0 %v1162_v24, %s1177_s17  ;;  %v1164_v27 = vpop.eup %1163 }
0x10b1   :  { %v1166_v28 = vpop.eup %1165  ;;  %v912_v29 = vadd.f32 1.0, %v1164_v27 }
0x10b2   :  { %v913_v30 = vadd.f32 1.0, %v1166_v28 }
0x10b3   :  { %1167 = vrcp.f32 %v912_v29  ;;  %v925_v40 = vand.u32 2147483648, %v912_v29  ;;  %vm919_vm6 = vweird.f32 %v912_v29  ;;  %v923_v43 = vand.u32 2147483647, %v912_v29 }
0x10b4   :  { %1169 = vrcp.f32 %v913_v30  ;;  %v940_v52 = vand.u32 2147483648, %v913_v30  ;;  %vm934_vm9 = vweird.f32 %v913_v30  ;;  %v938_v58 = vand.u32 2147483647, %v913_v30 }
0x10b5   :  { %v926_v54 = vor.u32 1.1754944e-38, %v925_v40  ;;  %vm924_vm11 = vcmp.eq.f32.partialorder %v923_v43, 8.507059e+37 }
0x10b6   :  { %v941_v44 = vor.u32 1.1754944e-38, %v940_v52  ;;  %vm939_vm13 = vcmp.eq.f32.partialorder %v938_v58, 8.507059e+37 }
0x10b9   :  { %v1168_v31 = vpop.eup %1167 }
0x10ba   :  { %v1170_v32 = vpop.eup %1169  ;;  %v915_v33 = vmul.f32 %v1168_v31, %v912_v29  ;;  %vm920_vm1 = vweird.f32 %v1168_v31 }
0x10bb   :  { %v930_v34 = vmul.f32 %v1170_v32, %v913_v30  ;;  %vm921_vm7 = vmor %vm919_vm6, %vm920_vm1  ;;  %vm935_vm8 = vweird.f32 %v1170_v32 }
0x10bc   :  { %v916_v35 = vsub.f32 1.0, %v915_v33  ;;  %vm936_vm12 = vmor %vm934_vm9, %vm935_vm8 }
0x10bd   :  { %v931_v36 = vsub.f32 1.0, %v930_v34 }
0x10be   :  { %v917_v37 = vmul.f32 %v1168_v31, %v916_v35 }
0x10bf   :  { %v932_v38 = vmul.f32 %v1170_v32, %v931_v36 }
0x10c0   :  { %v918_v39 = vadd.f32 %v1168_v31, %v917_v37 }
0x10c1   :  { %v933_v48 = vadd.f32 %v1170_v32, %v932_v38 }
0x10c2   :  { %v922_v51 = vsel %vm921_vm7, %v1168_v31, %v918_v39 }
0x10c3   :  { %v927_v62 = vsel %vm924_vm11, %v926_v54, %v922_v51  ;;  %v937_v63 = vsel %vm936_vm12, %v1170_v32, %v933_v48 }
0x10c4   :  { %v942_v5 = vsel %vm939_vm13, %v941_v44, %v937_v63 }
0x10c5   :  { %v947_v7 = vmul.f32 %v942_v5, %v1404_v3 }
0x1120   :  { %v951_v60 = vpop.permute.xlu1 %950 }
0x1121   :  { %v956_v2 = vmul.f32 %v951_v60, %v927_v62 }
0x1122   :  { %v953_v4 = vpop.permute.xlu0 %952 }
0x1123   :  { %960 = vrot.lane.b32.xlu0 %v956_v2, %s1176_s13  ;;  %v957_v6 = vmul.f32 %v953_v4, %v942_v5 }
0x1125   :  { %962 = vrot.lane.b32.xlu2 %v957_v6, %s1176_s13 }
0x112b   :  { %147 = vrot.lane.b32.xlu0 %v1227_v61, %s1176_s13  ;;  %v946_v61 = vmul.f32 %v927_v62, %v1400_v0 }
0x1133   :  { %270 = vrot.lane.b32.xlu0 %v1256_v55, %s1176_s13 }
0x113b   :  { %506 = vrot.lane.b32.xlu0 %v1316_v42, %s1176_s13 }
0x1143   :  { %627 = vrot.lane.b32.xlu0 %v1349_v59, %s1176_s13 }
0x114b   :  { %863 = vrot.lane.b32.xlu0 %v1409_v47, %s1176_s13 }
0x117f   :  { %v963_v41 = vpop.permute.xlu2 %962 }
0x1180   :  { %v967_v9 = vadd.f32 %v963_v41, %v947_v7 }
0x1182   :  { %1171 = vtanh.f32 %v967_v9  ;;  %v999_v42 = vrot.slane %v967_v9, 7 }
0x1188   :  { %v1172_v10 = vpop.eup %1171 }
0x1189   :  { %974 = vrot.lane.b32.xlu1 %v1172_v10, %s1177_s17 }
0x1191   :  { %149 = vrot.lane.b32.xlu1 %v1223_v57, %s1176_s13 }
0x1195   :  { %v961_v55 = vpop.permute.xlu0 %960 }
0x1196   :  { %v966_v11 = vadd.f32 %v961_v55, %v946_v61 }
0x1198   :  { %1173 = vtanh.f32 %v966_v11  ;;  %v1000_v59 = vsel %vm165_vm10, %v999_v42, %v966_v11 }
0x1199   :  { %387 = vrot.lane.b32.xlu1 %v1285_v50, %s1176_s13 }
0x119d   :  { %v148_v3 = vpop.permute.xlu0 %147 }
0x119e   :  { %v1174_v47 = vpop.eup %1173  ;;  %154 = vst.msk [vmem:[%s1535_s2] sm:$0x1] %vm153_vm14, %v148_v3 }
0x119f   :  { %972 = vrot.lane.b32.xlu2 %v1174_v47, %s1177_s17 }
0x11a1   :  { %508 = vrot.lane.b32.xlu1 %v1318_v45, %s1176_s13 }
0x11a5   :  { %v271_v57 = vpop.permute.xlu0 %270 }
0x11a6   :  { %275 = vst.msk [vmem:[%s1535_s2 + $0x9] sm:$0x1] %vm153_vm14, %v271_v57 }
0x11a7   :  { %268 = vrot.lane.b32.xlu2 %v1254_v49, %s1176_s13 }
0x11a9   :  { %744 = vrot.lane.b32.xlu1 %v1378_v56, %s1176_s13 }
0x11ad   :  { %v507_v50 = vpop.permute.xlu0 %506 }
0x11ae   :  { %512 = vst.msk [vmem:[%s1535_s2 + $0x3] sm:$0x1] %vm153_vm14, %v507_v50 }
0x11af   :  { %389 = vrot.lane.b32.xlu2 %v1287_v53, %s1176_s13 }
0x11b1   :  { %865 = vrot.lane.b32.xlu1 %v1411_v8, %s1176_s13 }
0x11b5   :  { %v628_v45 = vpop.permute.xlu0 %627 }
0x11b6   :  { %632 = vst.msk [vmem:[%s1535_s2 + $0xc] sm:$0x1] %vm153_vm14, %v628_v45 }
0x11b7   :  { %625 = vrot.lane.b32.xlu2 %v1347_v46, %s1176_s13 }
0x11bd   :  { %v864_v49 = vpop.permute.xlu0 %863 }
0x11be   :  { %869 = vst.msk [vmem:[%s1535_s2 + $0x6] sm:$0x1] %vm153_vm14, %v864_v49 }
0x11bf   :  { %746 = vrot.lane.b32.xlu2 %v1380_v1, %s1176_s13 }
0x11f9   :  { %v973_v53 = vpop.permute.xlu2 %972 }
0x11fa   :  { %v978_v56 = vmul.f32 %v973_v53, %v927_v62 }
0x11fb   :  { %v975_v0 = vpop.permute.xlu1 %974 }
0x11fc   :  { %982 = vrot.lane.b32.xlu2 %v978_v56, %s1176_s13  ;;  %v979_v8 = vmul.f32 %v975_v0, %v942_v5 }
0x11fe   :  { %v990_v12 = vrot.slane %v979_v8, 7  ;;  %984 = vrot.lane.b32.xlu0 %v979_v8, %s1176_s13 }
0x1200   :  { %v991_v46 = vsel %vm165_vm10, %v990_v12, %v978_v56 }
0x1201   :  { %v269_v13 = vpop.permute.xlu2 %268  ;;  %992 = vrot.lane.b32.xlu1 %v991_v46, %s1176_s13 }
0x1202   :  { %274 = vst.msk [vmem:[%s1535_s2 + $0x1] sm:$0x1] %vm153_vm14, %v269_v13 }
0x1203   :  { %v150_v1 = vpop.permute.xlu1 %149 }
0x1204   :  { %1001 = vrot.lane.b32.xlu2 %v1000_v59, %s1178_s29  ;;  %155 = vst.msk [vmem:[%s1535_s2 + $0x8] sm:$0x1] %vm153_vm14, %v150_v1 }
0x1209   :  { %v390_v14 = vpop.permute.xlu2 %389 }
0x120a   :  { %394 = vst.msk [vmem:[%s1535_s2 + $0xa] sm:$0x1] %vm153_vm14, %v390_v14 }
0x120b   :  { %v388_v15 = vpop.permute.xlu1 %387 }
0x120c   :  { %393 = vst.msk [vmem:[%s1535_s2 + $0x2] sm:$0x1] %vm153_vm14, %v388_v15 }
0x1211   :  { %v626_v16 = vpop.permute.xlu2 %625 }
0x1212   :  { %631 = vst.msk [vmem:[%s1535_s2 + $0x4] sm:$0x1] %vm153_vm14, %v626_v16 }
0x1213   :  { %v509_v17 = vpop.permute.xlu1 %508 }
0x1214   :  { %513 = vst.msk [vmem:[%s1535_s2 + $0xb] sm:$0x1] %vm153_vm14, %v509_v17 }
0x1219   :  { %v747_v18 = vpop.permute.xlu2 %746 }
0x121a   :  { %751 = vst.msk [vmem:[%s1535_s2 + $0xd] sm:$0x1] %vm153_vm14, %v747_v18 }
0x121b   :  { %v745_v19 = vpop.permute.xlu1 %744 }
0x121c   :  { %750 = vst.msk [vmem:[%s1535_s2 + $0x5] sm:$0x1] %vm153_vm14, %v745_v19 }
0x1223   :  { %v866_v20 = vpop.permute.xlu1 %865 }
0x1224   :  { %870 = vst.msk [vmem:[%s1535_s2 + $0xe] sm:$0x1] %vm153_vm14, %v866_v20 }
0x1256   :  { %v983_v21 = vpop.permute.xlu2 %982 }
0x1257   :  { %988 = vst.msk [vmem:[%s1535_s2 + $0x7] sm:$0x1] %vm153_vm14, %v983_v21 }
0x125e   :  { %v1002_v22 = vpop.permute.xlu2 %1001 }
0x125f   :  { %1004 = vst.msk [vmem:[#allocation3] sm:$0x3] %vm16_vm0, %v1002_v22 }
0x1270   :  { %v985_v23 = vpop.permute.xlu0 %984 }
0x1271   :  { %989 = vst.msk [vmem:[%s1535_s2 + $0xf] sm:$0x1] %vm153_vm14, %v985_v23 }
0x1273   :  { %v993_v24 = vpop.permute.xlu1 %992 }
0x1274   :  { %996 = vst.msk [vmem:[#allocation2] sm:$0x3] %vm16_vm0, %v993_v24 }

// kernel: speaker_encoder_forward.4
= control target key start
LH: loop header
LB: loop body
LE: loop exit
PB: predicated region body
PF: predicated region fallthrough
CT: control target
= control target key end

     0   :  { %vm120_vm0 = vcmask 261120   ;;  %vm278_vm1 = vcmask 257024   ;;  %vm592_vm2 = vcmask 130112   ;;  %vm596_vm3 = vcmask 195712   ;;  %s4822_s2 = inlined_call_operand.vmem [shape: bf16[32,32], index: 2, kind: input, shape index: {}]   ;;  %s4823_s0 = inlined_call_operand.vmem [shape: f32[16,32], index: 0, kind: input, shape index: {}]   ;;  %s4824_s1 = inlined_call_operand.vmem [shape: f32[16,36,32], index: 1, kind: input, shape index: {}]   ;;  %s4825_s4 = inlined_call_operand.vmem [shape: bf16[32,32], index: 4, kind: input, shape index: {}]   ;;  %s4826_s3 = inlined_call_operand.vmem [shape: bf16[32,32], index: 3, kind: input, shape index: {}]   ;;  %s4827_s5 = inlined_call_operand.vmem [shape: f32[16,32], index: 5, kind: output, shape index: {}]  }
   0x1   :  { %v2529_v0 = vld [vmem:[%s4822_s2 + $0x8] sm:$0xff]  ;;  %v2528_v1 = vld [vmem:[%s4822_s2] sm:$0xff]  ;;  %v26_v7 = vld [vmem:[%s4824_s1 + $0x10] sm:$0xff]  ;;  %vm600_vm4 = vcmask 261312   ;;  %vm604_vm5 = vcmask 326912   ;;  %vm741_vm6 = vcmask 1041409  }
   0x2   :  { %130 = vmatpush.bf16.msra.mxu0 %v2529_v0  ;;  %v21_v2 = vld [vmem:[%s4823_s0] sm:$0xff]  ;;  %v22_v3 = vld [vmem:[%s4823_s0 + $0x8] sm:$0xff]  ;;  %v27_v18 = vld [vmem:[%s4824_s1 + $0x18] sm:$0xff]  ;;  %vm743_vm7 = vcmask 1042434   ;;  %vm745_vm8 = vcmask 1043459   ;;  %vm747_vm9 = vcmask 1044484  }
   0x3   :  { %v2829_v4 = vpack.c.bf16 %v22_v3, %v21_v2  ;;  %v28_v6 = vld [vmem:[%s4824_s1 + $0x20] sm:$0xf]  ;;  %v29_v19 = vld [vmem:[%s4824_s1 + $0x28] sm:$0xff]  ;;  %v31_v27 = vld [vmem:[%s4824_s1 + $0x38] sm:$0xff]  ;;  %vm749_vm10 = vcmask 1045509   ;;  %vm751_vm11 = vcmask 1046534  }
   0x4   :  { %v24_v8 = vld [vmem:[%s4824_s1] sm:$0xff]  ;;  %v25_v20 = vld [vmem:[%s4824_s1 + $0x8] sm:$0xff]  ;;  %v30_v29 = vld [vmem:[%s4824_s1 + $0x30] sm:$0xff]  ;;  %vm753_vm12 = vcmask 1047559   ;;  %vm764_vm13 = vcmask 293888  }
   0x5   :  { %4927 = vst [vmem:[#allocation2_spill] sm:$0xff] %v2829_v4  ;;  %v32_v28 = vld [vmem:[%s4824_s1 + $0x40] sm:$0xff]  ;;  %v34_v38 = vld [vmem:[%s4824_s1 + $0x50] sm:$0xff]  ;;  %v35_v39 = vld [vmem:[%s4824_s1 + $0x58] sm:$0xff] }
   0x6   :  { %131 = vmatpush.bf16.msra.mxu0 %v2528_v1  ;;  %v33_v40 = vld [vmem:[%s4824_s1 + $0x48] sm:$0xf]  ;;  %v38_v48 = vld [vmem:[%s4824_s1 + $0x70] sm:$0xf]  ;;  %v36_v49 = vld [vmem:[%s4824_s1 + $0x60] sm:$0xff] }
   0x7   :  { %v37_v47 = vld [vmem:[%s4824_s1 + $0x68] sm:$0xff]  ;;  %v40_v58 = vld [vmem:[%s4824_s1 + $0x80] sm:$0xff]  ;;  %v39_v60 = vld [vmem:[%s4824_s1 + $0x78] sm:$0xff] }
   0x8   :  { %v41_v59 = vld [vmem:[%s4824_s1 + $0x88] sm:$0xff] }
   0x9   :  { %2509 = vmatmul.msk.bf16.vlgmr.msra.gmra.mxu0 %vm120_vm0, %v2829_v4 }
  0x86   :  { %v2833_v5 = vpop.f32.mrf.mxu0 }
  0x87   :  { %v154_v9 = vperm.slane %v2833_v5, 0  ;;  %v140_v10 = vrot.slane %v2833_v5, 1  ;;  %v141_v32 = vrot.slane %v2833_v5, 2  ;;  %v142_v52 = vrot.slane %v2833_v5, 3 }
  0x88   :  { %v143_v63 = vrot.slane %v2833_v5, 4 }
  0x89   :  { %v190_v11 = vmul.f32 %v154_v9, %v28_v6  ;;  %v188_v12 = vmul.f32 %v154_v9, %v26_v7  ;;  %v186_v13 = vmul.f32 %v154_v9, %v24_v8  ;;  %v155_v17 = vperm.slane %v140_v10, 0  ;;  %v43_v7 = vld [vmem:[%s4824_s1 + $0x98] sm:$0xf]  ;;  %v44_v8 = vld [vmem:[%s4824_s1 + $0xa0] sm:$0xff] }
  0x8a   :  { %v189_v21 = vmul.f32 %v154_v9, %v27_v18  ;;  %v187_v23 = vmul.f32 %v154_v9, %v25_v20  ;;  %v156_v36 = vperm.slane %v141_v32, 0  ;;  %v157_v56 = vperm.slane %v142_v52, 0  ;;  %v42_v9 = vld [vmem:[%s4824_s1 + $0x90] sm:$0xff]  ;;  %v45_v18 = vld [vmem:[%s4824_s1 + $0xa8] sm:$0xff] }
  0x8b   :  { %v279_v14 = vsel %vm278_vm1, %v190_v11, 0.0  ;;  %v272_v15 = vsel %vm120_vm0, %v188_v12, 0.0  ;;  %v266_v16 = vsel %vm120_vm0, %v186_v13, 0.0  ;;  %v191_v22 = vmul.f32 %v155_v17, %v29_v19 }
  0x8c   :  { %280 = vadd.xlane.f32.xlu2 %v279_v14  ;;  %273 = vadd.xlane.f32.xlu1 %v272_v15  ;;  %v275_v24 = vsel %vm120_vm0, %v189_v21, 0.0  ;;  %v269_v26 = vsel %vm120_vm0, %v187_v23, 0.0  ;;  %v193_v30 = vmul.f32 %v155_v17, %v31_v27  ;;  %v194_v31 = vmul.f32 %v155_v17, %v32_v28  ;;  %v49_v27 = vld [vmem:[%s4824_s1 + $0xc8] sm:$0xff]  ;;  %v50_v28 = vld [vmem:[%s4824_s1 + $0xd0] sm:$0xff] }
  0x8d   :  { %267 = vadd.xlane.f32.xlu0 %v266_v16  ;;  %v282_v25 = vsel %vm120_vm0, %v191_v22, 0.0  ;;  %v192_v33 = vmul.f32 %v155_v17, %v30_v29  ;;  %v196_v41 = vmul.f32 %v156_v36, %v34_v38  ;;  %v197_v42 = vmul.f32 %v156_v36, %v35_v39  ;;  %v46_v16 = vld [vmem:[%s4824_s1 + $0xb0] sm:$0xff]  ;;  %v48_v29 = vld [vmem:[%s4824_s1 + $0xc0] sm:$0xf]  ;;  %v51_v38 = vld [vmem:[%s4824_s1 + $0xd8] sm:$0xff] }
  0x8e   :  { %v288_v34 = vsel %vm120_vm0, %v193_v30, 0.0  ;;  %v291_v35 = vsel %vm120_vm0, %v194_v31, 0.0  ;;  %v195_v43 = vmul.f32 %v155_v17, %v33_v40  ;;  %v199_v50 = vmul.f32 %v156_v36, %v37_v47  ;;  %v47_v17 = vld [vmem:[%s4824_s1 + $0xb8] sm:$0xff] }
  0x8f   :  { %v285_v37 = vsel %vm120_vm0, %v192_v33, 0.0  ;;  %v297_v44 = vsel %vm120_vm0, %v196_v41, 0.0  ;;  %v300_v45 = vsel %vm120_vm0, %v197_v42, 0.0  ;;  %v200_v51 = vmul.f32 %v156_v36, %v38_v48  ;;  %v55_v47 = vld [vmem:[%s4824_s1 + $0xf8] sm:$0xff]  ;;  %v56_v48 = vld [vmem:[%s4824_s1 + $0x100] sm:$0xff] }
  0x90   :  { %v294_v46 = vsel %vm278_vm1, %v195_v43, 0.0  ;;  %v198_v53 = vmul.f32 %v156_v36, %v36_v49  ;;  %v306_v54 = vsel %vm120_vm0, %v199_v50, 0.0  ;;  %v202_v61 = vmul.f32 %v157_v56, %v40_v58  ;;  %v52_v36 = vld [vmem:[%s4824_s1 + $0xe0] sm:$0xff]  ;;  %v54_v49 = vld [vmem:[%s4824_s1 + $0xf0] sm:$0xff] }
  0x91   :  { %v309_v55 = vsel %vm278_vm1, %v200_v51, 0.0  ;;  %v203_v62 = vmul.f32 %v157_v56, %v41_v59  ;;  %v201_v0 = vmul.f32 %v157_v56, %v39_v60  ;;  %v158_v3 = vperm.slane %v143_v63, 0  ;;  %v58_v58 = vld [vmem:[%s4824_s1 + $0x110] sm:$0xf]  ;;  %v59_v59 = vld [vmem:[%s4824_s1 + $0x118] sm:$0xff] }
  0x92   :  { %v303_v57 = vsel %vm120_vm0, %v198_v53, 0.0  ;;  %v315_v1 = vsel %vm120_vm0, %v202_v61, 0.0  ;;  %v205_v10 = vmul.f32 %v157_v56, %v43_v7  ;;  %v204_v12 = vmul.f32 %v157_v56, %v42_v9  ;;  %v2996_v9 = vpop.f32.mrf.mxu0 }
  0x93   :  { %v318_v2 = vsel %vm120_vm0, %v203_v62, 0.0  ;;  %v312_v6 = vsel %vm120_vm0, %v201_v0, 0.0  ;;  %v206_v11 = vmul.f32 %v158_v3, %v44_v8  ;;  %v208_v19 = vmul.f32 %v158_v3, %v46_v16  ;;  %v64_v16 = vld [vmem:[%s4824_s1 + $0x140] sm:$0xff] }
  0x94   :  { %276 = vadd.xlane.f32.xlu1 %v275_v24  ;;  %283 = vadd.xlane.f32.xlu2 %v282_v25  ;;  %v324_v13 = vsel %vm278_vm1, %v205_v10, 0.0  ;;  %v321_v15 = vsel %vm120_vm0, %v204_v12, 0.0  ;;  %v209_v20 = vmul.f32 %v158_v3, %v47_v17  ;;  %v144_v21 = vrot.slane %v2833_v5, 5  ;;  %v63_v17 = vld [vmem:[%s4824_s1 + $0x138] sm:$0xf] }
  0x95   :  { %270 = vadd.xlane.f32.xlu0 %v269_v26  ;;  %v327_v14 = vsel %vm120_vm0, %v206_v11, 0.0  ;;  %v207_v22 = vmul.f32 %v158_v3, %v45_v18  ;;  %v333_v23 = vsel %vm120_vm0, %v208_v19, 0.0  ;;  %v210_v32 = vmul.f32 %v158_v3, %v48_v29  ;;  %v62_v3 = vld [vmem:[%s4824_s1 + $0x130] sm:$0xff] }
  0x96   :  { %v336_v24 = vsel %vm120_vm0, %v209_v20, 0.0  ;;  %v159_v25 = vperm.slane %v144_v21, 0  ;;  %v145_v41 = vrot.slane %v2833_v5, 6  ;;  %v146_v52 = vrot.slane %v2833_v5, 7  ;;  %v57_v5 = vld [vmem:[%s4824_s1 + $0x108] sm:$0xff] }
  0x97   :  { %v330_v26 = vsel %vm120_vm0, %v207_v22, 0.0  ;;  %v147_v29 = vrot.slane %v2996_v9, 1 }
  0x98   :  { %v211_v30 = vmul.f32 %v159_v25, %v49_v27  ;;  %v212_v31 = vmul.f32 %v159_v25, %v50_v28  ;;  %v214_v39 = vmul.f32 %v159_v25, %v52_v36  ;;  %v213_v42 = vmul.f32 %v159_v25, %v51_v38  ;;  %v70_v36 = vld [vmem:[%s4824_s1 + $0x170] sm:$0xff] }
  0x99   :  { %v161_v56 = vperm.slane %v146_v52, 0 }
  0x9a   :  { %v342_v33 = vsel %vm120_vm0, %v211_v30, 0.0  ;;  %v351_v43 = vsel %vm120_vm0, %v214_v39, 0.0 }
  0x9b   :  { %v221_v61 = vmul.f32 %v161_v56, %v59_v59  ;;  %v224_v8 = vmul.f32 %v161_v56, %v62_v3  ;;  %v225_v20 = vmul.f32 %v161_v56, %v63_v17  ;;  %v149_v3 = vrot.slane %v2996_v9, 3 }
  0x9c   :  { %289 = vadd.xlane.f32.xlu1 %v288_v34  ;;  %292 = vadd.xlane.f32.xlu2 %v291_v35  ;;  %v345_v34 = vsel %vm120_vm0, %v212_v31, 0.0  ;;  %v339_v35 = vsel %vm278_vm1, %v210_v32, 0.0 }
  0x9d   :  { %286 = vadd.xlane.f32.xlu0 %v285_v37  ;;  %v53_v37 = vld [vmem:[%s4824_s1 + $0xe8] sm:$0xf]  ;;  %v372_v0 = vsel %vm120_vm0, %v221_v61, 0.0  ;;  %v381_v12 = vsel %vm120_vm0, %v224_v8, 0.0  ;;  %v76_v61 = vld [vmem:[%s4824_s1 + $0x1a0] sm:$0xff] }
  0x9e   :  { %v215_v40 = vmul.f32 %v159_v25, %v53_v37  ;;  %v67_v25 = vld [vmem:[%s4824_s1 + $0x158] sm:$0xff]  ;;  %v69_v37 = vld [vmem:[%s4824_s1 + $0x168] sm:$0xff] }
  0xa4   :  { %298 = vadd.xlane.f32.xlu1 %v297_v44  ;;  %301 = vadd.xlane.f32.xlu2 %v300_v45  ;;  %v354_v44 = vsel %vm278_vm1, %v215_v40, 0.0  ;;  %v160_v45 = vperm.slane %v145_v41, 0 }
  0xa5   :  { %295 = vadd.xlane.f32.xlu0 %v294_v46  ;;  %v348_v46 = vsel %vm120_vm0, %v213_v42, 0.0  ;;  %v148_v42 = vrot.slane %v2996_v9, 2 }
  0xa6   :  { %v217_v50 = vmul.f32 %v160_v45, %v55_v47  ;;  %v218_v51 = vmul.f32 %v160_v45, %v56_v48  ;;  %v216_v53 = vmul.f32 %v160_v45, %v54_v49  ;;  %v220_v60 = vmul.f32 %v160_v45, %v58_v58  ;;  %v74_v49 = vld [vmem:[%s4824_s1 + $0x190] sm:$0xff] }
  0xa7   :  { %v219_v62 = vmul.f32 %v160_v45, %v57_v5  ;;  %v164_v47 = vperm.slane %v148_v42, 0  ;;  %v85_v42 = vld [vmem:[%s4824_s1 + $0x1e8] sm:$0xff] }
  0xa8   :  { %v369_v63 = vsel %vm278_vm1, %v220_v60, 0.0  ;;  %v77_v60 = vld [vmem:[%s4824_s1 + $0x1a8] sm:$0xff] }
  0xac   :  { %307 = vadd.xlane.f32.xlu1 %v306_v54  ;;  %310 = vadd.xlane.f32.xlu2 %v309_v55  ;;  %v360_v54 = vsel %vm120_vm0, %v217_v50, 0.0  ;;  %v363_v55 = vsel %vm120_vm0, %v218_v51, 0.0  ;;  %v73_v50 = vld [vmem:[%s4824_s1 + $0x188] sm:$0xf]  ;;  %v72_v51 = vld [vmem:[%s4824_s1 + $0x180] sm:$0xff] }
  0xad   :  { %304 = vadd.xlane.f32.xlu0 %v303_v57  ;;  %v357_v57 = vsel %vm120_vm0, %v216_v53, 0.0 }
  0xb4   :  { %316 = vadd.xlane.f32.xlu1 %v315_v1  ;;  %319 = vadd.xlane.f32.xlu2 %v318_v2  ;;  %v366_v1 = vsel %vm120_vm0, %v219_v62, 0.0  ;;  %v61_v2 = vld [vmem:[%s4824_s1 + $0x128] sm:$0xff]  ;;  %v75_v62 = vld [vmem:[%s4824_s1 + $0x198] sm:$0xff] }
  0xb5   :  { %313 = vadd.xlane.f32.xlu0 %v312_v6  ;;  %v60_v6 = vld [vmem:[%s4824_s1 + $0x120] sm:$0xff]  ;;  %v223_v7 = vmul.f32 %v161_v56, %v61_v2  ;;  %v238_v2 = vmul.f32 %v164_v47, %v76_v61 }
  0xb6   :  { %v222_v10 = vmul.f32 %v161_v56, %v60_v6 }
  0xb7   :  { %v378_v11 = vsel %vm120_vm0, %v223_v7, 0.0  ;;  %v237_v7 = vmul.f32 %v164_v47, %v75_v62 }
  0xbc   :  { %325 = vadd.xlane.f32.xlu1 %v324_v13  ;;  %328 = vadd.xlane.f32.xlu2 %v327_v14  ;;  %v162_v13 = vperm.slane %v2996_v9, 0  ;;  %v375_v14 = vsel %vm120_vm0, %v222_v10, 0.0  ;;  %v423_v10 = vsel %vm120_vm0, %v238_v2, 0.0 }
  0xbd   :  { %322 = vadd.xlane.f32.xlu0 %v321_v15  ;;  %v65_v15 = vld [vmem:[%s4824_s1 + $0x148] sm:$0xff] }
  0xbe   :  { %v227_v18 = vmul.f32 %v162_v13, %v65_v15  ;;  %v226_v19 = vmul.f32 %v162_v13, %v64_v16  ;;  %v229_v28 = vmul.f32 %v162_v13, %v67_v25  ;;  %v78_v15 = vld [vmem:[%s4824_s1 + $0x1b0] sm:$0xf]  ;;  %v83_v25 = vld [vmem:[%s4824_s1 + $0x1d8] sm:$0xf] }
  0xc0   :  { %v390_v21 = vsel %vm120_vm0, %v227_v18, 0.0  ;;  %v387_v22 = vsel %vm120_vm0, %v226_v19, 0.0  ;;  %v396_v32 = vsel %vm120_vm0, %v229_v28, 0.0 }
  0xc4   :  { %334 = vadd.xlane.f32.xlu1 %v333_v23  ;;  %337 = vadd.xlane.f32.xlu2 %v336_v24  ;;  %v384_v23 = vsel %vm278_vm1, %v225_v20, 0.0  ;;  %v68_v24 = vld [vmem:[%s4824_s1 + $0x160] sm:$0xf] }
  0xc5   :  { %331 = vadd.xlane.f32.xlu0 %v330_v26  ;;  %v66_v26 = vld [vmem:[%s4824_s1 + $0x150] sm:$0xff]  ;;  %v230_v27 = vmul.f32 %v162_v13, %v68_v24 }
  0xc6   :  { %v228_v30 = vmul.f32 %v162_v13, %v66_v26  ;;  %v80_v13 = vld [vmem:[%s4824_s1 + $0x1c0] sm:$0xff]  ;;  %v82_v26 = vld [vmem:[%s4824_s1 + $0x1d0] sm:$0xff] }
  0xc7   :  { %v399_v31 = vsel %vm278_vm1, %v230_v27, 0.0  ;;  %v81_v27 = vld [vmem:[%s4824_s1 + $0x1c8] sm:$0xff] }
  0xcc   :  { %343 = vadd.xlane.f32.xlu1 %v342_v33  ;;  %346 = vadd.xlane.f32.xlu2 %v345_v34  ;;  %v163_v33 = vperm.slane %v147_v29, 0  ;;  %v393_v34 = vsel %vm120_vm0, %v228_v30, 0.0 }
  0xcd   :  { %340 = vadd.xlane.f32.xlu0 %v339_v35  ;;  %v71_v35 = vld [vmem:[%s4824_s1 + $0x178] sm:$0xff] }
  0xce   :  { %v233_v40 = vmul.f32 %v163_v33, %v71_v35  ;;  %v232_v41 = vmul.f32 %v163_v33, %v70_v36 }
  0xd0   :  { %v408_v45 = vsel %vm120_vm0, %v233_v40, 0.0 }
  0xd4   :  { %352 = vadd.xlane.f32.xlu1 %v351_v43  ;;  %355 = vadd.xlane.f32.xlu2 %v354_v44  ;;  %v231_v44 = vmul.f32 %v163_v33, %v69_v37 }
  0xd5   :  { %349 = vadd.xlane.f32.xlu0 %v348_v46  ;;  %v405_v46 = vsel %vm120_vm0, %v232_v41, 0.0  ;;  %v86_v41 = vld [vmem:[%s4824_s1 + $0x1f0] sm:$0xff] }
  0xd6   :  { %v402_v48 = vsel %vm120_vm0, %v231_v44, 0.0  ;;  %v84_v44 = vld [vmem:[%s4824_s1 + $0x1e0] sm:$0xff] }
  0xdc   :  { %361 = vadd.xlane.f32.xlu1 %v360_v54  ;;  %364 = vadd.xlane.f32.xlu2 %v363_v55  ;;  %v236_v54 = vmul.f32 %v164_v47, %v74_v49  ;;  %v235_v55 = vmul.f32 %v163_v33, %v73_v50  ;;  %v151_v49 = vrot.slane %v2996_v9, 5 }
  0xdd   :  { %358 = vadd.xlane.f32.xlu0 %v357_v57  ;;  %v234_v57 = vmul.f32 %v163_v33, %v72_v51 }
  0xde   :  { %v417_v58 = vsel %vm120_vm0, %v236_v54, 0.0  ;;  %v414_v59 = vsel %vm278_vm1, %v235_v55, 0.0 }
  0xdf   :  { %v411_v5 = vsel %vm120_vm0, %v234_v57, 0.0  ;;  %v167_v57 = vperm.slane %v151_v49, 0 }
  0xe4   :  { %370 = vadd.xlane.f32.xlu1 %v369_v63  ;;  %373 = vadd.xlane.f32.xlu2 %v372_v0 }
  0xe5   :  { %367 = vadd.xlane.f32.xlu0 %v366_v1  ;;  %v239_v1 = vmul.f32 %v164_v47, %v77_v60  ;;  %v87_v60 = vld [vmem:[%s4824_s1 + $0x1f8] sm:$0xff] }
  0xe7   :  { %v426_v8 = vsel %vm120_vm0, %v239_v1, 0.0 }
  0xec   :  { %379 = vadd.xlane.f32.xlu1 %v378_v11  ;;  %382 = vadd.xlane.f32.xlu2 %v381_v12  ;;  %v165_v11 = vperm.slane %v149_v3, 0  ;;  %v420_v12 = vsel %vm120_vm0, %v237_v7, 0.0 }
  0xed   :  { %376 = vadd.xlane.f32.xlu0 %v375_v14  ;;  %v79_v14 = vld [vmem:[%s4824_s1 + $0x1b8] sm:$0xff] }
  0xee   :  { %v242_v18 = vmul.f32 %v165_v11, %v80_v13  ;;  %v241_v19 = vmul.f32 %v165_v11, %v79_v14  ;;  %v245_v30 = vmul.f32 %v165_v11, %v83_v25  ;;  %v91_v13 = vld [vmem:[%s4824_s1 + $0x218] sm:$0xff]  ;;  %v90_v14 = vld [vmem:[%s4824_s1 + $0x210] sm:$0xff] }
  0xf0   :  { %v444_v35 = vsel %vm278_vm1, %v245_v30, 0.0 }
  0xf4   :  { %391 = vadd.xlane.f32.xlu2 %v390_v21  ;;  %388 = vadd.xlane.f32.xlu1 %v387_v22  ;;  %v240_v21 = vmul.f32 %v164_v47, %v78_v15  ;;  %v435_v22 = vsel %vm120_vm0, %v242_v18, 0.0 }
  0xf5   :  { %385 = vadd.xlane.f32.xlu0 %v384_v23  ;;  %v432_v23 = vsel %vm120_vm0, %v241_v19, 0.0 }
  0xf6   :  { %v429_v24 = vsel %vm278_vm1, %v240_v21, 0.0  ;;  %v253_v21 = vmul.f32 %v167_v57, %v91_v13 }
  0xfc   :  { %400 = vadd.xlane.f32.xlu2 %v399_v31  ;;  %397 = vadd.xlane.f32.xlu1 %v396_v32  ;;  %v244_v31 = vmul.f32 %v165_v11, %v82_v26  ;;  %v150_v32 = vrot.slane %v2996_v9, 4  ;;  %v468_v26 = vsel %vm120_vm0, %v253_v21, 0.0  ;;  %v99_v21 = vld [vmem:[%s4824_s1 + $0x258] sm:$0xff] }
  0xfd   :  { %394 = vadd.xlane.f32.xlu0 %v393_v34  ;;  %v243_v34 = vmul.f32 %v165_v11, %v81_v27 }
  0xfe   :  { %v441_v36 = vsel %vm120_vm0, %v244_v31, 0.0  ;;  %v166_v37 = vperm.slane %v150_v32, 0  ;;  %v95_v31 = vld [vmem:[%s4824_s1 + $0x238] sm:$0xff]  ;;  %v94_v32 = vld [vmem:[%s4824_s1 + $0x230] sm:$0xff] }
  0xff   :  { %v3036_v38 = vpop.xlane.xlu2 %280  ;;  %v3038_v39 = vpop.xlane.xlu1 %273  ;;  %v438_v40 = vsel %vm120_vm0, %v243_v34, 0.0  ;;  %v93_v34 = vld [vmem:[%s4824_s1 + $0x228] sm:$0xf] }
 0x100   :  { %v3041_v43 = vpop.xlane.xlu0 %267  ;;  %v248_v47 = vmul.f32 %v166_v37, %v86_v41  ;;  %v246_v51 = vmul.f32 %v166_v37, %v84_v44  ;;  %v249_v7 = vmul.f32 %v166_v37, %v87_v60  ;;  %v587_v44 = vlaneseq }
 0x102   :  { %v453_v54 = vsel %vm120_vm0, %v248_v47, 0.0  ;;  %v456_v11 = vsel %vm120_vm0, %v249_v7, 0.0 }
 0x104   :  { %409 = vadd.xlane.f32.xlu2 %v408_v45  ;;  %406 = vadd.xlane.f32.xlu1 %v405_v46 }
 0x105   :  { %403 = vadd.xlane.f32.xlu0 %v402_v48  ;;  %v247_v48 = vmul.f32 %v166_v37, %v85_v42  ;;  %v255_v42 = vmul.f32 %v167_v57, %v93_v34 }
 0x107   :  { %v3055_v52 = vpop.xlane.xlu1 %276  ;;  %v3057_v53 = vpop.xlane.xlu2 %283  ;;  %v450_v55 = vsel %vm120_vm0, %v247_v48, 0.0  ;;  %v474_v49 = vsel %vm278_vm1, %v255_v42, 0.0  ;;  %v103_v42 = vld [vmem:[%s4824_s1 + $0x278] sm:$0xf] }
 0x108   :  { %v3059_v56 = vpop.xlane.xlu0 %270 }
 0x10c   :  { %418 = vadd.xlane.f32.xlu2 %v417_v58  ;;  %415 = vadd.xlane.f32.xlu1 %v414_v59  ;;  %v447_v58 = vsel %vm120_vm0, %v246_v51, 0.0  ;;  %v89_v59 = vld [vmem:[%s4824_s1 + $0x208] sm:$0xff]  ;;  %v98_v51 = vld [vmem:[%s4824_s1 + $0x250] sm:$0xf] }
 0x10d   :  { %412 = vadd.xlane.f32.xlu0 %v411_v5  ;;  %v88_v5 = vld [vmem:[%s4824_s1 + $0x200] sm:$0xf]  ;;  %v251_v1 = vmul.f32 %v167_v57, %v89_v59 }
 0x10e   :  { %v250_v2 = vmul.f32 %v166_v37, %v88_v5 }
 0x10f   :  { %v3073_v63 = vpop.xlane.xlu1 %289  ;;  %v3075_v0 = vpop.xlane.xlu2 %292 }
 0x110   :  { %v3078_v6 = vpop.xlane.xlu0 %286 }
 0x114   :  { %427 = vadd.xlane.f32.xlu2 %v426_v8  ;;  %424 = vadd.xlane.f32.xlu1 %v423_v10  ;;  %v462_v8 = vsel %vm120_vm0, %v251_v1, 0.0  ;;  %v459_v10 = vsel %vm278_vm1, %v250_v2, 0.0  ;;  %v153_v1 = vrot.slane %v2996_v9, 7 }
 0x115   :  { %421 = vadd.xlane.f32.xlu0 %v420_v12  ;;  %v92_v12 = vld [vmem:[%s4824_s1 + $0x220] sm:$0xff] }
 0x116   :  { %v254_v19 = vmul.f32 %v167_v57, %v92_v12  ;;  %v169_v12 = vperm.slane %v153_v1, 0 }
 0x117   :  { %v3092_v16 = vpop.xlane.xlu1 %298  ;;  %v3094_v17 = vpop.xlane.xlu2 %301 }
 0x118   :  { %v3096_v20 = vpop.xlane.xlu0 %295  ;;  %v471_v25 = vsel %vm120_vm0, %v254_v19, 0.0  ;;  %v265_v1 = vmul.f32 %v169_v12, %v103_v42 }
 0x11c   :  { %436 = vadd.xlane.f32.xlu2 %v435_v22  ;;  %433 = vadd.xlane.f32.xlu1 %v432_v23  ;;  %v152_v22 = vrot.slane %v2996_v9, 6  ;;  %v100_v9 = vld [vmem:[%s4824_s1 + $0x260] sm:$0xff] }
 0x11d   :  { %430 = vadd.xlane.f32.xlu0 %v429_v24  ;;  %v252_v24 = vmul.f32 %v167_v57, %v90_v14  ;;  %v3203_v57 = vand.u32 127, %v587_v44  ;;  %v101_v14 = vld [vmem:[%s4824_s1 + $0x268] sm:$0xff]  ;;  %v102_v44 = vld [vmem:[%s4824_s1 + $0x270] sm:$0xff] }
 0x11e   :  { %v168_v27 = vperm.slane %v152_v22, 0 }
 0x11f   :  { %v3110_v28 = vpop.xlane.xlu1 %307  ;;  %v3112_v29 = vpop.xlane.xlu2 %310  ;;  %v465_v30 = vsel %vm120_vm0, %v252_v24, 0.0  ;;  %v3230_v22 = vadd.s32 4294967280, %v3203_v57  ;;  %v589_v24 = vperm.slane %v3041_v43, %v3203_v57  ;;  %v3241_v34 = vadd.s32 4294967272, %v3203_v57 }
 0x120   :  { %v3115_v33 = vpop.xlane.xlu0 %304  ;;  %v257_v37 = vmul.f32 %v168_v27, %v95_v31  ;;  %v260_v5 = vmul.f32 %v168_v27, %v98_v51  ;;  %v3257_v51 = vadd.s32 4294967264, %v3203_v57 }
 0x122   :  { %v480_v47 = vsel %vm120_vm0, %v257_v37, 0.0 }
 0x124   :  { %445 = vadd.xlane.f32.xlu2 %v444_v35  ;;  %442 = vadd.xlane.f32.xlu1 %v441_v36 }
 0x125   :  { %439 = vadd.xlane.f32.xlu0 %v438_v40  ;;  %v256_v40 = vmul.f32 %v168_v27, %v94_v32  ;;  %v261_v32 = vmul.f32 %v169_v12, %v99_v21 }
 0x127   :  { %v3129_v45 = vpop.xlane.xlu1 %316  ;;  %v3131_v46 = vpop.xlane.xlu2 %319  ;;  %v477_v48 = vsel %vm120_vm0, %v256_v40, 0.0  ;;  %v595_v40 = vperm.slane %v3038_v39, %v3230_v22 }
 0x128   :  { %4928 = vst [vmem:[#allocation3_spill] sm:$0xff] %v3129_v45  ;;  %v3134_v50 = vpop.xlane.xlu0 %313 }
 0x129   :  { %4929 = vst [vmem:[#allocation4_spill] sm:$0xff] %v3131_v46 }
 0x12c   :  { %454 = vadd.xlane.f32.xlu2 %v453_v54  ;;  %451 = vadd.xlane.f32.xlu1 %v450_v55  ;;  %v97_v54 = vld [vmem:[%s4824_s1 + $0x248] sm:$0xff]  ;;  %v96_v55 = vld [vmem:[%s4824_s1 + $0x240] sm:$0xff] }
 0x12d   :  { %448 = vadd.xlane.f32.xlu0 %v447_v58  ;;  %v259_v60 = vmul.f32 %v168_v27, %v97_v54  ;;  %v258_v7 = vmul.f32 %v168_v27, %v96_v55  ;;  %v263_v27 = vmul.f32 %v169_v12, %v101_v14  ;;  %v492_v55 = vsel %vm120_vm0, %v261_v32, 0.0 }
 0x12f   :  { %v3148_v61 = vpop.xlane.xlu1 %325  ;;  %v3150_v62 = vpop.xlane.xlu2 %328  ;;  %v483_v13 = vsel %vm120_vm0, %v258_v7, 0.0  ;;  %v264_v7 = vmul.f32 %v169_v12, %v102_v44  ;;  %v611_v44 = vperm.slane %v3075_v0, %v3241_v34 }
 0x130   :  { %4930 = vst [vmem:[#allocation5_spill] sm:$0xff] %v3148_v61  ;;  %v3152_v3 = vpop.xlane.xlu0 %322  ;;  %v631_v4 = vperm.slane %v3148_v61, %v3257_v51 }
 0x131   :  { %4931 = vst [vmem:[#allocation6_spill] sm:$0xff] %v3150_v62 }
 0x134   :  { %463 = vadd.xlane.f32.xlu2 %v462_v8  ;;  %460 = vadd.xlane.f32.xlu1 %v459_v10  ;;  %v3213_v8 = vadd.s32 4294967288, %v3203_v57  ;;  %v489_v10 = vsel %vm278_vm1, %v260_v5, 0.0  ;;  %v599_v5 = vperm.slane %v3055_v52, %v3241_v34 }
 0x135   :  { %457 = vadd.xlane.f32.xlu0 %v456_v11  ;;  %v486_v11 = vsel %vm120_vm0, %v259_v60, 0.0  ;;  %v606_v60 = vperm.slane %v3057_v53, %v3203_v57 }
 0x136   :  { %v591_v19 = vperm.slane %v3059_v56, %v3213_v8 }
 0x137   :  { %v3166_v15 = vpop.xlane.xlu1 %334  ;;  %v3168_v18 = vpop.xlane.xlu2 %337 }
 0x138   :  { %4932 = vst [vmem:[#allocation7_spill] sm:$0xff] %v3166_v15  ;;  %v3171_v23 = vpop.xlane.xlu0 %331  ;;  %v593_v37 = vsel %vm592_vm2, %v591_v19, %v589_v24  ;;  %v618_v19 = vperm.slane %v3115_v33, %v3230_v22  ;;  %v603_v24 = vperm.slane %v3036_v38, %v3257_v51 }
 0x139   :  { %4933 = vst [vmem:[#allocation8_spill] sm:$0xff] %v3168_v18  ;;  %v597_v54 = vsel %vm596_vm3, %v595_v40, %v593_v37  ;;  %v504_v37 = vsel %vm278_vm1, %v265_v1, 0.0  ;;  %v501_v40 = vsel %vm120_vm0, %v264_v7, 0.0  ;;  %v629_v1 = vperm.slane %v3152_v3, %v3241_v34 }
 0x13a   :  { %4934 = vst [vmem:[#allocation9_spill] sm:$0xff] %v3171_v23  ;;  %v601_v14 = vsel %vm600_vm4, %v599_v5, %v597_v54  ;;  %v634_v5 = vperm.slane %v3171_v23, %v3213_v8 }
 0x13c   :  { %472 = vadd.xlane.f32.xlu2 %v471_v25  ;;  %469 = vadd.xlane.f32.xlu1 %v468_v26 }
 0x13d   :  { %466 = vadd.xlane.f32.xlu0 %v465_v30  ;;  %v262_v30 = vmul.f32 %v169_v12, %v100_v9 }
 0x13f   :  { %v3185_v35 = vpop.xlane.xlu1 %343  ;;  %v3187_v36 = vpop.xlane.xlu2 %346 }
 0x140   :  { %4935 = vst [vmem:[#allocation10_spill] sm:$0xff] %v3185_v35  ;;  %v3189_v41 = vpop.xlane.xlu0 %340  ;;  %v642_v7 = vperm.slane %v3185_v35, %v3203_v57 }
 0x141   :  { %4936 = vst [vmem:[#allocation11_spill] sm:$0xff] %v3187_v36 }
 0x142   :  { %4937 = vst [vmem:[#allocation12_spill] sm:$0xff] %v3189_v41 }
 0x144   :  { %481 = vadd.xlane.f32.xlu2 %v480_v47  ;;  %478 = vadd.xlane.f32.xlu1 %v477_v48  ;;  %v607_v47 = vperm.slane %v3078_v6, %v3213_v8  ;;  %v498_v48 = vsel %vm120_vm0, %v263_v27, 0.0  ;;  %v625_v27 = vperm.slane %v3129_v45, %v3213_v8 }
 0x145   :  { %475 = vadd.xlane.f32.xlu0 %v474_v49  ;;  %v495_v49 = vsel %vm120_vm0, %v262_v30, 0.0  ;;  %v624_v30 = vperm.slane %v3134_v50, %v3203_v57 }
 0x146   :  { %v608_v9 = vsel %vm592_vm2, %v607_v47, %v606_v60  ;;  %v605_v47 = vsel %vm604_vm5, %v603_v24, %v601_v14  ;;  %v613_v24 = vperm.slane %v3096_v20, %v3257_v51 }
 0x147   :  { %v3205_v58 = vpop.xlane.xlu1 %352  ;;  %v3207_v59 = vpop.xlane.xlu2 %355  ;;  %v626_v60 = vsel %vm592_vm2, %v625_v27, %v624_v30  ;;  %v622_v27 = vperm.slane %v3112_v29, %v3257_v51  ;;  %v636_v30 = vperm.slane %v3166_v15, %v3230_v22 }
 0x148   :  { %4938 = vst [vmem:[#allocation13_spill] sm:$0xff] %v3205_v58  ;;  %v3210_v2 = vpop.xlane.xlu0 %349  ;;  %v647_v35 = vperm.slane %v3205_v58, %v3241_v34 }
 0x149   :  { %4939 = vst [vmem:[#allocation14_spill] sm:$0xff] %v3207_v59 }
 0x14a   :  { %4940 = vst [vmem:[#allocation15_spill] sm:$0xff] %v3210_v2 }
 0x14c   :  { %490 = vadd.xlane.f32.xlu2 %v489_v10  ;;  %487 = vadd.xlane.f32.xlu1 %v486_v11  ;;  %v609_v10 = vperm.slane %v3073_v63, %v3230_v22  ;;  %v615_v11 = vperm.slane %v3092_v16, %v3203_v57 }
 0x14d   :  { %484 = vadd.xlane.f32.xlu0 %v483_v13  ;;  %v616_v13 = vperm.slane %v3094_v17, %v3213_v8 }
 0x14e   :  { %v610_v42 = vsel %vm596_vm3, %v609_v10, %v608_v9  ;;  %v643_v10 = vperm.slane %v3187_v36, %v3213_v8 }
 0x14f   :  { %v3234_v25 = vpop.xlane.xlu1 %361  ;;  %v3236_v26 = vpop.xlane.xlu2 %364 }
 0x150   :  { %4941 = vst [vmem:[#allocation16_spill] sm:$0xff] %v3234_v25  ;;  %v3238_v31 = vpop.xlane.xlu0 %358  ;;  %v652_v14 = vperm.slane %v3234_v25, %v3213_v8  ;;  %v644_v36 = vsel %vm592_vm2, %v643_v10, %v642_v7 }
 0x151   :  { %4942 = vst [vmem:[#allocation17_spill] sm:$0xff] %v3236_v26  ;;  %v651_v9 = vperm.slane %v3238_v31, %v3203_v57 }
 0x152   :  { %4943 = vst [vmem:[#allocation18_spill] sm:$0xff] %v3238_v31 }
 0x154   :  { %499 = vadd.xlane.f32.xlu2 %v498_v48  ;;  %496 = vadd.xlane.f32.xlu1 %v495_v49  ;;  %v617_v48 = vsel %vm592_vm2, %v616_v13, %v615_v11  ;;  %v620_v49 = vperm.slane %v3110_v28, %v3241_v34  ;;  %v633_v11 = vperm.slane %v3150_v62, %v3203_v57 }
 0x155   :  { %493 = vadd.xlane.f32.xlu0 %v492_v55  ;;  %v619_v54 = vsel %vm596_vm3, %v618_v19, %v617_v48  ;;  %v627_v55 = vperm.slane %v3131_v46, %v3230_v22  ;;  %v645_v13 = vperm.slane %v3210_v2, %v3230_v22  ;;  %v612_v19 = vsel %vm600_vm4, %v611_v44, %v610_v42 }
 0x156   :  { %v614_v7 = vsel %vm604_vm5, %v613_v24, %v612_v19 }
 0x157   :  { %v3275_v21 = vpop.xlane.xlu1 %370  ;;  %v3277_v12 = vpop.xlane.xlu2 %373  ;;  %v628_v48 = vsel %vm596_vm3, %v627_v55, %v626_v60  ;;  %v646_v55 = vsel %vm596_vm3, %v645_v13, %v644_v36 }
 0x158   :  { %4944 = vst [vmem:[#allocation19_spill] sm:$0xff] %v3275_v21  ;;  %v3285_v32 = vpop.xlane.xlu0 %367  ;;  %v630_v44 = vsel %vm600_vm4, %v629_v1, %v628_v48  ;;  %v660_v48 = vperm.slane %v3277_v12, %v3203_v57  ;;  %v648_v19 = vsel %vm600_vm4, %v647_v35, %v646_v55 }
 0x159   :  { %4945 = vst [vmem:[#allocation20_spill] sm:$0xff] %v3277_v12  ;;  %v656_v60 = vperm.slane %v3285_v32, %v3241_v34  ;;  %v632_v13 = vsel %vm604_vm5, %v631_v4, %v630_v44  ;;  %v649_v4 = vperm.slane %v3207_v59, %v3257_v51 }
 0x15a   :  { %4946 = vst [vmem:[#allocation21_spill] sm:$0xff] %v3285_v32 }
 0x15c   :  { %505 = vadd.xlane.f32.xlu1 %v504_v37  ;;  %v621_v37 = vsel %vm600_vm4, %v620_v49, %v619_v54  ;;  %v654_v49 = vperm.slane %v3236_v26, %v3230_v22 }
 0x15d   :  { %502 = vadd.xlane.f32.xlu0 %v501_v40  ;;  %v635_v40 = vsel %vm592_vm2, %v634_v5, %v633_v11  ;;  %v653_v5 = vsel %vm592_vm2, %v652_v14, %v651_v9  ;;  %v640_v11 = vperm.slane %v3189_v41, %v3257_v51  ;;  %v623_v36 = vsel %vm604_vm5, %v622_v27, %v621_v37 }
 0x15e   :  { %v637_v10 = vsel %vm596_vm3, %v636_v30, %v635_v40  ;;  %v638_v14 = vperm.slane %v3168_v18, %v3241_v34  ;;  %v655_v24 = vsel %vm596_vm3, %v654_v49, %v653_v5  ;;  %v658_v30 = vperm.slane %v3275_v21, %v3257_v51 }
 0x15f   :  { %v3328_v25 = vpop.xlane.xlu1 %379  ;;  %v3330_v42 = vpop.xlane.xlu2 %382  ;;  %v657_v27 = vsel %vm600_vm4, %v656_v60, %v655_v24  ;;  %v742_v37 = vsel %vm741_vm6, %v614_v7, %v605_v47  ;;  %v650_v49 = vsel %vm604_vm5, %v649_v4, %v648_v19 }
 0x160   :  { %4947 = vst [vmem:[#allocation22_spill] sm:$0xff] %v3328_v25  ;;  %v3338_v54 = vpop.xlane.xlu0 %376  ;;  %v663_v9 = vperm.slane %v3328_v25, %v3230_v22  ;;  %v639_v12 = vsel %vm600_vm4, %v638_v14, %v637_v10  ;;  %v744_v35 = vsel %vm743_vm7, %v623_v36, %v742_v37  ;;  %v665_v60 = vperm.slane %v3330_v42, %v3241_v34 }
 0x161   :  { %4948 = vst [vmem:[#allocation23_spill] sm:$0xff] %v3330_v42  ;;  %v661_v1 = vperm.slane %v3338_v54, %v3213_v8  ;;  %v641_v44 = vsel %vm604_vm5, %v640_v11, %v639_v12  ;;  %v659_v47 = vsel %vm604_vm5, %v658_v30, %v657_v27  ;;  %v746_v12 = vsel %vm745_vm8, %v632_v13, %v744_v35 }
 0x162   :  { %4949 = vst [vmem:[#allocation24_spill] sm:$0xff] %v3338_v54  ;;  %v748_v11 = vsel %vm747_vm9, %v641_v44, %v746_v12 }
 0x163   :  { %v662_v40 = vsel %vm592_vm2, %v661_v1, %v660_v48  ;;  %v750_v36 = vsel %vm749_vm10, %v650_v49, %v748_v11 }
 0x164   :  { %v664_v1 = vsel %vm596_vm3, %v663_v9, %v662_v40  ;;  %v752_v9 = vsel %vm751_vm11, %v659_v47, %v750_v36 }
 0x165   :  { %v666_v48 = vsel %vm600_vm4, %v665_v60, %v664_v1 }
 0x167   :  { %v3371_v55 = vpop.xlane.xlu2 %391  ;;  %v3373_v5 = vpop.xlane.xlu1 %388 }
 0x168   :  { %4950 = vst [vmem:[#allocation25_spill] sm:$0xff] %v3371_v55  ;;  %v3378_v10 = vpop.xlane.xlu0 %385  ;;  %v670_v15 = vperm.slane %v3371_v55, %v3213_v8  ;;  %v669_v2 = vperm.slane %v3373_v5, %v3203_v57 }
 0x169   :  { %4951 = vst [vmem:[#allocation26_spill] sm:$0xff] %v3373_v5  ;;  %v667_v7 = vperm.slane %v3378_v10, %v3257_v51 }
 0x16a   :  { %4952 = vst [vmem:[#allocation27_spill] sm:$0xff] %v3378_v10 }
 0x16b   :  { %v668_v14 = vsel %vm604_vm5, %v667_v7, %v666_v48 }
 0x16c   :  { %v754_v19 = vsel %vm753_vm12, %v668_v14, %v752_v9 }
 0x16d   :  { %v765_v13 = vsel %vm764_vm13, %v754_v19, -inf }
 0x16e   :  { %766 = vmax.xlane.f32.xlu2 %v765_v13 }
 0x16f   :  { %v3391_v24 = vpop.xlane.xlu2 %400  ;;  %v3393_v30 = vpop.xlane.xlu1 %397 }
 0x170   :  { %4953 = vst [vmem:[#allocation28_spill] sm:$0xff] %v3393_v30  ;;  %v3395_v40 = vpop.xlane.xlu0 %394 }
 0x171   :  { %4954 = vst [vmem:[#allocation29_spill] sm:$0xff] %v3395_v40 }
 0x177   :  { %v3397_v4 = vpop.xlane.xlu2 %409  ;;  %v3399_v27 = vpop.xlane.xlu1 %406 }
 0x178   :  { %4955 = vst [vmem:[#allocation30_spill] sm:$0xff] %v3397_v4  ;;  %v3401_v37 = vpop.xlane.xlu0 %403  ;;  %v679_v31 = vperm.slane %v3399_v27, %v3213_v8  ;;  %v681_v62 = vperm.slane %v3397_v4, %v3230_v22 }
 0x179   :  { %4956 = vst [vmem:[#allocation31_spill] sm:$0xff] %v3399_v27  ;;  %v678_v18 = vperm.slane %v3401_v37, %v3203_v57  ;;  %v672_v27 = vperm.slane %v3395_v40, %v3230_v22  ;;  %v671_v40 = vsel %vm592_vm2, %v670_v15, %v669_v2 }
 0x17a   :  { %4957 = vst [vmem:[#allocation32_spill] sm:$0xff] %v3401_v37 }
 0x17b   :  { %v680_v41 = vsel %vm592_vm2, %v679_v31, %v678_v18  ;;  %v673_v23 = vsel %vm596_vm3, %v672_v27, %v671_v40 }
 0x17f   :  { %v3403_v44 = vpop.xlane.xlu2 %418  ;;  %v3405_v35 = vpop.xlane.xlu1 %415 }
 0x180   :  { %4958 = vst [vmem:[#allocation33_spill] sm:$0xff] %v3403_v44  ;;  %v3407_v49 = vpop.xlane.xlu0 %412  ;;  %v687_v37 = vperm.slane %v3403_v44, %v3203_v57  ;;  %v674_v44 = vperm.slane %v3393_v30, %v3241_v34  ;;  %v685_v15 = vperm.slane %v3405_v35, %v3257_v51  ;;  %v2786_v30 = vmov 0  }
 0x181   :  { %4959 = vst [vmem:[#allocation34_spill] sm:$0xff] %v3407_v49  ;;  %v683_v55 = vperm.slane %v3407_v49, %v3241_v34  ;;  %v682_v49 = vsel %vm596_vm3, %v681_v62, %v680_v41  ;;  %2537 = vset.pattern.permute.xlu0 %v2786_v30  ;;  %2536 = vset.pattern.permute.xlu2 %v2786_v30 }
 0x182   :  { %2535 = vset.pattern.permute.xlu1 %v2786_v30 }
 0x183   :  { %v684_v2 = vsel %vm600_vm4, %v683_v55, %v682_v49 }
 0x187   :  { %v3409_v1 = vpop.xlane.xlu2 %427  ;;  %v3411_v60 = vpop.xlane.xlu1 %424 }
 0x188   :  { %4960 = vst [vmem:[#allocation35_spill] sm:$0xff] %v3411_v60  ;;  %v3413_v47 = vpop.xlane.xlu0 %421  ;;  %v690_v4 = vperm.slane %v3411_v60, %v3230_v22 }
 0x189   :  { %4961 = vst [vmem:[#allocation36_spill] sm:$0xff] %v3413_v47  ;;  %v688_v61 = vperm.slane %v3413_v47, %v3213_v8 }
 0x18b   :  { %v689_v45 = vsel %vm592_vm2, %v688_v61, %v687_v37  ;;  %v692_v61 = vperm.slane %v3409_v1, %v3241_v34 }
 0x18c   :  { %v691_v62 = vsel %vm596_vm3, %v690_v4, %v689_v45 }
 0x18f   :  { %v3415_v12 = vpop.xlane.xlu2 %436  ;;  %v3417_v7 = vpop.xlane.xlu1 %433 }
 0x190   :  { %4962 = vst [vmem:[#allocation37_spill] sm:$0xff] %v3415_v12  ;;  %v3419_v11 = vpop.xlane.xlu0 %430  ;;  %v697_v47 = vperm.slane %v3415_v12, %v3213_v8  ;;  %v696_v18 = vperm.slane %v3417_v7, %v3203_v57 }
 0x191   :  { %4963 = vst [vmem:[#allocation38_spill] sm:$0xff] %v3417_v7 }
 0x192   :  { %v698_v41 = vsel %vm592_vm2, %v697_v47, %v696_v18 }
 0x197   :  { %v3421_v48 = vpop.xlane.xlu2 %445  ;;  %v3423_v36 = vpop.xlane.xlu1 %442 }
 0x198   :  { %v3425_v14 = vpop.xlane.xlu0 %439  ;;  %v701_v40 = vperm.slane %v3423_v36, %v3241_v34 }
 0x199   :  { %v699_v60 = vperm.slane %v3425_v14, %v3230_v22 }
 0x19b   :  { %v700_v45 = vsel %vm596_vm3, %v699_v60, %v698_v41  ;;  %v693_v41 = vsel %vm600_vm4, %v692_v61, %v691_v62 }
 0x19f   :  { %v3427_v9 = vpop.xlane.xlu2 %454  ;;  %v3429_v19 = vpop.xlane.xlu1 %451 }
 0x1a0   :  { %4964 = vst [vmem:[#allocation39_spill] sm:$0xff] %v3427_v9  ;;  %v3431_v13 = vpop.xlane.xlu0 %448  ;;  %v706_v12 = vperm.slane %v3429_v19, %v3213_v8  ;;  %v708_v55 = vperm.slane %v3427_v9, %v3230_v22 }
 0x1a1   :  { %4965 = vst [vmem:[#allocation40_spill] sm:$0xff] %v3429_v19  ;;  %v705_v7 = vperm.slane %v3431_v13, %v3203_v57  ;;  %v702_v19 = vsel %vm600_vm4, %v701_v40, %v700_v45 }
 0x1a3   :  { %v707_v4 = vsel %vm592_vm2, %v706_v12, %v705_v7  ;;  %v686_v7 = vsel %vm604_vm5, %v685_v15, %v684_v2 }
 0x1a7   :  { %v3433_v42 = vpop.xlane.xlu2 %463  ;;  %v3435_v25 = vpop.xlane.xlu1 %460 }
 0x1a8   :  { %4966 = vst [vmem:[#allocation41_spill] sm:$0xff] %v3433_v42  ;;  %v3437_v21 = vpop.xlane.xlu0 %457  ;;  %v714_v47 = vperm.slane %v3433_v42, %v3203_v57  ;;  %v712_v9 = vperm.slane %v3435_v25, %v3257_v51 }
 0x1af   :  { %v3439_v10 = vpop.xlane.xlu2 %472  ;;  %v3441_v26 = vpop.xlane.xlu1 %469 }
 0x1b0   :  { %4967 = vst [vmem:[#allocation42_spill] sm:$0xff] %v3441_v26  ;;  %v3443_v54 = vpop.xlane.xlu0 %466  ;;  %v717_v60 = vperm.slane %v3441_v26, %v3230_v22 }
 0x1b1   :  { %4968 = vst [vmem:[#allocation43_spill] sm:$0xff] %v3443_v54  ;;  %v715_v37 = vperm.slane %v3443_v54, %v3213_v8  ;;  %v676_v54 = vperm.slane %v3391_v24, %v3257_v51 }
 0x1b3   :  { %v716_v42 = vsel %vm592_vm2, %v715_v37, %v714_v47  ;;  %v703_v37 = vperm.slane %v3421_v48, %v3257_v51 }
 0x1b7   :  { %v3445_v59 = vpop.xlane.xlu2 %481  ;;  %v3447_v58 = vpop.xlane.xlu1 %478 }
 0x1b8   :  { %4969 = vst [vmem:[#allocation44_spill] sm:$0xff] %v3445_v59  ;;  %v3449_v32 = vpop.xlane.xlu0 %475  ;;  %v724_v27 = vperm.slane %v3445_v59, %v3213_v8  ;;  %v723_v49 = vperm.slane %v3447_v58, %v3203_v57  ;;  %v675_v59 = vsel %vm600_vm4, %v674_v44, %v673_v23  ;;  %v709_v23 = vsel %vm596_vm3, %v708_v55, %v707_v4 }
 0x1b9   :  { %4970 = vst [vmem:[#allocation45_spill] sm:$0xff] %v3447_v58  ;;  %v710_v58 = vperm.slane %v3437_v21, %v3241_v34  ;;  %v718_v55 = vsel %vm596_vm3, %v717_v60, %v716_v42  ;;  %v719_v4 = vperm.slane %v3439_v10, %v3241_v34 }
 0x1ba   :  { %v725_v44 = vsel %vm592_vm2, %v724_v27, %v723_v49  ;;  %v721_v27 = vperm.slane %v3449_v32, %v3257_v51  ;;  %v677_v49 = vsel %vm604_vm5, %v676_v54, %v675_v59 }
 0x1bb   :  { %v711_v40 = vsel %vm600_vm4, %v710_v58, %v709_v23  ;;  %v755_v47 = vsel %vm741_vm6, %v686_v7, %v677_v49  ;;  %v720_v60 = vsel %vm600_vm4, %v719_v4, %v718_v55 }
 0x1bc   :  { %v713_v42 = vsel %vm604_vm5, %v712_v9, %v711_v40 }
 0x1bf   :  { %v3464_v46 = vpop.xlane.xlu1 %487  ;;  %v3480_v31 = vpop.xlane.xlu2 %490 }
 0x1c0   :  { %v3472_v5 = vpop.xlane.xlu0 %484  ;;  %v728_v26 = vperm.slane %v3464_v46, %v3241_v34  ;;  %v730_v59 = vperm.slane %v3480_v31, %v3257_v51 }
 0x1c1   :  { %4971 = vst [vmem:[#allocation46_spill] sm:$0xff] %v3472_v5  ;;  %v726_v30 = vperm.slane %v3472_v5, %v3230_v22  ;;  %v694_v5 = vperm.slane %v3419_v11, %v3257_v51 }
 0x1c3   :  { %v727_v15 = vsel %vm596_vm3, %v726_v30, %v725_v44  ;;  %v695_v45 = vsel %vm604_vm5, %v694_v5, %v693_v41  ;;  %v704_v30 = vsel %vm604_vm5, %v703_v37, %v702_v19  ;;  %v722_v19 = vsel %vm604_vm5, %v721_v27, %v720_v60 }
 0x1c4   :  { %v729_v58 = vsel %vm600_vm4, %v728_v26, %v727_v15  ;;  %v756_v7 = vsel %vm743_vm7, %v695_v45, %v755_v47 }
 0x1c5   :  { %v731_v9 = vsel %vm604_vm5, %v730_v59, %v729_v58  ;;  %v757_v15 = vsel %vm745_vm8, %v704_v30, %v756_v7 }
 0x1c7   :  { %v3517_v18 = vpop.xlane.xlu1 %496  ;;  %v3541_v2 = vpop.xlane.xlu2 %499 }
 0x1c8   :  { %v3526_v12 = vpop.xlane.xlu0 %493  ;;  %v733_v61 = vperm.slane %v3517_v18, %v3213_v8  ;;  %v735_v44 = vperm.slane %v3541_v2, %v3230_v22 }
 0x1c9   :  { %v732_v62 = vperm.slane %v3526_v12, %v3203_v57 }
 0x1cb   :  { %v734_v54 = vsel %vm592_vm2, %v733_v61, %v732_v62  ;;  %v758_v62 = vsel %vm747_vm9, %v713_v42, %v757_v15 }
 0x1cc   :  { %v736_v61 = vsel %vm596_vm3, %v735_v44, %v734_v54  ;;  %v759_v40 = vsel %vm749_vm10, %v722_v19, %v758_v62 }
 0x1cd   :  { %v760_v27 = vsel %vm751_vm11, %v731_v9, %v759_v40 }
 0x1cf   :  { %v3567_v5 = vpop.xlane.xlu1 %505 }
 0x1d0   :  { %v739_v41 = vperm.slane %v3567_v5, %v3257_v51  ;;  %v3573_v23 = vpop.xlane.xlu0 %502 }
 0x1d1   :  { %v737_v26 = vperm.slane %v3573_v23, %v3241_v34 }
 0x1d3   :  { %v738_v37 = vsel %vm600_vm4, %v737_v26, %v736_v61 }
 0x1d4   :  { %v740_v55 = vsel %vm604_vm5, %v739_v41, %v738_v37 }
 0x1d5   :  { %v761_v49 = vsel %vm753_vm12, %v740_v55, %v760_v27 }
 0x1d6   :  { %v768_v45 = vsel %vm764_vm13, %v761_v49, -inf }
 0x1d7   :  { %769 = vmax.xlane.f32.xlu0 %v768_v45 }
 0x1e1   :  { %v3587_v4 = vpop.xlane.xlu2 %766 }
 0x1e2   :  { %v773_v47 = vperm.slane %v3587_v4, 0  ;;  %v774_v42 = vperm.slane %v3587_v4, 1  ;;  %v3613_v55 = vperm.slane %v3587_v4, 3 }
 0x1e4   :  { %v806_v30 = vsub.f32 %v3059_v56, %v773_v47  ;;  %v805_v44 = vsub.f32 %v3041_v43, %v773_v47  ;;  %v807_v58 = vsub.f32 %v3038_v39, %v773_v47  ;;  %v808_v7 = vsub.f32 %v3055_v52, %v773_v47 }
 0x1e5   :  { %v809_v19 = vsub.f32 %v3036_v38, %v773_v47  ;;  %v814_v41 = vsub.f32 %v3096_v20, %v774_v42  ;;  %v775_v39 = vperm.slane %v3587_v4, 2  ;;  %v810_v38 = vsub.f32 %v3057_v53, %v774_v42 }
 0x1e6   :  { %v887_v60 = vmul.f32 1.442695, %v806_v30  ;;  %v885_v59 = vmul.f32 1.442695, %v805_v44  ;;  %v889_v54 = vmul.f32 1.442695, %v807_v58  ;;  %v811_v52 = vsub.f32 %v3078_v6, %v774_v42 }
 0x1e7   :  { %v891_v26 = vmul.f32 1.442695, %v808_v7  ;;  %v893_v56 = vmul.f32 1.442695, %v809_v19  ;;  %v903_v43 = vmul.f32 1.442695, %v814_v41  ;;  %v817_v20 = vsub.f32 %v3115_v33, %v775_v39 }
 0x1e8   :  { %2538 = vpow2.f32 %v887_v60  ;;  %v895_v62 = vmul.f32 1.442695, %v810_v38  ;;  %v897_v37 = vmul.f32 1.442695, %v811_v52  ;;  %v812_v6 = vsub.f32 %v3073_v63, %v774_v42 }
 0x1e9   :  { %2540 = vpow2.f32 %v885_v59  ;;  %v909_v27 = vmul.f32 1.442695, %v817_v20  ;;  %v813_v33 = vsub.f32 %v3075_v0, %v774_v42  ;;  %v820_v45 = vsub.f32 %v3134_v50, %v3613_v55 }
 0x1ea   :  { %2542 = vpow2.f32 %v889_v54  ;;  %v899_v47 = vmul.f32 1.442695, %v812_v6  ;;  %v815_v63 = vsub.f32 %v3092_v16, %v775_v39  ;;  %v816_v0 = vsub.f32 %v3094_v17, %v775_v39 }
 0x1eb   :  { %2544 = vpow2.f32 %v891_v26  ;;  %v901_v30 = vmul.f32 1.442695, %v813_v33  ;;  %v915_v58 = vmul.f32 1.442695, %v820_v45  ;;  %v823_v50 = vsub.f32 %v3152_v3, %v3613_v55  ;;  %v4981_v33 = vld [vmem:[#allocation12_spill] sm:$0xff] }
 0x1ec   :  { %2546 = vpow2.f32 %v893_v56  ;;  %v905_v42 = vmul.f32 1.442695, %v815_v63  ;;  %v907_v54 = vmul.f32 1.442695, %v816_v0  ;;  %v777_v19 = vperm.slane %v3587_v4, 4  ;;  %v4977_v56 = vld [vmem:[#allocation9_spill] sm:$0xff] }
 0x1ed   :  { %2548 = vpow2.f32 %v903_v43  ;;  %v921_v41 = vmul.f32 1.442695, %v823_v50  ;;  %v818_v17 = vsub.f32 %v3110_v28, %v775_v39  ;;  %v819_v3 = vsub.f32 %v3112_v29, %v775_v39  ;;  %v4979_v28 = vld [vmem:[#allocation3_spill] sm:$0xff]  ;;  %v4980_v39 = vld [vmem:[#allocation4_spill] sm:$0xff] }
 0x1ee   :  { %v3597_v9 = vpop.eup %2538  ;;  %2550 = vpow2.f32 %v895_v62  ;;  %v826_v43 = vsub.f32 %v4977_v56, %v777_v19  ;;  %v821_v29 = vsub.f32 %v4979_v28, %v3613_v55  ;;  %v822_v6 = vsub.f32 %v4980_v39, %v3613_v55  ;;  %v4985_v56 = vld [vmem:[#allocation15_spill] sm:$0xff] }
 0x1ef   :  { %v3600_v15 = vpop.eup %2540  ;;  %1129 = vperm.xlu2 %2536, %v3597_v9   ;;  %2552 = vpow2.f32 %v897_v37  ;;  %v911_v38 = vmul.f32 1.442695, %v818_v17  ;;  %v913_v52 = vmul.f32 1.442695, %v819_v3  ;;  %v829_v45 = vsub.f32 %v4981_v33, %v777_v19  ;;  %v4984_v17 = vld [vmem:[#allocation6_spill] sm:$0xff] }
 0x1f0   :  { %v3603_v61 = vpop.eup %2542  ;;  %1126 = vperm.xlu1 %2535, %v3600_v15   ;;  %2554 = vpow2.f32 %v909_v27  ;;  %v927_v62 = vmul.f32 1.442695, %v826_v43  ;;  %v778_v63 = vperm.slane %v3587_v4, 5  ;;  %v825_v3 = vsub.f32 %v4984_v17, %v777_v19 }
 0x1f1   :  { %1132 = vperm.xlu0 %2537, %v3603_v61   ;;  %v3610_v40 = vpop.eup %2544  ;;  %2556 = vpow2.f32 %v899_v47  ;;  %v917_v47 = vmul.f32 1.442695, %v821_v29  ;;  %v933_v0 = vmul.f32 1.442695, %v829_v45  ;;  %v3683_v28 = vperm.slane %v3587_v4, 6  ;;  %v4988_v45 = vld [vmem:[#allocation8_spill] sm:$0xff] }
 0x1f2   :  { %v3615_v49 = vpop.eup %2546  ;;  %2558 = vpow2.f32 %v901_v30  ;;  %v919_v30 = vmul.f32 1.442695, %v822_v6  ;;  %v832_v43 = vsub.f32 %v4985_v56, %v778_v63  ;;  %v4987_v6 = vld [vmem:[#allocation7_spill] sm:$0xff] }
 0x1f3   :  { %v3618_v53 = vpop.eup %2548  ;;  %2560 = vpow2.f32 %v915_v58  ;;  %v827_v33 = vsub.f32 %v4987_v6, %v777_v19  ;;  %v4993_v6 = vld [vmem:[#allocation21_spill] sm:$0xff] }
 0x1f4   :  { %4972 = vst [vmem:[#allocation47_spill] sm:$0xff] %v3618_v53  ;;  %v3626_v44 = vpop.eup %2550  ;;  %2562 = vpow2.f32 %v905_v42  ;;  %v939_v29 = vmul.f32 1.442695, %v832_v43 }
 0x1f5   :  { %v3628_v60 = vpop.eup %2552  ;;  %2564 = vpow2.f32 %v907_v54  ;;  %v4983_v54 = vld [vmem:[#allocation5_spill] sm:$0xff] }
 0x1f6   :  { %4973 = vst [vmem:[#allocation48_spill] sm:$0xff] %v3628_v60  ;;  %v3631_v59 = vpop.eup %2554  ;;  %2566 = vpow2.f32 %v921_v41  ;;  %v824_v41 = vsub.f32 %v4983_v54, %v3613_v55  ;;  %v929_v54 = vmul.f32 1.442695, %v827_v33  ;;  %v838_v33 = vsub.f32 %v4993_v6, %v3683_v28 }
 0x1f7   :  { %1135 = vperm.xlu2 %2536, %v3610_v40   ;;  %4974 = vst [vmem:[#allocation49_spill] sm:$0xff] %v3631_v59  ;;  %v3639_v7 = vpop.eup %2556  ;;  %2568 = vpow2.f32 %v911_v38 }
 0x1f8   :  { %1138 = vperm.xlu1 %2535, %v3615_v49   ;;  %v3642_v26 = vpop.eup %2558  ;;  %2570 = vpow2.f32 %v913_v52  ;;  %v923_v38 = vmul.f32 1.442695, %v824_v41  ;;  %v925_v52 = vmul.f32 1.442695, %v825_v3 }
 0x1f9   :  { %1153 = vperm.xlu0 %2537, %v3618_v53   ;;  %4975 = vst [vmem:[#allocation50_spill] sm:$0xff] %v3642_v26  ;;  %v3645_v16 = vpop.eup %2560  ;;  %2572 = vpow2.f32 %v927_v62 }
 0x1fa   :  { %4976 = vst [vmem:[#allocation51_spill] sm:$0xff] %v3645_v16  ;;  %v3652_v20 = vpop.eup %2562  ;;  %2574 = vpow2.f32 %v917_v47  ;;  %v828_v47 = vsub.f32 %v4988_v45, %v777_v19 }
 0x1fb   :  { %v3654_v37 = vpop.eup %2564  ;;  %2576 = vpow2.f32 %v919_v30  ;;  %v4989_v30 = vld [vmem:[#allocation18_spill] sm:$0xff] }
 0x1fc   :  { %v3657_v27 = vpop.eup %2566  ;;  %2578 = vpow2.f32 %v933_v0  ;;  %v835_v0 = vsub.f32 %v4989_v30, %v3683_v28  ;;  %v931_v41 = vmul.f32 1.442695, %v828_v47 }
 0x1fd   :  { %4978 = vst [vmem:[#allocation9_spill] sm:$0xff] %v3657_v27  ;;  %v3666_v58 = vpop.eup %2568  ;;  %2580 = vpow2.f32 %v923_v38  ;;  %v4991_v38 = vld [vmem:[#allocation10_spill] sm:$0xff] }
 0x1fe   :  { %v3669_v50 = vpop.eup %2570  ;;  %2582 = vpow2.f32 %v925_v52  ;;  %v945_v3 = vmul.f32 1.442695, %v835_v0  ;;  %v830_v19 = vsub.f32 %v4991_v38, %v778_v63  ;;  %v4992_v52 = vld [vmem:[#allocation11_spill] sm:$0xff]  ;;  %v780_v0 = vperm.slane %v3587_v4, 7  ;;  %v4998_v38 = vld [vmem:[#allocation14_spill] sm:$0xff] }
 0x1ff   :  { %1141 = vperm.xlu2 %2536, %v3626_v44   ;;  %v3672_v42 = vpop.eup %2572  ;;  %2584 = vpow2.f32 %v939_v29  ;;  %v831_v29 = vsub.f32 %v4992_v52, %v778_v63  ;;  %v4999_v52 = vld [vmem:[#allocation24_spill] sm:$0xff] }
 0x200   :  { %1144 = vperm.xlu1 %2535, %v3628_v60   ;;  %4982 = vst [vmem:[#allocation3_spill] sm:$0xff] %v3672_v42  ;;  %v3680_v62 = vpop.eup %2574  ;;  %2586 = vpow2.f32 %v929_v54  ;;  %v935_v45 = vmul.f32 1.442695, %v830_v19  ;;  %v834_v19 = vsub.f32 %v4998_v38, %v778_v63  ;;  %v841_v4 = vsub.f32 %v4999_v52, %v780_v0 }
 0x201   :  { %1162 = vperm.xlu0 %2537, %v3631_v59   ;;  %v3685_v39 = vpop.eup %2576  ;;  %2588 = vpow2.f32 %v931_v41  ;;  %v937_v47 = vmul.f32 1.442695, %v831_v29  ;;  %v4997_v41 = vld [vmem:[#allocation13_spill] sm:$0xff] }
 0x202   :  { %v3688_v55 = vpop.eup %2578  ;;  %2590 = vpow2.f32 %v945_v3  ;;  %v833_v3 = vsub.f32 %v4997_v41, %v778_v63  ;;  %v943_v6 = vmul.f32 1.442695, %v834_v19 }
 0x203   :  { %4986 = vst [vmem:[#allocation4_spill] sm:$0xff] %v3688_v55  ;;  %v3696_v17 = vpop.eup %2580  ;;  %2592 = vpow2.f32 %v935_v45 }
 0x204   :  { %v3698_v56 = vpop.eup %2582  ;;  %2594 = vpow2.f32 %v937_v47  ;;  %v941_v29 = vmul.f32 1.442695, %v833_v3  ;;  %v5003_v47 = vld [vmem:[#allocation16_spill] sm:$0xff]  ;;  %v5005_v3 = vld [vmem:[#allocation27_spill] sm:$0xff] }
 0x205   :  { %v3701_v43 = vpop.eup %2584  ;;  %v836_v63 = vsub.f32 %v5003_v47, %v3683_v28  ;;  %v844_v38 = vsub.f32 %v5005_v3, %v780_v0 }
 0x206   :  { %4990 = vst [vmem:[#allocation12_spill] sm:$0xff] %v3701_v43  ;;  %v3709_v30 = vpop.eup %2586 }
 0x207   :  { %1147 = vperm.xlu2 %2536, %v3639_v7   ;;  %4994 = vst [vmem:[#allocation5_spill] sm:$0xff] %v3709_v30  ;;  %v947_v19 = vmul.f32 1.442695, %v836_v63 }
 0x208   :  { %1150 = vperm.xlu1 %2535, %v3642_v26  }
 0x209   :  { %1171 = vperm.xlu0 %2537, %v3645_v16  }
 0x20f   :  { %1156 = vperm.xlu2 %2536, %v3652_v20  }
 0x210   :  { %1159 = vperm.xlu1 %2535, %v3654_v37  }
 0x211   :  { %1180 = vperm.xlu0 %2537, %v3657_v27  }
 0x217   :  { %1165 = vperm.xlu2 %2536, %v3666_v58  }
 0x218   :  { %1168 = vperm.xlu1 %2535, %v3669_v50  }
 0x219   :  { %1189 = vperm.xlu0 %2537, %v3672_v42   ;;  %v3712_v42 = vpop.eup %2588 }
 0x21a   :  { %4995 = vst [vmem:[#allocation6_spill] sm:$0xff] %v3712_v42  ;;  %v3715_v54 = vpop.eup %2590 }
 0x21b   :  { %4996 = vst [vmem:[#allocation15_spill] sm:$0xff] %v3715_v54 }
 0x21f   :  { %1174 = vperm.xlu2 %2536, %v3680_v62  }
 0x220   :  { %1177 = vperm.xlu1 %2535, %v3685_v39  }
 0x221   :  { %1198 = vperm.xlu0 %2537, %v3688_v55   ;;  %v951_v55 = vmul.f32 1.442695, %v838_v33  ;;  %v3722_v33 = vpop.eup %2592 }
 0x222   :  { %5000 = vst [vmem:[#allocation7_spill] sm:$0xff] %v3722_v33  ;;  %v3724_v27 = vpop.eup %2594 }
 0x223   :  { %2596 = vpow2.f32 %v951_v55  ;;  %5001 = vst [vmem:[#allocation8_spill] sm:$0xff] %v3724_v27  ;;  %v5004_v55 = vld [vmem:[#allocation17_spill] sm:$0xff] }
 0x224   :  { %2598 = vpow2.f32 %v941_v29  ;;  %v837_v41 = vsub.f32 %v5004_v55, %v3683_v28 }
 0x225   :  { %2600 = vpow2.f32 %v943_v6  ;;  %v5009_v6 = vld [vmem:[#allocation19_spill] sm:$0xff] }
 0x226   :  { %v949_v52 = vmul.f32 1.442695, %v837_v41  ;;  %v839_v47 = vsub.f32 %v5009_v6, %v3683_v28  ;;  %v5015_v28 = vld [vmem:[#allocation23_spill] sm:$0xff] }
 0x227   :  { %1183 = vperm.xlu2 %2536, %v3696_v17  }
 0x228   :  { %1186 = vperm.xlu1 %2535, %v3698_v56   ;;  %v953_v55 = vmul.f32 1.442695, %v839_v47 }
 0x229   :  { %1207 = vperm.xlu0 %2537, %v3701_v43   ;;  %v957_v43 = vmul.f32 1.442695, %v841_v4  ;;  %v3727_v45 = vpop.eup %2596 }
 0x22a   :  { %5002 = vst [vmem:[#allocation18_spill] sm:$0xff] %v3727_v45  ;;  %v3736_v4 = vpop.eup %2598 }
 0x22b   :  { %2602 = vpow2.f32 %v957_v43  ;;  %5006 = vst [vmem:[#allocation10_spill] sm:$0xff] %v3736_v4  ;;  %v3738_v16 = vpop.eup %2600  ;;  %v5010_v43 = vld [vmem:[#allocation20_spill] sm:$0xff] }
 0x22c   :  { %5007 = vst [vmem:[#allocation11_spill] sm:$0xff] %v3738_v16  ;;  %2604 = vpow2.f32 %v947_v19  ;;  %v840_v63 = vsub.f32 %v5010_v43, %v780_v0 }
 0x22d   :  { %2606 = vpow2.f32 %v949_v52  ;;  %v843_v52 = vsub.f32 %v5015_v28, %v780_v0 }
 0x22e   :  { %v955_v41 = vmul.f32 1.442695, %v840_v63 }
 0x22f   :  { %1192 = vperm.xlu2 %2536, %v3709_v30   ;;  %v961_v63 = vmul.f32 1.442695, %v843_v52 }
 0x230   :  { %1195 = vperm.xlu1 %2535, %v3712_v42  }
 0x231   :  { %1216 = vperm.xlu0 %2537, %v3715_v54   ;;  %v963_v54 = vmul.f32 1.442695, %v844_v38  ;;  %v3741_v29 = vpop.eup %2602 }
 0x232   :  { %5008 = vst [vmem:[#allocation21_spill] sm:$0xff] %v3741_v29  ;;  %v3748_v3 = vpop.eup %2604 }
 0x233   :  { %2608 = vpow2.f32 %v963_v54  ;;  %5011 = vst [vmem:[#allocation13_spill] sm:$0xff] %v3748_v3  ;;  %v3750_v38 = vpop.eup %2606 }
 0x234   :  { %5012 = vst [vmem:[#allocation14_spill] sm:$0xff] %v3750_v38  ;;  %2610 = vpow2.f32 %v953_v55 }
 0x235   :  { %2612 = vpow2.f32 %v955_v41  ;;  %v5019_v41 = vld [vmem:[#allocation25_spill] sm:$0xff] }
 0x237   :  { %1201 = vperm.xlu2 %2536, %v3722_v33  }
 0x238   :  { %1204 = vperm.xlu1 %2535, %v3724_v27  }
 0x239   :  { %1225 = vperm.xlu0 %2537, %v3727_v45   ;;  %v5013_v45 = vld [vmem:[#allocation22_spill] sm:$0xff]  ;;  %v3754_v19 = vpop.eup %2608 }
 0x23a   :  { %v842_v59 = vsub.f32 %v5013_v45, %v780_v0  ;;  %5014 = vst [vmem:[#allocation24_spill] sm:$0xff] %v3754_v19 }
 0x23c   :  { %v959_v43 = vmul.f32 1.442695, %v842_v59  ;;  %v5020_v59 = vld [vmem:[#allocation26_spill] sm:$0xff] }
 0x23e   :  { %2614 = vpow2.f32 %v959_v43 }
 0x23f   :  { %1210 = vperm.xlu2 %2536, %v3736_v4   ;;  %2616 = vpow2.f32 %v961_v63 }
 0x240   :  { %1213 = vperm.xlu1 %2535, %v3738_v16  }
 0x241   :  { %1234 = vperm.xlu0 %2537, %v3741_v29   ;;  %v5016_v29 = vld [vmem:[#allocation29_spill] sm:$0xff] }
 0x247   :  { %1219 = vperm.xlu2 %2536, %v3748_v3  }
 0x248   :  { %1222 = vperm.xlu1 %2535, %v3750_v38   ;;  %v3768_v38 = vpop.eup %2610 }
 0x249   :  { %1243 = vperm.xlu0 %2537, %v3754_v19   ;;  %v3759_v54 = vpop.permute.xlu2 %1129  ;;  %5017 = vst [vmem:[#allocation16_spill] sm:$0xff] %v3768_v38  ;;  %v3770_v55 = vpop.eup %2612 }
 0x24a   :  { %v3761_v6 = vpop.xlane.xlu0 %769  ;;  %5018 = vst [vmem:[#allocation17_spill] sm:$0xff] %v3770_v55  ;;  %v3780_v27 = vpop.eup %2614 }
 0x24b   :  { %v781_v47 = vperm.slane %v3761_v6, 0  ;;  %v3765_v45 = vperm.slane %v3761_v6, 1  ;;  %5022 = vst [vmem:[#allocation27_spill] sm:$0xff] %v3780_v27  ;;  %v3782_v43 = vpop.eup %2616 }
 0x24c   :  { %5023 = vst [vmem:[#allocation19_spill] sm:$0xff] %v3782_v43 }
 0x24d   :  { %v847_v3 = vsub.f32 %v5016_v29, %v781_v47  ;;  %v846_v28 = vsub.f32 %v5019_v41, %v781_v47  ;;  %v845_v52 = vsub.f32 %v5020_v59, %v781_v47  ;;  %v5021_v29 = vld [vmem:[#allocation32_spill] sm:$0xff]  ;;  %v849_v63 = vsub.f32 %v3391_v24, %v781_v47 }
 0x24e   :  { %v850_v16 = vsub.f32 %v5021_v29, %v3765_v45 }
 0x24f   :  { %1228 = vperm.xlu2 %2536, %v3768_v38   ;;  %v969_v0 = vmul.f32 1.442695, %v847_v3  ;;  %v967_v53 = vmul.f32 1.442695, %v846_v28  ;;  %v965_v4 = vmul.f32 1.442695, %v845_v52 }
 0x250   :  { %1231 = vperm.xlu1 %2535, %v3770_v55   ;;  %v975_v38 = vmul.f32 1.442695, %v850_v16  ;;  %v5026_v16 = vld [vmem:[#allocation34_spill] sm:$0xff]  ;;  %v973_v52 = vmul.f32 1.442695, %v849_v63 }
 0x251   :  { %v3776_v19 = vpop.permute.xlu2 %1135  ;;  %2618 = vpow2.f32 %v969_v0  ;;  %v5025_v0 = vld [vmem:[#allocation28_spill] sm:$0xff]  ;;  %v853_v59 = vsub.f32 %v5026_v16, %v3765_v45 }
 0x252   :  { %2620 = vpow2.f32 %v967_v53  ;;  %v848_v41 = vsub.f32 %v5025_v0, %v781_v47  ;;  %v783_v53 = vperm.slane %v3761_v6, 2  ;;  %v5031_v47 = vld [vmem:[#allocation31_spill] sm:$0xff] }
 0x253   :  { %2622 = vpow2.f32 %v965_v4  ;;  %v981_v24 = vmul.f32 1.442695, %v853_v59  ;;  %v5030_v4 = vld [vmem:[#allocation30_spill] sm:$0xff]  ;;  %v851_v63 = vsub.f32 %v5031_v47, %v3765_v45  ;;  %v5036_v47 = vld [vmem:[#allocation33_spill] sm:$0xff] }
 0x254   :  { %2624 = vpow2.f32 %v975_v38  ;;  %v971_v29 = vmul.f32 1.442695, %v848_v41  ;;  %v852_v38 = vsub.f32 %v5030_v4, %v3765_v45  ;;  %v5032_v41 = vld [vmem:[#allocation36_spill] sm:$0xff] }
 0x255   :  { %2626 = vpow2.f32 %v973_v52  ;;  %v856_v16 = vsub.f32 %v5032_v41, %v783_v53  ;;  %v859_v41 = vsub.f32 %v3419_v11, %v783_v53  ;;  %v858_v11 = vsub.f32 %v3409_v1, %v783_v53 }
 0x256   :  { %2628 = vpow2.f32 %v971_v29  ;;  %v979_v52 = vmul.f32 1.442695, %v852_v38  ;;  %v854_v38 = vsub.f32 %v3405_v35, %v3765_v45  ;;  %v5040_v45 = vld [vmem:[#allocation35_spill] sm:$0xff]  ;;  %v3856_v1 = vperm.slane %v3761_v6, 4 }
 0x257   :  { %v3784_v3 = vpop.eup %2618  ;;  %1237 = vperm.xlu2 %2536, %v3780_v27   ;;  %2630 = vpow2.f32 %v981_v24  ;;  %v855_v24 = vsub.f32 %v5036_v47, %v783_v53  ;;  %v991_v42 = vmul.f32 1.442695, %v858_v11 }
 0x258   :  { %5024 = vst [vmem:[#allocation20_spill] sm:$0xff] %v3784_v3  ;;  %1240 = vperm.xlu1 %2535, %v3782_v43   ;;  %1252 = vperm.xlu0 %2537, %v3784_v3   ;;  %v3795_v55 = vpop.eup %2620  ;;  %2632 = vpow2.f32 %v979_v52 }
 0x259   :  { %v3791_v28 = vpop.permute.xlu2 %1141  ;;  %5027 = vst [vmem:[#allocation22_spill] sm:$0xff] %v3795_v55  ;;  %v3798_v27 = vpop.eup %2622  ;;  %v985_v52 = vmul.f32 1.442695, %v855_v24 }
 0x25a   :  { %5028 = vst [vmem:[#allocation23_spill] sm:$0xff] %v3798_v27  ;;  %v3800_v43 = vpop.eup %2624 }
 0x25b   :  { %5029 = vst [vmem:[#allocation29_spill] sm:$0xff] %v3800_v43  ;;  %v3816_v4 = vpop.eup %2626 }
 0x25c   :  { %5033 = vst [vmem:[#allocation25_spill] sm:$0xff] %v3816_v4  ;;  %v3818_v26 = vpop.eup %2628 }
 0x25d   :  { %5034 = vst [vmem:[#allocation26_spill] sm:$0xff] %v3818_v26  ;;  %v3820_v29 = vpop.eup %2630 }
 0x25e   :  { %5035 = vst [vmem:[#allocation32_spill] sm:$0xff] %v3820_v29  ;;  %v3835_v47 = vpop.eup %2632 }
 0x25f   :  { %1246 = vperm.xlu2 %2536, %v3798_v27   ;;  %v977_v27 = vmul.f32 1.442695, %v851_v63  ;;  %5037 = vst [vmem:[#allocation28_spill] sm:$0xff] %v3835_v47 }
 0x260   :  { %1249 = vperm.xlu1 %2535, %v3795_v55   ;;  %1261 = vperm.xlu0 %2537, %v3800_v43   ;;  %v987_v55 = vmul.f32 1.442695, %v856_v16 }
 0x261   :  { %v3809_v0 = vpop.permute.xlu2 %1147  ;;  %2634 = vpow2.f32 %v977_v27  ;;  %v993_v27 = vmul.f32 1.442695, %v859_v41 }
 0x262   :  { %v3812_v59 = vpop.permute.xlu1 %1126  ;;  %2636 = vpow2.f32 %v987_v55  ;;  %v857_v55 = vsub.f32 %v5040_v45, %v783_v53  ;;  %v5044_v53 = vld [vmem:[#allocation37_spill] sm:$0xff] }
 0x263   :  { %v3814_v3 = vpop.permute.xlu0 %1132  ;;  %2638 = vpow2.f32 %v985_v52 }
 0x267   :  { %1255 = vperm.xlu2 %2536, %v3818_v26   ;;  %v983_v26 = vmul.f32 1.442695, %v854_v38 }
 0x268   :  { %1258 = vperm.xlu1 %2535, %v3816_v4   ;;  %1270 = vperm.xlu0 %2537, %v3820_v29   ;;  %v3838_v4 = vperm.slane %v3761_v6, 3  ;;  %v3840_v29 = vpop.eup %2634 }
 0x269   :  { %v3828_v63 = vpop.permute.xlu2 %1156  ;;  %5038 = vst [vmem:[#allocation34_spill] sm:$0xff] %v3840_v29  ;;  %v3842_v35 = vpop.eup %2636  ;;  %2640 = vpow2.f32 %v983_v26 }
 0x26a   :  { %v3831_v16 = vpop.permute.xlu1 %1138  ;;  %5039 = vst [vmem:[#allocation30_spill] sm:$0xff] %v3842_v35  ;;  %2642 = vpow2.f32 %v993_v27  ;;  %v862_v38 = vsub.f32 %v3425_v14, %v3838_v4  ;;  %v3853_v52 = vpop.eup %2638  ;;  %v861_v14 = vsub.f32 %v5044_v53, %v3838_v4  ;;  %v5045_v27 = vld [vmem:[#allocation38_spill] sm:$0xff] }
 0x26b   :  { %v3833_v43 = vpop.permute.xlu0 %1153  ;;  %5041 = vst [vmem:[#allocation31_spill] sm:$0xff] %v3853_v52  ;;  %2644 = vpow2.f32 %v991_v42  ;;  %v860_v11 = vsub.f32 %v5045_v27, %v3838_v4 }
 0x26c   :  { %v997_v42 = vmul.f32 1.442695, %v861_v14  ;;  %v1374_v14 = vperm.slane %v3791_v28, %v3203_v57 }
 0x26d   :  { %v995_v60 = vmul.f32 1.442695, %v860_v11 }
 0x26f   :  { %1264 = vperm.xlu2 %2536, %v3840_v29   ;;  %v989_v29 = vmul.f32 1.442695, %v857_v55  ;;  %v865_v55 = vsub.f32 %v3431_v13, %v3856_v1  ;;  %v863_v13 = vsub.f32 %v3423_v36, %v3838_v4  ;;  %v1383_v36 = vperm.slane %v3828_v63, %v3203_v57 }
 0x270   :  { %1267 = vperm.xlu1 %2535, %v3835_v47   ;;  %1279 = vperm.xlu0 %2537, %v3842_v35   ;;  %v999_v47 = vmul.f32 1.442695, %v862_v38  ;;  %v3858_v35 = vpop.eup %2640  ;;  %v3914_v63 = vperm.slane %v3761_v6, 5 }
 0x271   :  { %v3849_v24 = vpop.permute.xlu2 %1165  ;;  %5042 = vst [vmem:[#allocation36_spill] sm:$0xff] %v3858_v35  ;;  %v3860_v26 = vpop.eup %2642  ;;  %2646 = vpow2.f32 %v989_v29  ;;  %v864_v29 = vsub.f32 %v3421_v48, %v3838_v4  ;;  %v1365_v48 = vperm.slane %v3812_v59, %v3203_v57 }
 0x272   :  { %v1145_v41 = vpop.permute.xlu1 %1144  ;;  %5043 = vst [vmem:[#allocation33_spill] sm:$0xff] %v3860_v26  ;;  %2648 = vpow2.f32 %v999_v47  ;;  %v3875_v53 = vpop.eup %2644 }
 0x273   :  { %v1163_v33 = vpop.permute.xlu0 %1162  ;;  %5046 = vst [vmem:[#allocation35_spill] sm:$0xff] %v3875_v53  ;;  %v1375_v47 = vperm.slane %v1145_v41, %v3213_v8  ;;  %2650 = vpow2.f32 %v997_v42  ;;  %v868_v41 = vsub.f32 %v3437_v21, %v3856_v1  ;;  %v1368_v21 = vperm.slane %v3814_v3, %v3230_v22 }
 0x274   :  { %2652 = vpow2.f32 %v995_v60  ;;  %v1003_v60 = vmul.f32 1.442695, %v864_v29  ;;  %v1001_v29 = vmul.f32 1.442695, %v863_v13  ;;  %v5049_v13 = vld [vmem:[#allocation39_spill] sm:$0xff] }
 0x275   :  { %v1376_v4 = vsel %vm592_vm2, %v1375_v47, %v1374_v14  ;;  %v1011_v14 = vmul.f32 1.442695, %v868_v41 }
 0x277   :  { %1273 = vperm.xlu2 %2536, %v3858_v35   ;;  %v3877_v30 = vpop.eup %2646 }
 0x278   :  { %1276 = vperm.xlu1 %2535, %v3853_v52   ;;  %1288 = vperm.xlu0 %2537, %v3860_v26   ;;  %v1005_v52 = vmul.f32 1.442695, %v865_v55  ;;  %5047 = vst [vmem:[#allocation37_spill] sm:$0xff] %v3877_v30  ;;  %v3881_v27 = vpop.eup %2648  ;;  %v1366_v55 = vperm.slane %v3759_v54, %v3213_v8  ;;  %v1386_v54 = vperm.slane %v1163_v33, %v3230_v22 }
 0x279   :  { %v3869_v45 = vpop.permute.xlu2 %1174  ;;  %5048 = vst [vmem:[#allocation38_spill] sm:$0xff] %v3881_v27 }
 0x27a   :  { %v1151_v38 = vpop.permute.xlu1 %1150  ;;  %2654 = vpow2.f32 %v1005_v52  ;;  %v1377_v52 = vperm.slane %v3809_v0, %v3230_v22 }
 0x27b   :  { %v3873_v35 = vpop.permute.xlu0 %1171  ;;  %v1379_v28 = vperm.slane %v1151_v38, %v3241_v34  ;;  %v1367_v38 = vsel %vm592_vm2, %v1366_v55, %v1365_v48  ;;  %2656 = vpow2.f32 %v1003_v60  ;;  %v5050_v48 = vld [vmem:[#allocation40_spill] sm:$0xff]  ;;  %v1370_v60 = vperm.slane %v3776_v19, %v3241_v34 }
 0x27c   :  { %v1378_v0 = vsel %vm596_vm3, %v1377_v52, %v1376_v4  ;;  %v866_v55 = vsub.f32 %v5050_v48, %v3856_v1  ;;  %v1369_v41 = vsel %vm596_vm3, %v1368_v21, %v1367_v38  ;;  %v1381_v4 = vperm.slane %v3833_v43, %v3257_v51 }
 0x27d   :  { %v1380_v33 = vsel %vm600_vm4, %v1379_v28, %v1378_v0  ;;  %2658 = vpow2.f32 %v1001_v29 }
 0x27e   :  { %2660 = vpow2.f32 %v1011_v14  ;;  %v1382_v21 = vsel %vm604_vm5, %v1381_v4, %v1380_v33  ;;  %v1007_v14 = vmul.f32 1.442695, %v866_v55  ;;  %v1393_v55 = vperm.slane %v3869_v45, %v3213_v8 }
 0x27f   :  { %1282 = vperm.xlu2 %2536, %v3877_v30   ;;  %v867_v30 = vsub.f32 %v5049_v13, %v3856_v1 }
 0x280   :  { %1285 = vperm.xlu1 %2535, %v3875_v53   ;;  %1297 = vperm.xlu0 %2537, %v3881_v27   ;;  %v3911_v53 = vpop.eup %2650 }
 0x281   :  { %v3893_v11 = vpop.permute.xlu2 %1183 }
 0x282   :  { %v1160_v42 = vpop.permute.xlu1 %1159 }
 0x283   :  { %v1384_v59 = vperm.slane %v1160_v42, %v3213_v8  ;;  %v3904_v26 = vpop.permute.xlu0 %1180  ;;  %v3918_v42 = vpop.eup %2652 }
 0x284   :  { %v3922_v3 = vpop.eup %2654 }
 0x285   :  { %v1385_v47 = vsel %vm592_vm2, %v1384_v59, %v1383_v36  ;;  %v1372_v36 = vperm.slane %v3831_v16, %v3257_v51  ;;  %v5051_v59 = vld [vmem:[#allocation43_spill] sm:$0xff]  ;;  %v1388_v16 = vperm.slane %v3849_v24, %v3241_v34  ;;  %v3950_v13 = vpop.eup %2656 }
 0x286   :  { %v1387_v27 = vsel %vm596_vm3, %v1386_v54, %v1385_v47  ;;  %v871_v52 = vsub.f32 %v5051_v59, %v3914_v63  ;;  %v1371_v54 = vsel %vm600_vm4, %v1370_v60, %v1369_v41  ;;  %v1009_v47 = vmul.f32 1.442695, %v867_v30  ;;  %5052 = vst [vmem:[#allocation39_spill] sm:$0xff] %v3950_v13  ;;  %v3954_v33 = vpop.eup %2658  ;;  %v5054_v30 = vld [vmem:[#allocation41_spill] sm:$0xff] }
 0x287   :  { %1291 = vperm.xlu2 %2536, %v3918_v42   ;;  %v1373_v19 = vsel %vm604_vm5, %v1372_v36, %v1371_v54  ;;  %v1389_v0 = vsel %vm600_vm4, %v1388_v16, %v1387_v27  ;;  %v3957_v4 = vpop.eup %2660  ;;  %v870_v27 = vsub.f32 %v5054_v30, %v3914_v63  ;;  %v1392_v36 = vperm.slane %v3873_v35, %v3203_v57 }
 0x288   :  { %1294 = vperm.xlu1 %2535, %v3911_v53   ;;  %1306 = vperm.xlu0 %2537, %v3922_v3   ;;  %v1509_v24 = vsel %vm741_vm6, %v1382_v21, %v1373_v19  ;;  %v1017_v59 = vmul.f32 1.442695, %v871_v52  ;;  %5053 = vst [vmem:[#allocation40_spill] sm:$0xff] %v3957_v4  ;;  %2662 = vpow2.f32 %v1009_v47  ;;  %v869_v60 = vsub.f32 %v3435_v25, %v3856_v1 }
 0x289   :  { %v3939_v28 = vpop.permute.xlu2 %1192  ;;  %2664 = vpow2.f32 %v1007_v14  ;;  %v874_v16 = vsub.f32 %v3449_v32, %v3914_v63  ;;  %v1015_v35 = vmul.f32 1.442695, %v870_v27  ;;  %v1394_v54 = vsel %vm592_vm2, %v1393_v55, %v1392_v36  ;;  %v5057_v55 = vld [vmem:[#allocation46_spill] sm:$0xff] }
 0x28a   :  { %v1169_v43 = vpop.permute.xlu1 %1168  ;;  %2666 = vpow2.f32 %v1017_v59  ;;  %v1013_v47 = vmul.f32 1.442695, %v869_v60  ;;  %v3983_v25 = vperm.slane %v3761_v6, 6  ;;  %v1399_v30 = vperm.slane %v3893_v11, %v3257_v51 }
 0x28b   :  { %v1390_v38 = vperm.slane %v1169_v43, %v3257_v51  ;;  %v1190_v29 = vpop.permute.xlu0 %1189  ;;  %v1023_v32 = vmul.f32 1.442695, %v874_v16  ;;  %2668 = vpow2.f32 %v1015_v35  ;;  %v4012_v11 = vperm.slane %v3761_v6, 7  ;;  %v5061_v6 = vld [vmem:[#allocation45_spill] sm:$0xff] }
 0x28c   :  { %2670 = vpow2.f32 %v1013_v47  ;;  %v877_v36 = vsub.f32 %v5057_v55, %v3983_v25 }
 0x28d   :  { %v1391_v48 = vsel %vm604_vm5, %v1390_v38, %v1389_v0  ;;  %v1397_v38 = vperm.slane %v3904_v26, %v3241_v34  ;;  %v873_v26 = vsub.f32 %v3439_v10, %v3914_v63  ;;  %2672 = vpow2.f32 %v1023_v32 }
 0x28e   :  { %v1510_v41 = vsel %vm743_vm7, %v1391_v48, %v1509_v24  ;;  %v3980_v19 = vpop.eup %2662  ;;  %v5056_v24 = vld [vmem:[#allocation42_spill] sm:$0xff]  ;;  %v1402_v10 = vperm.slane %v1190_v29, %v3213_v8  ;;  %v1029_v47 = vmul.f32 1.442695, %v877_v36 }
 0x28f   :  { %1300 = vperm.xlu2 %2536, %v3954_v33   ;;  %v3986_v0 = vpop.eup %2664  ;;  %v872_v59 = vsub.f32 %v5056_v24, %v3914_v63  ;;  %v1021_v35 = vmul.f32 1.442695, %v873_v26  ;;  %v875_v24 = vsub.f32 %v5061_v6, %v3983_v25 }
 0x290   :  { %1303 = vperm.xlu1 %2535, %v3950_v13   ;;  %1315 = vperm.xlu0 %2537, %v3957_v4   ;;  %v3989_v48 = vpop.eup %2666 }
 0x291   :  { %v3970_v52 = vpop.permute.xlu2 %1201  ;;  %5055 = vst [vmem:[#allocation43_spill] sm:$0xff] %v3989_v48  ;;  %v1019_v63 = vmul.f32 1.442695, %v872_v59  ;;  %2674 = vpow2.f32 %v1021_v35 }
 0x292   :  { %v1178_v21 = vpop.permute.xlu1 %1177 }
 0x293   :  { %v1395_v45 = vperm.slane %v1178_v21, %v3230_v22  ;;  %v3975_v43 = vpop.permute.xlu0 %1198  ;;  %2676 = vpow2.f32 %v1019_v63 }
 0x294   :  { %2678 = vpow2.f32 %v1029_v47 }
 0x295   :  { %v1396_v1 = vsel %vm596_vm3, %v1395_v45, %v1394_v54  ;;  %v4009_v54 = vpop.eup %2668 }
 0x296   :  { %v1398_v14 = vsel %vm600_vm4, %v1397_v38, %v1396_v1  ;;  %v4015_v1 = vpop.eup %2670 }
 0x297   :  { %1309 = vperm.xlu2 %2536, %v3986_v0   ;;  %v1400_v16 = vsel %vm604_vm5, %v1399_v30, %v1398_v14  ;;  %5058 = vst [vmem:[#allocation41_spill] sm:$0xff] %v4015_v1  ;;  %v4018_v32 = vpop.eup %2672  ;;  %v5060_v14 = vld [vmem:[#allocation44_spill] sm:$0xff] }
 0x298   :  { %1312 = vperm.xlu1 %2535, %v3980_v19   ;;  %1324 = vperm.xlu0 %2537, %v3989_v48   ;;  %v1511_v29 = vsel %vm745_vm8, %v1400_v16, %v1510_v41  ;;  %5059 = vst [vmem:[#allocation42_spill] sm:$0xff] %v4018_v32  ;;  %v876_v26 = vsub.f32 %v5060_v14, %v3983_v25  ;;  %v1025_v16 = vmul.f32 1.442695, %v875_v24 }
 0x299   :  { %v4000_v27 = vpop.permute.xlu2 %1210  ;;  %v880_v41 = vsub.f32 %v3526_v12, %v4012_v11  ;;  %v883_v24 = vsub.f32 %v3573_v23, %v4012_v11  ;;  %v881_v23 = vsub.f32 %v3517_v18, %v4012_v11  ;;  %v884_v18 = vsub.f32 %v3567_v5, %v4012_v11 }
 0x29a   :  { %v1187_v60 = vpop.permute.xlu1 %1186  ;;  %v1027_v36 = vmul.f32 1.442695, %v876_v26  ;;  %v1408_v26 = vperm.slane %v3975_v43, %v3257_v51 }
 0x29b   :  { %v1401_v21 = vperm.slane %v1187_v60, %v3203_v57  ;;  %v4007_v45 = vpop.permute.xlu0 %1207  ;;  %v1404_v60 = vperm.slane %v3939_v28, %v3230_v22  ;;  %v1035_v35 = vmul.f32 1.442695, %v880_v41  ;;  %v879_v28 = vsub.f32 %v3480_v31, %v3983_v25 }
 0x29c   :  { %2680 = vpow2.f32 %v1027_v36  ;;  %v1041_v36 = vmul.f32 1.442695, %v883_v24 }
 0x29d   :  { %v1403_v38 = vsel %vm592_vm2, %v1402_v10, %v1401_v21  ;;  %v4036_v21 = vpop.eup %2674  ;;  %2682 = vpow2.f32 %v1025_v16 }
 0x29e   :  { %5062 = vst [vmem:[#allocation46_spill] sm:$0xff] %v4036_v21  ;;  %v4038_v63 = vpop.eup %2676  ;;  %v1405_v47 = vsel %vm596_vm3, %v1404_v60, %v1403_v38  ;;  %v878_v38 = vsub.f32 %v3464_v46, %v3983_v25  ;;  %2684 = vpow2.f32 %v1035_v35 }
 0x29f   :  { %1318 = vperm.xlu2 %2536, %v4015_v1   ;;  %v4041_v14 = vpop.eup %2678 }
 0x2a0   :  { %1321 = vperm.xlu1 %2535, %v4009_v54   ;;  %1333 = vperm.xlu0 %2537, %v4018_v32   ;;  %v1031_v43 = vmul.f32 1.442695, %v878_v38 }
 0x2a1   :  { %v4027_v59 = vpop.permute.xlu2 %1219 }
 0x2a2   :  { %v1196_v30 = vpop.permute.xlu1 %1195 }
 0x2a3   :  { %v1406_v55 = vperm.slane %v1196_v30, %v3241_v34  ;;  %v4034_v10 = vpop.permute.xlu0 %1216  ;;  %v1033_v30 = vmul.f32 1.442695, %v879_v28 }
 0x2a5   :  { %v1407_v12 = vsel %vm600_vm4, %v1406_v55, %v1405_v47  ;;  %v4060_v55 = vpop.eup %2680  ;;  %2686 = vpow2.f32 %v1033_v30 }
 0x2a6   :  { %v1409_v41 = vsel %vm604_vm5, %v1408_v26, %v1407_v12  ;;  %v4065_v16 = vpop.eup %2682  ;;  %2688 = vpow2.f32 %v1031_v43  ;;  %v1037_v12 = vmul.f32 1.442695, %v881_v23  ;;  %v1043_v43 = vmul.f32 1.442695, %v884_v18 }
 0x2a7   :  { %1327 = vperm.xlu2 %2536, %v4038_v63   ;;  %v4063_v60 = vsel %vm747_vm9, %v1409_v41, %v1511_v29  ;;  %5063 = vst [vmem:[#allocation44_spill] sm:$0xff] %v4065_v16  ;;  %v4069_v25 = vpop.eup %2684  ;;  %2690 = vpow2.f32 %v1041_v36  ;;  %v882_v29 = vsub.f32 %v3541_v2, %v4012_v11 }
 0x2a8   :  { %1330 = vperm.xlu1 %2535, %v4036_v21   ;;  %1342 = vperm.xlu0 %2537, %v4041_v14   ;;  %5064 = vst [vmem:[#allocation45_spill] sm:$0xff] %v4069_v25  ;;  %2692 = vpow2.f32 %v1037_v12 }
 0x2a9   :  { %v4053_v6 = vpop.permute.xlu2 %1228  ;;  %v1039_v26 = vmul.f32 1.442695, %v882_v29 }
 0x2aa   :  { %v4058_v31 = vpop.permute.xlu1 %1204 }
 0x2ab   :  { %v4067_v46 = vpop.permute.xlu0 %1225  ;;  %v4082_v28 = vpop.eup %2686  ;;  %2694 = vpow2.f32 %v1039_v26 }
 0x2ac   :  { %5065 = vst [vmem:[#allocation52_spill] sm:$0xff] %v4082_v28  ;;  %v4084_v38 = vpop.eup %2688  ;;  %2696 = vpow2.f32 %v1043_v43 }
 0x2ad   :  { %5066 = vst [vmem:[#allocation53_spill] sm:$0xff] %v4084_v38  ;;  %v4086_v24 = vpop.eup %2690 }
 0x2ae   :  { %5067 = vst [vmem:[#allocation54_spill] sm:$0xff] %v4086_v24  ;;  %v4093_v36 = vpop.eup %2692 }
 0x2af   :  { %1336 = vperm.xlu2 %2536, %v4065_v16  }
 0x2b0   :  { %1339 = vperm.xlu1 %2535, %v4060_v55   ;;  %1351 = vperm.xlu0 %2537, %v4069_v25  }
 0x2b1   :  { %v4076_v35 = vpop.permute.xlu2 %1237  ;;  %v4095_v23 = vpop.eup %2694 }
 0x2b2   :  { %v4080_v47 = vpop.permute.xlu1 %1213  ;;  %5068 = vst [vmem:[#allocation55_spill] sm:$0xff] %v4095_v23  ;;  %v4099_v12 = vpop.eup %2696 }
 0x2b3   :  { %v1235_v41 = vpop.permute.xlu0 %1234  ;;  %5069 = vst [vmem:[#allocation56_spill] sm:$0xff] %v4099_v12 }
 0x2b7   :  { %1345 = vperm.xlu2 %2536, %v4084_v38  }
 0x2b8   :  { %1348 = vperm.xlu1 %2535, %v4082_v28   ;;  %1360 = vperm.xlu0 %2537, %v4086_v24  }
 0x2b9   :  { %v1247_v2 = vpop.permute.xlu2 %1246 }
 0x2ba   :  { %v1223_v30 = vpop.permute.xlu1 %1222  ;;  %v1437_v25 = vperm.slane %v1247_v2, %v3203_v57  ;;  %v1420_v2 = vperm.slane %v4027_v59, %v3213_v8  ;;  %v1413_v59 = vperm.slane %v4007_v45, %v3230_v22  ;;  %v1417_v45 = vperm.slane %v4080_v47, %v3257_v51 }
 0x2bb   :  { %v1244_v28 = vpop.permute.xlu0 %1243 }
 0x2bc   :  { %v1435_v47 = vperm.slane %v1244_v28, %v3257_v51 }
 0x2bf   :  { %1354 = vperm.xlu2 %2536, %v4093_v36  }
 0x2c0   :  { %1357 = vperm.xlu1 %2535, %v4095_v23   ;;  %v1411_v23 = vperm.slane %v4058_v31, %v3213_v8 }
 0x2c1   :  { %v1256_v29 = vpop.permute.xlu2 %1255 }
 0x2c2   :  { %v1232_v38 = vpop.permute.xlu1 %1231  ;;  %v1442_v48 = vperm.slane %v1256_v29, %v3241_v34  ;;  %v1410_v29 = vperm.slane %v3970_v52, %v3203_v57  ;;  %v1424_v52 = vperm.slane %v4067_v46, %v3241_v34 }
 0x2c4   :  { %v1412_v31 = vsel %vm592_vm2, %v1411_v23, %v1410_v29  ;;  %v1431_v23 = vperm.slane %v4076_v35, %v3230_v22 }
 0x2c7   :  { %1363 = vperm.xlu2 %2536, %v4099_v12  }
 0x2c9   :  { %v1265_v5 = vpop.permute.xlu2 %1264 }
 0x2ca   :  { %v1241_v11 = vpop.permute.xlu1 %1240  ;;  %v1253_v26 = vpop.permute.xlu0 %1252  ;;  %v1447_v16 = vperm.slane %v1265_v5, %v3213_v8 }
 0x2cb   :  { %v1440_v32 = vperm.slane %v1253_v26, %v3230_v22 }
 0x2d1   :  { %v1274_v18 = vpop.permute.xlu2 %1273 }
 0x2d2   :  { %v1250_v21 = vpop.permute.xlu1 %1249  ;;  %v1262_v4 = vpop.permute.xlu0 %1261 }
 0x2d3   :  { %v1438_v24 = vperm.slane %v1250_v21, %v3213_v8  ;;  %v1446_v43 = vperm.slane %v1262_v4, %v3203_v57  ;;  %v1419_v21 = vperm.slane %v4034_v10, %v3203_v57 }
 0x2d5   :  { %v1439_v12 = vsel %vm592_vm2, %v1438_v24, %v1437_v25  ;;  %v1448_v1 = vsel %vm592_vm2, %v1447_v16, %v1446_v43  ;;  %v1422_v25 = vperm.slane %v1223_v30, %v3230_v22  ;;  %v1428_v16 = vperm.slane %v1232_v38, %v3203_v57 }
 0x2d6   :  { %v1441_v13 = vsel %vm596_vm3, %v1440_v32, %v1439_v12  ;;  %v1429_v32 = vperm.slane %v1235_v41, %v3213_v8  ;;  %v1421_v10 = vsel %vm592_vm2, %v1420_v2, %v1419_v21  ;;  %v1433_v30 = vperm.slane %v1241_v11, %v3241_v34 }
 0x2d7   :  { %v1443_v4 = vsel %vm600_vm4, %v1442_v48, %v1441_v13  ;;  %v1423_v48 = vsel %vm596_vm3, %v1422_v25, %v1421_v10  ;;  %v1414_v41 = vsel %vm596_vm3, %v1413_v59, %v1412_v31  ;;  %v1415_v43 = vperm.slane %v4000_v27, %v3241_v34 }
 0x2d8   :  { %v1430_v38 = vsel %vm592_vm2, %v1429_v32, %v1428_v16  ;;  %v1425_v46 = vsel %vm600_vm4, %v1424_v52, %v1423_v48  ;;  %v1426_v11 = vperm.slane %v4053_v6, %v3257_v51  ;;  %v1453_v59 = vperm.slane %v1274_v18, %v3257_v51 }
 0x2d9   :  { %v1283_v24 = vpop.permute.xlu2 %1282  ;;  %v1432_v2 = vsel %vm596_vm3, %v1431_v23, %v1430_v38  ;;  %v1416_v21 = vsel %vm600_vm4, %v1415_v43, %v1414_v41 }
 0x2da   :  { %v1259_v12 = vpop.permute.xlu1 %1258  ;;  %v1271_v5 = vpop.permute.xlu0 %1270  ;;  %v1434_v29 = vsel %vm600_vm4, %v1433_v30, %v1432_v2  ;;  %v1418_v35 = vsel %vm604_vm5, %v1417_v45, %v1416_v21  ;;  %v1427_v27 = vsel %vm604_vm5, %v1426_v11, %v1425_v46  ;;  %v1458_v23 = vperm.slane %v1283_v24, %v3230_v22 }
 0x2db   :  { %v1444_v13 = vperm.slane %v1259_v12, %v3257_v51  ;;  %v1436_v32 = vsel %vm604_vm5, %v1435_v47, %v1434_v29  ;;  %v1451_v12 = vperm.slane %v1271_v5, %v3241_v34  ;;  %v1513_v6 = vsel %vm749_vm10, %v1418_v35, %v4063_v60 }
 0x2dc   :  { %v1514_v28 = vsel %vm751_vm11, %v1427_v27, %v1513_v6 }
 0x2dd   :  { %v1445_v26 = vsel %vm604_vm5, %v1444_v13, %v1443_v4  ;;  %v1515_v52 = vsel %vm753_vm12, %v1436_v32, %v1514_v28 }
 0x2de   :  { %v1525_v30 = vsel %vm764_vm13, %v1515_v52, 0.0 }
 0x2e1   :  { %v1292_v25 = vpop.permute.xlu2 %1291 }
 0x2e2   :  { %v1268_v4 = vpop.permute.xlu1 %1267  ;;  %v1280_v16 = vpop.permute.xlu0 %1279 }
 0x2e3   :  { %v1449_v31 = vperm.slane %v1268_v4, %v3230_v22  ;;  %v1456_v60 = vperm.slane %v1280_v16, %v3213_v8 }
 0x2e5   :  { %v1450_v10 = vsel %vm596_vm3, %v1449_v31, %v1448_v1 }
 0x2e6   :  { %v1452_v13 = vsel %vm600_vm4, %v1451_v12, %v1450_v10 }
 0x2e7   :  { %v1454_v48 = vsel %vm604_vm5, %v1453_v59, %v1452_v13 }
 0x2e8   :  { %v1516_v38 = vsel %vm741_vm6, %v1454_v48, %v1445_v26 }
 0x2e9   :  { %v1301_v1 = vpop.permute.xlu2 %1300 }
 0x2ea   :  { %v1277_v5 = vpop.permute.xlu1 %1276  ;;  %1526 = vadd.xlane.f32.xlu1 %v1525_v30  ;;  %v1289_v41 = vpop.permute.xlu0 %1288 }
 0x2eb   :  { %v1455_v18 = vperm.slane %v1277_v5, %v3203_v57  ;;  %v1462_v11 = vperm.slane %v1289_v41, %v3257_v51  ;;  %v1464_v41 = vperm.slane %v1292_v25, %v3203_v57  ;;  %v1469_v25 = vperm.slane %v1301_v1, %v3241_v34 }
 0x2ed   :  { %v1457_v45 = vsel %vm592_vm2, %v1456_v60, %v1455_v18 }
 0x2ee   :  { %v1459_v43 = vsel %vm596_vm3, %v1458_v23, %v1457_v45 }
 0x2f1   :  { %v1310_v29 = vpop.permute.xlu2 %1309 }
 0x2f2   :  { %v1286_v46 = vpop.permute.xlu1 %1285  ;;  %v1298_v2 = vpop.permute.xlu0 %1297 }
 0x2f3   :  { %v1460_v26 = vperm.slane %v1286_v46, %v3241_v34 }
 0x2f5   :  { %v1461_v21 = vsel %vm600_vm4, %v1460_v26, %v1459_v43  ;;  %v1474_v43 = vperm.slane %v1310_v29, %v3213_v8 }
 0x2f6   :  { %v1463_v35 = vsel %vm604_vm5, %v1462_v11, %v1461_v21  ;;  %v1467_v11 = vperm.slane %v1298_v2, %v3230_v22 }
 0x2f7   :  { %v1517_v47 = vsel %vm743_vm7, %v1463_v35, %v1516_v38 }
 0x2f9   :  { %v1319_v24 = vpop.permute.xlu2 %1318 }
 0x2fa   :  { %v1295_v4 = vpop.permute.xlu1 %1294  ;;  %v1307_v16 = vpop.permute.xlu0 %1306 }
 0x2fb   :  { %v1465_v5 = vperm.slane %v1295_v4, %v3213_v8  ;;  %v1473_v38 = vperm.slane %v1307_v16, %v3203_v57 }
 0x2fd   :  { %v1466_v46 = vsel %vm592_vm2, %v1465_v5, %v1464_v41  ;;  %v1475_v4 = vsel %vm592_vm2, %v1474_v43, %v1473_v38 }
 0x301   :  { %v1328_v32 = vpop.permute.xlu2 %1327 }
 0x302   :  { %v1304_v27 = vpop.permute.xlu1 %1303  ;;  %v1316_v31 = vpop.permute.xlu0 %1315  ;;  %v1485_v2 = vperm.slane %v1328_v32, %v3230_v22 }
 0x309   :  { %v1337_v28 = vpop.permute.xlu2 %1336 }
 0x30a   :  { %v1313_v12 = vpop.permute.xlu1 %1312  ;;  %v1325_v6 = vpop.permute.xlu0 %1324  ;;  %v1491_v16 = vperm.slane %v1337_v28, %v3203_v57  ;;  %v1480_v28 = vperm.slane %v1319_v24, %v3257_v51 }
 0x30b   :  { %v1476_v18 = vperm.slane %v1313_v12, %v3230_v22  ;;  %v1483_v21 = vperm.slane %v1325_v6, %v3213_v8  ;;  %v1468_v12 = vsel %vm596_vm3, %v1467_v11, %v1466_v46  ;;  %v1478_v6 = vperm.slane %v1316_v31, %v3241_v34 }
 0x30c   :  { %v1470_v38 = vsel %vm600_vm4, %v1469_v25, %v1468_v12 }
 0x311   :  { %v1346_v48 = vpop.permute.xlu2 %1345 }
 0x312   :  { %v1322_v59 = vpop.permute.xlu1 %1321  ;;  %v1334_v10 = vpop.permute.xlu0 %1333 }
 0x313   :  { %v1482_v23 = vperm.slane %v1322_v59, %v3203_v57  ;;  %v1477_v59 = vsel %vm596_vm3, %v1476_v18, %v1475_v4  ;;  %v1489_v24 = vperm.slane %v1334_v10, %v3257_v51 }
 0x314   :  { %v1479_v18 = vsel %vm600_vm4, %v1478_v6, %v1477_v59 }
 0x315   :  { %v1484_v29 = vsel %vm592_vm2, %v1483_v21, %v1482_v23 }
 0x316   :  { %v1486_v23 = vsel %vm596_vm3, %v1485_v2, %v1484_v29 }
 0x319   :  { %v1355_v45 = vpop.permute.xlu2 %1354 }
 0x31a   :  { %v1331_v13 = vpop.permute.xlu1 %1330  ;;  %v1343_v52 = vpop.permute.xlu0 %1342  ;;  %v1501_v11 = vperm.slane %v1355_v45, %v3213_v8 }
 0x31b   :  { %v1487_v5 = vperm.slane %v1331_v13, %v3241_v34  ;;  %v1494_v41 = vperm.slane %v1343_v52, %v3230_v22  ;;  %v1496_v52 = vperm.slane %v1346_v48, %v3241_v34 }
 0x31d   :  { %v1488_v13 = vsel %vm600_vm4, %v1487_v5, %v1486_v23 }
 0x31e   :  { %v1490_v4 = vsel %vm604_vm5, %v1489_v24, %v1488_v13 }
 0x321   :  { %v1364_v21 = vpop.permute.xlu2 %1363 }
 0x322   :  { %v1340_v30 = vpop.permute.xlu1 %1339  ;;  %v1352_v60 = vpop.permute.xlu0 %1351  ;;  %v1507_v12 = vperm.slane %v1364_v21, %v3257_v51 }
 0x323   :  { %v1492_v26 = vperm.slane %v1340_v30, %v3213_v8  ;;  %v1471_v30 = vperm.slane %v1304_v27, %v3257_v51  ;;  %v1500_v32 = vperm.slane %v1352_v60, %v3203_v57 }
 0x325   :  { %v1493_v1 = vsel %vm592_vm2, %v1492_v26, %v1491_v16  ;;  %v1472_v43 = vsel %vm604_vm5, %v1471_v30, %v1470_v38  ;;  %v1481_v26 = vsel %vm604_vm5, %v1480_v28, %v1479_v18 }
 0x326   :  { %v1495_v27 = vsel %vm596_vm3, %v1494_v41, %v1493_v1  ;;  %v1518_v60 = vsel %vm745_vm8, %v1472_v43, %v1517_v47 }
 0x327   :  { %v1497_v16 = vsel %vm600_vm4, %v1496_v52, %v1495_v27  ;;  %v1519_v45 = vsel %vm747_vm9, %v1481_v26, %v1518_v60 }
 0x328   :  { %v1520_v29 = vsel %vm749_vm10, %v1490_v4, %v1519_v45  ;;  %v5077_v4 = vld [vmem:[#allocation47_spill] sm:$0xff]  ;;  %v5081_v45 = vld [vmem:[#allocation14_spill] sm:$0xff] }
 0x32a   :  { %v1349_v35 = vpop.permute.xlu1 %1348  ;;  %v1361_v46 = vpop.permute.xlu0 %1360 }
 0x32b   :  { %v1498_v31 = vperm.slane %v1349_v35, %v3257_v51  ;;  %v1502_v35 = vsel %vm592_vm2, %v1501_v11, %v1500_v32  ;;  %v1505_v10 = vperm.slane %v1361_v46, %v3241_v34  ;;  %v5073_v46 = vld [vmem:[#allocation7_spill] sm:$0xff] }
 0x32d   :  { %v1499_v48 = vsel %vm604_vm5, %v1498_v31, %v1497_v16  ;;  %v5070_v31 = vld [vmem:[#allocation5_spill] sm:$0xff] }
 0x32e   :  { %v1521_v47 = vsel %vm751_vm11, %v1499_v48, %v1520_v29  ;;  %v5079_v48 = vld [vmem:[#allocation13_spill] sm:$0xff] }
 0x332   :  { %v1358_v25 = vpop.permute.xlu1 %1357 }
 0x333   :  { %v1503_v57 = vperm.slane %v1358_v25, %v3230_v22 }
 0x335   :  { %v1504_v8 = vsel %vm596_vm3, %v1503_v57, %v1502_v35  ;;  %v5078_v57 = vld [vmem:[#allocation11_spill] sm:$0xff] }
 0x336   :  { %v1506_v59 = vsel %vm600_vm4, %v1505_v10, %v1504_v8 }
 0x337   :  { %v1508_v22 = vsel %vm604_vm5, %v1507_v12, %v1506_v59  ;;  %v5080_v12 = vld [vmem:[#allocation49_spill] sm:$0xff] }
 0x338   :  { %v1522_v5 = vsel %vm753_vm12, %v1508_v22, %v1521_v47  ;;  %v5082_v47 = vld [vmem:[#allocation16_spill] sm:$0xff] }
 0x339   :  { %v1528_v30 = vsel %vm764_vm13, %v1522_v5, 0.0 }
 0x33a   :  { %1529 = vadd.xlane.f32.xlu0 %v1528_v30  ;;  %v5083_v30 = vld [vmem:[#allocation51_spill] sm:$0xff] }
 0x35d   :  { %v1527_v34 = vpop.xlane.xlu1 %1526 }
 0x35e   :  { %2698 = vrcp.f32 %v1527_v34 }
 0x364   :  { %v2699_v51 = vpop.eup %2698 }
 0x365   :  { %v1536_v2 = vperm.slane %v2699_v51, 1  ;;  %v1535_v6 = vperm.slane %v2699_v51, 0  ;;  %v1537_v38 = vperm.slane %v2699_v51, 2  ;;  %v4248_v35 = vperm.slane %v2699_v51, 6 }
 0x366   :  { %v4255_v29 = vperm.slane %v2699_v51, 7 }
 0x367   :  { %v1572_v1 = vmul.f32 %v3626_v44, %v1536_v2  ;;  %v1567_v41 = vmul.f32 %v3600_v15, %v1535_v6  ;;  %v1574_v28 = vmul.f32 %v3639_v7, %v1536_v2  ;;  %v1577_v18 = vmul.f32 %v3652_v20, %v1537_v38 }
 0x368   :  { %v1568_v23 = vmul.f32 %v3597_v9, %v1535_v6  ;;  %v1578_v13 = vmul.f32 %v3654_v37, %v1537_v38  ;;  %v1580_v27 = vmul.f32 %v3666_v58, %v1537_v38  ;;  %v1569_v44 = vmul.f32 %v3603_v61, %v1535_v6 }
 0x369   :  { %1674 = vperm.xlu1 %2535, %v1572_v1   ;;  %1649 = vperm.xlu2 %2536, %v1567_v41   ;;  %v1581_v15 = vmul.f32 %v3669_v50, %v1537_v38  ;;  %v1538_v7 = vperm.slane %v2699_v51, 3  ;;  %v1570_v20 = vmul.f32 %v3610_v40, %v1535_v6  ;;  %v1539_v37 = vperm.slane %v2699_v51, 4  ;;  %v5072_v40 = vld [vmem:[#allocation6_spill] sm:$0xff]  ;;  %v5085_v1 = vld [vmem:[#allocation27_spill] sm:$0xff] }
 0x36a   :  { %1684 = vperm.xlu0 %2537, %v1574_v28   ;;  %v1571_v61 = vmul.f32 %v3615_v49, %v1535_v6  ;;  %v5075_v49 = vld [vmem:[#allocation8_spill] sm:$0xff]  ;;  %v1576_v16 = vmul.f32 %v5077_v4, %v1536_v2  ;;  %v1598_v10 = vmul.f32 %v5079_v48, %v4248_v35  ;;  %v1579_v8 = vmul.f32 %v5080_v12, %v1537_v38  ;;  %v5086_v28 = vld [vmem:[#allocation9_spill] sm:$0xff]  ;;  %v5095_v4 = vld [vmem:[#allocation30_spill] sm:$0xff] }
 0x36b   :  { %v1583_v32 = vmul.f32 %v3680_v62, %v1538_v7  ;;  %v1584_v9 = vmul.f32 %v3685_v39, %v1538_v7  ;;  %v1586_v58 = vmul.f32 %v3696_v17, %v1538_v7  ;;  %v1587_v50 = vmul.f32 %v3698_v56, %v1539_v37  ;;  %v5071_v62 = vld [vmem:[#allocation48_spill] sm:$0xff]  ;;  %v5074_v17 = vld [vmem:[#allocation50_spill] sm:$0xff] }
 0x36c   :  { %v1589_v43 = vmul.f32 %v5070_v31, %v1539_v37  ;;  %v1573_v52 = vmul.f32 %v5071_v62, %v1536_v2  ;;  %v1590_v24 = vmul.f32 %v5072_v40, %v1539_v37  ;;  %v1540_v39 = vperm.slane %v2699_v51, 5  ;;  %v5076_v56 = vld [vmem:[#allocation10_spill] sm:$0xff]  ;;  %v5092_v31 = vld [vmem:[#allocation29_spill] sm:$0xff]  ;;  %v2708_v12 = vld [vmem:[%s4824_s1 + $0x10] sm:$0xff] }
 0x36d   :  { %v1575_v11 = vmul.f32 %v5074_v17, %v1536_v2  ;;  %v1599_v59 = vmul.f32 %v5081_v45, %v4248_v35  ;;  %v1601_v5 = vmul.f32 %v5082_v47, %v4248_v35  ;;  %v1582_v34 = vmul.f32 %v5083_v30, %v1538_v7  ;;  %v5084_v2 = vld [vmem:[#allocation17_spill] sm:$0xff]  ;;  %v5093_v62 = vld [vmem:[#allocation34_spill] sm:$0xff] }
 0x36e   :  { %v1592_v26 = vmul.f32 %v5073_v46, %v1540_v39  ;;  %v1593_v21 = vmul.f32 %v5075_v49, %v1540_v39  ;;  %v1595_v25 = vmul.f32 %v5076_v56, %v1540_v39  ;;  %v1596_v60 = vmul.f32 %v5078_v57, %v1540_v39  ;;  %v2706_v40 = vld [vmem:[%s4824_s1] sm:$0xff]  ;;  %v5094_v56 = vld [vmem:[#allocation12_spill] sm:$0xff] }
 0x36f   :  { %v1602_v6 = vmul.f32 %v5084_v2, %v4255_v29  ;;  %v1604_v41 = vmul.f32 %v5085_v1, %v4255_v29  ;;  %v1585_v38 = vmul.f32 %v5086_v28, %v1538_v7  ;;  %v5096_v57 = vld [vmem:[#allocation28_spill] sm:$0xff]  ;;  %v2709_v1 = vld [vmem:[%s4824_s1 + $0x18] sm:$0xff] }
 0x371   :  { %1699 = vperm.xlu1 %2535, %v1577_v18   ;;  %1654 = vperm.xlu2 %2536, %v1568_v23   ;;  %v5087_v18 = vld [vmem:[#allocation19_spill] sm:$0xff] }
 0x372   :  { %1704 = vperm.xlu0 %2537, %v1578_v13   ;;  %v1605_v23 = vmul.f32 %v5087_v18, %v4255_v29  ;;  %v5099_v18 = vld [vmem:[#allocation18_spill] sm:$0xff] }
 0x379   :  { %1714 = vperm.xlu1 %2535, %v1580_v27   ;;  %1659 = vperm.xlu2 %2536, %v1569_v44   ;;  %v5088_v27 = vld [vmem:[#allocation3_spill] sm:$0xff] }
 0x37a   :  { %1719 = vperm.xlu0 %2537, %v1581_v15   ;;  %v1588_v44 = vmul.f32 %v5088_v27, %v1539_v37  ;;  %v5089_v15 = vld [vmem:[#allocation23_spill] sm:$0xff] }
 0x381   :  { %1729 = vperm.xlu1 %2535, %v1583_v32   ;;  %1664 = vperm.xlu2 %2536, %v1570_v20   ;;  %v5090_v20 = vld [vmem:[#allocation22_spill] sm:$0xff] }
 0x382   :  { %1734 = vperm.xlu0 %2537, %v1584_v9  }
 0x389   :  { %1744 = vperm.xlu1 %2535, %v1586_v58   ;;  %1669 = vperm.xlu2 %2536, %v1571_v61   ;;  %v5091_v61 = vld [vmem:[#allocation4_spill] sm:$0xff] }
 0x38a   :  { %1749 = vperm.xlu0 %2537, %v1587_v50   ;;  %v1591_v50 = vmul.f32 %v5091_v61, %v1539_v37  ;;  %v2707_v37 = vld [vmem:[%s4824_s1 + $0x8] sm:$0xff] }
 0x391   :  { %1759 = vperm.xlu1 %2535, %v1589_v43   ;;  %1679 = vperm.xlu2 %2536, %v1573_v52  }
 0x392   :  { %1764 = vperm.xlu0 %2537, %v1590_v24  }
 0x399   :  { %1774 = vperm.xlu1 %2535, %v1592_v26   ;;  %1689 = vperm.xlu2 %2536, %v1575_v11  }
 0x39a   :  { %1779 = vperm.xlu0 %2537, %v1593_v21  }
 0x3a1   :  { %1789 = vperm.xlu1 %2535, %v1595_v25   ;;  %1694 = vperm.xlu2 %2536, %v1576_v16   ;;  %v1594_v25 = vmul.f32 %v5094_v56, %v1540_v39  ;;  %v2713_v56 = vld [vmem:[%s4824_s1 + $0x28] sm:$0xff] }
 0x3a2   :  { %1794 = vperm.xlu0 %2537, %v1596_v60  }
 0x3a9   :  { %1804 = vperm.xlu1 %2535, %v1598_v10   ;;  %1709 = vperm.xlu2 %2536, %v1579_v8  }
 0x3aa   :  { %1809 = vperm.xlu0 %2537, %v1599_v59   ;;  %v5097_v59 = vld [vmem:[#allocation15_spill] sm:$0xff] }
 0x3ad   :  { %v1530_v22 = vpop.xlane.xlu0 %1529 }
 0x3ae   :  { %2700 = vrcp.f32 %v1530_v22  ;;  %v1597_v22 = vmul.f32 %v5097_v59, %v4248_v35  ;;  %v5103_v59 = vld [vmem:[#allocation24_spill] sm:$0xff] }
 0x3b1   :  { %1819 = vperm.xlu1 %2535, %v1601_v5   ;;  %1724 = vperm.xlu2 %2536, %v1582_v34   ;;  %v5098_v5 = vld [vmem:[#allocation37_spill] sm:$0xff] }
 0x3b2   :  { %1824 = vperm.xlu0 %2537, %v1602_v6  }
 0x3b4   :  { %v4265_v51 = vpop.eup %2700 }
 0x3b5   :  { %v4270_v13 = vperm.slane %v4265_v51, 0  ;;  %v4278_v58 = vperm.slane %v4265_v51, 1  ;;  %v4289_v26 = vperm.slane %v4265_v51, 2  ;;  %v4302_v10 = vperm.slane %v4265_v51, 3 }
 0x3b6   :  { %v4315_v6 = vperm.slane %v4265_v51, 4 }
 0x3b7   :  { %v1607_v32 = vmul.f32 %v5089_v15, %v4270_v13  ;;  %v1608_v9 = vmul.f32 %v5090_v20, %v4270_v13  ;;  %v1612_v43 = vmul.f32 %v5092_v31, %v4278_v58  ;;  %v1613_v52 = vmul.f32 %v5093_v62, %v4278_v58  ;;  %v2712_v31 = vld [vmem:[%s4824_s1 + $0x58] sm:$0xff] }
 0x3b8   :  { %v1618_v16 = vmul.f32 %v5095_v4, %v4289_v26  ;;  %v1614_v60 = vmul.f32 %v5096_v57, %v4278_v58  ;;  %v1623_v47 = vmul.f32 %v3911_v53, %v4302_v10  ;;  %v1619_v30 = vmul.f32 %v5098_v5, %v4289_v26  ;;  %v2714_v57 = vld [vmem:[%s4824_s1 + $0x38] sm:$0xff] }
 0x3b9   :  { %1834 = vperm.xlu1 %2535, %v1604_v41   ;;  %1739 = vperm.xlu2 %2536, %v1585_v38   ;;  %v1628_v27 = vmul.f32 %v3986_v0, %v4315_v6  ;;  %v4334_v0 = vperm.slane %v4265_v51, 5 }
 0x3ba   :  { %1839 = vperm.xlu0 %2537, %v1605_v23   ;;  %v1600_v23 = vmul.f32 %v5099_v18, %v4248_v35  ;;  %v2711_v35 = vld [vmem:[%s4824_s1 + $0x20] sm:$0xf] }
 0x3c1   :  { %1754 = vperm.xlu2 %2536, %v1588_v44   ;;  %1849 = vperm.xlu1 %2535, %v1607_v32   ;;  %v5100_v44 = vld [vmem:[#allocation26_spill] sm:$0xff] }
 0x3c2   :  { %1854 = vperm.xlu0 %2537, %v1608_v9   ;;  %v1610_v15 = vmul.f32 %v5100_v44, %v4270_v13  ;;  %v2710_v9 = vld [vmem:[%s4824_s1 + $0x50] sm:$0xff] }
 0x3c3   :  { %v1650_v7 = vpop.permute.xlu2 %1649  ;;  %v5105_v44 = vld [vmem:[#allocation20_spill] sm:$0xff] }
 0x3c4   :  { %v2047_v24 = vmul.f32 %v2706_v40, %v1650_v7 }
 0x3c6   :  { %v2127_v11 = vsel %vm120_vm0, %v2047_v24, 0.0 }
 0x3c9   :  { %1769 = vperm.xlu2 %2536, %v1591_v50   ;;  %1874 = vperm.xlu1 %2535, %v1612_v43  }
 0x3ca   :  { %1879 = vperm.xlu0 %2537, %v1613_v52  }
 0x3cb   :  { %v1655_v46 = vpop.permute.xlu2 %1654 }
 0x3cc   :  { %v2048_v17 = vmul.f32 %v2707_v37, %v1655_v46  ;;  %v5101_v46 = vld [vmem:[#allocation21_spill] sm:$0xff] }
 0x3cd   :  { %v1603_v37 = vmul.f32 %v5101_v46, %v4255_v29  ;;  %v1634_v46 = vmul.f32 %v4038_v63, %v4334_v0  ;;  %v2719_v63 = vld [vmem:[%s4824_s1 + $0x60] sm:$0xff] }
 0x3ce   :  { %v2128_v49 = vsel %vm120_vm0, %v2048_v17, 0.0  ;;  %v5102_v17 = vld [vmem:[#allocation38_spill] sm:$0xff] }
 0x3cf   :  { %v2129_v21 = vadd.f32 %v2128_v49, %v2127_v11  ;;  %v1624_v11 = vmul.f32 %v5102_v17, %v4302_v10 }
 0x3d1   :  { %1784 = vperm.xlu2 %2536, %v1594_v25   ;;  %1904 = vperm.xlu1 %2535, %v1618_v16  }
 0x3d2   :  { %1884 = vperm.xlu0 %2537, %v1614_v60  }
 0x3d3   :  { %v1660_v48 = vpop.permute.xlu2 %1659 }
 0x3d4   :  { %v2049_v8 = vmul.f32 %v2708_v12, %v1660_v48  ;;  %v2715_v48 = vld [vmem:[%s4824_s1 + $0x30] sm:$0xff] }
 0x3d6   :  { %v2130_v39 = vsel %vm120_vm0, %v2049_v8, 0.0 }
 0x3d7   :  { %v2131_v45 = vadd.f32 %v2130_v39, %v2129_v21  ;;  %v1632_v21 = vmul.f32 %v4009_v54, %v4334_v0 }
 0x3d9   :  { %1799 = vperm.xlu2 %2536, %v1597_v22   ;;  %1929 = vperm.xlu1 %2535, %v1623_v47   ;;  %v1606_v22 = vmul.f32 %v5103_v59, %v4255_v29  ;;  %v5104_v47 = vld [vmem:[#allocation35_spill] sm:$0xff]  ;;  %v2716_v29 = vld [vmem:[%s4824_s1 + $0x40] sm:$0xff] }
 0x3da   :  { %1909 = vperm.xlu0 %2537, %v1619_v30   ;;  %v1620_v5 = vmul.f32 %v5104_v47, %v4289_v26 }
 0x3db   :  { %v1675_v34 = vpop.permute.xlu1 %1674  ;;  %v1665_v2 = vpop.permute.xlu2 %1664 }
 0x3dc   :  { %v2050_v41 = vmul.f32 %v2709_v1, %v1665_v2  ;;  %v1685_v28 = vpop.permute.xlu0 %1684  ;;  %v2052_v25 = vmul.f32 %v2713_v56, %v1675_v34  ;;  %v1629_v34 = vmul.f32 %v3980_v19, %v4315_v6 }
 0x3dd   :  { %v2054_v60 = vmul.f32 %v2714_v57, %v1685_v28 }
 0x3de   :  { %v2132_v38 = vsel %vm120_vm0, %v2050_v41, 0.0  ;;  %v2142_v8 = vsel %vm120_vm0, %v2052_v25, 0.0  ;;  %v4398_v25 = vperm.slane %v4265_v51, 7 }
 0x3df   :  { %v2133_v53 = vadd.f32 %v2132_v38, %v2131_v45  ;;  %v2145_v30 = vsel %vm120_vm0, %v2054_v60, 0.0  ;;  %v4369_v38 = vperm.slane %v4265_v51, 6 }
 0x3e1   :  { %1814 = vperm.xlu2 %2536, %v1600_v23   ;;  %1954 = vperm.xlu1 %2535, %v1628_v27  }
 0x3e2   :  { %1864 = vperm.xlu0 %2537, %v1610_v15   ;;  %v1609_v15 = vmul.f32 %v5105_v44, %v4270_v13  ;;  %v2724_v44 = vld [vmem:[%s4824_s1 + $0x78] sm:$0xff] }
 0x3e3   :  { %v1700_v32 = vpop.permute.xlu1 %1699  ;;  %v1670_v20 = vpop.permute.xlu2 %1669 }
 0x3e4   :  { %v2057_v7 = vmul.f32 %v2710_v9, %v1700_v32  ;;  %v2051_v61 = vmul.f32 %v2711_v35, %v1670_v20  ;;  %v1705_v50 = vpop.permute.xlu0 %1704  ;;  %v1638_v32 = vmul.f32 %v4060_v55, %v4369_v38  ;;  %v5106_v20 = vld [vmem:[#allocation25_spill] sm:$0xff] }
 0x3e5   :  { %v2058_v43 = vmul.f32 %v2712_v31, %v1705_v50  ;;  %v1611_v9 = vmul.f32 %v5106_v20, %v4270_v13  ;;  %v2717_v50 = vld [vmem:[%s4824_s1 + $0x48] sm:$0xf] }
 0x3e6   :  { %v2157_v62 = vsel %vm120_vm0, %v2057_v7, 0.0  ;;  %v2134_v52 = vsel %vm278_vm1, %v2051_v61, 0.0  ;;  %v5107_v13 = vld [vmem:[#allocation31_spill] sm:$0xff] }
 0x3e7   :  { %v2135_v40 = vadd.f32 %v2134_v52, %v2133_v53  ;;  %v2158_v24 = vsel %vm120_vm0, %v2058_v43, 0.0 }
 0x3e8   :  { %v4346_v49 = vadd.f32 %v2158_v24, %v2157_v62  ;;  %v1625_v24 = vmul.f32 %v3954_v33, %v4302_v10 }
 0x3e9   :  { %1829 = vperm.xlu2 %2536, %v1603_v37   ;;  %1934 = vperm.xlu1 %2535, %v1624_v11   ;;  %v2136_v1 = vrot.slane %v2135_v40, 4 }
 0x3ea   :  { %1974 = vperm.xlu0 %2537, %v1632_v21  }
 0x3eb   :  { %v1715_v4 = vpop.permute.xlu1 %1714  ;;  %v1680_v16 = vpop.permute.xlu2 %1679  ;;  %v2137_v23 = vadd.f32 %v2136_v1, %v2135_v40  ;;  %v1617_v40 = vmul.f32 %v5107_v13, %v4289_v26 }
 0x3ec   :  { %v2053_v54 = vmul.f32 %v2715_v48, %v1680_v16  ;;  %v1720_v12 = vpop.permute.xlu0 %1719  ;;  %v2718_v16 = vld [vmem:[%s4824_s1 + $0x68] sm:$0xff] }
 0x3ed   :  { %v2138_v7 = vrot.slane %v2137_v23, 2  ;;  %v2060_v33 = vmul.f32 %v2718_v16, %v1715_v4  ;;  %v1622_v4 = vmul.f32 %v3918_v42, %v4302_v10 }
 0x3ee   :  { %v2143_v39 = vsel %vm120_vm0, %v2053_v54, 0.0 }
 0x3ef   :  { %v2144_v45 = vadd.f32 %v2143_v39, %v2142_v8  ;;  %v2139_v62 = vadd.f32 %v2138_v7, %v2137_v23  ;;  %v2720_v8 = vld [vmem:[%s4824_s1 + $0x70] sm:$0xf]  ;;  %v2162_v47 = vsel %vm120_vm0, %v2060_v33, 0.0 }
 0x3f0   :  { %v2061_v51 = vmul.f32 %v2720_v8, %v1720_v12 }
 0x3f1   :  { %1844 = vperm.xlu2 %2536, %v1606_v22   ;;  %1914 = vperm.xlu1 %2535, %v1620_v5   ;;  %v2146_v2 = vadd.f32 %v2145_v30, %v2144_v45  ;;  %v2140_v17 = vrot.slane %v2139_v62, 1  ;;  %v1643_v22 = vmul.f32 %v4093_v36, %v4398_v25  ;;  %v5108_v5 = vld [vmem:[#allocation33_spill] sm:$0xff] }
 0x3f2   :  { %1959 = vperm.xlu0 %2537, %v1629_v34   ;;  %v1621_v30 = vmul.f32 %v5108_v5, %v4289_v26  ;;  %v2164_v1 = vsel %vm278_vm1, %v2061_v51, 0.0  ;;  %v2722_v26 = vld [vmem:[%s4824_s1 + $0x88] sm:$0xff] }
 0x3f3   :  { %v1730_v41 = vpop.permute.xlu1 %1729  ;;  %v1690_v28 = vpop.permute.xlu2 %1689  ;;  %v2141_v54 = vadd.f32 %v2140_v17, %v2139_v62 }
 0x3f4   :  { %v2055_v53 = vmul.f32 %v2716_v29, %v1690_v28  ;;  %v1735_v18 = vpop.permute.xlu0 %1734 }
 0x3f5   :  { %v2367_v12 = vpack.c.bf16 %v2141_v54, %v2141_v54  ;;  %v2064_v23 = vmul.f32 %v2722_v26, %v1735_v18  ;;  %v2725_v18 = vld [vmem:[%s4824_s1 + $0xd0] sm:$0xff]  ;;  %v2730_v26 = vld [vmem:[%s4824_s1 + $0xa8] sm:$0xff] }
 0x3f6   :  { %v2147_v27 = vsel %vm120_vm0, %v2055_v53, 0.0 }
 0x3f7   :  { %v2148_v19 = vadd.f32 %v2147_v27, %v2146_v2  ;;  %v2723_v27 = vld [vmem:[%s4824_s1 + $0xc8] sm:$0xff] }
 0x3f9   :  { %1859 = vperm.xlu2 %2536, %v1609_v15   ;;  %2004 = vperm.xlu1 %2535, %v1638_v32   ;;  %v1627_v32 = vmul.f32 %v3922_v3, %v4315_v6 }
 0x3fa   :  { %1869 = vperm.xlu0 %2537, %v1611_v9  }
 0x3fb   :  { %v4381_v35 = vpop.permute.xlu1 %1744  ;;  %v1695_v61 = vpop.permute.xlu2 %1694 }
 0x3fc   :  { %v2056_v31 = vmul.f32 %v2717_v50, %v1695_v61  ;;  %v4386_v43 = vpop.permute.xlu0 %1749  ;;  %v1639_v61 = vmul.f32 %v4041_v14, %v4369_v38  ;;  %v2433_v50 = vunpack.c.l.b16 %v2367_v12  ;;  %v2728_v12 = vld [vmem:[%s4824_s1 + $0xa0] sm:$0xff] }
 0x3fe   :  { %v2149_v55 = vsel %vm278_vm1, %v2056_v31, 0.0 }
 0x3ff   :  { %v2150_v52 = vadd.f32 %v2149_v55, %v2148_v19 }
 0x401   :  { %v2151_v37 = vrot.slane %v2150_v52, 4  ;;  %1899 = vperm.xlu2 %2536, %v1617_v40   ;;  %1939 = vperm.xlu1 %2535, %v1625_v24   ;;  %v2175_v24 = vsel %vm120_vm0, %v2064_v23, 0.0 }
 0x402   :  { %1984 = vperm.xlu0 %2537, %v1634_v46  }
 0x403   :  { %v2152_v11 = vadd.f32 %v2151_v37, %v2150_v52  ;;  %v4395_v21 = vpop.permute.xlu1 %1759  ;;  %v1710_v56 = vpop.permute.xlu2 %1709  ;;  %v5109_v37 = vld [vmem:[#allocation39_spill] sm:$0xff] }
 0x404   :  { %v2059_v57 = vmul.f32 %v2719_v63, %v1710_v56  ;;  %v4406_v60 = vpop.permute.xlu0 %1764  ;;  %v1626_v17 = vmul.f32 %v5109_v37, %v4302_v10  ;;  %v2727_v10 = vld [vmem:[%s4824_s1 + $0x90] sm:$0xff] }
 0x405   :  { %v2153_v48 = vrot.slane %v2152_v11, 2 }
 0x406   :  { %v2160_v39 = vsel %vm120_vm0, %v2059_v57, 0.0  ;;  %v2726_v57 = vld [vmem:[%s4824_s1 + $0x98] sm:$0xf] }
 0x407   :  { %v2154_v45 = vadd.f32 %v2153_v48, %v2152_v11  ;;  %v2161_v59 = vadd.f32 %v2160_v39, %v4346_v49  ;;  %v2721_v49 = vld [vmem:[%s4824_s1 + $0x80] sm:$0xff]  ;;  %v2066_v48 = vmul.f32 %v2726_v57, %v4381_v35 }
 0x408   :  { %v2063_v42 = vmul.f32 %v2721_v49, %v1730_v41 }
 0x409   :  { %v2155_v34 = vrot.slane %v2154_v45, 1  ;;  %v2163_v2 = vadd.f32 %v2162_v47, %v2161_v59  ;;  %1924 = vperm.xlu2 %2536, %v1622_v4   ;;  %2029 = vperm.xlu1 %2535, %v1643_v22   ;;  %v5110_v4 = vld [vmem:[#allocation32_spill] sm:$0xff]  ;;  %v5111_v47 = vld [vmem:[#allocation55_spill] sm:$0xff]  ;;  %v2179_v35 = vsel %vm278_vm1, %v2066_v48, 0.0 }
 0x40a   :  { %1919 = vperm.xlu0 %2537, %v1621_v30   ;;  %v2173_v31 = vsel %vm120_vm0, %v2063_v42, 0.0  ;;  %v1615_v22 = vmul.f32 %v5110_v4, %v4278_v58  ;;  %v1644_v5 = vmul.f32 %v5111_v47, %v4398_v25  ;;  %v5112_v30 = vld [vmem:[#allocation41_spill] sm:$0xff]  ;;  %v5116_v48 = vld [vmem:[#allocation44_spill] sm:$0xff] }
 0x40b   :  { %v2156_v28 = vadd.f32 %v2155_v34, %v2154_v45  ;;  %v2165_v36 = vadd.f32 %v2164_v1, %v2163_v2  ;;  %v1775_v29 = vpop.permute.xlu1 %1774  ;;  %v1725_v53 = vpop.permute.xlu2 %1724  ;;  %v1631_v34 = vmul.f32 %v5112_v30, %v4315_v6  ;;  %v2067_v1 = vmul.f32 %v2728_v12, %v4386_v43  ;;  %v2735_v12 = vld [vmem:[%s4824_s1 + $0xe8] sm:$0xf] }
 0x40c   :  { %v2072_v19 = vmul.f32 %v2723_v27, %v1775_v29  ;;  %v2062_v41 = vmul.f32 %v2724_v44, %v1725_v53  ;;  %v1780_v15 = vpop.permute.xlu0 %1779  ;;  %v2729_v29 = vld [vmem:[%s4824_s1 + $0xb0] sm:$0xff]  ;;  %v2731_v44 = vld [vmem:[%s4824_s1 + $0xb8] sm:$0xff] }
 0x40d   :  { %v2368_v20 = vpack.c.bf16 %v2156_v28, %v2156_v28  ;;  %v2166_v9 = vrot.slane %v2165_v36, 4  ;;  %v2073_v7 = vmul.f32 %v2725_v18, %v1780_v15  ;;  %v2069_v53 = vmul.f32 %v2729_v29, %v4395_v21  ;;  %v5113_v21 = vld [vmem:[#allocation43_spill] sm:$0xff] }
 0x40e   :  { %v2202_v62 = vsel %vm120_vm0, %v2072_v19, 0.0  ;;  %v2172_v55 = vsel %vm120_vm0, %v2062_v41, 0.0  ;;  %v2187_v19 = vsel %vm120_vm0, %v2067_v1, 0.0  ;;  %v2070_v41 = vmul.f32 %v2731_v44, %v4406_v60 }
 0x40f   :  { %v2434_v52 = vunpack.c.l.b16 %v2368_v20  ;;  %v2167_v13 = vadd.f32 %v2166_v9, %v2165_v36  ;;  %v2174_v3 = vadd.f32 %v2173_v31, %v2172_v55  ;;  %v2203_v40 = vsel %vm120_vm0, %v2073_v7, 0.0  ;;  %v5114_v7 = vld [vmem:[#allocation42_spill] sm:$0xff] }
 0x410   :  { %v4445_v46 = vadd.f32 %v2203_v40, %v2202_v62  ;;  %v5115_v31 = vld [vmem:[#allocation54_spill] sm:$0xff]  ;;  %v2192_v60 = vsel %vm120_vm0, %v2070_v41, 0.0 }
 0x411   :  { %v2449_v14 = vsel %vm741_vm6, %v2434_v52, %v2433_v50  ;;  %v2168_v11 = vrot.slane %v2167_v13, 2  ;;  %1949 = vperm.xlu2 %2536, %v1627_v32   ;;  %2009 = vperm.xlu1 %2535, %v1639_v61   ;;  %v2176_v56 = vadd.f32 %v2175_v24, %v2174_v3  ;;  %v1633_v32 = vmul.f32 %v5113_v21, %v4334_v0 }
 0x412   :  { %1944 = vperm.xlu0 %2537, %v1626_v17   ;;  %v1636_v61 = vmul.f32 %v5114_v7, %v4334_v0  ;;  %v2190_v50 = vsel %vm120_vm0, %v2069_v53, 0.0  ;;  %v1645_v62 = vmul.f32 %v5115_v31, %v4398_v25  ;;  %v2732_v17 = vld [vmem:[%s4824_s1 + $0xc0] sm:$0xf] }
 0x413   :  { %v2169_v16 = vadd.f32 %v2168_v11, %v2167_v13  ;;  %v4450_v33 = vpop.permute.xlu1 %1789  ;;  %v1740_v63 = vpop.permute.xlu2 %1739 }
 0x414   :  { %v2065_v54 = vmul.f32 %v2727_v10, %v1740_v63  ;;  %v4459_v8 = vpop.permute.xlu0 %1794  ;;  %v1637_v10 = vmul.f32 %v5116_v48, %v4369_v38 }
 0x415   :  { %v2170_v51 = vrot.slane %v2169_v16, 1  ;;  %v2076_v1 = vmul.f32 %v2735_v12, %v4459_v8  ;;  %v2736_v8 = vld [vmem:[%s4824_s1 + $0xf8] sm:$0xff] }
 0x416   :  { %v2177_v39 = vsel %vm120_vm0, %v2065_v54, 0.0  ;;  %v5117_v54 = vld [vmem:[#allocation56_spill] sm:$0xff] }
 0x417   :  { %v2171_v45 = vadd.f32 %v2170_v51, %v2169_v16  ;;  %v2178_v59 = vadd.f32 %v2177_v39, %v2176_v56  ;;  %v1646_v51 = vmul.f32 %v5117_v54, %v4398_v25 }
 0x419   :  { %v2180_v2 = vadd.f32 %v2179_v35, %v2178_v59  ;;  %1889 = vperm.xlu2 %2536, %v1615_v22   ;;  %2034 = vperm.xlu1 %2535, %v1644_v5   ;;  %v2369_v49 = vpack.c.bf16 %v2171_v45, %v2171_v45  ;;  %v2733_v22 = vld [vmem:[%s4824_s1 + $0xe0] sm:$0xff]  ;;  %v2734_v5 = vld [vmem:[%s4824_s1 + $0xd8] sm:$0xff] }
 0x41a   :  { %1969 = vperm.xlu0 %2537, %v1631_v34   ;;  %v2075_v47 = vmul.f32 %v2733_v22, %v4450_v33 }
 0x41b   :  { %v2181_v42 = vrot.slane %v2180_v2, 4  ;;  %v4473_v28 = vpop.permute.xlu1 %1804  ;;  %v1755_v36 = vpop.permute.xlu2 %1754  ;;  %v2435_v20 = vunpack.c.l.b16 %v2369_v49 }
 0x41c   :  { %v2068_v23 = vmul.f32 %v2730_v26, %v1755_v36  ;;  %v4482_v27 = vpop.permute.xlu0 %1809  ;;  %v5118_v36 = vld [vmem:[#allocation36_spill] sm:$0xff]  ;;  %v2207_v53 = vsel %vm120_vm0, %v2075_v47, 0.0  ;;  %v2078_v44 = vmul.f32 %v2736_v8, %v4473_v28 }
 0x41d   :  { %v2182_v43 = vadd.f32 %v2181_v42, %v2180_v2  ;;  %v2450_v37 = vsel %vm743_vm7, %v2435_v20, %v2449_v14  ;;  %v1616_v29 = vmul.f32 %v5118_v36, %v4278_v58  ;;  %v2737_v58 = vld [vmem:[%s4824_s1 + $0x100] sm:$0xff]  ;;  %v2738_v20 = vld [vmem:[%s4824_s1 + $0xf0] sm:$0xff] }
 0x41e   :  { %v2188_v15 = vsel %vm120_vm0, %v2068_v23, 0.0 }
 0x41f   :  { %v2183_v9 = vrot.slane %v2182_v43, 2  ;;  %v2189_v18 = vadd.f32 %v2188_v15, %v2187_v19  ;;  %v2209_v19 = vsel %vm278_vm1, %v2076_v1, 0.0  ;;  %v5120_v1 = vld [vmem:[#allocation40_spill] sm:$0xff] }
 0x421   :  { %v2184_v55 = vadd.f32 %v2183_v9, %v2182_v43  ;;  %v2191_v52 = vadd.f32 %v2190_v50, %v2189_v18  ;;  %1979 = vperm.xlu2 %2536, %v1633_v32   ;;  %1994 = vperm.xlu1 %2535, %v1636_v61   ;;  %v2079_v32 = vmul.f32 %v2737_v58, %v4482_v27  ;;  %v2739_v18 = vld [vmem:[%s4824_s1 + $0x140] sm:$0xff]  ;;  %v2740_v50 = vld [vmem:[%s4824_s1 + $0x148] sm:$0xff] }
 0x422   :  { %2039 = vperm.xlu0 %2537, %v1645_v62   ;;  %v2218_v62 = vsel %vm120_vm0, %v2078_v44, 0.0 }
 0x423   :  { %v2185_v13 = vrot.slane %v2184_v55, 1  ;;  %v4498_v3 = vpop.permute.xlu1 %1819  ;;  %v1770_v40 = vpop.permute.xlu2 %1769  ;;  %v2193_v24 = vadd.f32 %v2192_v60, %v2191_v52  ;;  %v5119_v52 = vld [vmem:[#allocation45_spill] sm:$0xff] }
 0x424   :  { %v2071_v11 = vmul.f32 %v2732_v17, %v1770_v40  ;;  %v4504_v56 = vpop.permute.xlu0 %1824  ;;  %v1642_v60 = vmul.f32 %v5119_v52, %v4398_v25  ;;  %v2220_v17 = vsel %vm120_vm0, %v2079_v32, 0.0  ;;  %v2741_v25 = vld [vmem:[%s4824_s1 + $0x110] sm:$0xf] }
 0x425   :  { %v2186_v16 = vadd.f32 %v2185_v13, %v2184_v55 }
 0x426   :  { %v2194_v63 = vsel %vm278_vm1, %v2071_v11, 0.0 }
 0x427   :  { %v2195_v57 = vadd.f32 %v2194_v63, %v2193_v24  ;;  %v2370_v39 = vpack.c.bf16 %v2186_v16, %v2186_v16 }
 0x429   :  { %v2196_v45 = vrot.slane %v2195_v57, 4  ;;  %1999 = vperm.xlu2 %2536, %v1637_v10   ;;  %2044 = vperm.xlu1 %2535, %v1646_v51   ;;  %v2436_v34 = vunpack.c.l.b16 %v2370_v39  ;;  %v2081_v51 = vmul.f32 %v2741_v25, %v4498_v3  ;;  %v2742_v39 = vld [vmem:[%s4824_s1 + $0x108] sm:$0xff] }
 0x42b   :  { %v2197_v14 = vadd.f32 %v2196_v45, %v2195_v57  ;;  %v4511_v59 = vpop.permute.xlu1 %1834  ;;  %v1785_v4 = vpop.permute.xlu2 %1784  ;;  %v2451_v43 = vsel %vm745_vm8, %v2436_v34, %v2450_v37 }
 0x42c   :  { %v2074_v35 = vmul.f32 %v2734_v5, %v1785_v4  ;;  %v4520_v30 = vpop.permute.xlu0 %1839  ;;  %v2744_v5 = vld [vmem:[%s4824_s1 + $0x170] sm:$0xff] }
 0x42d   :  { %v2198_v2 = vrot.slane %v2197_v14, 2 }
 0x42e   :  { %v2205_v49 = vsel %vm120_vm0, %v2074_v35, 0.0 }
 0x42f   :  { %v2199_v42 = vadd.f32 %v2198_v2, %v2197_v14  ;;  %v2206_v33 = vadd.f32 %v2205_v49, %v4445_v46  ;;  %v2743_v14 = vld [vmem:[%s4824_s1 + $0x168] sm:$0xff]  ;;  %v1630_v49 = vmul.f32 %v5120_v1, %v4315_v6 }
 0x430   :  { %v2746_v6 = vld [vmem:[%s4824_s1 + $0x128] sm:$0xff] }
 0x431   :  { %v2200_v26 = vrot.slane %v2199_v42, 1  ;;  %v2208_v23 = vadd.f32 %v2207_v53, %v2206_v33  ;;  %1894 = vperm.xlu2 %2536, %v1616_v29   ;;  %v2224_v33 = vsel %vm278_vm1, %v2081_v51, 0.0 }
 0x433   :  { %v2201_v41 = vadd.f32 %v2200_v26, %v2199_v42  ;;  %v2210_v46 = vadd.f32 %v2209_v19, %v2208_v23  ;;  %v1800_v15 = vpop.permute.xlu2 %1799  ;;  %v1850_v21 = vpop.permute.xlu1 %1849  ;;  %v2745_v26 = vld [vmem:[%s4824_s1 + $0x118] sm:$0xff] }
 0x434   :  { %v2077_v9 = vmul.f32 %v2738_v20, %v1800_v15  ;;  %v2087_v28 = vmul.f32 %v2739_v18, %v1850_v21  ;;  %v1855_v7 = vpop.permute.xlu0 %1854  ;;  %v2082_v23 = vmul.f32 %v2745_v26, %v4504_v56  ;;  %v2748_v56 = vld [vmem:[%s4824_s1 + $0x178] sm:$0xff] }
 0x435   :  { %v2211_v61 = vrot.slane %v2210_v46, 4  ;;  %v2088_v31 = vmul.f32 %v2740_v50, %v1855_v7  ;;  %v2371_v13 = vpack.c.bf16 %v2201_v41, %v2201_v41  ;;  %v2747_v41 = vld [vmem:[%s4824_s1 + $0x120] sm:$0xff] }
 0x436   :  { %v2217_v27 = vsel %vm120_vm0, %v2077_v9, 0.0  ;;  %v2247_v55 = vsel %vm120_vm0, %v2087_v28, 0.0  ;;  %v2232_v20 = vsel %vm120_vm0, %v2082_v23, 0.0  ;;  %v2749_v9 = vld [vmem:[%s4824_s1 + $0x130] sm:$0xff]  ;;  %v5121_v50 = vld [vmem:[#allocation46_spill] sm:$0xff] }
 0x437   :  { %v2212_v40 = vadd.f32 %v2211_v61, %v2210_v46  ;;  %v2219_v24 = vadd.f32 %v2218_v62, %v2217_v27  ;;  %v2248_v37 = vsel %vm120_vm0, %v2088_v31, 0.0  ;;  %v2437_v57 = vunpack.c.l.b16 %v2371_v13  ;;  %v2753_v23 = vld [vmem:[%s4824_s1 + $0x1a0] sm:$0xff] }
 0x438   :  { %v4557_v11 = vadd.f32 %v2248_v37, %v2247_v55  ;;  %v1635_v31 = vmul.f32 %v5121_v50, %v4334_v0  ;;  %v2750_v0 = vld [vmem:[%s4824_s1 + $0x138] sm:$0xf] }
 0x439   :  { %v2213_v16 = vrot.slane %v2212_v40, 2  ;;  %2024 = vperm.xlu2 %2536, %v1642_v60   ;;  %v2221_v63 = vadd.f32 %v2220_v17, %v2219_v24  ;;  %v2452_v42 = vsel %vm747_vm9, %v2437_v57, %v2451_v43  ;;  %v2084_v43 = vmul.f32 %v2746_v6, %v4511_v59 }
 0x43a   :  { %v2085_v59 = vmul.f32 %v2749_v9, %v4520_v30  ;;  %v2756_v9 = vld [vmem:[%s4824_s1 + $0x1b8] sm:$0xff] }
 0x43b   :  { %v2214_v48 = vadd.f32 %v2213_v16, %v2212_v40  ;;  %v1815_v10 = vpop.permute.xlu2 %1814  ;;  %v1875_v54 = vpop.permute.xlu1 %1874  ;;  %v2235_v62 = vsel %vm120_vm0, %v2084_v43, 0.0 }
 0x43c   :  { %v2080_v45 = vmul.f32 %v2742_v39, %v1815_v10  ;;  %v2092_v4 = vmul.f32 %v2743_v14, %v1875_v54  ;;  %v1880_v22 = vpop.permute.xlu0 %1879  ;;  %v2237_v13 = vsel %vm120_vm0, %v2085_v59, 0.0  ;;  %v5122_v54 = vld [vmem:[#allocation53_spill] sm:$0xff] }
 0x43d   :  { %v2215_v47 = vrot.slane %v2214_v48, 1  ;;  %v2093_v35 = vmul.f32 %v2744_v5, %v1880_v22  ;;  %v1640_v25 = vmul.f32 %v5122_v54, %v4369_v38  ;;  %v2751_v22 = vld [vmem:[%s4824_s1 + $0x150] sm:$0xff] }
 0x43e   :  { %v2222_v34 = vsel %vm120_vm0, %v2080_v45, 0.0  ;;  %v2262_v3 = vsel %vm120_vm0, %v2092_v4, 0.0 }
 0x43f   :  { %v2223_v2 = vadd.f32 %v2222_v34, %v2221_v63  ;;  %v2263_v12 = vsel %vm120_vm0, %v2093_v35, 0.0  ;;  %v2216_v29 = vadd.f32 %v2215_v47, %v2214_v48 }
 0x440   :  { %v2264_v36 = vadd.f32 %v2263_v12, %v2262_v3  ;;  %v5123_v12 = vld [vmem:[#allocation52_spill] sm:$0xff] }
 0x441   :  { %v2225_v53 = vadd.f32 %v2224_v33, %v2223_v2  ;;  %1964 = vperm.xlu2 %2536, %v1630_v49   ;;  %v2372_v21 = vpack.c.bf16 %v2216_v29, %v2216_v29  ;;  %v1641_v1 = vmul.f32 %v5123_v12, %v4369_v38  ;;  %v2752_v33 = vld [vmem:[%s4824_s1 + $0x198] sm:$0xff]  ;;  %v2754_v38 = vld [vmem:[%s4824_s1 + $0x190] sm:$0xff] }
 0x443   :  { %v2226_v19 = vrot.slane %v2225_v53, 4  ;;  %v1830_v8 = vpop.permute.xlu2 %1829  ;;  %v1905_v44 = vpop.permute.xlu1 %1904  ;;  %v2438_v60 = vunpack.c.l.b16 %v2372_v21  ;;  %v2755_v21 = vld [vmem:[%s4824_s1 + $0x1c0] sm:$0xff] }
 0x444   :  { %v2083_v46 = vmul.f32 %v2747_v41, %v1830_v8  ;;  %v1885_v15 = vpop.permute.xlu0 %1884 }
 0x445   :  { %v2227_v58 = vadd.f32 %v2226_v19, %v2225_v53  ;;  %v2094_v32 = vmul.f32 %v2748_v56, %v1885_v15  ;;  %v2453_v17 = vsel %vm749_vm10, %v2438_v60, %v2452_v42 }
 0x446   :  { %v2233_v18 = vsel %vm120_vm0, %v2083_v46, 0.0 }
 0x447   :  { %v2228_v28 = vrot.slane %v2227_v58, 2  ;;  %v2234_v7 = vadd.f32 %v2233_v18, %v2232_v20  ;;  %v2265_v61 = vsel %vm120_vm0, %v2094_v32, 0.0 }
 0x448   :  { %v4603_v27 = vadd.f32 %v2265_v61, %v2264_v36  ;;  %v2098_v36 = vmul.f32 %v2752_v33, %v1905_v44 }
 0x449   :  { %v2229_v55 = vadd.f32 %v2228_v28, %v2227_v58  ;;  %v2236_v52 = vadd.f32 %v2235_v62, %v2234_v7  ;;  %1989 = vperm.xlu2 %2536, %v1635_v31  }
 0x44a   :  { %v2278_v6 = vsel %vm120_vm0, %v2098_v36, 0.0 }
 0x44b   :  { %v2230_v30 = vrot.slane %v2229_v55, 1  ;;  %v1845_v40 = vpop.permute.xlu2 %1844  ;;  %v2238_v24 = vadd.f32 %v2237_v13, %v2236_v52  ;;  %v1930_v37 = vpop.permute.xlu1 %1929 }
 0x44c   :  { %v2086_v16 = vmul.f32 %v2750_v0, %v1845_v40  ;;  %v1910_v63 = vpop.permute.xlu0 %1909  ;;  %v2103_v58 = vmul.f32 %v2755_v21, %v1930_v37  ;;  %v2757_v40 = vld [vmem:[%s4824_s1 + $0x158] sm:$0xff]  ;;  %v2758_v37 = vld [vmem:[%s4824_s1 + $0x160] sm:$0xf]  ;;  %v2759_v0 = vld [vmem:[%s4824_s1 + $0x1a8] sm:$0xff] }
 0x44d   :  { %v2231_v48 = vadd.f32 %v2230_v30, %v2229_v55 }
 0x44e   :  { %v2239_v57 = vsel %vm278_vm1, %v2086_v16, 0.0  ;;  %v2293_v7 = vsel %vm120_vm0, %v2103_v58, 0.0 }
 0x44f   :  { %v2240_v10 = vadd.f32 %v2239_v57, %v2238_v24  ;;  %v2373_v39 = vpack.c.bf16 %v2231_v48, %v2231_v48 }
 0x451   :  { %v2241_v51 = vrot.slane %v2240_v10, 4  ;;  %2014 = vperm.xlu2 %2536, %v1640_v25   ;;  %v2439_v49 = vunpack.c.l.b16 %v2373_v39 }
 0x453   :  { %v2242_v45 = vadd.f32 %v2241_v51, %v2240_v10  ;;  %v1860_v14 = vpop.permute.xlu2 %1859  ;;  %v4613_v4 = vpop.permute.xlu1 %1954  ;;  %v2454_v42 = vsel %vm751_vm11, %v2439_v49, %v2453_v17  ;;  %v2760_v51 = vld [vmem:[%s4824_s1 + $0x1b0] sm:$0xf] }
 0x454   :  { %v2089_v47 = vmul.f32 %v2751_v22, %v1860_v14  ;;  %v1865_v5 = vpop.permute.xlu0 %1864 }
 0x455   :  { %v2243_v35 = vrot.slane %v2242_v45, 2  ;;  %v2090_v24 = vmul.f32 %v2757_v40, %v1865_v5  ;;  %v2762_v5 = vld [vmem:[%s4824_s1 + $0x1d0] sm:$0xff] }
 0x456   :  { %v2250_v34 = vsel %vm120_vm0, %v2089_v47, 0.0 }
 0x457   :  { %v2244_v3 = vadd.f32 %v2243_v35, %v2242_v45  ;;  %v2251_v2 = vadd.f32 %v2250_v34, %v4557_v11  ;;  %v2099_v11 = vmul.f32 %v2753_v23, %v1910_v63  ;;  %v2252_v48 = vsel %vm120_vm0, %v2090_v24, 0.0  ;;  %v2761_v45 = vld [vmem:[%s4824_s1 + $0x1c8] sm:$0xff]  ;;  %v2764_v23 = vld [vmem:[%s4824_s1 + $0x180] sm:$0xff] }
 0x459   :  { %2019 = vperm.xlu2 %2536, %v1641_v1   ;;  %v2245_v29 = vrot.slane %v2244_v3, 1  ;;  %v2280_v46 = vsel %vm120_vm0, %v2099_v11, 0.0  ;;  %v2253_v25 = vadd.f32 %v2252_v48, %v2251_v2 }
 0x45b   :  { %v1900_v53 = vpop.permute.xlu2 %1899  ;;  %v1935_v26 = vpop.permute.xlu1 %1934  ;;  %v2246_v44 = vadd.f32 %v2245_v29, %v2244_v3 }
 0x45c   :  { %v2097_v19 = vmul.f32 %v2754_v38, %v1900_v53  ;;  %v4632_v8 = vpop.permute.xlu0 %1974  ;;  %v2104_v14 = vmul.f32 %v2761_v45, %v1935_v26  ;;  %v2763_v53 = vld [vmem:[%s4824_s1 + $0x1d8] sm:$0xf] }
 0x45d   :  { %v2374_v20 = vpack.c.bf16 %v2246_v44, %v2246_v44 }
 0x45e   :  { %v2277_v43 = vsel %vm120_vm0, %v2097_v19, 0.0  ;;  %v2295_v2 = vsel %vm120_vm0, %v2104_v14, 0.0 }
 0x45f   :  { %v2279_v41 = vadd.f32 %v2278_v6, %v2277_v43  ;;  %v2440_v28 = vunpack.c.l.b16 %v2374_v20 }
 0x461   :  { %v2281_v15 = vadd.f32 %v2280_v46, %v2279_v41  ;;  %v4648_v31 = vsel %vm753_vm12, %v2440_v28, %v2454_v42 }
 0x463   :  { %v1925_v56 = vpop.permute.xlu2 %1924  ;;  %v1915_v32 = vpop.permute.xlu1 %1914 }
 0x464   :  { %v2102_v59 = vmul.f32 %v2756_v9, %v1925_v56  ;;  %v4643_v18 = vpop.permute.xlu0 %1959  ;;  %v2100_v16 = vmul.f32 %v2759_v0, %v1915_v32  ;;  %v2765_v32 = vld [vmem:[%s4824_s1 + $0x188] sm:$0xf] }
 0x466   :  { %v2292_v61 = vsel %vm120_vm0, %v2102_v59, 0.0  ;;  %v2282_v22 = vsel %vm120_vm0, %v2100_v16, 0.0 }
 0x467   :  { %v2294_v50 = vadd.f32 %v2293_v7, %v2292_v61  ;;  %v2283_v3 = vadd.f32 %v2282_v22, %v2281_v15 }
 0x469   :  { %v2296_v33 = vadd.f32 %v2295_v2, %v2294_v50 }
 0x46b   :  { %v1950_v62 = vpop.permute.xlu2 %1949  ;;  %v4650_v55 = vpop.permute.xlu1 %2004 }
 0x46c   :  { %v1870_v52 = vpop.permute.xlu0 %1869 }
 0x46d   :  { %v2091_v17 = vmul.f32 %v2758_v37, %v1870_v52 }
 0x46f   :  { %v2254_v10 = vsel %vm278_vm1, %v2091_v17, 0.0 }
 0x470   :  { %v2255_v47 = vadd.f32 %v2254_v10, %v2253_v25 }
 0x472   :  { %v2256_v12 = vrot.slane %v2255_v47, 4 }
 0x473   :  { %v1890_v60 = vpop.permute.xlu2 %1889  ;;  %v1940_v13 = vpop.permute.xlu1 %1939 }
 0x474   :  { %v4652_v30 = vpop.permute.xlu0 %1984  ;;  %v2105_v35 = vmul.f32 %v2762_v5, %v1940_v13  ;;  %v2095_v11 = vmul.f32 %v2764_v23, %v1890_v60  ;;  %v2257_v19 = vadd.f32 %v2256_v12, %v2255_v47  ;;  %v2766_v60 = vld [vmem:[%s4824_s1 + $0x1e0] sm:$0xff] }
 0x475   :  { %v2107_v13 = vmul.f32 %v2766_v60, %v1950_v62  ;;  %v2768_v62 = vld [vmem:[%s4824_s1 + $0x1f0] sm:$0xff] }
 0x476   :  { %v2297_v1 = vsel %vm120_vm0, %v2105_v35, 0.0  ;;  %v2267_v41 = vsel %vm120_vm0, %v2095_v11, 0.0  ;;  %v2258_v15 = vrot.slane %v2257_v19, 2 }
 0x477   :  { %v2298_v38 = vadd.f32 %v2297_v1, %v2296_v33  ;;  %v2268_v9 = vadd.f32 %v2267_v41, %v4603_v27  ;;  %v2767_v27 = vld [vmem:[%s4824_s1 + $0x1e8] sm:$0xff]  ;;  %v2307_v25 = vsel %vm120_vm0, %v2107_v13, 0.0 }
 0x478   :  { %v2259_v7 = vadd.f32 %v2258_v15, %v2257_v19  ;;  %v2108_v0 = vmul.f32 %v2767_v27, %v4613_v4  ;;  %v2769_v4 = vld [vmem:[%s4824_s1 + $0x258] sm:$0xff]  ;;  %v2772_v1 = vld [vmem:[%s4824_s1 + $0x208] sm:$0xff]  ;;  %v2774_v19 = vld [vmem:[%s4824_s1 + $0x200] sm:$0xf] }
 0x479   :  { %v2112_v33 = vmul.f32 %v2772_v1, %v4632_v8  ;;  %v2775_v8 = vld [vmem:[%s4824_s1 + $0x1f8] sm:$0xff]  ;;  %v2531_v1 = vld [vmem:[%s4826_s3 + $0x8] sm:$0xff] }
 0x47a   :  { %v2260_v24 = vrot.slane %v2259_v7, 1  ;;  %v2308_v47 = vsel %vm120_vm0, %v2108_v0, 0.0  ;;  %2485 = vmatpush.bf16.msra.mxu2 %v2531_v1 }
 0x47b   :  { %v4663_v63 = vpop.permute.xlu2 %1979  ;;  %v4665_v57 = vpop.permute.xlu1 %2029  ;;  %v2309_v35 = vadd.f32 %v2308_v47, %v2307_v25 }
 0x47c   :  { %v1920_v54 = vpop.permute.xlu0 %1919  ;;  %v2261_v45 = vadd.f32 %v2260_v24, %v2259_v7 }
 0x47d   :  { %v2101_v39 = vmul.f32 %v2760_v51, %v1920_v54 }
 0x47f   :  { %v2284_v34 = vsel %vm278_vm1, %v2101_v39, 0.0  ;;  %v2109_v39 = vmul.f32 %v2768_v62, %v4643_v18  ;;  %v2771_v18 = vld [vmem:[%s4824_s1 + $0x260] sm:$0xff]  ;;  %v2779_v62 = vld [vmem:[%s4824_s1 + $0x228] sm:$0xf] }
 0x480   :  { %v2285_v36 = vadd.f32 %v2284_v34, %v2283_v3  ;;  %v2770_v34 = vld [vmem:[%s4824_s1 + $0x210] sm:$0xff]  ;;  %v2123_v2 = vmul.f32 %v2771_v18, %v4665_v57  ;;  %v2773_v57 = vld [vmem:[%s4824_s1 + $0x268] sm:$0xff] }
 0x481   :  { %v2113_v3 = vmul.f32 %v2770_v34, %v4663_v63 }
 0x482   :  { %v2286_v43 = vrot.slane %v2285_v36, 4  ;;  %v2353_v41 = vsel %vm120_vm0, %v2123_v2, 0.0 }
 0x483   :  { %v4682_v49 = vpop.permute.xlu2 %1999  ;;  %v4684_v42 = vpop.permute.xlu1 %2009 }
 0x484   :  { %v1945_v29 = vpop.permute.xlu0 %1944  ;;  %v2287_v56 = vadd.f32 %v2286_v43, %v2285_v36 }
 0x485   :  { %v2106_v26 = vmul.f32 %v2763_v53, %v1945_v29  ;;  %v2310_v29 = vsel %vm120_vm0, %v2109_v39, 0.0  ;;  %v2375_v53 = vpack.c.bf16 %v2261_v45, %v2261_v45  ;;  %v2780_v45 = vld [vmem:[%s4824_s1 + $0x220] sm:$0xff] }
 0x486   :  { %v2288_v50 = vrot.slane %v2287_v56, 2  ;;  %v2311_v15 = vadd.f32 %v2310_v29, %v2309_v35 }
 0x487   :  { %v2299_v6 = vsel %vm278_vm1, %v2106_v26, 0.0 }
 0x488   :  { %v2300_v44 = vadd.f32 %v2299_v6, %v2298_v38  ;;  %v2289_v16 = vadd.f32 %v2288_v50, %v2287_v56 }
 0x48a   :  { %v2301_v46 = vrot.slane %v2300_v44, 4  ;;  %v2290_v5 = vrot.slane %v2289_v16, 1 }
 0x48b   :  { %v1895_v21 = vpop.permute.xlu2 %1894  ;;  %v2035_v58 = vpop.permute.xlu1 %2034 }
 0x48c   :  { %v2096_v20 = vmul.f32 %v2765_v32, %v1895_v21  ;;  %v2302_v59 = vadd.f32 %v2301_v46, %v2300_v44  ;;  %v1970_v48 = vpop.permute.xlu0 %1969  ;;  %v2291_v11 = vadd.f32 %v2290_v5, %v2289_v16  ;;  %v2124_v38 = vmul.f32 %v2773_v57, %v2035_v58  ;;  %v2532_v57 = vld [vmem:[%s4825_s4] sm:$0xff] }
 0x48d   :  { %v2111_v6 = vmul.f32 %v2774_v19, %v1970_v48  ;;  %v2323_v44 = vsel %vm120_vm0, %v2113_v3, 0.0  ;;  %v2322_v21 = vsel %vm120_vm0, %v2112_v33, 0.0 }
 0x48e   :  { %v2269_v28 = vsel %vm278_vm1, %v2096_v20, 0.0  ;;  %v2303_v40 = vrot.slane %v2302_v59, 2  ;;  %v2377_v60 = vpack.c.bf16 %v2291_v11, %v2291_v11  ;;  %v2355_v13 = vsel %vm120_vm0, %v2124_v38, 0.0  ;;  %v2530_v38 = vld [vmem:[%s4826_s3] sm:$0xff] }
 0x48f   :  { %v2270_v61 = vadd.f32 %v2269_v28, %v2268_v9  ;;  %v2776_v28 = vld [vmem:[%s4824_s1 + $0x218] sm:$0xff]  ;;  %2486 = vmatpush.bf16.msra.mxu2 %v2530_v38 }
 0x490   :  { %v2304_v51 = vadd.f32 %v2303_v40, %v2302_v59  ;;  %v2441_v59 = vunpack.c.l.b16 %v2375_v53  ;;  %v2114_v7 = vmul.f32 %v2776_v28, %v4652_v30  ;;  %v2314_v40 = vsel %vm278_vm1, %v2111_v6, 0.0  ;;  %v2778_v30 = vld [vmem:[%s4824_s1 + $0x278] sm:$0xf] }
 0x491   :  { %v2271_v52 = vrot.slane %v2270_v61, 4 }
 0x492   :  { %v2305_v36 = vrot.slane %v2304_v51, 1 }
 0x493   :  { %v2272_v37 = vadd.f32 %v2271_v52, %v2270_v61  ;;  %v2025_v17 = vpop.permute.xlu2 %2024  ;;  %v4706_v10 = vpop.permute.xlu1 %1994  ;;  %v2324_v52 = vadd.f32 %v2323_v44, %v2322_v21 }
 0x494   :  { %v2122_v22 = vmul.f32 %v2769_v4, %v2025_v17  ;;  %v2306_v56 = vadd.f32 %v2305_v36, %v2304_v51  ;;  %v2040_v32 = vpop.permute.xlu0 %2039  ;;  %v2116_v39 = vmul.f32 %v2779_v62, %v4706_v10  ;;  %v2533_v10 = vld [vmem:[%s4825_s4 + $0x8] sm:$0xff]  ;;  %v2781_v36 = vld [vmem:[%s4824_s1 + $0x230] sm:$0xff] }
 0x495   :  { %v2273_v54 = vrot.slane %v2272_v37, 2  ;;  %v2117_v29 = vmul.f32 %v2781_v36, %v4682_v49  ;;  %2409 = vmatpush.bf16.msra.mxu1 %v2533_v10  ;;  %v2782_v49 = vld [vmem:[%s4824_s1 + $0x238] sm:$0xff] }
 0x496   :  { %v2352_v63 = vsel %vm120_vm0, %v2122_v22, 0.0  ;;  %v2378_v16 = vpack.c.bf16 %v2306_v56, %v2306_v56  ;;  %v2443_v22 = vunpack.c.l.b16 %v2377_v60  ;;  %v2329_v53 = vsel %vm278_vm1, %v2116_v39, 0.0  ;;  %v2783_v56 = vld [vmem:[%s4824_s1 + $0x240] sm:$0xff] }
 0x497   :  { %v2274_v14 = vadd.f32 %v2273_v54, %v2272_v37  ;;  %v2354_v58 = vadd.f32 %v2353_v41, %v2352_v63  ;;  %v2777_v37 = vld [vmem:[%s4824_s1 + $0x270] sm:$0xff]  ;;  %v2325_v54 = vsel %vm120_vm0, %v2114_v7, 0.0  ;;  %v2118_v19 = vmul.f32 %v2782_v49, %v4650_v55  ;;  %v2784_v55 = vld [vmem:[%s4824_s1 + $0x248] sm:$0xff]  ;;  %v5124_v7 = vld [vmem:[#allocation2_spill] sm:$0xff] }
 0x498   :  { %v2125_v17 = vmul.f32 %v2777_v37, %v2040_v32  ;;  %v2326_v4 = vadd.f32 %v2325_v54, %v2324_v52  ;;  %v2444_v34 = vunpack.c.l.b16 %v2378_v16  ;;  %v2337_v44 = vsel %vm120_vm0, %v2117_v29, 0.0  ;;  %v2785_v37 = vld [vmem:[%s4824_s1 + $0x250] sm:$0xf] }
 0x499   :  { %v2275_v12 = vrot.slane %v2274_v14, 1  ;;  %v2356_v48 = vadd.f32 %v2355_v13, %v2354_v58  ;;  %2410 = vmatpush.bf16.msra.mxu1 %v2532_v57  ;;  %v2338_v21 = vsel %vm120_vm0, %v2118_v19, 0.0  ;;  %v2119_v58 = vmul.f32 %v2783_v56, %v4684_v42 }
 0x49a   :  { %v2357_v47 = vsel %vm120_vm0, %v2125_v17, 0.0 }
 0x49b   :  { %v2276_v26 = vadd.f32 %v2275_v12, %v2274_v14  ;;  %v1965_v23 = vpop.permute.xlu2 %1964  ;;  %v2045_v9 = vpop.permute.xlu1 %2044  ;;  %v2358_v3 = vadd.f32 %v2357_v47, %v2356_v48 }
 0x49c   :  { %v2110_v43 = vmul.f32 %v2775_v8, %v1965_v23  ;;  %v2126_v0 = vmul.f32 %v2778_v30, %v2045_v9  ;;  %2518 = vmatmul.msk.bf16.vlgmr.msra.gmra.mxu1 %vm120_vm0, %v5124_v7 }
 0x49d   :  { %v2376_v46 = vpack.c.bf16 %v2276_v26, %v2276_v26 }
 0x49e   :  { %v2312_v20 = vsel %vm120_vm0, %v2110_v43, 0.0  ;;  %v2359_v35 = vsel %vm278_vm1, %v2126_v0, 0.0 }
 0x49f   :  { %v2442_v61 = vunpack.c.l.b16 %v2376_v46  ;;  %v2313_v50 = vadd.f32 %v2312_v20, %v2311_v15  ;;  %v2360_v26 = vadd.f32 %v2359_v35, %v2358_v3  ;;  %v2339_v20 = vadd.f32 %v2338_v21, %v2337_v44 }
 0x4a1   :  { %v2456_v24 = vsel %vm741_vm6, %v2442_v61, %v2441_v59  ;;  %v2315_v27 = vadd.f32 %v2314_v40, %v2313_v50  ;;  %v2361_v41 = vrot.slane %v2360_v26, 4  ;;  %v2340_v50 = vsel %vm120_vm0, %v2119_v58, 0.0 }
 0x4a2   :  { %v2457_v33 = vsel %vm743_vm7, %v2443_v22, %v2456_v24  ;;  %v2341_v60 = vadd.f32 %v2340_v50, %v2339_v20 }
 0x4a3   :  { %v2316_v25 = vrot.slane %v2315_v27, 4  ;;  %v1990_v51 = vpop.permute.xlu2 %1989  ;;  %v2458_v63 = vsel %vm745_vm8, %v2444_v34, %v2457_v33  ;;  %v2362_v59 = vadd.f32 %v2361_v41, %v2360_v26 }
 0x4a4   :  { %v2115_v14 = vmul.f32 %v2780_v45, %v1990_v51 }
 0x4a5   :  { %v2317_v5 = vadd.f32 %v2316_v25, %v2315_v27  ;;  %v2363_v40 = vrot.slane %v2362_v59, 2 }
 0x4a6   :  { %v2327_v18 = vsel %vm120_vm0, %v2115_v14, 0.0 }
 0x4a7   :  { %v2318_v2 = vrot.slane %v2317_v5, 2  ;;  %v2328_v12 = vadd.f32 %v2327_v18, %v2326_v4  ;;  %v2364_v16 = vadd.f32 %v2363_v40, %v2362_v59 }
 0x4a9   :  { %v2319_v23 = vadd.f32 %v2318_v2, %v2317_v5  ;;  %v2330_v11 = vadd.f32 %v2329_v53, %v2328_v12  ;;  %v2365_v51 = vrot.slane %v2364_v16, 1 }
 0x4ab   :  { %v2320_v6 = vrot.slane %v2319_v23, 1  ;;  %v2331_v8 = vrot.slane %v2330_v11, 4  ;;  %v2015_v43 = vpop.permute.xlu2 %2014  ;;  %v2366_v14 = vadd.f32 %v2365_v51, %v2364_v16 }
 0x4ac   :  { %v2120_v32 = vmul.f32 %v2784_v55, %v2015_v43 }
 0x4ad   :  { %v2321_v46 = vadd.f32 %v2320_v6, %v2319_v23  ;;  %v2332_v15 = vadd.f32 %v2331_v8, %v2330_v11  ;;  %v2382_v35 = vpack.c.bf16 %v2366_v14, %v2366_v14 }
 0x4ae   :  { %v2342_v52 = vsel %vm120_vm0, %v2120_v32, 0.0 }
 0x4af   :  { %v2379_v9 = vpack.c.bf16 %v2321_v46, %v2321_v46  ;;  %v2333_v28 = vrot.slane %v2332_v15, 2  ;;  %v2343_v27 = vadd.f32 %v2342_v52, %v2341_v60  ;;  %v2448_v18 = vunpack.c.l.b16 %v2382_v35 }
 0x4b1   :  { %v2445_v61 = vunpack.c.l.b16 %v2379_v9  ;;  %v2334_v24 = vadd.f32 %v2333_v28, %v2332_v15 }
 0x4b3   :  { %v2020_v13 = vpop.permute.xlu2 %2019  ;;  %v2459_v42 = vsel %vm747_vm9, %v2445_v61, %v2458_v63  ;;  %v2335_v48 = vrot.slane %v2334_v24, 1 }
 0x4b4   :  { %v2121_v17 = vmul.f32 %v2785_v37, %v2020_v13 }
 0x4b5   :  { %v2336_v62 = vadd.f32 %v2335_v48, %v2334_v24 }
 0x4b6   :  { %v2344_v30 = vsel %vm278_vm1, %v2121_v17, 0.0 }
 0x4b7   :  { %v2345_v0 = vadd.f32 %v2344_v30, %v2343_v27  ;;  %v2380_v4 = vpack.c.bf16 %v2336_v62, %v2336_v62 }
 0x4b9   :  { %v2346_v54 = vrot.slane %v2345_v0, 4  ;;  %v2446_v5 = vunpack.c.l.b16 %v2380_v4 }
 0x4bb   :  { %v2347_v25 = vadd.f32 %v2346_v54, %v2345_v0  ;;  %v2460_v2 = vsel %vm749_vm10, %v2446_v5, %v2459_v42 }
 0x4bd   :  { %v2348_v39 = vrot.slane %v2347_v25, 2 }
 0x4bf   :  { %v2349_v45 = vadd.f32 %v2348_v39, %v2347_v25 }
 0x4c1   :  { %v2350_v22 = vrot.slane %v2349_v45, 1 }
 0x4c3   :  { %v2351_v47 = vadd.f32 %v2350_v22, %v2349_v45 }
 0x4c5   :  { %v2381_v34 = vpack.c.bf16 %v2351_v47, %v2351_v47 }
 0x4c7   :  { %v2447_v3 = vunpack.c.l.b16 %v2381_v34 }
 0x4c9   :  { %v2461_v12 = vsel %vm751_vm11, %v2447_v3, %v2460_v2 }
 0x4ca   :  { %v2462_v10 = vsel %vm753_vm12, %v2448_v18, %v2461_v12 }
 0x4cb   :  { %v2463_v1 = vpack.c.b16 %v2462_v10, %v4648_v31 }
 0x4cd   :  { %2527 = vmatmul.msk.bf16.vlgmr.msra.gmra.mxu2 %vm120_vm0, %v2463_v1 }
 0x519   :  { %v2412_v33 = vpop.f32.mrf.mxu1 }
 0x521   :  { %v2414_v53 = vpop.f32.mrf.mxu1 }
 0x550   :  { %v2488_v36 = vpop.f32.mrf.mxu2 }
 0x551   :  { %v2489_v29 = vadd.f32 %v2488_v36, %v2412_v33 }
 0x553   :  { %2702 = vtanh.f32 %v2489_v29 }
 0x558   :  { %v2490_v26 = vpop.f32.mrf.mxu2 }
 0x559   :  { %v2703_v63 = vpop.eup %2702  ;;  %v2491_v23 = vadd.f32 %v2490_v26, %v2414_v53 }
 0x55a   :  { %2495 = vst.msk [vmem:[%s4827_s5] sm:$0xff] %vm120_vm0, %v2703_v63 }
 0x55b   :  { %2704 = vtanh.f32 %v2491_v23 }
 0x561   :  { %v2705_v11 = vpop.eup %2704 }
 0x562   :  { %2496 = vst.msk [vmem:[%s4827_s5 + $0x8] sm:$0xff] %vm120_vm0, %v2705_v11 }

// kernel: speaker_encoder_forward.5
= control target key start
LH: loop header
LB: loop body
LE: loop exit
PB: predicated region body
PF: predicated region fallthrough
CT: control target
= control target key end

     0   :  { %vm17_vm0 = vcmask 254976   ;;  %v1219_v1 = vmov 0.0   ;;  %s1535_s0 = inlined_call_operand.vmem [shape: f32[2,8,128], index: 0, kind: input, shape index: {}]   ;;  %s1536_s1 = inlined_call_operand.vmem [shape: bf16[32,128], index: 1, kind: input, shape index: {}]   ;;  %s1537_s2 = inlined_call_operand.hbm [shape: f32[2,8,32], index: 2, kind: output, shape index: {}]  }
   0x1   :  { %v1057_v0 = vld [vmem:[%s1536_s1 + $0x8] sm:$0xff]  ;;  %18 = vst.msk [vmem:[#allocation2] sm:$0x3] %vm17_vm0, %v1219_v1  ;;  %v1056_v2 = vld [vmem:[%s1536_s1] sm:$0xff] }
   0x2   :  { %51 = vmatpush.bf16.msra.mxu0 %v1057_v0  ;;  %19 = vst.msk [vmem:[#allocation3] sm:$0x3] %vm17_vm0, %v1219_v1  ;;  %180 = vmatpush.bf16.msra.mxu1 %v1057_v0 }
   0x3   :  { %7 = vsyncpa [#allocation5], 0  ;;  %299 = vmatpush.bf16.msra.mxu2 %v1057_v0  ;;  %418 = vmatpush.bf16.msra.mxu3 %v1057_v0  ;;  %vm41_vm1 = vcmask 261120   ;;  %s1220_s1 = smov 32   ;;  %v27_v7 = vld [vmem:[%s1535_s0 + $0x8] sm:$0x1] }
   0x4   :  { %v26_v11 = vld [vmem:[%s1535_s0] sm:$0x1]  ;;  %s1221_s17 = smov 64   ;;  %vm166_vm10 = vcmask 1041409   ;;  %s1012_s21 = sshll.u32 %s1537_s2, 4  ;;  %s1013_s21 = int_to_ptr.hbm [resolvable:$true] %s1012_s21 }
   0x5   :  { %s1224_s22 = smov 128   ;;  %s1225_s23 = smov 8  }
   0x6   :  { %52 = vmatpush.bf16.msra.mxu0 %v1056_v2  ;;  %181 = vmatpush.bf16.msra.mxu1 %v1056_v2 }
   0x7   :  { %300 = vmatpush.bf16.msra.mxu2 %v1056_v2  ;;  %419 = vmatpush.bf16.msra.mxu3 %v1056_v2 }
   0x8   :  { %v24_v3 = vld [vmem:[#allocation2] sm:$0x3] }
   0x9   :  { %v28_v4 = vpack.c.bf16 %v24_v3, %v24_v3  ;;  %v25_v5 = vld [vmem:[#allocation3] sm:$0x3] }
   0xa   :  { %537 = vmatpush.bf16.msrb.mxu0 %v1057_v0  ;;  %656 = vmatpush.bf16.msrb.mxu1 %v1057_v0  ;;  %v105_v6 = vrot.slane %v25_v5, 1 }
   0xb   :  { %775 = vmatpush.bf16.msrb.mxu2 %v1057_v0  ;;  %894 = vmatpush.bf16.msrb.mxu3 %v1057_v0 }
   0xc   :  { %1032 = vmatmul.msk.bf16.vlgmr.msra.gmra.mxu0 %vm41_vm1, %v28_v4  ;;  %108 = vrot.lane.b32.xlu1 %v105_v6, %s1220_s1  ;;  %v157_v4 = vld [vmem:[%s1535_s0 + $0x1] sm:$0x1] }
   0xe   :  { %538 = vmatpush.bf16.msrb.mxu0 %v1056_v2  ;;  %657 = vmatpush.bf16.msrb.mxu1 %v1056_v2 }
   0xf   :  { %776 = vmatpush.bf16.msrb.mxu2 %v1056_v2  ;;  %895 = vmatpush.bf16.msrb.mxu3 %v1056_v2 }
  0x14   :  { %106 = vrot.lane.b32.xlu1 %v25_v5, %s1220_s1  ;;  %v158_v5 = vld [vmem:[%s1535_s0 + $0x9] sm:$0x1] }
  0x7e   :  { %v109_v46 = vpop.permute.xlu1 %108 }
  0x86   :  { %v107_v50 = vpop.permute.xlu1 %106 }
  0x89   :  { %v54_v8 = vpop.f32.mrf.mxu0 }
  0x8a   :  { %v59_v9 = vrot.slane %v54_v8, 1  ;;  %v62_v13 = vadd.f32 %v54_v8, %v26_v11 }
  0x8c   :  { %v63_v10 = vadd.f32 %v59_v9, %v27_v7  ;;  %v1033_v17 = vmul.f32 -1.442695, %v62_v13 }
  0x8e   :  { %1065 = vtanh.f32 %v63_v10  ;;  %v1034_v16 = vmul.f32 -1.442695, %v63_v10 }
  0x8f   :  { %1067 = vtanh.f32 %v62_v13 }
  0x90   :  { %1069 = vpow2.f32 %v1034_v16 }
  0x91   :  { %v56_v12 = vpop.f32.mrf.mxu0  ;;  %1071 = vpow2.f32 %v1033_v17 }
  0x94   :  { %v1066_v14 = vpop.eup %1065 }
  0x95   :  { %118 = vrot.lane.b32.xlu0 %v1066_v14, %s1221_s17  ;;  %v1068_v15 = vpop.eup %1067 }
  0x96   :  { %v1070_v18 = vpop.eup %1069 }
  0x97   :  { %v71_v19 = vadd.f32 1.0, %v1070_v18  ;;  %v1072_v20 = vpop.eup %1071 }
  0x98   :  { %v70_v21 = vadd.f32 1.0, %v1072_v20 }
  0x99   :  { %1073 = vrcp.f32 %v71_v19  ;;  %v98_v30 = vand.u32 2147483648, %v71_v19  ;;  %vm92_vm3 = vweird.f32 %v71_v19  ;;  %v96_v31 = vand.u32 2147483647, %v71_v19 }
  0x9a   :  { %1075 = vrcp.f32 %v70_v21  ;;  %v83_v39 = vand.u32 2147483648, %v70_v21  ;;  %vm77_vm7 = vweird.f32 %v70_v21  ;;  %v81_v40 = vand.u32 2147483647, %v70_v21 }
  0x9b   :  { %v99_v34 = vor.u32 1.1754944e-38, %v98_v30  ;;  %vm97_vm5 = vcmp.eq.f32.partialorder %v96_v31, 8.507059e+37 }
  0x9c   :  { %v84_v42 = vor.u32 1.1754944e-38, %v83_v39  ;;  %vm82_vm9 = vcmp.eq.f32.partialorder %v81_v40, 8.507059e+37 }
  0x9d   :  { %116 = vrot.lane.b32.xlu0 %v1068_v15, %s1221_s17 }
  0x9f   :  { %v1074_v22 = vpop.eup %1073 }
  0xa0   :  { %v88_v23 = vmul.f32 %v1074_v22, %v71_v19  ;;  %v1076_v25 = vpop.eup %1075  ;;  %vm93_vm2 = vweird.f32 %v1074_v22 }
  0xa1   :  { %v73_v27 = vmul.f32 %v1076_v25, %v70_v21  ;;  %vm94_vm4 = vmor %vm92_vm3, %vm93_vm2  ;;  %vm78_vm6 = vweird.f32 %v1076_v25 }
  0xa2   :  { %v89_v24 = vsub.f32 1.0, %v88_v23  ;;  %vm79_vm8 = vmor %vm77_vm7, %vm78_vm6 }
  0xa3   :  { %v74_v29 = vsub.f32 1.0, %v73_v27 }
  0xa4   :  { %v90_v26 = vmul.f32 %v1074_v22, %v89_v24 }
  0xa5   :  { %v75_v33 = vmul.f32 %v1076_v25, %v74_v29 }
  0xa6   :  { %v91_v28 = vadd.f32 %v1074_v22, %v90_v26 }
  0xa7   :  { %v76_v37 = vadd.f32 %v1076_v25, %v75_v33 }
  0xa8   :  { %v95_v32 = vsel %vm94_vm4, %v1074_v22, %v91_v28 }
  0xa9   :  { %v100_v35 = vsel %vm97_vm5, %v99_v34, %v95_v32  ;;  %v80_v41 = vsel %vm79_vm8, %v1076_v25, %v76_v37 }
  0xaa   :  { %v85_v43 = vsel %vm82_vm9, %v84_v42, %v80_v41  ;;  %v113_v47 = vmul.f32 %v109_v46, %v100_v35 }
  0xab   :  { %v112_v51 = vmul.f32 %v107_v50, %v85_v43 }
 0x107   :  { %v119_v36 = vpop.permute.xlu0 %118 }
 0x108   :  { %v123_v38 = vmul.f32 %v119_v36, %v100_v35 }
 0x10a   :  { %128 = vrot.lane.b32.xlu2 %v123_v38, %s1220_s1 }
 0x10f   :  { %v117_v44 = vpop.permute.xlu0 %116 }
 0x110   :  { %v122_v45 = vmul.f32 %v117_v44, %v85_v43 }
 0x112   :  { %126 = vrot.lane.b32.xlu2 %v122_v45, %s1220_s1 }
 0x164   :  { %v129_v48 = vpop.permute.xlu2 %128 }
 0x165   :  { %v1262_v49 = vadd.f32 %v129_v48, %v113_v47 }
 0x167   :  { %1077 = vtanh.f32 %v1262_v49 }
 0x16c   :  { %v127_v52 = vpop.permute.xlu2 %126 }
 0x16d   :  { %v1078_v53 = vpop.eup %1077  ;;  %v1265_v54 = vadd.f32 %v127_v52, %v112_v51 }
 0x16e   :  { %140 = vrot.lane.b32.xlu0 %v1078_v53, %s1221_s17 }
 0x16f   :  { %1079 = vtanh.f32 %v1265_v54 }
 0x175   :  { %v1080_v55 = vpop.eup %1079 }
 0x176   :  { %138 = vrot.lane.b32.xlu1 %v1080_v55, %s1221_s17 }
 0x1e0   :  { %v141_v56 = vpop.permute.xlu0 %140 }
 0x1e1   :  { %v1270_v57 = vmul.f32 %v141_v56, %v100_v35 }
 0x1e3   :  { %v160_v58 = vpack.c.bf16 %v1270_v57, %v1270_v57 }
 0x1e5   :  { %v164_v60 = vunpack.c.l.b16 %v160_v58 }
 0x1e7   :  { %v165_v63 = vrot.slane %v164_v60, 7 }
 0x1e8   :  { %v139_v59 = vpop.permute.xlu1 %138 }
 0x1e9   :  { %v1274_v61 = vmul.f32 %v139_v59, %v85_v43 }
 0x1eb   :  { %v159_v62 = vpack.c.bf16 %v1274_v61, %v1274_v61 }
 0x1ed   :  { %v163_v0 = vunpack.c.l.b16 %v159_v62 }
 0x1ef   :  { %v167_v1 = vsel %vm166_vm10, %v165_v63, %v163_v0 }
 0x1f0   :  { %v168_v2 = vpack.c.b16 %v167_v1, %v167_v1  ;;  %v277_v1 = vld [vmem:[%s1535_s0 + $0x2] sm:$0x1] }
 0x1f2   :  { %169 = vrot.lane.b32.xlu2 %v168_v2, %s1220_s1  ;;  %v278_v2 = vld [vmem:[%s1535_s0 + $0xa] sm:$0x1] }
 0x24c   :  { %v170_v3 = vpop.permute.xlu2 %169 }
 0x24d   :  { %1035 = vmatmul.msk.bf16.vlgmr.msra.gmra.mxu1 %vm41_vm1, %v170_v3 }
 0x2ca   :  { %v183_v6 = vpop.f32.mrf.mxu1 }
 0x2cb   :  { %v188_v7 = vrot.slane %v183_v6, 1  ;;  %v191_v8 = vadd.f32 %v183_v6, %v157_v4 }
 0x2cd   :  { %v192_v9 = vadd.f32 %v188_v7, %v158_v5  ;;  %1081 = vtanh.f32 %v191_v8  ;;  %v1036_v13 = vmul.f32 -1.442695, %v191_v8 }
 0x2cf   :  { %1083 = vtanh.f32 %v192_v9  ;;  %v1037_v14 = vmul.f32 -1.442695, %v192_v9 }
 0x2d0   :  { %1085 = vpow2.f32 %v1036_v13 }
 0x2d1   :  { %1087 = vpow2.f32 %v1037_v14 }
 0x2d2   :  { %v185_v10 = vpop.f32.mrf.mxu1 }
 0x2d3   :  { %v1082_v11 = vpop.eup %1081 }
 0x2d4   :  { %237 = vrot.lane.b32.xlu1 %v1082_v11, %s1221_s17 }
 0x2d5   :  { %v1084_v12 = vpop.eup %1083 }
 0x2d6   :  { %239 = vrot.lane.b32.xlu0 %v1084_v12, %s1221_s17  ;;  %v1086_v15 = vpop.eup %1085 }
 0x2d7   :  { %v1088_v16 = vpop.eup %1087  ;;  %v199_v17 = vadd.f32 1.0, %v1086_v15 }
 0x2d8   :  { %v200_v18 = vadd.f32 1.0, %v1088_v16 }
 0x2d9   :  { %1089 = vrcp.f32 %v199_v17  ;;  %v212_v28 = vand.u32 2147483648, %v199_v17  ;;  %vm206_vm12 = vweird.f32 %v199_v17  ;;  %v210_v29 = vand.u32 2147483647, %v199_v17 }
 0x2da   :  { %1091 = vrcp.f32 %v200_v18  ;;  %v227_v32 = vand.u32 2147483648, %v200_v18  ;;  %vm221_vm15 = vweird.f32 %v200_v18  ;;  %v225_v34 = vand.u32 2147483647, %v200_v18 }
 0x2db   :  { %v213_v33 = vor.u32 1.1754944e-38, %v212_v28  ;;  %vm211_vm2 = vcmp.eq.f32.partialorder %v210_v29, 8.507059e+37 }
 0x2dc   :  { %v228_v39 = vor.u32 1.1754944e-38, %v227_v32  ;;  %vm226_vm4 = vcmp.eq.f32.partialorder %v225_v34, 8.507059e+37 }
 0x2df   :  { %v1090_v19 = vpop.eup %1089 }
 0x2e0   :  { %v1092_v20 = vpop.eup %1091  ;;  %v202_v21 = vmul.f32 %v1090_v19, %v199_v17  ;;  %vm207_vm11 = vweird.f32 %v1090_v19 }
 0x2e1   :  { %v217_v22 = vmul.f32 %v1092_v20, %v200_v18  ;;  %vm208_vm13 = vmor %vm206_vm12, %vm207_vm11  ;;  %vm222_vm14 = vweird.f32 %v1092_v20 }
 0x2e2   :  { %v203_v23 = vsub.f32 1.0, %v202_v21  ;;  %vm223_vm3 = vmor %vm221_vm15, %vm222_vm14 }
 0x2e3   :  { %v218_v24 = vsub.f32 1.0, %v217_v22 }
 0x2e4   :  { %v204_v25 = vmul.f32 %v1090_v19, %v203_v23 }
 0x2e5   :  { %v219_v26 = vmul.f32 %v1092_v20, %v218_v24 }
 0x2e6   :  { %v205_v27 = vadd.f32 %v1090_v19, %v204_v25 }
 0x2e7   :  { %v220_v30 = vadd.f32 %v1092_v20, %v219_v26 }
 0x2e8   :  { %v209_v31 = vsel %vm208_vm13, %v1090_v19, %v205_v27 }
 0x2e9   :  { %v214_v36 = vsel %vm211_vm2, %v213_v33, %v209_v31  ;;  %v224_v37 = vsel %vm223_vm3, %v1092_v20, %v220_v30 }
 0x2ea   :  { %v229_v41 = vsel %vm226_vm4, %v228_v39, %v224_v37  ;;  %v233_v47 = vmul.f32 %v214_v36, %v1265_v54 }
 0x2eb   :  { %v234_v43 = vmul.f32 %v229_v41, %v1262_v49 }
 0x346   :  { %v238_v35 = vpop.permute.xlu1 %237 }
 0x347   :  { %v243_v38 = vmul.f32 %v238_v35, %v214_v36 }
 0x348   :  { %v240_v40 = vpop.permute.xlu0 %239 }
 0x349   :  { %247 = vrot.lane.b32.xlu0 %v243_v38, %s1220_s1  ;;  %v244_v42 = vmul.f32 %v240_v40, %v229_v41 }
 0x34b   :  { %249 = vrot.lane.b32.xlu2 %v244_v42, %s1220_s1 }
 0x3a5   :  { %v250_v44 = vpop.permute.xlu2 %249 }
 0x3a6   :  { %v1292_v45 = vadd.f32 %v250_v44, %v234_v43 }
 0x3a8   :  { %1093 = vtanh.f32 %v1292_v45 }
 0x3ae   :  { %v1094_v46 = vpop.eup %1093 }
 0x3af   :  { %261 = vrot.lane.b32.xlu1 %v1094_v46, %s1221_s17 }
 0x3bb   :  { %v248_v48 = vpop.permute.xlu0 %247 }
 0x3bc   :  { %v1297_v50 = vadd.f32 %v248_v48, %v233_v47 }
 0x3be   :  { %1095 = vtanh.f32 %v1297_v50 }
 0x3c4   :  { %v1096_v51 = vpop.eup %1095 }
 0x3c5   :  { %259 = vrot.lane.b32.xlu2 %v1096_v51, %s1221_s17 }
 0x41f   :  { %v260_v52 = vpop.permute.xlu2 %259 }
 0x420   :  { %v1301_v49 = vmul.f32 %v260_v52, %v214_v36 }
 0x421   :  { %v262_v53 = vpop.permute.xlu1 %261 }
 0x422   :  { %v1303_v55 = vmul.f32 %v262_v53, %v229_v41  ;;  %v279_v56 = vpack.c.bf16 %v1301_v49, %v1301_v49 }
 0x424   :  { %v280_v54 = vpack.c.bf16 %v1303_v55, %v1303_v55  ;;  %v283_v59 = vunpack.c.l.b16 %v279_v56 }
 0x426   :  { %v284_v58 = vunpack.c.l.b16 %v280_v54 }
 0x428   :  { %v285_v60 = vrot.slane %v284_v58, 7 }
 0x42a   :  { %v286_v62 = vsel %vm166_vm10, %v285_v60, %v283_v59 }
 0x42b   :  { %v287_v63 = vpack.c.b16 %v286_v62, %v286_v62 }
 0x42d   :  { %288 = vrot.lane.b32.xlu0 %v287_v63, %s1220_s1 }
 0x49f   :  { %v289_v0 = vpop.permute.xlu0 %288 }
 0x4a0   :  { %1038 = vmatmul.msk.bf16.vlgmr.msra.gmra.mxu2 %vm41_vm1, %v289_v0  ;;  %v396_v0 = vld [vmem:[%s1535_s0 + $0x3] sm:$0x1] }
 0x523   :  { %v302_v3 = vpop.f32.mrf.mxu2 }
 0x524   :  { %v307_v4 = vrot.slane %v302_v3, 1  ;;  %v310_v5 = vadd.f32 %v302_v3, %v277_v1  ;;  %v397_v1 = vld [vmem:[%s1535_s0 + $0xb] sm:$0x1] }
 0x526   :  { %v311_v6 = vadd.f32 %v307_v4, %v278_v2  ;;  %1097 = vtanh.f32 %v310_v5  ;;  %v1039_v10 = vmul.f32 -1.442695, %v310_v5 }
 0x528   :  { %1099 = vtanh.f32 %v311_v6  ;;  %v1040_v15 = vmul.f32 -1.442695, %v311_v6 }
 0x529   :  { %1101 = vpow2.f32 %v1039_v10 }
 0x52b   :  { %v304_v7 = vpop.f32.mrf.mxu2 }
 0x52c   :  { %v1098_v8 = vpop.eup %1097 }
 0x52d   :  { %356 = vrot.lane.b32.xlu2 %v1098_v8, %s1221_s17 }
 0x52e   :  { %v1100_v9 = vpop.eup %1099 }
 0x52f   :  { %358 = vrot.lane.b32.xlu1 %v1100_v9, %s1221_s17  ;;  %v1102_v11 = vpop.eup %1101 }
 0x530   :  { %v318_v12 = vadd.f32 1.0, %v1102_v11 }
 0x532   :  { %1103 = vrcp.f32 %v318_v12  ;;  %v331_v20 = vand.u32 2147483648, %v318_v12  ;;  %vm325_vm6 = vweird.f32 %v318_v12  ;;  %v329_v22 = vand.u32 2147483647, %v318_v12 }
 0x533   :  { %1105 = vpow2.f32 %v1040_v15 }
 0x534   :  { %v332_v24 = vor.u32 1.1754944e-38, %v331_v20  ;;  %vm330_vm8 = vcmp.eq.f32.partialorder %v329_v22, 8.507059e+37 }
 0x538   :  { %v1104_v13 = vpop.eup %1103 }
 0x539   :  { %v321_v14 = vmul.f32 %v1104_v13, %v318_v12  ;;  %v1106_v18 = vpop.eup %1105  ;;  %vm326_vm5 = vweird.f32 %v1104_v13 }
 0x53a   :  { %v319_v21 = vadd.f32 1.0, %v1106_v18  ;;  %vm327_vm7 = vmor %vm325_vm6, %vm326_vm5 }
 0x53b   :  { %v322_v16 = vsub.f32 1.0, %v321_v14 }
 0x53c   :  { %1107 = vrcp.f32 %v319_v21  ;;  %v346_v33 = vand.u32 2147483648, %v319_v21  ;;  %vm340_vm11 = vweird.f32 %v319_v21  ;;  %v344_v34 = vand.u32 2147483647, %v319_v21 }
 0x53d   :  { %v323_v17 = vmul.f32 %v1104_v13, %v322_v16 }
 0x53e   :  { %v347_v36 = vor.u32 1.1754944e-38, %v346_v33  ;;  %vm345_vm13 = vcmp.eq.f32.partialorder %v344_v34, 8.507059e+37 }
 0x53f   :  { %v324_v19 = vadd.f32 %v1104_v13, %v323_v17 }
 0x541   :  { %v328_v23 = vsel %vm327_vm7, %v1104_v13, %v324_v19 }
 0x542   :  { %v333_v26 = vsel %vm330_vm8, %v332_v24, %v328_v23  ;;  %v1108_v28 = vpop.eup %1107 }
 0x543   :  { %v336_v29 = vmul.f32 %v1108_v28, %v319_v21  ;;  %vm341_vm9 = vweird.f32 %v1108_v28  ;;  %v352_v40 = vmul.f32 %v333_v26, %v1297_v50 }
 0x544   :  { %vm342_vm12 = vmor %vm340_vm11, %vm341_vm9 }
 0x545   :  { %v337_v30 = vsub.f32 1.0, %v336_v29 }
 0x547   :  { %v338_v31 = vmul.f32 %v1108_v28, %v337_v30 }
 0x549   :  { %v339_v32 = vadd.f32 %v1108_v28, %v338_v31 }
 0x54b   :  { %v343_v35 = vsel %vm342_vm12, %v1108_v28, %v339_v32 }
 0x54c   :  { %v348_v38 = vsel %vm345_vm13, %v347_v36, %v343_v35 }
 0x54d   :  { %v353_v44 = vmul.f32 %v348_v38, %v1292_v45 }
 0x587   :  { %v357_v25 = vpop.permute.xlu2 %356 }
 0x588   :  { %v362_v27 = vmul.f32 %v357_v25, %v333_v26 }
 0x58a   :  { %366 = vrot.lane.b32.xlu1 %v362_v27, %s1220_s1 }
 0x5a1   :  { %v359_v37 = vpop.permute.xlu1 %358 }
 0x5a2   :  { %v363_v39 = vmul.f32 %v359_v37, %v348_v38 }
 0x5a4   :  { %368 = vrot.lane.b32.xlu0 %v363_v39, %s1220_s1 }
 0x5fc   :  { %v367_v41 = vpop.permute.xlu1 %366 }
 0x5fd   :  { %v1323_v42 = vadd.f32 %v367_v41, %v352_v40 }
 0x5ff   :  { %1109 = vtanh.f32 %v1323_v42 }
 0x605   :  { %v1110_v43 = vpop.eup %1109 }
 0x606   :  { %378 = vrot.lane.b32.xlu0 %v1110_v43, %s1221_s17 }
 0x616   :  { %v369_v46 = vpop.permute.xlu0 %368 }
 0x617   :  { %v1328_v47 = vadd.f32 %v369_v46, %v353_v44 }
 0x619   :  { %1111 = vtanh.f32 %v1328_v47 }
 0x61f   :  { %v1112_v48 = vpop.eup %1111 }
 0x620   :  { %380 = vrot.lane.b32.xlu2 %v1112_v48, %s1221_s17 }
 0x678   :  { %v379_v51 = vpop.permute.xlu0 %378 }
 0x679   :  { %v1332_v50 = vmul.f32 %v379_v51, %v333_v26 }
 0x67a   :  { %v381_v52 = vpop.permute.xlu2 %380 }
 0x67b   :  { %v1334_v53 = vmul.f32 %v381_v52, %v348_v38  ;;  %v398_v56 = vpack.c.bf16 %v1332_v50, %v1332_v50 }
 0x67d   :  { %v399_v45 = vpack.c.bf16 %v1334_v53, %v1334_v53  ;;  %v402_v58 = vunpack.c.l.b16 %v398_v56 }
 0x67f   :  { %v403_v54 = vunpack.c.l.b16 %v399_v45 }
 0x681   :  { %v404_v59 = vrot.slane %v403_v54, 7 }
 0x683   :  { %v405_v60 = vsel %vm166_vm10, %v404_v59, %v402_v58 }
 0x684   :  { %v406_v62 = vpack.c.b16 %v405_v60, %v405_v60 }
 0x686   :  { %407 = vrot.lane.b32.xlu1 %v406_v62, %s1220_s1 }
 0x6f8   :  { %v408_v63 = vpop.permute.xlu1 %407 }
 0x6f9   :  { %1041 = vmatmul.msk.bf16.vlgmr.msra.gmra.mxu3 %vm41_vm1, %v408_v63 }
 0x77c   :  { %v421_v2 = vpop.f32.mrf.mxu3 }
 0x77d   :  { %v426_v3 = vrot.slane %v421_v2, 1  ;;  %v429_v4 = vadd.f32 %v421_v2, %v396_v0  ;;  %v516_v2 = vld [vmem:[%s1535_s0 + $0xc] sm:$0x1] }
 0x77f   :  { %v430_v5 = vadd.f32 %v426_v3, %v397_v1  ;;  %1113 = vtanh.f32 %v429_v4  ;;  %v1042_v12 = vmul.f32 -1.442695, %v429_v4  ;;  %v515_v1 = vld [vmem:[%s1535_s0 + $0x4] sm:$0x1] }
 0x781   :  { %1115 = vtanh.f32 %v430_v5  ;;  %v1043_v9 = vmul.f32 -1.442695, %v430_v5 }
 0x783   :  { %1117 = vpow2.f32 %v1043_v9 }
 0x784   :  { %v423_v6 = vpop.f32.mrf.mxu3 }
 0x785   :  { %v1114_v7 = vpop.eup %1113 }
 0x786   :  { %475 = vrot.lane.b32.xlu0 %v1114_v7, %s1221_s17 }
 0x787   :  { %v1116_v8 = vpop.eup %1115 }
 0x788   :  { %477 = vrot.lane.b32.xlu2 %v1116_v8, %s1221_s17 }
 0x789   :  { %v1118_v10 = vpop.eup %1117 }
 0x78a   :  { %v438_v11 = vadd.f32 1.0, %v1118_v10 }
 0x78c   :  { %1119 = vrcp.f32 %v438_v11  ;;  %v465_v20 = vand.u32 2147483648, %v438_v11  ;;  %vm459_vm15 = vweird.f32 %v438_v11  ;;  %v463_v21 = vand.u32 2147483647, %v438_v11 }
 0x78d   :  { %1121 = vpow2.f32 %v1042_v12 }
 0x78e   :  { %v466_v23 = vor.u32 1.1754944e-38, %v465_v20  ;;  %vm464_vm3 = vcmp.eq.f32.partialorder %v463_v21, 8.507059e+37 }
 0x792   :  { %v1120_v13 = vpop.eup %1119 }
 0x793   :  { %v455_v14 = vmul.f32 %v1120_v13, %v438_v11  ;;  %v1122_v16 = vpop.eup %1121  ;;  %vm460_vm14 = vweird.f32 %v1120_v13 }
 0x794   :  { %v437_v17 = vadd.f32 1.0, %v1122_v16  ;;  %vm461_vm2 = vmor %vm459_vm15, %vm460_vm14 }
 0x795   :  { %v456_v15 = vsub.f32 1.0, %v455_v14 }
 0x796   :  { %1123 = vrcp.f32 %v437_v17  ;;  %v450_v32 = vand.u32 2147483648, %v437_v17  ;;  %vm444_vm5 = vweird.f32 %v437_v17  ;;  %v448_v33 = vand.u32 2147483647, %v437_v17 }
 0x797   :  { %v457_v18 = vmul.f32 %v1120_v13, %v456_v15 }
 0x798   :  { %v451_v35 = vor.u32 1.1754944e-38, %v450_v32  ;;  %vm449_vm7 = vcmp.eq.f32.partialorder %v448_v33, 8.507059e+37 }
 0x799   :  { %v458_v19 = vadd.f32 %v1120_v13, %v457_v18 }
 0x79b   :  { %v462_v22 = vsel %vm461_vm2, %v1120_v13, %v458_v19 }
 0x79c   :  { %v1124_v24 = vpop.eup %1123  ;;  %v467_v26 = vsel %vm464_vm3, %v466_v23, %v462_v22 }
 0x79d   :  { %v440_v28 = vmul.f32 %v1124_v24, %v437_v17  ;;  %vm445_vm4 = vweird.f32 %v1124_v24  ;;  %v472_v43 = vmul.f32 %v467_v26, %v1328_v47 }
 0x79e   :  { %vm446_vm6 = vmor %vm444_vm5, %vm445_vm4 }
 0x79f   :  { %v441_v29 = vsub.f32 1.0, %v440_v28 }
 0x7a1   :  { %v442_v30 = vmul.f32 %v1124_v24, %v441_v29 }
 0x7a3   :  { %v443_v31 = vadd.f32 %v1124_v24, %v442_v30 }
 0x7a5   :  { %v447_v34 = vsel %vm446_vm6, %v1124_v24, %v443_v31 }
 0x7a6   :  { %v452_v37 = vsel %vm449_vm7, %v451_v35, %v447_v34 }
 0x7a7   :  { %v471_v39 = vmul.f32 %v452_v37, %v1323_v42 }
 0x7e2   :  { %v478_v25 = vpop.permute.xlu2 %477 }
 0x7e3   :  { %v482_v27 = vmul.f32 %v478_v25, %v467_v26 }
 0x7e5   :  { %487 = vrot.lane.b32.xlu1 %v482_v27, %s1220_s1 }
 0x7f8   :  { %v476_v36 = vpop.permute.xlu0 %475 }
 0x7f9   :  { %v481_v38 = vmul.f32 %v476_v36, %v452_v37 }
 0x7fb   :  { %485 = vrot.lane.b32.xlu2 %v481_v38, %s1220_s1 }
 0x855   :  { %v486_v40 = vpop.permute.xlu2 %485 }
 0x856   :  { %v1354_v41 = vadd.f32 %v486_v40, %v471_v39 }
 0x857   :  { %v488_v44 = vpop.permute.xlu1 %487 }
 0x858   :  { %1125 = vtanh.f32 %v1354_v41  ;;  %v1358_v46 = vadd.f32 %v488_v44, %v472_v43 }
 0x85a   :  { %1127 = vtanh.f32 %v1358_v46 }
 0x85e   :  { %v1126_v48 = vpop.eup %1125 }
 0x85f   :  { %497 = vrot.lane.b32.xlu1 %v1126_v48, %s1221_s17 }
 0x860   :  { %v1128_v51 = vpop.eup %1127 }
 0x861   :  { %499 = vrot.lane.b32.xlu0 %v1128_v51, %s1221_s17 }
 0x8d1   :  { %v498_v52 = vpop.permute.xlu1 %497 }
 0x8d2   :  { %v1363_v42 = vmul.f32 %v498_v52, %v452_v37 }
 0x8d3   :  { %v500_v56 = vpop.permute.xlu0 %499 }
 0x8d4   :  { %v1365_v45 = vmul.f32 %v500_v56, %v467_v26  ;;  %v517_v47 = vpack.c.bf16 %v1363_v42, %v1363_v42 }
 0x8d6   :  { %v518_v54 = vpack.c.bf16 %v1365_v45, %v1365_v45  ;;  %v521_v59 = vunpack.c.l.b16 %v517_v47 }
 0x8d8   :  { %v522_v58 = vunpack.c.l.b16 %v518_v54 }
 0x8da   :  { %v523_v60 = vrot.slane %v522_v58, 7 }
 0x8dc   :  { %v524_v62 = vsel %vm166_vm10, %v523_v60, %v521_v59 }
 0x8dd   :  { %v525_v63 = vpack.c.b16 %v524_v62, %v524_v62 }
 0x8df   :  { %526 = vrot.lane.b32.xlu2 %v525_v63, %s1220_s1 }
 0x939   :  { %v527_v0 = vpop.permute.xlu2 %526 }
 0x93a   :  { %1044 = vmatmul.msk.bf16.vlgmr.msrb.gmra.mxu0 %vm41_vm1, %v527_v0 }
 0x9b7   :  { %v540_v3 = vpop.f32.mrf.mxu0 }
 0x9b8   :  { %v545_v4 = vrot.slane %v540_v3, 1  ;;  %v548_v5 = vadd.f32 %v540_v3, %v515_v1 }
 0x9ba   :  { %v549_v6 = vadd.f32 %v545_v4, %v516_v2  ;;  %1129 = vtanh.f32 %v548_v5  ;;  %v1045_v10 = vmul.f32 -1.442695, %v548_v5  ;;  %v634_v4 = vld [vmem:[%s1535_s0 + $0x5] sm:$0x1]  ;;  %v635_v5 = vld [vmem:[%s1535_s0 + $0xd] sm:$0x1] }
 0x9bc   :  { %1131 = vtanh.f32 %v549_v6  ;;  %v1046_v11 = vmul.f32 -1.442695, %v549_v6 }
 0x9bd   :  { %1133 = vpow2.f32 %v1045_v10 }
 0x9be   :  { %1135 = vpow2.f32 %v1046_v11 }
 0x9bf   :  { %v542_v7 = vpop.f32.mrf.mxu0 }
 0x9c0   :  { %v1130_v8 = vpop.eup %1129 }
 0x9c1   :  { %594 = vrot.lane.b32.xlu1 %v1130_v8, %s1221_s17 }
 0x9c2   :  { %v1132_v9 = vpop.eup %1131 }
 0x9c3   :  { %596 = vrot.lane.b32.xlu0 %v1132_v9, %s1221_s17  ;;  %v1134_v12 = vpop.eup %1133 }
 0x9c4   :  { %v1136_v13 = vpop.eup %1135  ;;  %v556_v14 = vadd.f32 1.0, %v1134_v12 }
 0x9c5   :  { %v557_v15 = vadd.f32 1.0, %v1136_v13 }
 0x9c6   :  { %1137 = vrcp.f32 %v556_v14  ;;  %v569_v25 = vand.u32 2147483648, %v556_v14  ;;  %vm563_vm9 = vweird.f32 %v556_v14  ;;  %v567_v26 = vand.u32 2147483647, %v556_v14 }
 0x9c7   :  { %1139 = vrcp.f32 %v557_v15  ;;  %v584_v29 = vand.u32 2147483648, %v557_v15  ;;  %vm578_vm13 = vweird.f32 %v557_v15  ;;  %v582_v31 = vand.u32 2147483647, %v557_v15 }
 0x9c8   :  { %v570_v30 = vor.u32 1.1754944e-38, %v569_v25  ;;  %vm568_vm14 = vcmp.eq.f32.partialorder %v567_v26, 8.507059e+37 }
 0x9c9   :  { %v585_v36 = vor.u32 1.1754944e-38, %v584_v29  ;;  %vm583_vm2 = vcmp.eq.f32.partialorder %v582_v31, 8.507059e+37 }
 0x9cc   :  { %v1138_v16 = vpop.eup %1137 }
 0x9cd   :  { %v1140_v17 = vpop.eup %1139  ;;  %v559_v18 = vmul.f32 %v1138_v16, %v556_v14  ;;  %vm564_vm8 = vweird.f32 %v1138_v16 }
 0x9ce   :  { %v574_v19 = vmul.f32 %v1140_v17, %v557_v15  ;;  %vm565_vm11 = vmor %vm563_vm9, %vm564_vm8  ;;  %vm579_vm12 = vweird.f32 %v1140_v17 }
 0x9cf   :  { %v560_v20 = vsub.f32 1.0, %v559_v18  ;;  %vm580_vm15 = vmor %vm578_vm13, %vm579_vm12 }
 0x9d0   :  { %v575_v21 = vsub.f32 1.0, %v574_v19 }
 0x9d1   :  { %v561_v22 = vmul.f32 %v1138_v16, %v560_v20 }
 0x9d2   :  { %v576_v23 = vmul.f32 %v1140_v17, %v575_v21 }
 0x9d3   :  { %v562_v24 = vadd.f32 %v1138_v16, %v561_v22 }
 0x9d4   :  { %v577_v27 = vadd.f32 %v1140_v17, %v576_v23 }
 0x9d5   :  { %v566_v28 = vsel %vm565_vm11, %v1138_v16, %v562_v24 }
 0x9d6   :  { %v571_v33 = vsel %vm568_vm14, %v570_v30, %v566_v28  ;;  %v581_v34 = vsel %vm580_vm15, %v1140_v17, %v577_v27 }
 0x9d7   :  { %v586_v38 = vsel %vm583_vm2, %v585_v36, %v581_v34  ;;  %v590_v51 = vmul.f32 %v571_v33, %v1354_v41 }
 0x9d8   :  { %v591_v40 = vmul.f32 %v586_v38, %v1358_v46 }
 0xa33   :  { %v595_v32 = vpop.permute.xlu1 %594 }
 0xa34   :  { %v600_v35 = vmul.f32 %v595_v32, %v571_v33 }
 0xa35   :  { %v597_v37 = vpop.permute.xlu0 %596 }
 0xa36   :  { %604 = vrot.lane.b32.xlu0 %v600_v35, %s1220_s1  ;;  %v601_v39 = vmul.f32 %v597_v37, %v586_v38 }
 0xa38   :  { %606 = vrot.lane.b32.xlu2 %v601_v39, %s1220_s1 }
 0xa92   :  { %v607_v43 = vpop.permute.xlu2 %606 }
 0xa93   :  { %v1385_v44 = vadd.f32 %v607_v43, %v591_v40 }
 0xa95   :  { %1141 = vtanh.f32 %v1385_v44 }
 0xa9b   :  { %v1142_v48 = vpop.eup %1141 }
 0xa9c   :  { %618 = vrot.lane.b32.xlu1 %v1142_v48, %s1221_s17 }
 0xaa8   :  { %v605_v52 = vpop.permute.xlu0 %604 }
 0xaa9   :  { %v1390_v56 = vadd.f32 %v605_v52, %v590_v51 }
 0xaab   :  { %1143 = vtanh.f32 %v1390_v56 }
 0xab1   :  { %v1144_v47 = vpop.eup %1143 }
 0xab2   :  { %616 = vrot.lane.b32.xlu2 %v1144_v47, %s1221_s17 }
 0xb0c   :  { %v617_v54 = vpop.permute.xlu2 %616 }
 0xb0d   :  { %v1394_v46 = vmul.f32 %v617_v54, %v571_v33 }
 0xb0e   :  { %v619_v58 = vpop.permute.xlu1 %618 }
 0xb0f   :  { %v1396_v59 = vmul.f32 %v619_v58, %v586_v38  ;;  %v636_v60 = vpack.c.bf16 %v1394_v46, %v1394_v46 }
 0xb11   :  { %v637_v41 = vpack.c.bf16 %v1396_v59, %v1396_v59  ;;  %v640_v63 = vunpack.c.l.b16 %v636_v60 }
 0xb13   :  { %v641_v62 = vunpack.c.l.b16 %v637_v41 }
 0xb15   :  { %v642_v0 = vrot.slane %v641_v62, 7 }
 0xb17   :  { %v643_v1 = vsel %vm166_vm10, %v642_v0, %v640_v63 }
 0xb18   :  { %v644_v2 = vpack.c.b16 %v643_v1, %v643_v1 }
 0xb1a   :  { %645 = vrot.lane.b32.xlu0 %v644_v2, %s1220_s1 }
 0xb8c   :  { %v646_v3 = vpop.permute.xlu0 %645 }
 0xb8d   :  { %1047 = vmatmul.msk.bf16.vlgmr.msrb.gmra.mxu1 %vm41_vm1, %v646_v3 }
 0xc0a   :  { %v659_v6 = vpop.f32.mrf.mxu1 }
 0xc0b   :  { %v664_v7 = vrot.slane %v659_v6, 1  ;;  %v667_v8 = vadd.f32 %v659_v6, %v634_v4 }
 0xc0d   :  { %v668_v9 = vadd.f32 %v664_v7, %v635_v5  ;;  %1145 = vtanh.f32 %v667_v8  ;;  %v1048_v13 = vmul.f32 -1.442695, %v667_v8 }
 0xc0f   :  { %1147 = vtanh.f32 %v668_v9  ;;  %v1049_v18 = vmul.f32 -1.442695, %v668_v9  ;;  %v753_v9 = vld [vmem:[%s1535_s0 + $0x6] sm:$0x1] }
 0xc10   :  { %1149 = vpow2.f32 %v1048_v13 }
 0xc12   :  { %v661_v10 = vpop.f32.mrf.mxu1 }
 0xc13   :  { %v1146_v11 = vpop.eup %1145  ;;  %v754_v10 = vld [vmem:[%s1535_s0 + $0xe] sm:$0x1] }
 0xc14   :  { %713 = vrot.lane.b32.xlu2 %v1146_v11, %s1221_s17 }
 0xc15   :  { %v1148_v12 = vpop.eup %1147 }
 0xc16   :  { %715 = vrot.lane.b32.xlu1 %v1148_v12, %s1221_s17  ;;  %v1150_v14 = vpop.eup %1149 }
 0xc17   :  { %v675_v15 = vadd.f32 1.0, %v1150_v14 }
 0xc19   :  { %1151 = vrcp.f32 %v675_v15  ;;  %v688_v23 = vand.u32 2147483648, %v675_v15  ;;  %vm682_vm4 = vweird.f32 %v675_v15  ;;  %v686_v25 = vand.u32 2147483647, %v675_v15 }
 0xc1a   :  { %1153 = vpow2.f32 %v1049_v18 }
 0xc1b   :  { %v689_v27 = vor.u32 1.1754944e-38, %v688_v23  ;;  %vm687_vm6 = vcmp.eq.f32.partialorder %v686_v25, 8.507059e+37 }
 0xc1f   :  { %v1152_v16 = vpop.eup %1151 }
 0xc20   :  { %v678_v17 = vmul.f32 %v1152_v16, %v675_v15  ;;  %v1154_v21 = vpop.eup %1153  ;;  %vm683_vm3 = vweird.f32 %v1152_v16 }
 0xc21   :  { %v676_v24 = vadd.f32 1.0, %v1154_v21  ;;  %vm684_vm5 = vmor %vm682_vm4, %vm683_vm3 }
 0xc22   :  { %v679_v19 = vsub.f32 1.0, %v678_v17 }
 0xc23   :  { %1155 = vrcp.f32 %v676_v24  ;;  %v703_v36 = vand.u32 2147483648, %v676_v24  ;;  %vm697_vm8 = vweird.f32 %v676_v24  ;;  %v701_v37 = vand.u32 2147483647, %v676_v24 }
 0xc24   :  { %v680_v20 = vmul.f32 %v1152_v16, %v679_v19 }
 0xc25   :  { %v704_v39 = vor.u32 1.1754944e-38, %v703_v36  ;;  %vm702_vm11 = vcmp.eq.f32.partialorder %v701_v37, 8.507059e+37 }
 0xc26   :  { %v681_v22 = vadd.f32 %v1152_v16, %v680_v20 }
 0xc28   :  { %v685_v26 = vsel %vm684_vm5, %v1152_v16, %v681_v22 }
 0xc29   :  { %v690_v29 = vsel %vm687_vm6, %v689_v27, %v685_v26  ;;  %v1156_v31 = vpop.eup %1155 }
 0xc2a   :  { %v693_v32 = vmul.f32 %v1156_v31, %v676_v24  ;;  %vm698_vm7 = vweird.f32 %v1156_v31  ;;  %v709_v51 = vmul.f32 %v690_v29, %v1390_v56 }
 0xc2b   :  { %vm699_vm9 = vmor %vm697_vm8, %vm698_vm7 }
 0xc2c   :  { %v694_v33 = vsub.f32 1.0, %v693_v32 }
 0xc2e   :  { %v695_v34 = vmul.f32 %v1156_v31, %v694_v33 }
 0xc30   :  { %v696_v35 = vadd.f32 %v1156_v31, %v695_v34 }
 0xc32   :  { %v700_v38 = vsel %vm699_vm9, %v1156_v31, %v696_v35 }
 0xc33   :  { %v705_v43 = vsel %vm702_vm11, %v704_v39, %v700_v38 }
 0xc34   :  { %v710_v58 = vmul.f32 %v705_v43, %v1385_v44 }
 0xc6e   :  { %v714_v28 = vpop.permute.xlu2 %713 }
 0xc6f   :  { %v719_v30 = vmul.f32 %v714_v28, %v690_v29 }
 0xc71   :  { %723 = vrot.lane.b32.xlu1 %v719_v30, %s1220_s1 }
 0xc88   :  { %v716_v40 = vpop.permute.xlu1 %715 }
 0xc89   :  { %v720_v48 = vmul.f32 %v716_v40, %v705_v43 }
 0xc8b   :  { %725 = vrot.lane.b32.xlu0 %v720_v48, %s1220_s1 }
 0xce3   :  { %v724_v52 = vpop.permute.xlu1 %723 }
 0xce4   :  { %v1416_v47 = vadd.f32 %v724_v52, %v709_v51 }
 0xce6   :  { %1157 = vtanh.f32 %v1416_v47 }
 0xcec   :  { %v1158_v54 = vpop.eup %1157 }
 0xced   :  { %735 = vrot.lane.b32.xlu0 %v1158_v54, %s1221_s17 }
 0xcfd   :  { %v726_v60 = vpop.permute.xlu0 %725 }
 0xcfe   :  { %v1421_v41 = vadd.f32 %v726_v60, %v710_v58 }
 0xd00   :  { %1159 = vtanh.f32 %v1421_v41 }
 0xd06   :  { %v1160_v62 = vpop.eup %1159 }
 0xd07   :  { %737 = vrot.lane.b32.xlu2 %v1160_v62, %s1221_s17 }
 0xd5f   :  { %v736_v63 = vpop.permute.xlu0 %735 }
 0xd60   :  { %v1425_v56 = vmul.f32 %v736_v63, %v690_v29 }
 0xd61   :  { %v738_v0 = vpop.permute.xlu2 %737 }
 0xd62   :  { %v1427_v1 = vmul.f32 %v738_v0, %v705_v43  ;;  %v755_v2 = vpack.c.bf16 %v1425_v56, %v1425_v56 }
 0xd64   :  { %v756_v44 = vpack.c.bf16 %v1427_v1, %v1427_v1  ;;  %v759_v4 = vunpack.c.l.b16 %v755_v2 }
 0xd66   :  { %v760_v3 = vunpack.c.l.b16 %v756_v44 }
 0xd68   :  { %v761_v5 = vrot.slane %v760_v3, 7 }
 0xd6a   :  { %v762_v6 = vsel %vm166_vm10, %v761_v5, %v759_v4 }
 0xd6b   :  { %v763_v7 = vpack.c.b16 %v762_v6, %v762_v6 }
 0xd6d   :  { %764 = vrot.lane.b32.xlu1 %v763_v7, %s1220_s1 }
 0xddf   :  { %v765_v8 = vpop.permute.xlu1 %764 }
 0xde0   :  { %1050 = vmatmul.msk.bf16.vlgmr.msrb.gmra.mxu2 %vm41_vm1, %v765_v8 }
 0xe63   :  { %v778_v11 = vpop.f32.mrf.mxu2 }
 0xe64   :  { %v783_v12 = vrot.slane %v778_v11, 1  ;;  %v786_v13 = vadd.f32 %v778_v11, %v753_v9 }
 0xe66   :  { %v787_v14 = vadd.f32 %v783_v12, %v754_v10  ;;  %1161 = vtanh.f32 %v786_v13  ;;  %v1051_v21 = vmul.f32 -1.442695, %v786_v13 }
 0xe68   :  { %1163 = vtanh.f32 %v787_v14  ;;  %v1052_v18 = vmul.f32 -1.442695, %v787_v14 }
 0xe6a   :  { %1165 = vpow2.f32 %v1052_v18 }
 0xe6b   :  { %v780_v15 = vpop.f32.mrf.mxu2 }
 0xe6c   :  { %v1162_v16 = vpop.eup %1161 }
 0xe6d   :  { %832 = vrot.lane.b32.xlu0 %v1162_v16, %s1221_s17  ;;  %v872_v16 = vld [vmem:[%s1535_s0 + $0x7] sm:$0x1] }
 0xe6e   :  { %v1164_v17 = vpop.eup %1163 }
 0xe6f   :  { %834 = vrot.lane.b32.xlu2 %v1164_v17, %s1221_s17  ;;  %v873_v17 = vld [vmem:[%s1535_s0 + $0xf] sm:$0x1]  ;;  %s1222_s0 = smov 96  }
 0xe70   :  { %v1166_v19 = vpop.eup %1165 }
 0xe71   :  { %v795_v20 = vadd.f32 1.0, %v1166_v19 }
 0xe73   :  { %1167 = vrcp.f32 %v795_v20  ;;  %v822_v29 = vand.u32 2147483648, %v795_v20  ;;  %vm816_vm13 = vweird.f32 %v795_v20  ;;  %v820_v30 = vand.u32 2147483647, %v795_v20 }
 0xe74   :  { %1169 = vpow2.f32 %v1051_v21 }
 0xe75   :  { %v823_v32 = vor.u32 1.1754944e-38, %v822_v29  ;;  %vm821_vm15 = vcmp.eq.f32.partialorder %v820_v30, 8.507059e+37 }
 0xe79   :  { %v1168_v22 = vpop.eup %1167 }
 0xe7a   :  { %v812_v23 = vmul.f32 %v1168_v22, %v795_v20  ;;  %v1170_v25 = vpop.eup %1169  ;;  %vm817_vm12 = vweird.f32 %v1168_v22 }
 0xe7b   :  { %v794_v26 = vadd.f32 1.0, %v1170_v25  ;;  %vm818_vm14 = vmor %vm816_vm13, %vm817_vm12 }
 0xe7c   :  { %v813_v24 = vsub.f32 1.0, %v812_v23 }
 0xe7d   :  { %1171 = vrcp.f32 %v794_v26  ;;  %v807_v43 = vand.u32 2147483648, %v794_v26  ;;  %vm801_vm3 = vweird.f32 %v794_v26  ;;  %v805_v48 = vand.u32 2147483647, %v794_v26 }
 0xe7e   :  { %v814_v27 = vmul.f32 %v1168_v22, %v813_v24 }
 0xe7f   :  { %v808_v52 = vor.u32 1.1754944e-38, %v807_v43  ;;  %vm806_vm5 = vcmp.eq.f32.partialorder %v805_v48, 8.507059e+37 }
 0xe80   :  { %v815_v28 = vadd.f32 %v1168_v22, %v814_v27 }
 0xe82   :  { %v819_v31 = vsel %vm818_vm14, %v1168_v22, %v815_v28  ;;  %vm154_vm14 = vcmask 253952  }
 0xe83   :  { %v1172_v33 = vpop.eup %1171  ;;  %v824_v35 = vsel %vm821_vm15, %v823_v32, %v819_v31 }
 0xe84   :  { %v797_v37 = vmul.f32 %v1172_v33, %v794_v26  ;;  %vm802_vm2 = vweird.f32 %v1172_v33  ;;  %v829_v2 = vmul.f32 %v824_v35, %v1421_v41 }
 0xe85   :  { %vm803_vm4 = vmor %vm801_vm3, %vm802_vm2 }
 0xe86   :  { %v798_v38 = vsub.f32 1.0, %v797_v37 }
 0xe88   :  { %v799_v39 = vmul.f32 %v1172_v33, %v798_v38 }
 0xe8a   :  { %v800_v40 = vadd.f32 %v1172_v33, %v799_v39 }
 0xe8c   :  { %v804_v51 = vsel %vm803_vm4, %v1172_v33, %v800_v40 }
 0xe8d   :  { %v809_v58 = vsel %vm806_vm5, %v808_v52, %v804_v51 }
 0xe8e   :  { %v828_v62 = vmul.f32 %v809_v58, %v1416_v47 }
 0xec9   :  { %v835_v34 = vpop.permute.xlu2 %834 }
 0xeca   :  { %v839_v36 = vmul.f32 %v835_v34, %v824_v35 }
 0xecc   :  { %844 = vrot.lane.b32.xlu1 %v839_v36, %s1220_s1 }
 0xedf   :  { %v833_v54 = vpop.permute.xlu0 %832 }
 0xee0   :  { %v838_v60 = vmul.f32 %v833_v54, %v809_v58 }
 0xee2   :  { %842 = vrot.lane.b32.xlu2 %v838_v60, %s1220_s1 }
 0xf3c   :  { %v843_v63 = vpop.permute.xlu2 %842 }
 0xf3d   :  { %v1447_v0 = vadd.f32 %v843_v63, %v828_v62 }
 0xf3e   :  { %v845_v44 = vpop.permute.xlu1 %844 }
 0xf3f   :  { %1173 = vtanh.f32 %v1447_v0  ;;  %v1451_v3 = vadd.f32 %v845_v44, %v829_v2 }
 0xf41   :  { %1175 = vtanh.f32 %v1451_v3 }
 0xf45   :  { %v1174_v4 = vpop.eup %1173 }
 0xf46   :  { %854 = vrot.lane.b32.xlu1 %v1174_v4, %s1221_s17 }
 0xf47   :  { %v1176_v5 = vpop.eup %1175 }
 0xf48   :  { %856 = vrot.lane.b32.xlu0 %v1176_v5, %s1221_s17 }
 0xfb8   :  { %v855_v6 = vpop.permute.xlu1 %854 }
 0xfb9   :  { %v1456_v47 = vmul.f32 %v855_v6, %v809_v58 }
 0xfba   :  { %v857_v7 = vpop.permute.xlu0 %856 }
 0xfbb   :  { %v1458_v8 = vmul.f32 %v857_v7, %v824_v35  ;;  %v874_v41 = vpack.c.bf16 %v1456_v47, %v1456_v47 }
 0xfbd   :  { %v875_v9 = vpack.c.bf16 %v1458_v8, %v1458_v8  ;;  %v878_v11 = vunpack.c.l.b16 %v874_v41 }
 0xfbf   :  { %v879_v10 = vunpack.c.l.b16 %v875_v9 }
 0xfc1   :  { %v880_v12 = vrot.slane %v879_v10, 7 }
 0xfc3   :  { %v881_v13 = vsel %vm166_vm10, %v880_v12, %v878_v11 }
 0xfc4   :  { %v882_v14 = vpack.c.b16 %v881_v13, %v881_v13 }
 0xfc6   :  { %883 = vrot.lane.b32.xlu2 %v882_v14, %s1220_s1 }
0x1020   :  { %v884_v15 = vpop.permute.xlu2 %883 }
0x1021   :  { %1053 = vmatmul.msk.bf16.vlgmr.msrb.gmra.mxu3 %vm41_vm1, %v884_v15 }
0x10a4   :  { %v897_v18 = vpop.f32.mrf.mxu3 }
0x10a5   :  { %v902_v19 = vrot.slane %v897_v18, 1  ;;  %v905_v20 = vadd.f32 %v897_v18, %v872_v16 }
0x10a7   :  { %v906_v21 = vadd.f32 %v902_v19, %v873_v17  ;;  %1177 = vtanh.f32 %v905_v20  ;;  %v1054_v25 = vmul.f32 -1.442695, %v905_v20 }
0x10a9   :  { %1179 = vtanh.f32 %v906_v21  ;;  %v1055_v26 = vmul.f32 -1.442695, %v906_v21 }
0x10aa   :  { %1181 = vpow2.f32 %v1054_v25 }
0x10ab   :  { %1183 = vpow2.f32 %v1055_v26 }
0x10ac   :  { %v899_v22 = vpop.f32.mrf.mxu3 }
0x10ad   :  { %v1178_v23 = vpop.eup %1177 }
0x10ae   :  { %951 = vrot.lane.b32.xlu1 %v1178_v23, %s1221_s17 }
0x10af   :  { %v1180_v24 = vpop.eup %1179 }
0x10b0   :  { %953 = vrot.lane.b32.xlu0 %v1180_v24, %s1221_s17  ;;  %v1182_v27 = vpop.eup %1181 }
0x10b1   :  { %v1184_v28 = vpop.eup %1183  ;;  %v913_v29 = vadd.f32 1.0, %v1182_v27 }
0x10b2   :  { %v914_v30 = vadd.f32 1.0, %v1184_v28 }
0x10b3   :  { %1185 = vrcp.f32 %v913_v29  ;;  %v926_v40 = vand.u32 2147483648, %v913_v29  ;;  %vm920_vm6 = vweird.f32 %v913_v29  ;;  %v924_v43 = vand.u32 2147483647, %v913_v29 }
0x10b4   :  { %1187 = vrcp.f32 %v914_v30  ;;  %v941_v52 = vand.u32 2147483648, %v914_v30  ;;  %vm935_vm9 = vweird.f32 %v914_v30  ;;  %v939_v58 = vand.u32 2147483647, %v914_v30 }
0x10b5   :  { %v927_v54 = vor.u32 1.1754944e-38, %v926_v40  ;;  %vm925_vm11 = vcmp.eq.f32.partialorder %v924_v43, 8.507059e+37 }
0x10b6   :  { %v942_v44 = vor.u32 1.1754944e-38, %v941_v52  ;;  %vm940_vm13 = vcmp.eq.f32.partialorder %v939_v58, 8.507059e+37 }
0x10b9   :  { %v1186_v31 = vpop.eup %1185 }
0x10ba   :  { %v1188_v32 = vpop.eup %1187  ;;  %v916_v33 = vmul.f32 %v1186_v31, %v913_v29  ;;  %vm921_vm1 = vweird.f32 %v1186_v31 }
0x10bb   :  { %v931_v34 = vmul.f32 %v1188_v32, %v914_v30  ;;  %vm922_vm7 = vmor %vm920_vm6, %vm921_vm1  ;;  %vm936_vm8 = vweird.f32 %v1188_v32 }
0x10bc   :  { %v917_v35 = vsub.f32 1.0, %v916_v33  ;;  %vm937_vm12 = vmor %vm935_vm9, %vm936_vm8 }
0x10bd   :  { %v932_v36 = vsub.f32 1.0, %v931_v34 }
0x10be   :  { %v918_v37 = vmul.f32 %v1186_v31, %v917_v35 }
0x10bf   :  { %v933_v38 = vmul.f32 %v1188_v32, %v932_v36 }
0x10c0   :  { %v919_v39 = vadd.f32 %v1186_v31, %v918_v37 }
0x10c1   :  { %v934_v48 = vadd.f32 %v1188_v32, %v933_v38 }
0x10c2   :  { %v923_v51 = vsel %vm922_vm7, %v1186_v31, %v919_v39 }
0x10c3   :  { %v928_v62 = vsel %vm925_vm11, %v927_v54, %v923_v51  ;;  %v938_v63 = vsel %vm937_vm12, %v1188_v32, %v934_v48 }
0x10c4   :  { %v943_v5 = vsel %vm940_vm13, %v942_v44, %v938_v63 }
0x10c5   :  { %v948_v7 = vmul.f32 %v943_v5, %v1451_v3 }
0x1120   :  { %v952_v60 = vpop.permute.xlu1 %951 }
0x1121   :  { %v957_v2 = vmul.f32 %v952_v60, %v928_v62 }
0x1122   :  { %v954_v4 = vpop.permute.xlu0 %953 }
0x1123   :  { %961 = vrot.lane.b32.xlu0 %v957_v2, %s1220_s1  ;;  %v958_v6 = vmul.f32 %v954_v4, %v943_v5 }
0x1125   :  { %963 = vrot.lane.b32.xlu2 %v958_v6, %s1220_s1 }
0x112b   :  { %148 = vrot.lane.b32.xlu0 %v1274_v61, %s1220_s1  ;;  %v947_v61 = vmul.f32 %v928_v62, %v1447_v0 }
0x1133   :  { %271 = vrot.lane.b32.xlu0 %v1303_v55, %s1220_s1 }
0x113b   :  { %507 = vrot.lane.b32.xlu0 %v1363_v42, %s1220_s1 }
0x1143   :  { %628 = vrot.lane.b32.xlu0 %v1396_v59, %s1220_s1 }
0x114b   :  { %864 = vrot.lane.b32.xlu0 %v1456_v47, %s1220_s1 }
0x117f   :  { %v964_v41 = vpop.permute.xlu2 %963 }
0x1180   :  { %v968_v9 = vadd.f32 %v964_v41, %v948_v7 }
0x1182   :  { %1189 = vtanh.f32 %v968_v9  ;;  %v1000_v42 = vrot.slane %v968_v9, 7 }
0x1188   :  { %v1190_v10 = vpop.eup %1189 }
0x1189   :  { %975 = vrot.lane.b32.xlu1 %v1190_v10, %s1221_s17 }
0x1191   :  { %150 = vrot.lane.b32.xlu1 %v1270_v57, %s1220_s1 }
0x1195   :  { %v962_v55 = vpop.permute.xlu0 %961 }
0x1196   :  { %v967_v11 = vadd.f32 %v962_v55, %v947_v61 }
0x1198   :  { %1191 = vtanh.f32 %v967_v11  ;;  %v1001_v59 = vsel %vm166_vm10, %v1000_v42, %v967_v11 }
0x1199   :  { %388 = vrot.lane.b32.xlu1 %v1332_v50, %s1220_s1 }
0x119d   :  { %v149_v3 = vpop.permute.xlu0 %148 }
0x119e   :  { %v1192_v47 = vpop.eup %1191  ;;  %155 = vst.msk [vmem:[#allocation4] sm:$0x1] %vm154_vm14, %v149_v3 }
0x119f   :  { %973 = vrot.lane.b32.xlu2 %v1192_v47, %s1221_s17 }
0x11a1   :  { %509 = vrot.lane.b32.xlu1 %v1365_v45, %s1220_s1 }
0x11a5   :  { %v272_v57 = vpop.permute.xlu0 %271 }
0x11a6   :  { %276 = vst.msk [vmem:[#allocation4 + $0x9] sm:$0x1] %vm154_vm14, %v272_v57 }
0x11a7   :  { %269 = vrot.lane.b32.xlu2 %v1301_v49, %s1220_s1 }
0x11a9   :  { %745 = vrot.lane.b32.xlu1 %v1425_v56, %s1220_s1 }
0x11ad   :  { %v508_v50 = vpop.permute.xlu0 %507 }
0x11ae   :  { %513 = vst.msk [vmem:[#allocation4 + $0x3] sm:$0x1] %vm154_vm14, %v508_v50 }
0x11af   :  { %390 = vrot.lane.b32.xlu2 %v1334_v53, %s1220_s1 }
0x11b1   :  { %866 = vrot.lane.b32.xlu1 %v1458_v8, %s1220_s1 }
0x11b5   :  { %v629_v0 = vpop.permute.xlu0 %628 }
0x11b6   :  { %633 = vst.msk [vmem:[#allocation4 + $0xc] sm:$0x1] %vm154_vm14, %v629_v0 }
0x11b7   :  { %626 = vrot.lane.b32.xlu2 %v1394_v46, %s1220_s1 }
0x11bd   :  { %v865_v45 = vpop.permute.xlu0 %864 }
0x11be   :  { %870 = vst.msk [vmem:[#allocation4 + $0x6] sm:$0x1] %vm154_vm14, %v865_v45 }
0x11bf   :  { %747 = vrot.lane.b32.xlu2 %v1427_v1, %s1220_s1 }
0x11f9   :  { %v974_v49 = vpop.permute.xlu2 %973 }
0x11fa   :  { %v979_v56 = vmul.f32 %v974_v49, %v928_v62 }
0x11fb   :  { %v976_v12 = vpop.permute.xlu1 %975 }
0x11fc   :  { %983 = vrot.lane.b32.xlu2 %v979_v56, %s1220_s1  ;;  %v980_v53 = vmul.f32 %v976_v12, %v943_v5 }
0x11fe   :  { %v991_v13 = vrot.slane %v980_v53, 7  ;;  %985 = vrot.lane.b32.xlu0 %v980_v53, %s1220_s1 }
0x1200   :  { %v992_v14 = vsel %vm166_vm10, %v991_v13, %v979_v56 }
0x1201   :  { %v270_v8 = vpop.permute.xlu2 %269  ;;  %993 = vrot.lane.b32.xlu1 %v992_v14, %s1220_s1  ;;  %s1223_s1 = smov [#allocation4]  }
0x1202   :  { %275 = vst.msk [vmem:[#allocation4 + $0x1] sm:$0x1] %vm154_vm14, %v270_v8  ;;  %s1010_s17 = sshll.u32 %s1223_s1, 4  ;;  %s1011_s17 = int_to_ptr.vmem [resolvable:$true] %s1010_s17 }
0x1203   :  { %v151_v46 = vpop.permute.xlu1 %150 }
0x1204   :  { %1002 = vrot.lane.b32.xlu2 %v1001_v59, %s1222_s0  ;;  %156 = vst.msk [vmem:[#allocation4 + $0x8] sm:$0x1] %vm154_vm14, %v151_v46 }
0x1209   :  { %v391_v1 = vpop.permute.xlu2 %390 }
0x120a   :  { %395 = vst.msk [vmem:[#allocation4 + $0xa] sm:$0x1] %vm154_vm14, %v391_v1 }
0x120b   :  { %v389_v15 = vpop.permute.xlu1 %388 }
0x120c   :  { %394 = vst.msk [vmem:[#allocation4 + $0x2] sm:$0x1] %vm154_vm14, %v389_v15 }
0x1211   :  { %v627_v16 = vpop.permute.xlu2 %626 }
0x1212   :  { %632 = vst.msk [vmem:[#allocation4 + $0x4] sm:$0x1] %vm154_vm14, %v627_v16 }
0x1213   :  { %v510_v17 = vpop.permute.xlu1 %509 }
0x1214   :  { %514 = vst.msk [vmem:[#allocation4 + $0xb] sm:$0x1] %vm154_vm14, %v510_v17 }
0x1219   :  { %v748_v18 = vpop.permute.xlu2 %747 }
0x121a   :  { %752 = vst.msk [vmem:[#allocation4 + $0xd] sm:$0x1] %vm154_vm14, %v748_v18 }
0x121b   :  { %v746_v19 = vpop.permute.xlu1 %745 }
0x121c   :  { %751 = vst.msk [vmem:[#allocation4 + $0x5] sm:$0x1] %vm154_vm14, %v746_v19 }
0x1223   :  { %v867_v20 = vpop.permute.xlu1 %866 }
0x1224   :  { %871 = vst.msk [vmem:[#allocation4 + $0xe] sm:$0x1] %vm154_vm14, %v867_v20 }
0x1256   :  { %v984_v21 = vpop.permute.xlu2 %983 }
0x1257   :  { %989 = vst.msk [vmem:[#allocation4 + $0x7] sm:$0x1] %vm154_vm14, %v984_v21 }
0x125e   :  { %v1003_v22 = vpop.permute.xlu2 %1002 }
0x125f   :  { %1005 = vst.msk [vmem:[#allocation3] sm:$0x3] %vm17_vm0, %v1003_v22 }
0x1270   :  { %v986_v23 = vpop.permute.xlu0 %985 }
0x1271   :  { %990 = vst.msk [vmem:[#allocation4 + $0xf] sm:$0x1] %vm154_vm14, %v986_v23 }
0x1272   :  { %1018 = dma.vmem_to_hbm [thread:$0]  %s1011_s17, 256, %s1013_s21, [#allocation5], %s1224_s22, %s1224_s22, %s1225_s23  }
0x1273   :  { %v994_v24 = vpop.permute.xlu1 %993 }
0x1274   :  { %997 = vst.msk [vmem:[#allocation2] sm:$0x3] %vm17_vm0, %v994_v24 }
0x1275   :  { %1217 = dma.done.wait [#allocation5], 256  }
0x1276   :  { %1218 = vsyncadd [#allocation5], 4294967040 }
0x1277   :  { %1023 = vsyncpa [#allocation5], 1 }

</bundles_post_ra>
